<compile_context>
chip_gen: v6e
topology: v6e:2x2x1
jax: 0.10.0
libtpu: 0.0.40
codegen_flags: <defaults>
</compile_context>

<pallas_src>
import functools

import jax
import jax.numpy as jnp
from jax.experimental import pallas as pl
from jax.experimental.pallas import tpu as pltpu

_EPS = 1e-5
_VMEM_LIMIT = 48 * 1024 * 1024  # explicit scoped-VMEM budget (fits v5e/v6e/v7x)


def _bn_fold(h, gamma, beta, inv_p):
    """Training-mode BN folded into one scale/shift, one-pass statistics."""
    s = jnp.sum(h, axis=0, keepdims=True)
    ss = jnp.sum(h * h, axis=0, keepdims=True)
    mean = s * inv_p
    var = ss * inv_p - mean * mean
    scale = gamma * jax.lax.rsqrt(var + _EPS)
    shift = beta - mean * scale
    return h * scale + shift


def _bottleneck_kernel(N, H, W, C0, C1, C2, has_proj,
                       x_ref, w1_ref, g1_ref, be1_ref,
                       w2_ref, g2_ref, be2_ref,
                       w3_ref, g3_ref, be3_ref,
                       *rest):
    if has_proj:
        wsc_ref, gsc_ref, besc_ref, o_ref, pad_ref, col_ref = rest
    else:
        o_ref, pad_ref, col_ref = rest

    P = N * H * W
    inv_p = 1.0 / P
    x = x_ref[...]                                                   # (P, Cin)

    # ---- conv1 (1x1) + BN + ReLU  (conv bias omitted: cancels in train-mode BN) ----
    h1 = jnp.dot(x, w1_ref[...], preferred_element_type=jnp.float32)
    h1 = jnp.maximum(_bn_fold(h1, g1_ref[...], be1_ref[...], inv_p), 0.0)  # (P, C0)

    # ---- conv2 (3x3, pad=1) as ONE im2col matmul ----
    # Write conv1's result directly into the padded scratch interior; zero only the halo.
    pad_ref[:, 1:H + 1, 1:W + 1, :] = h1.reshape(N, H, W, C0)
    zrow = jnp.zeros((N, 1, W + 2, C0), jnp.float32)
    pad_ref[:, 0:1, :, :] = zrow
    pad_ref[:, H + 1:H + 2, :, :] = zrow
    zcol = jnp.zeros((N, H, 1, C0), jnp.float32)
    pad_ref[:, 1:H + 1, 0:1, :] = zcol
    pad_ref[:, 1:H + 1, W + 1:W + 2, :] = zcol

    # Build (P, 9*C0) im2col buffer: 9 lane-offset (multiples of 128) stores.
    t = 0
    for dy in range(3):
        for dx in range(3):
            col_ref[:, t * C0:(t + 1) * C0] = (
                pad_ref[:, dy:dy + H, dx:dx + W, :].reshape(P, C0))
            t += 1
    h2 = jnp.dot(col_ref[...], w2_ref[...], preferred_element_type=jnp.float32)
    h2 = jnp.maximum(_bn_fold(h2, g2_ref[...], be2_ref[...], inv_p), 0.0)  # (P, C1)

    # ---- conv3 (1x1) + BN ----
    h3 = _bn_fold(jnp.dot(h2, w3_ref[...], preferred_element_type=jnp.float32),
                  g3_ref[...], be3_ref[...], inv_p)                        # (P, C2)

    # ---- shortcut ----
    if has_proj:
        sc = _bn_fold(jnp.dot(x, wsc_ref[...], preferred_element_type=jnp.float32),
                      gsc_ref[...], besc_ref[...], inv_p)
    else:
        sc = x                                                             # identity (Cin == C2)

    # ---- residual add + final ReLU (lane-dense (P, C2) store, C2 % 128 == 0) ----
    o_ref[...] = jnp.maximum(h3 + sc, 0.0).astype(o_ref.dtype)


def _head_kernel(x_ref, wc_ref, bc_ref, wr1_ref, br1_ref, wr2_ref, br2_ref,
                 cls_ref, reg_ref):
    # x_ref: (N, H*W, C2).  AvgPool2d(7) on a 7x7 map == global spatial mean.
    feat = jnp.mean(x_ref[...], axis=1)                                    # (N, C2)

    # classify: Linear + Softmax(dim=1)
    logits = jnp.dot(feat, wc_ref[...], preferred_element_type=jnp.float32) + bc_ref[...]
    m = jnp.max(logits, axis=-1, keepdims=True)
    e = jnp.exp(logits - m)
    cls_ref[...] = (e / jnp.sum(e, axis=-1, keepdims=True)).astype(cls_ref.dtype)

    # regress: Linear + ReLU + Linear
    hr = jnp.maximum(
        jnp.dot(feat, wr1_ref[...], preferred_element_type=jnp.float32) + br1_ref[...], 0.0)
    reg_ref[...] = (jnp.dot(hr, wr2_ref[...], preferred_element_type=jnp.float32)
                    + br2_ref[...]).astype(reg_ref.dtype)


def _bottleneck_block(x_flat, N, H, W, p, has_proj):
    P, _ = x_flat.shape
    C0 = p["conv1"]["w"].shape[1]
    C1 = p["conv2"]["w"].shape[3]
    C2 = p["conv3"]["w"].shape[1]
    w2_mat = p["conv2"]["w"].reshape(9 * C0, C1)          # HWIO -> (9*C0, C1) for im2col

    def row(v):
        return v.reshape(1, -1)

    args = [x_flat,
            p["conv1"]["w"], row(p["conv1"]["g"]), row(p["conv1"]["be"]),
            w2_mat,          row(p["conv2"]["g"]), row(p["conv2"]["be"]),
            p["conv3"]["w"], row(p["conv3"]["g"]), row(p["conv3"]["be"])]
    if has_proj:
        args += [p["sc"]["w"], row(p["sc"]["g"]), row(p["sc"]["be"])]

    kernel = functools.partial(_bottleneck_kernel, N, H, W, C0, C1, C2, has_proj)
    vmem = pl.BlockSpec(memory_space=pltpu.MemorySpace.VMEM)
    return pl.pallas_call(
        kernel,
        out_shape=jax.ShapeDtypeStruct((P, C2), jnp.float32),
        in_specs=[vmem] * len(args),
        out_specs=vmem,
        scratch_shapes=[pltpu.VMEM((N, H + 2, W + 2, C0), jnp.float32),   # padded conv1 output
                        pltpu.VMEM((P, 9 * C0), jnp.float32)],            # im2col buffer
        compiler_params=pltpu.CompilerParams(vmem_limit_bytes=_VMEM_LIMIT),
    )(*args)


def _heads(feat_seq, p, num_class):
    N, HW, C2 = feat_seq.shape
    args = [feat_seq,
            p["wc"], p["bc"].reshape(1, -1),
            p["wr1"], p["br1"].reshape(1, -1),
            p["wr2"], p["br2"].reshape(1, -1)]
    vmem = pl.BlockSpec(memory_space=pltpu.MemorySpace.VMEM)
    return pl.pallas_call(
        _head_kernel,
        out_shape=(jax.ShapeDtypeStruct((N, num_class + 1), jnp.float32),
                   jax.ShapeDtypeStruct((N, 4 * num_class), jnp.float32)),
        in_specs=[vmem] * len(args),
        out_specs=(vmem, vmem),
        compiler_params=pltpu.CompilerParams(vmem_limit_bytes=_VMEM_LIMIT),
    )(*args)


def detector_forward(x_nchw, params, num_class):
    """Full Detector.forward (minus the host-side print statements)."""
    N, F, Hin, Win = x_nchw.shape
    x = jnp.transpose(x_nchw, (0, 2, 3, 1))         # NHWC: channels on the lane axis
    x = x[:, ::2, ::2, :]                           # stride-2 1x1 sampling (main + shortcut)
    Ho, Wo = x.shape[1], x.shape[2]
    assert Ho == 7 and Wo == 7, "Detector expects a 7x7 map before AvgPool2d(7)"

    h = _bottleneck_block(x.reshape(N * Ho * Wo, F), N, Ho, Wo,
                          params["conv_block"], has_proj=True)
    h = _bottleneck_block(h, N, Ho, Wo, params["id1"], has_proj=False)
    h = _bottleneck_block(h, N, Ho, Wo, params["id2"], has_proj=False)

    c2 = h.shape[-1]
    return _heads(h.reshape(N, Ho * Wo, c2), params["head"], num_class)


# ---------------------------------------------------------------------------
# Pure-JAX reference (same semantics as the PyTorch module in train mode).
# NOTE: the reference DOES add the conv biases; the kernel omits them — they
# cancel exactly in training-mode BN, which the allclose check verifies.
# ---------------------------------------------------------------------------
def _ref_detector(x_nchw, params, num_class):
    x = jnp.transpose(x_nchw, (0, 2, 3, 1))
    dn = ("NHWC", "HWIO", "NHWC")
    hi = jax.lax.Precision.HIGHEST

    def bn(h, g, b):
        m = jnp.mean(h, axis=(0, 1, 2), keepdims=True)
        v = jnp.mean((h - m) ** 2, axis=(0, 1, 2), keepdims=True)
        return (h - m) * jax.lax.rsqrt(v + _EPS) * g + b

    def conv1x1(h, w, b, stride=1):
        cin, cout = w.shape
        return jax.lax.conv_general_dilated(
            h, w.reshape(1, 1, cin, cout), (stride, stride), "VALID",
            dimension_numbers=dn, precision=hi) + b

    def conv3x3(h, w, b):
        return jax.lax.conv_general_dilated(
            h, w, (1, 1), "SAME", dimension_numbers=dn, precision=hi) + b

    def block(h, p, stride, proj):
        y = jax.nn.relu(bn(conv1x1(h, p["conv1"]["w"], p["conv1"]["b"], stride),
                           p["conv1"]["g"], p["conv1"]["be"]))
        y = jax.nn.relu(bn(conv3x3(y, p["conv2"]["w"], p["conv2"]["b"]),
                           p["conv2"]["g"], p["conv2"]["be"]))
        y = bn(conv1x1(y, p["conv3"]["w"], p["conv3"]["b"]),
               p["conv3"]["g"], p["conv3"]["be"])
        if proj:
            s = bn(conv1x1(h, p["sc"]["w"], p["sc"]["b"], stride),
                   p["sc"]["g"], p["sc"]["be"])
        else:
            s = h
        return jax.nn.relu(y + s)

    h = block(x, params["conv_block"], 2, True)
    h = block(h, params["id1"], 1, False)
    h = block(h, params["id2"], 1, False)
    feat = jnp.mean(h, axis=(1, 2))                         # AvgPool2d(7) on 7x7 + flatten
    ph = params["head"]
    cls = jax.nn.softmax(jnp.dot(feat, ph["wc"], precision=hi) + ph["bc"], axis=1)
    reg = jnp.dot(jax.nn.relu(jnp.dot(feat, ph["wr1"], precision=hi) + ph["br1"]),
                  ph["wr2"], precision=hi) + ph["br2"]
    return cls, reg


# ---------------------------------------------------------------------------
# Parameter construction
# ---------------------------------------------------------------------------
def _conv_bn_params(key, cin, cout, ksize=1):
    kw, kb, kg, kbe = jax.random.split(key, 4)
    f32 = jnp.float32
    if ksize == 1:
        w = 0.1 * jax.random.normal(kw, (cin, cout), f32)
    else:
        w = 0.1 * jax.random.normal(kw, (ksize, ksize, cin, cout), f32)   # HWIO
    return {"w": w,
            "b": 0.1 * jax.random.normal(kb, (cout,), f32),               # reference only
            "g": 1.0 + 0.1 * jax.random.normal(kg, (cout,), f32),
            "be": 0.1 * jax.random.normal(kbe, (cout,), f32)}


def _block_params(key, cin, channels, proj):
    c0, c1, c2 = channels
    ks = jax.random.split(key, 4)
    p = {"conv1": _conv_bn_params(ks[0], cin, c0, 1),
         "conv2": _conv_bn_params(ks[1], c0, c1, 3),
         "conv3": _conv_bn_params(ks[2], c1, c2, 1)}
    if proj:
        p["sc"] = _conv_bn_params(ks[3], cin, c2, 1)
    return p


def _head_params(key, c2, num_class, reg_hidden):
    ks = jax.random.split(key, 6)
    f32 = jnp.float32
    return {"wc": 0.1 * jax.random.normal(ks[0], (c2, num_class + 1), f32),
            "bc": 0.1 * jax.random.normal(ks[1], (num_class + 1,), f32),
            "wr1": 0.1 * jax.random.normal(ks[2], (c2, reg_hidden), f32),
            "br1": 0.1 * jax.random.normal(ks[3], (reg_hidden,), f32),
            "wr2": 0.1 * jax.random.normal(ks[4], (reg_hidden, 4 * num_class), f32),
            "br2": 0.1 * jax.random.normal(ks[5], (4 * num_class,), f32)}


if __name__ == "__main__":
    # Scaled-down Detector: feature_channel 1024->128, channels [512,512,2048]->[128,128,256],
    # regress hidden 1024->128 (all multiples of 128 so every slab is lane-dense).
    N = 2
    FEATURE_CHANNEL = 128
    CHANNELS = (128, 128, 256)
    REG_HIDDEN = 128
    NUM_CLASS = 3
    HIN = WIN = 14        # ConBlock stride 2 -> 7x7 -> AvgPool2d(7) -> 1x1 (as in the module)

    key = jax.random.PRNGKey(0)
    k_x, k_cb, k_i1, k_i2, k_hd = jax.random.split(key, 5)
    params = {
        "conv_block": _block_params(k_cb, FEATURE_CHANNEL, CHANNELS, proj=True),
        "id1": _block_params(k_i1, CHANNELS[2], CHANNELS, proj=False),
        "id2": _block_params(k_i2, CHANNELS[2], CHANNELS, proj=False),
        "head": _head_params(k_hd, CHANNELS[2], NUM_CLASS, REG_HIDDEN),
    }
    x = jax.random.normal(k_x, (N, FEATURE_CHANNEL, HIN, WIN), jnp.float32)

    cls, reg = detector_forward(x, params, NUM_CLASS)
    cls.block_until_ready()
    reg.block_until_ready()

    cls_ref, reg_ref = _ref_detector(x, params, NUM_CLASS)
    cls_ref.block_until_ready()
    reg_ref.block_until_ready()

    assert cls.shape == (N, NUM_CLASS + 1) and cls.dtype == jnp.float32
    assert reg.shape == (N, 4 * NUM_CLASS) and reg.dtype == jnp.float32
    assert jnp.allclose(cls, cls_ref, atol=1e-2, rtol=1e-2), (
        f"classify max abs diff {float(jnp.max(jnp.abs(cls - cls_ref)))}")
    assert jnp.allclose(reg, reg_ref, atol=1e-2, rtol=1e-2), (
        f"regress max abs diff {float(jnp.max(jnp.abs(reg - reg_ref)))}")
    print("KERNEL_OK")
</pallas_src>

<mosaic_0001>
module attributes {stable_mosaic.version = 11 : i64} {
  func.func @_bottleneck_kernel(%arg0: memref<98x128xf32, #tpu.memory_space<vmem>>, %arg1: memref<128x128xf32, #tpu.memory_space<vmem>>, %arg2: memref<1x128xf32, #tpu.memory_space<vmem>>, %arg3: memref<1x128xf32, #tpu.memory_space<vmem>>, %arg4: memref<1152x128xf32, #tpu.memory_space<vmem>>, %arg5: memref<1x128xf32, #tpu.memory_space<vmem>>, %arg6: memref<1x128xf32, #tpu.memory_space<vmem>>, %arg7: memref<128x256xf32, #tpu.memory_space<vmem>>, %arg8: memref<1x256xf32, #tpu.memory_space<vmem>>, %arg9: memref<1x256xf32, #tpu.memory_space<vmem>>, %arg10: memref<128x256xf32, #tpu.memory_space<vmem>>, %arg11: memref<1x256xf32, #tpu.memory_space<vmem>>, %arg12: memref<1x256xf32, #tpu.memory_space<vmem>>, %arg13: memref<98x256xf32, #tpu.memory_space<vmem>>, %arg14: memref<2x9x9x128xf32, #tpu.memory_space<vmem>>, %arg15: memref<98x1152xf32, #tpu.memory_space<vmem>>) attributes {dimension_semantics = [], scalar_prefetch = 0 : i64, scratch_operands = 2 : i64, tpu.core_type = #tpu.core_type<tc>} {
    %c0 = arith.constant 0 : index
    %c0_0 = arith.constant 0 : index
    %0 = vector.load %arg0[%c0, %c0_0] : memref<98x128xf32, #tpu.memory_space<vmem>>, vector<98x128xf32>
    %c0_1 = arith.constant 0 : index
    %c0_2 = arith.constant 0 : index
    %1 = vector.load %arg1[%c0_1, %c0_2] : memref<128x128xf32, #tpu.memory_space<vmem>>, vector<128x128xf32>
    %cst = arith.constant dense<0.000000e+00> : vector<98x128xf32>
    %2 = tpu.matmul %0, %1, %cst {dimension_numbers = #tpu.dot_dimension_numbers<[1], [0], [0], [1], [0, 0, 1, 1], [], []>} : vector<98x128xf32>, vector<128x128xf32>, vector<98x128xf32> -> vector<98x128xf32>
    %c0_3 = arith.constant 0 : index
    %c0_4 = arith.constant 0 : index
    %3 = vector.load %arg2[%c0_3, %c0_4] : memref<1x128xf32, #tpu.memory_space<vmem>>, vector<1x128xf32>
    %c0_5 = arith.constant 0 : index
    %c0_6 = arith.constant 0 : index
    %4 = vector.load %arg3[%c0_5, %c0_6] : memref<1x128xf32, #tpu.memory_space<vmem>>, vector<1x128xf32>
    %cst_7 = arith.constant dense<0.000000e+00> : vector<128xf32>
    %5 = vector.multi_reduction <add>, %2, %cst_7 [0] : vector<98x128xf32> to vector<128xf32>
    %6 = vector.shape_cast %5 : vector<128xf32> to vector<1x128xf32>
    %7 = arith.mulf %2, %2 : vector<98x128xf32>
    %cst_8 = arith.constant dense<0.000000e+00> : vector<128xf32>
    %8 = vector.multi_reduction <add>, %7, %cst_8 [0] : vector<98x128xf32> to vector<128xf32>
    %9 = vector.shape_cast %8 : vector<128xf32> to vector<1x128xf32>
    %cst_9 = arith.constant 0.0102040814 : f32
    %10 = vector.broadcast %cst_9 : f32 to vector<1x128xf32>
    %11 = arith.mulf %6, %10 : vector<1x128xf32>
    %cst_10 = arith.constant 0.0102040814 : f32
    %12 = vector.broadcast %cst_10 : f32 to vector<1x128xf32>
    %13 = arith.mulf %9, %12 : vector<1x128xf32>
    %14 = arith.mulf %11, %11 : vector<1x128xf32>
    %15 = arith.subf %13, %14 : vector<1x128xf32>
    %cst_11 = arith.constant 9.99999974E-6 : f32
    %16 = vector.broadcast %cst_11 : f32 to vector<1x128xf32>
    %17 = arith.addf %15, %16 : vector<1x128xf32>
    %18 = math.rsqrt %17 : vector<1x128xf32>
    %19 = arith.mulf %3, %18 : vector<1x128xf32>
    %20 = arith.mulf %11, %19 : vector<1x128xf32>
    %21 = arith.subf %4, %20 : vector<1x128xf32>
    %22 = vector.broadcast %19 : vector<1x128xf32> to vector<98x128xf32>
    %23 = arith.mulf %2, %22 : vector<98x128xf32>
    %24 = vector.broadcast %21 : vector<1x128xf32> to vector<98x128xf32>
    %25 = arith.addf %23, %24 : vector<98x128xf32>
    %cst_12 = arith.constant 0.000000e+00 : f32
    %26 = vector.broadcast %cst_12 : f32 to vector<98x128xf32>
    %27 = arith.maximumf %25, %26 : vector<98x128xf32>
    %28 = vector.shape_cast %27 : vector<98x128xf32> to vector<2x7x7x128xf32>
    %c0_13 = arith.constant 0 : index
    %c1 = arith.constant 1 : index
    %c1_14 = arith.constant 1 : index
    %c0_15 = arith.constant 0 : index
    %29 = vector.load %arg14[%c0_13, %c1, %c1_14, %c0_15] : memref<2x9x9x128xf32, #tpu.memory_space<vmem>>, vector<2x7x7x128xf32>
    tpu.vector_store %arg14[%c0_13, %c1, %c1_14, %c0_15], %28 {strides = array<i32>} : memref<2x9x9x128xf32, #tpu.memory_space<vmem>>, vector<2x7x7x128xf32>,
    %cst_16 = arith.constant 0.000000e+00 : f32
    %30 = vector.broadcast %cst_16 : f32 to vector<2x1x9x128xf32>
    %c0_17 = arith.constant 0 : index
    %c0_18 = arith.constant 0 : index
    %c0_19 = arith.constant 0 : index
    %c0_20 = arith.constant 0 : index
    %31 = vector.load %arg14[%c0_17, %c0_18, %c0_19, %c0_20] : memref<2x9x9x128xf32, #tpu.memory_space<vmem>>, vector<2x1x9x128xf32>
    tpu.vector_store %arg14[%c0_17, %c0_18, %c0_19, %c0_20], %30 {strides = array<i32>} : memref<2x9x9x128xf32, #tpu.memory_space<vmem>>, vector<2x1x9x128xf32>,
    %c0_21 = arith.constant 0 : index
    %c8 = arith.constant 8 : index
    %c0_22 = arith.constant 0 : index
    %c0_23 = arith.constant 0 : index
    %32 = vector.load %arg14[%c0_21, %c8, %c0_22, %c0_23] : memref<2x9x9x128xf32, #tpu.memory_space<vmem>>, vector<2x1x9x128xf32>
    tpu.vector_store %arg14[%c0_21, %c8, %c0_22, %c0_23], %30 {strides = array<i32>} : memref<2x9x9x128xf32, #tpu.memory_space<vmem>>, vector<2x1x9x128xf32>,
    %cst_24 = arith.constant 0.000000e+00 : f32
    %33 = vector.broadcast %cst_24 : f32 to vector<2x7x1x128xf32>
    %c0_25 = arith.constant 0 : index
    %c1_26 = arith.constant 1 : index
    %c0_27 = arith.constant 0 : index
    %c0_28 = arith.constant 0 : index
    %34 = vector.load %arg14[%c0_25, %c1_26, %c0_27, %c0_28] : memref<2x9x9x128xf32, #tpu.memory_space<vmem>>, vector<2x7x1x128xf32>
    tpu.vector_store %arg14[%c0_25, %c1_26, %c0_27, %c0_28], %33 {strides = array<i32>} : memref<2x9x9x128xf32, #tpu.memory_space<vmem>>, vector<2x7x1x128xf32>,
    %c0_29 = arith.constant 0 : index
    %c1_30 = arith.constant 1 : index
    %c8_31 = arith.constant 8 : index
    %c0_32 = arith.constant 0 : index
    %35 = vector.load %arg14[%c0_29, %c1_30, %c8_31, %c0_32] : memref<2x9x9x128xf32, #tpu.memory_space<vmem>>, vector<2x7x1x128xf32>
    tpu.vector_store %arg14[%c0_29, %c1_30, %c8_31, %c0_32], %33 {strides = array<i32>} : memref<2x9x9x128xf32, #tpu.memory_space<vmem>>, vector<2x7x1x128xf32>,
    %c0_33 = arith.constant 0 : index
    %c0_34 = arith.constant 0 : index
    %c0_35 = arith.constant 0 : index
    %c0_36 = arith.constant 0 : index
    %36 = vector.load %arg14[%c0_33, %c0_34, %c0_35, %c0_36] : memref<2x9x9x128xf32, #tpu.memory_space<vmem>>, vector<2x7x7x128xf32>
    %37 = vector.shape_cast %36 : vector<2x7x7x128xf32> to vector<98x128xf32>
    %c0_37 = arith.constant 0 : index
    %c0_38 = arith.constant 0 : index
    %38 = vector.load %arg15[%c0_37, %c0_38] : memref<98x1152xf32, #tpu.memory_space<vmem>>, vector<98x128xf32>
    tpu.vector_store %arg15[%c0_37, %c0_38], %37 {strides = array<i32>} : memref<98x1152xf32, #tpu.memory_space<vmem>>, vector<98x128xf32>,
    %c0_39 = arith.constant 0 : index
    %c0_40 = arith.constant 0 : index
    %c1_41 = arith.constant 1 : index
    %c0_42 = arith.constant 0 : index
    %39 = vector.load %arg14[%c0_39, %c0_40, %c1_41, %c0_42] : memref<2x9x9x128xf32, #tpu.memory_space<vmem>>, vector<2x7x7x128xf32>
    %40 = vector.shape_cast %39 : vector<2x7x7x128xf32> to vector<98x128xf32>
    %c0_43 = arith.constant 0 : index
    %c128 = arith.constant 128 : index
    %41 = vector.load %arg15[%c0_43, %c128] : memref<98x1152xf32, #tpu.memory_space<vmem>>, vector<98x128xf32>
    tpu.vector_store %arg15[%c0_43, %c128], %40 {strides = array<i32>} : memref<98x1152xf32, #tpu.memory_space<vmem>>, vector<98x128xf32>,
    %c0_44 = arith.constant 0 : index
    %c0_45 = arith.constant 0 : index
    %c2 = arith.constant 2 : index
    %c0_46 = arith.constant 0 : index
    %42 = vector.load %arg14[%c0_44, %c0_45, %c2, %c0_46] : memref<2x9x9x128xf32, #tpu.memory_space<vmem>>, vector<2x7x7x128xf32>
    %43 = vector.shape_cast %42 : vector<2x7x7x128xf32> to vector<98x128xf32>
    %c0_47 = arith.constant 0 : index
    %c256 = arith.constant 256 : index
    %44 = vector.load %arg15[%c0_47, %c256] : memref<98x1152xf32, #tpu.memory_space<vmem>>, vector<98x128xf32>
    tpu.vector_store %arg15[%c0_47, %c256], %43 {strides = array<i32>} : memref<98x1152xf32, #tpu.memory_space<vmem>>, vector<98x128xf32>,
    %c0_48 = arith.constant 0 : index
    %c1_49 = arith.constant 1 : index
    %c0_50 = arith.constant 0 : index
    %c0_51 = arith.constant 0 : index
    %45 = vector.load %arg14[%c0_48, %c1_49, %c0_50, %c0_51] : memref<2x9x9x128xf32, #tpu.memory_space<vmem>>, vector<2x7x7x128xf32>
    %46 = vector.shape_cast %45 : vector<2x7x7x128xf32> to vector<98x128xf32>
    %c0_52 = arith.constant 0 : index
    %c384 = arith.constant 384 : index
    %47 = vector.load %arg15[%c0_52, %c384] : memref<98x1152xf32, #tpu.memory_space<vmem>>, vector<98x128xf32>
    tpu.vector_store %arg15[%c0_52, %c384], %46 {strides = array<i32>} : memref<98x1152xf32, #tpu.memory_space<vmem>>, vector<98x128xf32>,
    %c0_53 = arith.constant 0 : index
    %c1_54 = arith.constant 1 : index
    %c1_55 = arith.constant 1 : index
    %c0_56 = arith.constant 0 : index
    %48 = vector.load %arg14[%c0_53, %c1_54, %c1_55, %c0_56] : memref<2x9x9x128xf32, #tpu.memory_space<vmem>>, vector<2x7x7x128xf32>
    %49 = vector.shape_cast %48 : vector<2x7x7x128xf32> to vector<98x128xf32>
    %c0_57 = arith.constant 0 : index
    %c512 = arith.constant 512 : index
    %50 = vector.load %arg15[%c0_57, %c512] : memref<98x1152xf32, #tpu.memory_space<vmem>>, vector<98x128xf32>
    tpu.vector_store %arg15[%c0_57, %c512], %49 {strides = array<i32>} : memref<98x1152xf32, #tpu.memory_space<vmem>>, vector<98x128xf32>,
    %c0_58 = arith.constant 0 : index
    %c1_59 = arith.constant 1 : index
    %c2_60 = arith.constant 2 : index
    %c0_61 = arith.constant 0 : index
    %51 = vector.load %arg14[%c0_58, %c1_59, %c2_60, %c0_61] : memref<2x9x9x128xf32, #tpu.memory_space<vmem>>, vector<2x7x7x128xf32>
    %52 = vector.shape_cast %51 : vector<2x7x7x128xf32> to vector<98x128xf32>
    %c0_62 = arith.constant 0 : index
    %c640 = arith.constant 640 : index
    %53 = vector.load %arg15[%c0_62, %c640] : memref<98x1152xf32, #tpu.memory_space<vmem>>, vector<98x128xf32>
    tpu.vector_store %arg15[%c0_62, %c640], %52 {strides = array<i32>} : memref<98x1152xf32, #tpu.memory_space<vmem>>, vector<98x128xf32>,
    %c0_63 = arith.constant 0 : index
    %c2_64 = arith.constant 2 : index
    %c0_65 = arith.constant 0 : index
    %c0_66 = arith.constant 0 : index
    %54 = vector.load %arg14[%c0_63, %c2_64, %c0_65, %c0_66] : memref<2x9x9x128xf32, #tpu.memory_space<vmem>>, vector<2x7x7x128xf32>
    %55 = vector.shape_cast %54 : vector<2x7x7x128xf32> to vector<98x128xf32>
    %c0_67 = arith.constant 0 : index
    %c768 = arith.constant 768 : index
    %56 = vector.load %arg15[%c0_67, %c768] : memref<98x1152xf32, #tpu.memory_space<vmem>>, vector<98x128xf32>
    tpu.vector_store %arg15[%c0_67, %c768], %55 {strides = array<i32>} : memref<98x1152xf32, #tpu.memory_space<vmem>>, vector<98x128xf32>,
    %c0_68 = arith.constant 0 : index
    %c2_69 = arith.constant 2 : index
    %c1_70 = arith.constant 1 : index
    %c0_71 = arith.constant 0 : index
    %57 = vector.load %arg14[%c0_68, %c2_69, %c1_70, %c0_71] : memref<2x9x9x128xf32, #tpu.memory_space<vmem>>, vector<2x7x7x128xf32>
    %58 = vector.shape_cast %57 : vector<2x7x7x128xf32> to vector<98x128xf32>
    %c0_72 = arith.constant 0 : index
    %c896 = arith.constant 896 : index
    %59 = vector.load %arg15[%c0_72, %c896] : memref<98x1152xf32, #tpu.memory_space<vmem>>, vector<98x128xf32>
    tpu.vector_store %arg15[%c0_72, %c896], %58 {strides = array<i32>} : memref<98x1152xf32, #tpu.memory_space<vmem>>, vector<98x128xf32>,
    %c0_73 = arith.constant 0 : index
    %c2_74 = arith.constant 2 : index
    %c2_75 = arith.constant 2 : index
    %c0_76 = arith.constant 0 : index
    %60 = vector.load %arg14[%c0_73, %c2_74, %c2_75, %c0_76] : memref<2x9x9x128xf32, #tpu.memory_space<vmem>>, vector<2x7x7x128xf32>
    %61 = vector.shape_cast %60 : vector<2x7x7x128xf32> to vector<98x128xf32>
    %c0_77 = arith.constant 0 : index
    %c1024 = arith.constant 1024 : index
    %62 = vector.load %arg15[%c0_77, %c1024] : memref<98x1152xf32, #tpu.memory_space<vmem>>, vector<98x128xf32>
    tpu.vector_store %arg15[%c0_77, %c1024], %61 {strides = array<i32>} : memref<98x1152xf32, #tpu.memory_space<vmem>>, vector<98x128xf32>,
    %c0_78 = arith.constant 0 : index
    %c0_79 = arith.constant 0 : index
    %63 = vector.load %arg15[%c0_78, %c0_79] : memref<98x1152xf32, #tpu.memory_space<vmem>>, vector<98x1152xf32>
    %c0_80 = arith.constant 0 : index
    %c0_81 = arith.constant 0 : index
    %64 = vector.load %arg4[%c0_80, %c0_81] : memref<1152x128xf32, #tpu.memory_space<vmem>>, vector<1152x128xf32>
    %cst_82 = arith.constant dense<0.000000e+00> : vector<98x128xf32>
    %65 = tpu.matmul %63, %64, %cst_82 {dimension_numbers = #tpu.dot_dimension_numbers<[1], [0], [0], [1], [0, 0, 1, 1], [], []>} : vector<98x1152xf32>, vector<1152x128xf32>, vector<98x128xf32> -> vector<98x128xf32>
    %c0_83 = arith.constant 0 : index
    %c0_84 = arith.constant 0 : index
    %66 = vector.load %arg5[%c0_83, %c0_84] : memref<1x128xf32, #tpu.memory_space<vmem>>, vector<1x128xf32>
    %c0_85 = arith.constant 0 : index
    %c0_86 = arith.constant 0 : index
    %67 = vector.load %arg6[%c0_85, %c0_86] : memref<1x128xf32, #tpu.memory_space<vmem>>, vector<1x128xf32>
    %cst_87 = arith.constant dense<0.000000e+00> : vector<128xf32>
    %68 = vector.multi_reduction <add>, %65, %cst_87 [0] : vector<98x128xf32> to vector<128xf32>
    %69 = vector.shape_cast %68 : vector<128xf32> to vector<1x128xf32>
    %70 = arith.mulf %65, %65 : vector<98x128xf32>
    %cst_88 = arith.constant dense<0.000000e+00> : vector<128xf32>
    %71 = vector.multi_reduction <add>, %70, %cst_88 [0] : vector<98x128xf32> to vector<128xf32>
    %72 = vector.shape_cast %71 : vector<128xf32> to vector<1x128xf32>
    %cst_89 = arith.constant 0.0102040814 : f32
    %73 = vector.broadcast %cst_89 : f32 to vector<1x128xf32>
    %74 = arith.mulf %69, %73 : vector<1x128xf32>
    %cst_90 = arith.constant 0.0102040814 : f32
    %75 = vector.broadcast %cst_90 : f32 to vector<1x128xf32>
    %76 = arith.mulf %72, %75 : vector<1x128xf32>
    %77 = arith.mulf %74, %74 : vector<1x128xf32>
    %78 = arith.subf %76, %77 : vector<1x128xf32>
    %cst_91 = arith.constant 9.99999974E-6 : f32
    %79 = vector.broadcast %cst_91 : f32 to vector<1x128xf32>
    %80 = arith.addf %78, %79 : vector<1x128xf32>
    %81 = math.rsqrt %80 : vector<1x128xf32>
    %82 = arith.mulf %66, %81 : vector<1x128xf32>
    %83 = arith.mulf %74, %82 : vector<1x128xf32>
    %84 = arith.subf %67, %83 : vector<1x128xf32>
    %85 = vector.broadcast %82 : vector<1x128xf32> to vector<98x128xf32>
    %86 = arith.mulf %65, %85 : vector<98x128xf32>
    %87 = vector.broadcast %84 : vector<1x128xf32> to vector<98x128xf32>
    %88 = arith.addf %86, %87 : vector<98x128xf32>
    %cst_92 = arith.constant 0.000000e+00 : f32
    %89 = vector.broadcast %cst_92 : f32 to vector<98x128xf32>
    %90 = arith.maximumf %88, %89 : vector<98x128xf32>
    %c0_93 = arith.constant 0 : index
    %c0_94 = arith.constant 0 : index
    %91 = vector.load %arg7[%c0_93, %c0_94] : memref<128x256xf32, #tpu.memory_space<vmem>>, vector<128x256xf32>
    %cst_95 = arith.constant dense<0.000000e+00> : vector<98x256xf32>
    %92 = tpu.matmul %90, %91, %cst_95 {dimension_numbers = #tpu.dot_dimension_numbers<[1], [0], [0], [1], [0, 0, 1, 1], [], []>} : vector<98x128xf32>, vector<128x256xf32>, vector<98x256xf32> -> vector<98x256xf32>
    %c0_96 = arith.constant 0 : index
    %c0_97 = arith.constant 0 : index
    %93 = vector.load %arg8[%c0_96, %c0_97] : memref<1x256xf32, #tpu.memory_space<vmem>>, vector<1x256xf32>
    %c0_98 = arith.constant 0 : index
    %c0_99 = arith.constant 0 : index
    %94 = vector.load %arg9[%c0_98, %c0_99] : memref<1x256xf32, #tpu.memory_space<vmem>>, vector<1x256xf32>
    %cst_100 = arith.constant dense<0.000000e+00> : vector<256xf32>
    %95 = vector.multi_reduction <add>, %92, %cst_100 [0] : vector<98x256xf32> to vector<256xf32>
    %96 = vector.shape_cast %95 : vector<256xf32> to vector<1x256xf32>
    %97 = arith.mulf %92, %92 : vector<98x256xf32>
    %cst_101 = arith.constant dense<0.000000e+00> : vector<256xf32>
    %98 = vector.multi_reduction <add>, %97, %cst_101 [0] : vector<98x256xf32> to vector<256xf32>
    %99 = vector.shape_cast %98 : vector<256xf32> to vector<1x256xf32>
    %cst_102 = arith.constant 0.0102040814 : f32
    %100 = vector.broadcast %cst_102 : f32 to vector<1x256xf32>
    %101 = arith.mulf %96, %100 : vector<1x256xf32>
    %cst_103 = arith.constant 0.0102040814 : f32
    %102 = vector.broadcast %cst_103 : f32 to vector<1x256xf32>
    %103 = arith.mulf %99, %102 : vector<1x256xf32>
    %104 = arith.mulf %101, %101 : vector<1x256xf32>
    %105 = arith.subf %103, %104 : vector<1x256xf32>
    %cst_104 = arith.constant 9.99999974E-6 : f32
    %106 = vector.broadcast %cst_104 : f32 to vector<1x256xf32>
    %107 = arith.addf %105, %106 : vector<1x256xf32>
    %108 = math.rsqrt %107 : vector<1x256xf32>
    %109 = arith.mulf %93, %108 : vector<1x256xf32>
    %110 = arith.mulf %101, %109 : vector<1x256xf32>
    %111 = arith.subf %94, %110 : vector<1x256xf32>
    %112 = vector.broadcast %109 : vector<1x256xf32> to vector<98x256xf32>
    %113 = arith.mulf %92, %112 : vector<98x256xf32>
    %114 = vector.broadcast %111 : vector<1x256xf32> to vector<98x256xf32>
    %115 = arith.addf %113, %114 : vector<98x256xf32>
    %c0_105 = arith.constant 0 : index
    %c0_106 = arith.constant 0 : index
    %116 = vector.load %arg10[%c0_105, %c0_106] : memref<128x256xf32, #tpu.memory_space<vmem>>, vector<128x256xf32>
    %cst_107 = arith.constant dense<0.000000e+00> : vector<98x256xf32>
    %117 = tpu.matmul %0, %116, %cst_107 {dimension_numbers = #tpu.dot_dimension_numbers<[1], [0], [0], [1], [0, 0, 1, 1], [], []>} : vector<98x128xf32>, vector<128x256xf32>, vector<98x256xf32> -> vector<98x256xf32>
    %c0_108 = arith.constant 0 : index
    %c0_109 = arith.constant 0 : index
    %118 = vector.load %arg11[%c0_108, %c0_109] : memref<1x256xf32, #tpu.memory_space<vmem>>, vector<1x256xf32>
    %c0_110 = arith.constant 0 : index
    %c0_111 = arith.constant 0 : index
    %119 = vector.load %arg12[%c0_110, %c0_111] : memref<1x256xf32, #tpu.memory_space<vmem>>, vector<1x256xf32>
    %cst_112 = arith.constant dense<0.000000e+00> : vector<256xf32>
    %120 = vector.multi_reduction <add>, %117, %cst_112 [0] : vector<98x256xf32> to vector<256xf32>
    %121 = vector.shape_cast %120 : vector<256xf32> to vector<1x256xf32>
    %122 = arith.mulf %117, %117 : vector<98x256xf32>
    %cst_113 = arith.constant dense<0.000000e+00> : vector<256xf32>
    %123 = vector.multi_reduction <add>, %122, %cst_113 [0] : vector<98x256xf32> to vector<256xf32>
    %124 = vector.shape_cast %123 : vector<256xf32> to vector<1x256xf32>
    %cst_114 = arith.constant 0.0102040814 : f32
    %125 = vector.broadcast %cst_114 : f32 to vector<1x256xf32>
    %126 = arith.mulf %121, %125 : vector<1x256xf32>
    %cst_115 = arith.constant 0.0102040814 : f32
    %127 = vector.broadcast %cst_115 : f32 to vector<1x256xf32>
    %128 = arith.mulf %124, %127 : vector<1x256xf32>
    %129 = arith.mulf %126, %126 : vector<1x256xf32>
    %130 = arith.subf %128, %129 : vector<1x256xf32>
    %cst_116 = arith.constant 9.99999974E-6 : f32
    %131 = vector.broadcast %cst_116 : f32 to vector<1x256xf32>
    %132 = arith.addf %130, %131 : vector<1x256xf32>
    %133 = math.rsqrt %132 : vector<1x256xf32>
    %134 = arith.mulf %118, %133 : vector<1x256xf32>
    %135 = arith.mulf %126, %134 : vector<1x256xf32>
    %136 = arith.subf %119, %135 : vector<1x256xf32>
    %137 = vector.broadcast %134 : vector<1x256xf32> to vector<98x256xf32>
    %138 = arith.mulf %117, %137 : vector<98x256xf32>
    %139 = vector.broadcast %136 : vector<1x256xf32> to vector<98x256xf32>
    %140 = arith.addf %138, %139 : vector<98x256xf32>
    %141 = arith.addf %115, %140 : vector<98x256xf32>
    %cst_117 = arith.constant 0.000000e+00 : f32
    %142 = vector.broadcast %cst_117 : f32 to vector<98x256xf32>
    %143 = arith.maximumf %141, %142 : vector<98x256xf32>
    %c0_118 = arith.constant 0 : index
    %c0_119 = arith.constant 0 : index
    %144 = vector.load %arg13[%c0_118, %c0_119] : memref<98x256xf32, #tpu.memory_space<vmem>>, vector<98x256xf32>
    tpu.vector_store %arg13[%c0_118, %c0_119], %143 {strides = array<i32>} : memref<98x256xf32, #tpu.memory_space<vmem>>, vector<98x256xf32>,
    return
  }
}

</mosaic_0001>

<bundles_post_ra>
// kernel: tpu_custom_call.1
= control target key start
LH: loop header
LB: loop body
LE: loop exit
PB: predicated region body
PF: predicated region fallthrough
CT: control target
= control target key end

     0   :  { %18 = vsyncpa [#allocation5], 0  ;;  %s20495_s0 = inlined_call_operand.hbm [shape: f32[98,128], index: 0, kind: input, shape index: {}]   ;;  %s20496_s1 = inlined_call_operand.hbm [shape: f32[128,128], index: 1, kind: input, shape index: {}]   ;;  %s20497_s2 = inlined_call_operand.vmem [shape: f32[1,128], index: 2, kind: input, shape index: {}]   ;;  %s20498_s3 = inlined_call_operand.hbm [shape: f32[1,128], index: 3, kind: input, shape index: {}]   ;;  %s20499_s4 = inlined_call_operand.hbm [shape: f32[1152,128], index: 4, kind: input, shape index: {}]   ;;  %s20500_s5 = inlined_call_operand.hbm [shape: f32[1,128], index: 5, kind: input, shape index: {}]   ;;  %s20501_s6 = inlined_call_operand.vmem [shape: f32[1,128], index: 6, kind: input, shape index: {}]   ;;  %s20502_s7 = inlined_call_operand.hbm [shape: f32[128,256], index: 7, kind: input, shape index: {}]   ;;  %s20503_s8 = inlined_call_operand.vmem [shape: f32[1,256], index: 8, kind: input, shape index: {}]   ;;  %s20504_s9 = inlined_call_operand.vmem [shape: f32[1,256], index: 9, kind: input, shape index: {}]   ;;  %s20505_s10 = inlined_call_operand.hbm [shape: f32[128,256], index: 10, kind: input, shape index: {}]   ;;  %s20506_s11 = inlined_call_operand.vmem [shape: f32[1,256], index: 11, kind: input, shape index: {}]   ;;  %s20507_s12 = inlined_call_operand.vmem [shape: f32[1,256], index: 12, kind: input, shape index: {}]   ;;  %s20508_s13 = inlined_call_operand.hbm [shape: f32[98,256], index: 13, kind: output, shape index: {}]  }
   0x1   :  { %19 = vsyncpa [#allocation8], 0 }
   0x2   :  { %20 = vsyncpa [#allocation11], 0 }
   0x3   :  { %21 = vsyncpa [#allocation14], 0 }
   0x4   :  { %22 = vsyncpa [#allocation6], 0  ;;  %s16566_s25 = smov [#allocation7]   ;;  %s16567_s27 = smov [#allocation10]  }
   0x5   :  { %s40_s26 = sshll.u32 %s16566_s25, 4  ;;  %s64_s28 = sshll.u32 %s16567_s27, 4  ;;  %s41_s26 = int_to_ptr.vmem [resolvable:$true] %s40_s26  ;;  %s65_s28 = int_to_ptr.vmem [resolvable:$true] %s64_s28 }
   0x6   :  { %s16404_s29 = scalar_lea.vmem %s41_s26, 2048  ;;  %p16409_p1 = scmp.lt.s32.totalorder %s41_s26, %s41_s26 }
   0x7   :  { %p16405_p0 = scmp.ne.s32.totalorder %s41_s26, %s16404_s29  ;;  %p16410_p2 = scmp.lt.s32.totalorder %s16404_s29, %s16404_s29 }
   0x9   :  { %p16411_p3 = por %p16410_p2, %p16409_p1 }
   0xb   :  { %p16412_p4 = pnand %p16411_p3, %p16405_p0 }
   0xd   :  { %16415 = shalt.err (!%p16412_p4)
}
   0xe   :  { %s16568_s30 = smov 128   ;;  %s16569_s14 = smov 8  }
   0xf   :  { %46 = dma.hbm_to_vmem [thread:$0]  %s20496_s1, 2048, %s41_s26, [#allocation8], %s16568_s30, %s16568_s30, %s16569_s14  }
  0x10   :  { %s16424_s17 = scalar_lea.vmem %s65_s28, 18432  ;;  %p16429_p6 = scmp.lt.s32.totalorder %s65_s28, %s65_s28 }
  0x11   :  { %p16425_p5 = scmp.ne.s32.totalorder %s65_s28, %s16424_s17  ;;  %p16430_p7 = scmp.lt.s32.totalorder %s16424_s17, %s16424_s17 }
  0x13   :  { %p16431_p8 = por %p16430_p7, %p16429_p6 }
  0x15   :  { %p16432_p9 = pnand %p16431_p8, %p16425_p5 }
  0x17   :  { %16435 = shalt.err (!%p16432_p9)
}
  0x18   :  { %70 = dma.hbm_to_vmem [thread:$0]  %s20499_s4, 18432, %s65_s28, [#allocation11], %s16568_s30, %s16568_s30, %s16569_s14  }
  0x19   :  { %s16570_s20 = smov [#allocation13]  }
  0x1a   :  { %s88_s21 = sshll.u32 %s16570_s20, 4  ;;  %s89_s21 = int_to_ptr.vmem [resolvable:$true] %s88_s21 }
  0x1b   :  { %s16444_s22 = scalar_lea.vmem %s89_s21, 4096  ;;  %p16449_p11 = scmp.lt.s32.totalorder %s89_s21, %s89_s21 }
  0x1c   :  { %p16445_p10 = scmp.ne.s32.totalorder %s89_s21, %s16444_s22  ;;  %p16450_p12 = scmp.lt.s32.totalorder %s16444_s22, %s16444_s22 }
  0x1e   :  { %p16451_p13 = por %p16450_p12, %p16449_p11 }
  0x20   :  { %p16452_p0 = pnand %p16451_p13, %p16445_p10 }
  0x22   :  { %16455 = shalt.err (!%p16452_p0)
}
  0x23   :  { %s16571_s1 = smov 256   ;;  %s16572_s23 = smov 16  }
  0x24   :  { %94 = dma.hbm_to_vmem [thread:$0]  %s20502_s7, 4096, %s89_s21, [#allocation14], %s16571_s1, %s16571_s1, %s16572_s23  }
  0x25   :  { %s16573_s4 = smov [#allocation4]   ;;  %s16574_s27 = smov [#allocation9]  }
  0x26   :  { %s28_s26 = sshll.u32 %s16573_s4, 4  ;;  %s55_s28 = sshll.u32 %s16574_s27, 4  ;;  %s29_s26 = int_to_ptr.vmem [resolvable:$true] %s28_s26  ;;  %s56_s28 = int_to_ptr.vmem [resolvable:$true] %s55_s28 }
  0x27   :  { %s16464_s29 = scalar_lea.vmem %s29_s26, 1664  ;;  %p16469_p2 = scmp.lt.s32.totalorder %s29_s26, %s29_s26 }
  0x28   :  { %p16465_p1 = scmp.ne.s32.totalorder %s29_s26, %s16464_s29  ;;  %p16470_p3 = scmp.lt.s32.totalorder %s16464_s29, %s16464_s29 }
  0x2a   :  { %p16471_p4 = por %p16470_p3, %p16469_p2 }
  0x2c   :  { %p16472_p5 = pnand %p16471_p4, %p16465_p1 }
  0x2e   :  { %16475 = shalt.err (!%p16472_p5)
}
  0x2f   :  { %34 = dma.hbm_to_vmem [thread:$0]  %s20495_s0, 1664, %s29_s26, [#allocation5], %s16568_s30, %s16568_s30, %s16569_s14  }
  0x30   :  { %s16484_s7 = scalar_lea.vmem %s56_s28, 16  ;;  %s16488_s17 = scalar_lea.vmem %s56_s28, 32 }
  0x31   :  { %p16485_p6 = scmp.ne.s32.totalorder %s56_s28, %s16484_s7  ;;  %p16489_p7 = scmp.lt.s32.totalorder %s56_s28, %s56_s28 }
  0x32   :  { %p16490_p8 = scmp.lt.s32.totalorder %s16488_s17, %s16484_s7 }
  0x34   :  { %p16491_p9 = por %p16490_p8, %p16489_p7 }
  0x36   :  { %p16492_p10 = pnand %p16491_p9, %p16485_p6 }
  0x38   :  { %16495 = shalt.err (!%p16492_p10)
}
  0x39   :  { %58 = dma.hbm_to_vmem [thread:$0]  %s20498_s3, 16, %s56_s28, [#allocation8]  }
  0x3a   :  { %s16575_s20 = smov [#allocation12]   ;;  %s16576_s22 = smov [#allocation15]  }
  0x3b   :  { %s77_s21 = sshll.u32 %s16575_s20, 4  ;;  %s104_s24 = sshll.u32 %s16576_s22, 4  ;;  %s78_s21 = int_to_ptr.vmem [resolvable:$true] %s77_s21  ;;  %s105_s24 = int_to_ptr.vmem [resolvable:$true] %s104_s24 }
  0x3c   :  { %s16504_s25 = scalar_lea.vmem %s78_s21, 16  ;;  %s16508_s0 = scalar_lea.vmem %s78_s21, 32 }
  0x3d   :  { %p16505_p11 = scmp.ne.s32.totalorder %s78_s21, %s16504_s25  ;;  %p16509_p12 = scmp.lt.s32.totalorder %s78_s21, %s78_s21 }
  0x3e   :  { %p16510_p13 = scmp.lt.s32.totalorder %s16508_s0, %s16504_s25 }
  0x40   :  { %p16511_p0 = por %p16510_p13, %p16509_p12 }
  0x42   :  { %p16512_p1 = pnand %p16511_p0, %p16505_p11 }
  0x44   :  { %16515 = shalt.err (!%p16512_p1)
}
  0x45   :  { %80 = dma.hbm_to_vmem [thread:$0]  %s20500_s5, 16, %s78_s21, [#allocation11]  }
  0x46   :  { %s16524_s4 = scalar_lea.vmem %s105_s24, 4096  ;;  %p16529_p3 = scmp.lt.s32.totalorder %s105_s24, %s105_s24 }
  0x47   :  { %p16525_p2 = scmp.ne.s32.totalorder %s105_s24, %s16524_s4  ;;  %p16530_p4 = scmp.lt.s32.totalorder %s16524_s4, %s16524_s4 }
  0x49   :  { %p16531_p5 = por %p16530_p4, %p16529_p3 }
  0x4b   :  { %p16532_p6 = pnand %p16531_p5, %p16525_p2 }
  0x4d   :  { %16535 = shalt.err (!%p16532_p6)
}
  0x4e   :  { %110 = dma.hbm_to_vmem [thread:$0]  %s20505_s10, 4096, %s105_s24, [#allocation14], %s16571_s1, %s16571_s1, %s16572_s23  }
  0x4f   :  { %16556 = dma.done.wait [#allocation5], 1664  }
  0x50   :  { %16557 = vsyncadd [#allocation5], 4294965632 }
  0x51   :  { %16558 = dma.done.wait [#allocation8], 2064  }
  0x52   :  { %16559 = vsyncadd [#allocation8], 4294965232 }
  0x53   :  { %16560 = dma.done.wait [#allocation11], 18448  }
  0x54   :  { %16561 = vsyncadd [#allocation11], 4294948848 }
  0x55   :  { %16562 = dma.done.wait [#allocation14], 8192  }
  0x56   :  { %16563 = vsyncadd [#allocation14], 4294959104  ;;  %v16577_v0 = vmov 0.0   ;;  %vm16578_vm0 = vmmov 0   ;;  %v164_v1 = vld [vmem:[#allocation7 + $0x78] sm:$0xff]  ;;  %v163_v2 = vld [vmem:[#allocation7 + $0x70] sm:$0xff] }
  0x57   :  { %16088 = vmatprep.subr.mxu0 %v16577_v0  ;;  %1733 = vst [vmem:[#allocation2] sm:$0xff] %v16577_v0  ;;  %1734 = vst [vmem:[#allocation2 + $0x8] sm:$0x1] %v16577_v0  ;;  %16120 = vmatprep.mubr.msk.f32.mxu0 %vm16578_vm0, %v16577_v0  ;;  %v162_v3 = vld [vmem:[#allocation7 + $0x68] sm:$0xff]  ;;  %v161_v4 = vld [vmem:[#allocation7 + $0x60] sm:$0xff]  ;;  %vm308_vm1 = vcmask 1041408  }
  0x58   :  { %1735 = vst [vmem:[#allocation2 + $0x90] sm:$0xff] %v16577_v0  ;;  %1736 = vst [vmem:[#allocation2 + $0x98] sm:$0x1] %v16577_v0  ;;  %16089 = vmatpush3.msra.mxu0 %v164_v1  ;;  %v160_v5 = vld [vmem:[#allocation7 + $0x58] sm:$0xff]  ;;  %v159_v6 = vld [vmem:[#allocation7 + $0x50] sm:$0xff] }
  0x59   :  { %1738 = vst [vmem:[#allocation2 + $0x80] sm:$0xff] %v16577_v0  ;;  %1739 = vst [vmem:[#allocation2 + $0x88] sm:$0x1] %v16577_v0  ;;  %16090 = vmatprep.subr.mxu0 %v16577_v0  ;;  %v158_v7 = vld [vmem:[#allocation7 + $0x48] sm:$0xff]  ;;  %v157_v8 = vld [vmem:[#allocation7 + $0x40] sm:$0xff] }
  0x5a   :  { %1740 = vst [vmem:[#allocation2 + $0x110] sm:$0xff] %v16577_v0  ;;  %1741 = vst [vmem:[#allocation2 + $0x118] sm:$0x1] %v16577_v0  ;;  %16091 = vmatpush3.msra.mxu0 %v163_v2  ;;  %v156_v9 = vld [vmem:[#allocation7 + $0x38] sm:$0xff]  ;;  %v155_v10 = vld [vmem:[#allocation7 + $0x30] sm:$0xff] }
  0x5b   :  { %1742 = vst [vmem:[#allocation2 + $0x10] sm:$0x1] %v16577_v0  ;;  %1743 = vst [vmem:[#allocation2 + $0x20] sm:$0x1] %v16577_v0  ;;  %16092 = vmatprep.subr.mxu0 %v16577_v0  ;;  %v154_v11 = vld [vmem:[#allocation7 + $0x28] sm:$0xff]  ;;  %v153_v12 = vld [vmem:[#allocation7 + $0x20] sm:$0xff] }
  0x5c   :  { %1744 = vst [vmem:[#allocation2 + $0x30] sm:$0x1] %v16577_v0  ;;  %1745 = vst [vmem:[#allocation2 + $0x40] sm:$0x1] %v16577_v0  ;;  %16093 = vmatpush3.msra.mxu0 %v162_v3  ;;  %v152_v13 = vld [vmem:[#allocation7 + $0x18] sm:$0xff]  ;;  %v151_v14 = vld [vmem:[#allocation7 + $0x10] sm:$0xff] }
  0x5d   :  { %1746 = vst [vmem:[#allocation2 + $0x50] sm:$0x1] %v16577_v0  ;;  %1747 = vst [vmem:[#allocation2 + $0x60] sm:$0x1] %v16577_v0  ;;  %16094 = vmatprep.subr.mxu0 %v16577_v0  ;;  %v150_v15 = vld [vmem:[#allocation7 + $0x8] sm:$0xff]  ;;  %v149_v16 = vld [vmem:[#allocation7] sm:$0xff] }
  0x5e   :  { %1748 = vst [vmem:[#allocation2 + $0x70] sm:$0x1] %v16577_v0  ;;  %1749 = vst [vmem:[#allocation2 + $0xa0] sm:$0x1] %v16577_v0  ;;  %16095 = vmatpush3.msra.mxu0 %v161_v4  ;;  %v136_v17 = vld [vmem:[#allocation4] sm:$0xff]  ;;  %v137_v18 = vld [vmem:[#allocation4 + $0x8] sm:$0xff] }
  0x5f   :  { %1750 = vst [vmem:[#allocation2 + $0xb0] sm:$0x1] %v16577_v0  ;;  %1751 = vst [vmem:[#allocation2 + $0xc0] sm:$0x1] %v16577_v0  ;;  %16096 = vmatprep.subr.mxu0 %v16577_v0  ;;  %v138_v19 = vld [vmem:[#allocation4 + $0x10] sm:$0xff]  ;;  %v139_v20 = vld [vmem:[#allocation4 + $0x18] sm:$0xff] }
  0x60   :  { %1752 = vst [vmem:[#allocation2 + $0xd0] sm:$0x1] %v16577_v0  ;;  %1753 = vst [vmem:[#allocation2 + $0xe0] sm:$0x1] %v16577_v0  ;;  %16097 = vmatpush3.msra.mxu0 %v160_v5  ;;  %v140_v21 = vld [vmem:[#allocation4 + $0x20] sm:$0xff]  ;;  %v141_v22 = vld [vmem:[#allocation4 + $0x28] sm:$0xff] }
  0x61   :  { %1754 = vst [vmem:[#allocation2 + $0xf0] sm:$0x1] %v16577_v0  ;;  %1755 = vst [vmem:[#allocation2 + $0x100] sm:$0x1] %v16577_v0  ;;  %16098 = vmatprep.subr.mxu0 %v16577_v0  ;;  %v142_v23 = vld [vmem:[#allocation4 + $0x30] sm:$0xff]  ;;  %v143_v24 = vld [vmem:[#allocation4 + $0x38] sm:$0xff] }
  0x62   :  { %1756 = vst [vmem:[#allocation2 + $0x18] sm:$0x1] %v16577_v0  ;;  %1757 = vst [vmem:[#allocation2 + $0x28] sm:$0x1] %v16577_v0  ;;  %16099 = vmatpush3.msra.mxu0 %v159_v6  ;;  %v144_v25 = vld [vmem:[#allocation4 + $0x40] sm:$0xff]  ;;  %v145_v26 = vld [vmem:[#allocation4 + $0x48] sm:$0xff] }
  0x63   :  { %1758 = vst [vmem:[#allocation2 + $0x38] sm:$0x1] %v16577_v0  ;;  %1759 = vst [vmem:[#allocation2 + $0x48] sm:$0x1] %v16577_v0  ;;  %16100 = vmatprep.subr.mxu0 %v16577_v0  ;;  %v146_v27 = vld [vmem:[#allocation4 + $0x50] sm:$0xff]  ;;  %v147_v28 = vld [vmem:[#allocation4 + $0x58] sm:$0xff] }
  0x64   :  { %1760 = vst [vmem:[#allocation2 + $0x58] sm:$0x1] %v16577_v0  ;;  %1761 = vst [vmem:[#allocation2 + $0x68] sm:$0x1] %v16577_v0  ;;  %16101 = vmatpush3.msra.mxu0 %v158_v7  ;;  %v148_v29 = vld [vmem:[#allocation4 + $0x60] sm:$0x3] }
  0x65   :  { %1762 = vst [vmem:[#allocation2 + $0x78] sm:$0x1] %v16577_v0  ;;  %1763 = vst [vmem:[#allocation2 + $0xa8] sm:$0x1] %v16577_v0  ;;  %16102 = vmatprep.subr.mxu0 %v16577_v0  ;;  %v13880_v30 = vld [vmem:[#allocation10 + $0xf8] sm:$0xff]  ;;  %v13879_v32 = vld [vmem:[#allocation10 + $0xf0] sm:$0xff] }
  0x66   :  { %1764 = vst [vmem:[#allocation2 + $0xb8] sm:$0x1] %v16577_v0  ;;  %1765 = vst [vmem:[#allocation2 + $0xc8] sm:$0x1] %v16577_v0  ;;  %16103 = vmatpush3.msra.mxu0 %v157_v8  ;;  %15775 = vmatprep.subr.mxu1 %v13880_v30  ;;  %v13864_v31 = vld [vmem:[#allocation10 + $0x78] sm:$0xff]  ;;  %v13863_v33 = vld [vmem:[#allocation10 + $0x70] sm:$0xff] }
  0x67   :  { %1766 = vst [vmem:[#allocation2 + $0xd8] sm:$0x1] %v16577_v0  ;;  %1767 = vst [vmem:[#allocation2 + $0xe8] sm:$0x1] %v16577_v0  ;;  %16104 = vmatprep.subr.mxu0 %v16577_v0  ;;  %15776 = vmatpush3.msra.mxu1 %v13864_v31  ;;  %v13878_v34 = vld [vmem:[#allocation10 + $0xe8] sm:$0xff]  ;;  %v13912_v35 = vld [vmem:[#allocation10 + $0x1f8] sm:$0xff] }
  0x68   :  { %1768 = vst [vmem:[#allocation2 + $0xf8] sm:$0x1] %v16577_v0  ;;  %1769 = vst [vmem:[#allocation2 + $0x108] sm:$0x1] %v16577_v0  ;;  %16105 = vmatpush3.msra.mxu0 %v156_v9  ;;  %15777 = vmatprep.subr.mxu1 %v13879_v32  ;;  %v13862_v36 = vld [vmem:[#allocation10 + $0x68] sm:$0xff]  ;;  %v13896_v37 = vld [vmem:[#allocation10 + $0x178] sm:$0xff] }
  0x69   :  { %16106 = vmatprep.subr.mxu0 %v16577_v0  ;;  %15778 = vmatpush3.msra.mxu1 %v13863_v33  ;;  %v13877_v39 = vld [vmem:[#allocation10 + $0xe0] sm:$0xff]  ;;  %v13911_v41 = vld [vmem:[#allocation10 + $0x1f0] sm:$0xff]  ;;  %v13876_v42 = vld [vmem:[#allocation10 + $0xd8] sm:$0xff] }
  0x6a   :  { %16107 = vmatpush3.msra.mxu0 %v155_v10  ;;  %15779 = vmatprep.subr.mxu1 %v13878_v34  ;;  %v13861_v40 = vld [vmem:[#allocation10 + $0x60] sm:$0xff]  ;;  %v13895_v43 = vld [vmem:[#allocation10 + $0x170] sm:$0xff]  ;;  %v13860_v44 = vld [vmem:[#allocation10 + $0x58] sm:$0xff] }
  0x6b   :  { %16108 = vmatprep.subr.mxu0 %v16577_v0  ;;  %15780 = vmatpush3.msra.mxu1 %v13862_v36  ;;  %v13910_v46 = vld [vmem:[#allocation10 + $0x1e8] sm:$0xff]  ;;  %v13875_v47 = vld [vmem:[#allocation10 + $0xd0] sm:$0xff]  ;;  %v13909_v50 = vld [vmem:[#allocation10 + $0x1e0] sm:$0xff] }
  0x6c   :  { %16109 = vmatpush3.msra.mxu0 %v154_v11  ;;  %15781 = vmatprep.subr.mxu1 %v13877_v39  ;;  %v13894_v48 = vld [vmem:[#allocation10 + $0x168] sm:$0xff]  ;;  %v13859_v49 = vld [vmem:[#allocation10 + $0x50] sm:$0xff]  ;;  %v13893_v53 = vld [vmem:[#allocation10 + $0x160] sm:$0xff] }
  0x6d   :  { %16110 = vmatprep.subr.mxu0 %v16577_v0  ;;  %15782 = vmatpush3.msra.mxu1 %v13861_v40  ;;  %v13874_v52 = vld [vmem:[#allocation10 + $0xc8] sm:$0xff]  ;;  %v13908_v54 = vld [vmem:[#allocation10 + $0x1d8] sm:$0xff]  ;;  %v13873_v58 = vld [vmem:[#allocation10 + $0xc0] sm:$0xff] }
  0x6e   :  { %16111 = vmatpush3.msra.mxu0 %v153_v12  ;;  %15783 = vmatprep.subr.mxu1 %v13876_v42  ;;  %v13858_v55 = vld [vmem:[#allocation10 + $0x48] sm:$0xff]  ;;  %v13892_v56 = vld [vmem:[#allocation10 + $0x158] sm:$0xff]  ;;  %v13907_v59 = vld [vmem:[#allocation10 + $0x1d0] sm:$0xff] }
  0x6f   :  { %16112 = vmatprep.subr.mxu0 %v16577_v0  ;;  %15784 = vmatpush3.msra.mxu1 %v13860_v44  ;;  %v13857_v60 = vld [vmem:[#allocation10 + $0x40] sm:$0xff]  ;;  %v13891_v61 = vld [vmem:[#allocation10 + $0x150] sm:$0xff]  ;;  %v13872_v63 = vld [vmem:[#allocation10 + $0xb8] sm:$0xff] }
  0x70   :  { %16113 = vmatpush3.msra.mxu0 %v152_v13  ;;  %15785 = vmatprep.subr.mxu1 %v13875_v47  ;;  %v13856_v1 = vld [vmem:[#allocation10 + $0x38] sm:$0xff]  ;;  %v13890_v2 = vld [vmem:[#allocation10 + $0x148] sm:$0xff]  ;;  %v13871_v4 = vld [vmem:[#allocation10 + $0xb0] sm:$0xff] }
  0x71   :  { %16114 = vmatprep.subr.mxu0 %v16577_v0  ;;  %15786 = vmatpush3.msra.mxu1 %v13859_v49  ;;  %v13905_v5 = vld [vmem:[#allocation10 + $0x1c0] sm:$0xff]  ;;  %v13855_v6 = vld [vmem:[#allocation10 + $0x30] sm:$0xff]  ;;  %v13870_v9 = vld [vmem:[#allocation10 + $0xa8] sm:$0xff] }
  0x72   :  { %16115 = vmatpush3.msra.mxu0 %v151_v14  ;;  %15787 = vmatprep.subr.mxu1 %v13874_v52  ;;  %v13889_v7 = vld [vmem:[#allocation10 + $0x140] sm:$0xff]  ;;  %v13904_v10 = vld [vmem:[#allocation10 + $0x1b8] sm:$0xff]  ;;  %v13854_v11 = vld [vmem:[#allocation10 + $0x28] sm:$0xff] }
  0x73   :  { %16116 = vmatprep.subr.mxu0 %v16577_v0  ;;  %15788 = vmatpush3.msra.mxu1 %v13858_v55  ;;  %v13888_v12 = vld [vmem:[#allocation10 + $0x138] sm:$0xff]  ;;  %v13869_v14 = vld [vmem:[#allocation10 + $0xa0] sm:$0xff]  ;;  %v13850_v31 = vld [vmem:[#allocation10 + $0x8] sm:$0xff] }
  0x74   :  { %16117 = vmatpush3.msra.mxu0 %v150_v15  ;;  %15789 = vmatprep.subr.mxu1 %v13873_v58  ;;  %v13903_v15 = vld [vmem:[#allocation10 + $0x1b0] sm:$0xff]  ;;  %v13900_v30 = vld [vmem:[#allocation10 + $0x198] sm:$0xff]  ;;  %v13865_v34 = vld [vmem:[#allocation10 + $0x80] sm:$0xff] }
  0x75   :  { %16118 = vmatprep.subr.mxu0 %v16577_v0  ;;  %15790 = vmatpush3.msra.mxu1 %v13857_v60  ;;  %v13884_v32 = vld [vmem:[#allocation10 + $0x118] sm:$0xff]  ;;  %v13849_v36 = vld [vmem:[#allocation10] sm:$0xff] }
  0x76   :  { %16119 = vmatpush3.msra.mxu0 %v149_v16  ;;  %15791 = vmatprep.subr.mxu1 %v13872_v63  ;;  %v13853_v16 = vld [vmem:[#allocation10 + $0x20] sm:$0xff]  ;;  %v13944_v55 = vld [vmem:[#allocation10 + $0x2f8] sm:$0xff] }
  0x77   :  { %16121 = vmatmul.mubr.f32.vlgmr.msra.gmra.mxu0 %v136_v17  ;;  %15846 = vmatprep.subr.mxu0 %v13912_v35  ;;  %v13887_v17 = vld [vmem:[#allocation10 + $0x130] sm:$0xff]  ;;  %v13897_v63 = vld [vmem:[#allocation10 + $0x180] sm:$0xff] }
  0x78   :  { %16123 = vmatprep.mubr.msk.f32.mxu0 %vm16578_vm0, %v16577_v0  ;;  %15847 = vmatpush3.msra.mxu0 %v13896_v37  ;;  %v13899_v35 = vld [vmem:[#allocation10 + $0x190] sm:$0xff] }
  0x79   :  { %15848 = vmatprep.subr.mxu0 %v13911_v41  ;;  %15792 = vmatpush3.msra.mxu1 %v13856_v1 }
  0x7a   :  { %15849 = vmatpush3.msra.mxu0 %v13895_v43  ;;  %15793 = vmatprep.subr.mxu1 %v13871_v4  ;;  %v13881_v4 = vld [vmem:[#allocation10 + $0x100] sm:$0xff] }
  0x7b   :  { %16124 = vmatmul.mubr.f32.gmra.mxu0 %v137_v18  ;;  %15850 = vmatprep.subr.mxu0 %v13910_v46 }
  0x7c   :  { %16126 = vmatprep.mubr.msk.f32.mxu0 %vm16578_vm0, %v16577_v0  ;;  %15851 = vmatpush3.msra.mxu0 %v13894_v48 }
  0x7d   :  { %15852 = vmatprep.subr.mxu0 %v13909_v50  ;;  %15794 = vmatpush3.msra.mxu1 %v13855_v6 }
  0x7e   :  { %15853 = vmatpush3.msra.mxu0 %v13893_v53  ;;  %15795 = vmatprep.subr.mxu1 %v13870_v9 }
  0x7f   :  { %16127 = vmatmul.mubr.f32.gmra.mxu0 %v138_v19  ;;  %15854 = vmatprep.subr.mxu0 %v13908_v54  ;;  %v13868_v19 = vld [vmem:[#allocation10 + $0x98] sm:$0xff]  ;;  %v13883_v54 = vld [vmem:[#allocation10 + $0x110] sm:$0xff] }
  0x80   :  { %16129 = vmatprep.mubr.msk.f32.mxu0 %vm16578_vm0, %v16577_v0  ;;  %15855 = vmatpush3.msra.mxu0 %v13892_v56  ;;  %v13898_v56 = vld [vmem:[#allocation10 + $0x188] sm:$0xff] }
  0x81   :  { %15856 = vmatprep.subr.mxu0 %v13907_v59  ;;  %15796 = vmatpush3.msra.mxu1 %v13854_v11 }
  0x82   :  { %15857 = vmatpush3.msra.mxu0 %v13891_v61  ;;  %15797 = vmatprep.subr.mxu1 %v13869_v14  ;;  %v13882_v61 = vld [vmem:[#allocation10 + $0x108] sm:$0xff] }
  0x83   :  { %16130 = vmatmul.mubr.f32.gmra.mxu0 %v139_v20  ;;  %v13902_v20 = vld [vmem:[#allocation10 + $0x1a8] sm:$0xff]  ;;  %15798 = vmatpush3.msra.mxu1 %v13853_v16 }
  0x84   :  { %16132 = vmatprep.mubr.msk.f32.mxu0 %vm16578_vm0, %v16577_v0  ;;  %15799 = vmatprep.subr.mxu1 %v13868_v19 }
  0x87   :  { %16133 = vmatmul.mubr.f32.gmra.mxu0 %v140_v21  ;;  %v13852_v21 = vld [vmem:[#allocation10 + $0x18] sm:$0xff] }
  0x88   :  { %16135 = vmatprep.mubr.msk.f32.mxu0 %vm16578_vm0, %v16577_v0  ;;  %15800 = vmatpush3.msra.mxu1 %v13852_v21 }
  0x8b   :  { %16136 = vmatmul.mubr.f32.gmra.mxu0 %v141_v22  ;;  %v13886_v22 = vld [vmem:[#allocation10 + $0x128] sm:$0xff] }
  0x8c   :  { %16138 = vmatprep.mubr.msk.f32.mxu0 %vm16578_vm0, %v16577_v0 }
  0x8f   :  { %16139 = vmatmul.mubr.f32.gmra.mxu0 %v142_v23 }
  0x90   :  { %16141 = vmatprep.mubr.msk.f32.mxu0 %vm16578_vm0, %v16577_v0 }
  0x93   :  { %16142 = vmatmul.mubr.f32.gmra.mxu0 %v143_v24  ;;  %v13867_v24 = vld [vmem:[#allocation10 + $0x90] sm:$0xff] }
  0x94   :  { %16144 = vmatprep.mubr.msk.f32.mxu0 %vm16578_vm0, %v16577_v0  ;;  %15801 = vmatprep.subr.mxu1 %v13867_v24 }
  0x97   :  { %16145 = vmatmul.mubr.f32.gmra.mxu0 %v144_v25  ;;  %v13901_v25 = vld [vmem:[#allocation10 + $0x1a0] sm:$0xff] }
  0x98   :  { %16147 = vmatprep.mubr.msk.f32.mxu0 %vm16578_vm0, %v16577_v0 }
  0x9b   :  { %16148 = vmatmul.mubr.f32.gmra.mxu0 %v145_v26  ;;  %v13851_v26 = vld [vmem:[#allocation10 + $0x10] sm:$0xff] }
  0x9c   :  { %16150 = vmatprep.mubr.msk.f32.mxu0 %vm16578_vm0, %v16577_v0  ;;  %15802 = vmatpush3.msra.mxu1 %v13851_v26 }
  0x9f   :  { %16151 = vmatmul.mubr.f32.gmra.mxu0 %v146_v27  ;;  %v13885_v27 = vld [vmem:[#allocation10 + $0x120] sm:$0xff] }
  0xa0   :  { %16153 = vmatprep.mubr.msk.f32.mxu0 %vm16578_vm0, %v16577_v0 }
  0xa3   :  { %16154 = vmatmul.mubr.f32.gmra.mxu0 %v147_v28 }
  0xa4   :  { %16156 = vmatprep.mubr.msk.f32.mxu0 %vm16578_vm0, %v16577_v0  ;;  %v13906_v0 = vld [vmem:[#allocation10 + $0x1c8] sm:$0xff] }
  0xa5   :  { %15858 = vmatprep.subr.mxu0 %v13906_v0 }
  0xa6   :  { %15859 = vmatpush3.msra.mxu0 %v13890_v2 }
  0xa7   :  { %16157 = vmatmul.mubr.f32.gmra.mxu0 %v148_v29  ;;  %15860 = vmatprep.subr.mxu0 %v13905_v5  ;;  %v13866_v29 = vld [vmem:[#allocation10 + $0x88] sm:$0xff] }
  0xa8   :  { %15861 = vmatpush3.msra.mxu0 %v13889_v7  ;;  %15803 = vmatprep.subr.mxu1 %v13866_v29 }
  0xa9   :  { %15862 = vmatprep.subr.mxu0 %v13904_v10  ;;  %15804 = vmatpush3.msra.mxu1 %v13850_v31 }
  0xaa   :  { %15863 = vmatpush3.msra.mxu0 %v13888_v12  ;;  %15805 = vmatprep.subr.mxu1 %v13865_v34 }
  0xab   :  { %15864 = vmatprep.subr.mxu0 %v13903_v15  ;;  %15806 = vmatpush3.msra.mxu1 %v13849_v36 }
  0xac   :  { %15865 = vmatpush3.msra.mxu0 %v13887_v17  ;;  %15917 = vmatprep.subr.mxu1 %v13944_v55 }
  0xad   :  { %15866 = vmatprep.subr.mxu0 %v13902_v20 }
  0xae   :  { %15867 = vmatpush3.msra.mxu0 %v13886_v22 }
  0xaf   :  { %15868 = vmatprep.subr.mxu0 %v13901_v25 }
  0xb0   :  { %15869 = vmatpush3.msra.mxu0 %v13885_v27 }
  0xb1   :  { %15870 = vmatprep.subr.mxu0 %v13900_v30 }
  0xb2   :  { %15871 = vmatpush3.msra.mxu0 %v13884_v32 }
  0xb3   :  { %15872 = vmatprep.subr.mxu0 %v13899_v35 }
  0xb4   :  { %15873 = vmatpush3.msra.mxu0 %v13883_v54 }
  0xb5   :  { %15874 = vmatprep.subr.mxu0 %v13898_v56 }
  0xb6   :  { %15875 = vmatpush3.msra.mxu0 %v13882_v61 }
  0xb7   :  { %15876 = vmatprep.subr.mxu0 %v13897_v63 }
  0xb8   :  { %15877 = vmatpush3.msra.mxu0 %v13881_v4  ;;  %v4428_v4 = vld [vmem:[#allocation2 + $0x2] sm:$0x7f] }
 0x137   :  { %v16765_v38 = vpop.f32.mrf.mxu0 }
 0x138   :  { %v317_v41 = vmul.f32 %v16765_v38, %v16765_v38 }
 0x139   :  { %v16122_v45 = vpop.f32.mrf.mxu0 }
 0x13b   :  { %v16767_v51 = vpop.f32.mrf.mxu0 }
 0x13c   :  { %v318_v39 = vmul.f32 %v16767_v51, %v16767_v51  ;;  %v297_v42 = vadd.f32 %v16767_v51, %v16765_v38 }
 0x13d   :  { %v16125_v57 = vpop.f32.mrf.mxu0 }
 0x13e   :  { %v330_v45 = vadd.f32 %v318_v39, %v317_v41 }
 0x13f   :  { %v16769_v62 = vpop.f32.mrf.mxu0 }
 0x140   :  { %v319_v43 = vmul.f32 %v16769_v62, %v16769_v62  ;;  %v298_v46 = vadd.f32 %v297_v42, %v16769_v62 }
 0x141   :  { %v16128_v3 = vpop.f32.mrf.mxu0 }
 0x142   :  { %v331_v49 = vadd.f32 %v330_v45, %v319_v43  ;;  %v16579_v43 = vmov 1966171168  }
 0x143   :  { %v16771_v8 = vpop.f32.mrf.mxu0  ;;  %v424_v45 = vunpack.c.l.s4 %v16579_v43 }
 0x144   :  { %v320_v47 = vmul.f32 %v16771_v8, %v16771_v8  ;;  %v299_v50 = vadd.f32 %v298_v46, %v16771_v8 }
 0x145   :  { %v16131_v13 = vpop.f32.mrf.mxu0 }
 0x146   :  { %v332_v57 = vadd.f32 %v331_v49, %v320_v47 }
 0x147   :  { %v16773_v18 = vpop.f32.mrf.mxu0 }
 0x148   :  { %v321_v52 = vmul.f32 %v16773_v18, %v16773_v18  ;;  %v300_v58 = vadd.f32 %v299_v50, %v16773_v18 }
 0x149   :  { %v16134_v23 = vpop.f32.mrf.mxu0 }
 0x14a   :  { %v333_v0 = vadd.f32 %v332_v57, %v321_v52  ;;  %v425_v52 = vunpack.c.0.s8 %v424_v45 }
 0x14b   :  { %v16775_v28 = vpop.f32.mrf.mxu0 }
 0x14c   :  { %v322_v59 = vmul.f32 %v16775_v28, %v16775_v28  ;;  %v301_v1 = vadd.f32 %v300_v58, %v16775_v28 }
 0x14d   :  { %v16137_v33 = vpop.f32.mrf.mxu0 }
 0x14e   :  { %v334_v5 = vadd.f32 %v333_v0, %v322_v59 }
 0x14f   :  { %v16777_v37 = vpop.f32.mrf.mxu0 }
 0x150   :  { %v323_v2 = vmul.f32 %v16777_v37, %v16777_v37  ;;  %v302_v6 = vadd.f32 %v301_v1, %v16777_v37  ;;  %v1770_v1 = vld [vmem:[#allocation2] sm:$0x7f] }
 0x151   :  { %v16140_v40 = vpop.f32.mrf.mxu0 }
 0x152   :  { %v335_v10 = vadd.f32 %v334_v5, %v323_v2 }
 0x153   :  { %v16787_v44 = vpop.f32.mrf.mxu0 }
 0x154   :  { %v324_v7 = vmul.f32 %v16787_v44, %v16787_v44  ;;  %v303_v11 = vadd.f32 %v302_v6, %v16787_v44 }
 0x155   :  { %v16143_v48 = vpop.f32.mrf.mxu0 }
 0x156   :  { %v336_v14 = vadd.f32 %v335_v10, %v324_v7  ;;  %v359_v48 = vlaneseq }
 0x157   :  { %v16795_v53 = vpop.f32.mrf.mxu0 }
 0x158   :  { %v325_v12 = vmul.f32 %v16795_v53, %v16795_v53  ;;  %v304_v15 = vadd.f32 %v303_v11, %v16795_v53  ;;  %v16832_v56 = vshrl.u32 %v359_v48, 7 }
 0x159   :  { %v16146_v60 = vpop.f32.mrf.mxu0 }
 0x15a   :  { %v337_v19 = vadd.f32 %v336_v14, %v325_v12  ;;  %20534 = vst [vmem:[#allocation22_spill] sm:$0xff] %v16832_v56  ;;  %v16835_v59 = vsub.s32 %v425_v52, %v16832_v56  ;;  %v3099_v60 = vld [vmem:[#allocation2 + $0x1] sm:$0x7f]  ;;  %v1798_v12 = vcombine.high %v1770_v1, %v1770_v1 }
 0x15b   :  { %v16803_v3 = vpop.f32.mrf.mxu0  ;;  %v3127_v10 = vcombine.high %v3099_v60, %v3099_v60 }
 0x15c   :  { %v326_v16 = vmul.f32 %v16803_v3, %v16803_v3  ;;  %v305_v20 = vadd.f32 %v304_v15, %v16803_v3  ;;  %20535 = vst [vmem:[#allocation23_spill] sm:$0xff] %v16835_v59  ;;  %v3134_v0 = vrot.slane %v3099_v60, %v16835_v59  ;;  %v1805_v2 = vrot.slane %v1770_v1, %v16835_v59 }
 0x15d   :  { %v16149_v9 = vpop.f32.mrf.mxu0  ;;  %v4463_v7 = vrot.slane %v4428_v4, %v16835_v59 }
 0x15e   :  { %v338_v23 = vadd.f32 %v337_v19, %v326_v16  ;;  %v3142_v11 = vcombine.high %v3134_v0, %v3134_v0  ;;  %v1813_v14 = vcombine.high %v1805_v2, %v1805_v2  ;;  %v4456_v16 = vcombine.high %v4428_v4, %v4428_v4 }
 0x15f   :  { %v16811_v13 = vpop.f32.mrf.mxu0  ;;  %v3141_v19 = vrot.slane %v3127_v10, %v16835_v59 }
 0x160   :  { %v327_v21 = vmul.f32 %v16811_v13, %v16811_v13  ;;  %v306_v24 = vadd.f32 %v305_v20, %v16811_v13  ;;  %v3150_v20 = vrot.slane %v3134_v0, %v16835_v59 }
 0x161   :  { %v16152_v17 = vpop.f32.mrf.mxu0 }
 0x162   :  { %v339_v27 = vadd.f32 %v338_v23, %v327_v21  ;;  %v4471_v17 = vcombine.high %v4463_v7, %v4463_v7  ;;  %v3164_v21 = vrot.slane %v3142_v11, %v16835_v59  ;;  %v1812_v23 = vrot.slane %v1798_v12, %v16835_v59 }
 0x163   :  { %v16819_v22 = vpop.f32.mrf.mxu0 }
 0x164   :  { %v328_v25 = vmul.f32 %v16819_v22, %v16819_v22  ;;  %v307_v29 = vadd.f32 %v306_v24, %v16819_v22  ;;  %v1821_v24 = vrot.slane %v1805_v2, %v16835_v59 }
 0x165   :  { %v16155_v26 = vpop.f32.mrf.mxu0 }
 0x166   :  { %v340_v33 = vadd.f32 %v339_v27, %v328_v25  ;;  %v1835_v25 = vrot.slane %v1813_v14, %v16835_v59  ;;  %v4470_v26 = vrot.slane %v4456_v16, %v16835_v59  ;;  %v4479_v27 = vrot.slane %v4463_v7, %v16835_v59 }
 0x167   :  { %v16825_v30 = vpop.f32.mrf.mxu0 }
 0x168   :  { %v309_v31 = vsel %vm308_vm1, %v16825_v30, 0.0  ;;  %v329_v32 = vmul.f32 %v16825_v30, %v16825_v30 }
 0x169   :  { %v310_v34 = vadd.f32 %v309_v31, %v307_v29  ;;  %v16158_v35 = vpop.f32.mrf.mxu0  ;;  %v4493_v29 = vrot.slane %v4471_v17, %v16835_v59  ;;  %v3143_v31 = vcombine.high %v3141_v19, %v3141_v19 }
 0x16a   :  { %v341_v36 = vsel %vm308_vm1, %v329_v32, 0.0  ;;  %v3799_v32 = vcombine.low %v3150_v20, %v3164_v21  ;;  %v2470_v35 = vcombine.low %v1821_v24, %v1835_v25 }
 0x16b   :  { %v311_v39 = vrot.slane %v310_v34, 4  ;;  %v342_v40 = vadd.f32 %v341_v36, %v340_v33  ;;  %v15682_v33 = vcombine.high %v3150_v20, %v3164_v21  ;;  %v15674_v36 = vcombine.high %v1821_v24, %v1835_v25 }
 0x16c   :  { %v3809_v43 = vrot.slane %v3799_v32, %v16835_v59 }
 0x16d   :  { %v312_v41 = vadd.f32 %v311_v39, %v310_v34  ;;  %v343_v42 = vrot.slane %v342_v40, 4  ;;  %v1814_v34 = vcombine.high %v1812_v23, %v1812_v23  ;;  %v4472_v39 = vcombine.high %v4470_v26, %v4470_v26 }
 0x16e   :  { %v3816_v45 = vrot.slane %v15682_v33, %v16835_v59  ;;  %v2487_v48 = vrot.slane %v15674_v36, %v16835_v59 }
 0x16f   :  { %v313_v46 = vrot.slane %v312_v41, 2  ;;  %v344_v47 = vadd.f32 %v343_v42, %v342_v40  ;;  %v5128_v40 = vcombine.low %v4479_v27, %v4493_v29  ;;  %v3171_v42 = vrot.slane %v3143_v31, %v16835_v59 }
 0x170   :  { %v3831_v1 = vcombine.low %v3809_v43, %v3816_v45 }
 0x171   :  { %v314_v49 = vadd.f32 %v313_v46, %v312_v41  ;;  %v345_v50 = vrot.slane %v344_v47, 2  ;;  %v15690_v41 = vcombine.high %v4479_v27, %v4493_v29  ;;  %v1842_v46 = vrot.slane %v1814_v34, %v16835_v59 }
 0x172   :  { %v5138_v52 = vrot.slane %v5128_v40, %v16835_v59 }
 0x173   :  { %v315_v54 = vrot.slane %v314_v49, 1  ;;  %v346_v55 = vadd.f32 %v345_v50, %v344_v47  ;;  %v2480_v47 = vrot.slane %v2470_v35, %v16835_v59  ;;  %v4500_v50 = vrot.slane %v4472_v39, %v16835_v59 }
 0x175   :  { %v316_v57 = vadd.f32 %v315_v54, %v314_v49  ;;  %v347_v58 = vrot.slane %v346_v55, 1  ;;  %v16856_v49 = vrot.slane %v3141_v19, %v16835_v59  ;;  %v5145_v54 = vrot.slane %v15690_v41, %v16835_v59 }
 0x176   :  { %v2502_v4 = vcombine.low %v2480_v47, %v2487_v48 }
 0x177   :  { %v348_v61 = vadd.f32 %v347_v58, %v346_v55  ;;  %v349_v63 = vmul.f32 0.010204081, %v316_v57  ;;  %v295_v55 = vld [vmem:[%s20497_s2] sm:$0x1]  ;;  %v16865_v57 = vrot.slane %v1812_v23, %v16835_v59  ;;  %v16868_v58 = vsub.s32 0, %v16832_v56 }
 0x178   :  { %v3801_v60 = vcombine.low %v16856_v49, %v3171_v42  ;;  %v5160_v7 = vcombine.low %v5138_v52, %v5145_v54  ;;  %v3173_v12 = vcombine.high %v16856_v49, %v16856_v49 }
 0x179   :  { %v350_v5 = vmul.f32 0.010204081, %v348_v61  ;;  %v351_v6 = vmul.f32 %v349_v63, %v349_v63  ;;  %20536 = vst [vmem:[#allocation24_spill] sm:$0xff] %v16868_v58  ;;  %v16872_v61 = vrot.slane %v4470_v26, %v16835_v59  ;;  %v2472_v2 = vcombine.low %v16865_v57, %v1842_v46 }
 0x17a   :  { %v16882_v14 = vrot.slane %v3801_v60, %v16835_v59  ;;  %v16901_v23 = vrot.slane %v5160_v7, %v16835_v59 }
 0x17b   :  { %v352_v9 = vsub.f32 %v350_v5, %v351_v6  ;;  %v5130_v6 = vcombine.low %v16872_v61, %v4500_v50  ;;  %v16890_v17 = vrot.slane %v2472_v2, %v16835_v59 }
 0x17d   :  { %v353_v15 = vadd.f32 1e-05, %v352_v9  ;;  %v296_v9 = vld [vmem:[#allocation9] sm:$0x1]  ;;  %v16898_v21 = vrot.slane %v5130_v6, %v16835_v59 }
 0x17f   :  { %16366 = vrsqrt.f32 %v353_v15  ;;  %v16885_v15 = vrot.slane %v3831_v1, %v16835_v59 }
 0x18c   :  { %v16367_v0 = vpop.eup %16366 }
 0x18d   :  { %v355_v5 = vmul.f32 %v16367_v0, %v295_v55 }
 0x18f   :  { %v356_v10 = vmul.f32 %v355_v5, %v349_v63  ;;  %v16877_v11 = vrot.slane %v355_v5, %v16868_v58  ;;  %v16893_v63 = vrot.slane %v2502_v4, %v16835_v59 }
 0x191   :  { %v357_v19 = vsub.f32 %v296_v9, %v356_v10  ;;  %v372_v24 = vmul.f32 %v16877_v11, %v16795_v53  ;;  %v373_v25 = vmul.f32 %v16877_v11, %v16803_v3  ;;  %v374_v26 = vmul.f32 %v16877_v11, %v16811_v13 }
 0x192   :  { %v375_v27 = vmul.f32 %v16877_v11, %v16819_v22  ;;  %v376_v29 = vmul.f32 %v16877_v11, %v16825_v30  ;;  %v364_v32 = vmul.f32 %v16877_v11, %v16765_v38  ;;  %v365_v53 = vmul.f32 %v16877_v11, %v16767_v51 }
 0x193   :  { %v16914_v31 = vrot.slane %v357_v19, %v16868_v58  ;;  %v366_v3 = vmul.f32 %v16877_v11, %v16769_v62  ;;  %v16924_v13 = vmul.f32 %v16877_v11, %v16771_v8  ;;  %v16928_v22 = vmul.f32 %v16877_v11, %v16773_v18  ;;  %v15166_v58 = vld [vmem:[#allocation15 + $0x28] sm:$0xff] }
 0x194   :  { %v16932_v30 = vmul.f32 %v16877_v11, %v16775_v28 }
 0x195   :  { %v391_v38 = vadd.f32 %v16914_v31, %v372_v24  ;;  %v392_v33 = vadd.f32 %v16914_v31, %v373_v25  ;;  %v393_v51 = vadd.f32 %v16914_v31, %v374_v26  ;;  %v394_v62 = vadd.f32 %v16914_v31, %v375_v27 }
 0x196   :  { %v395_v34 = vadd.f32 %v16914_v31, %v376_v29  ;;  %v383_v8 = vadd.f32 %v16914_v31, %v364_v32  ;;  %v384_v35 = vadd.f32 %v16914_v31, %v365_v53  ;;  %v385_v18 = vadd.f32 %v16914_v31, %v366_v3 }
 0x197   :  { %v404_v36 = vmax.f32 %v391_v38, 0.0  ;;  %v405_v39 = vmax.f32 %v392_v33, 0.0  ;;  %v406_v28 = vmax.f32 %v393_v51, 0.0  ;;  %v407_v40 = vmax.f32 %v394_v62, 0.0 }
 0x198   :  { %v408_v41 = vmax.f32 %v395_v34, 0.0  ;;  %v16942_v42 = vmax.f32 %v383_v8, 0.0  ;;  %v16944_v43 = vmax.f32 %v384_v35, 0.0  ;;  %v16946_v45 = vmax.f32 %v385_v18, 0.0 }
 0x199   :  { %v814_v46 = vcombine.high %v404_v36, %v404_v36  ;;  %v16949_v47 = vrot.slane %v404_v36, %v16835_v59  ;;  %v863_v48 = vcombine.high %v405_v39, %v405_v39  ;;  %v870_v50 = vrot.slane %v405_v39, %v16835_v59 }
 0x19a   :  { %v912_v52 = vcombine.high %v406_v28, %v406_v28  ;;  %v919_v54 = vrot.slane %v406_v28, %v16835_v59  ;;  %v961_v55 = vcombine.high %v407_v40, %v407_v40  ;;  %v968_v60 = vrot.slane %v407_v40, %v16835_v59 }
 0x19b   :  { %v828_v0 = vrot.slane %v814_v46, %v16835_v59  ;;  %v829_v1 = vcombine.high %v16949_v47, %v16949_v47  ;;  %v877_v2 = vrot.slane %v863_v48, %v16835_v59  ;;  %v878_v4 = vcombine.high %v870_v50, %v870_v50 }
 0x19c   :  { %v886_v5 = vrot.slane %v870_v50, %v16835_v59  ;;  %v926_v6 = vrot.slane %v912_v52, %v16835_v59  ;;  %v927_v7 = vcombine.high %v919_v54, %v919_v54  ;;  %v935_v9 = vrot.slane %v919_v54, %v16835_v59 }
 0x19d   :  { %v830_v10 = vcombine.high %v828_v0, %v828_v0  ;;  %v844_v19 = vrot.slane %v828_v0, %v16835_v59  ;;  %v16963_v24 = vrot.slane %v829_v1, %v16835_v59  ;;  %v879_v25 = vcombine.high %v877_v2, %v877_v2 }
 0x19e   :  { %v893_v26 = vrot.slane %v877_v2, %v16835_v59  ;;  %v900_v27 = vrot.slane %v878_v4, %v16835_v59  ;;  %v928_v29 = vcombine.high %v926_v6, %v926_v6  ;;  %v942_v32 = vrot.slane %v926_v6, %v16835_v59 }
 0x19f   :  { %v16969_v53 = vrot.slane %v830_v10, %v16835_v59  ;;  %v861_v3 = vcombine.high %v16963_v24, %v16963_v24  ;;  %v907_v38 = vrot.slane %v879_v25, %v16835_v59  ;;  %v949_v33 = vrot.slane %v927_v7, %v16835_v59 }
 0x1a0   :  { %v909_v51 = vcombine.high %v893_v26, %v893_v26  ;;  %v956_v62 = vrot.slane %v928_v29, %v16835_v59  ;;  %v957_v34 = vcombine.high %v935_v9, %v935_v9  ;;  %v975_v8 = vrot.slane %v961_v55, %v16835_v59 }
 0x1a1   :  { %v911_v35 = vcombine.high %v907_v38, %v907_v38  ;;  %v959_v18 = vcombine.high %v949_v33, %v949_v33  ;;  %v976_v36 = vcombine.high %v968_v60, %v968_v60  ;;  %v984_v39 = vrot.slane %v968_v60, %v16835_v59 }
 0x1a2   :  { %v977_v28 = vcombine.high %v975_v8, %v975_v8  ;;  %v991_v40 = vrot.slane %v975_v8, %v16835_v59  ;;  %v1016_v46 = vrot.slane %v408_v41, %v16835_v59  ;;  %v16980_v48 = vcombine.low %v861_v3, %v844_v19 }
 0x1a3   :  { %v998_v50 = vrot.slane %v976_v36, %v16835_v59  ;;  %v1006_v52 = vcombine.high %v984_v39, %v984_v39  ;;  %v15671_v54 = vcombine.high %v844_v19, %v16969_v53  ;;  %v1513_v0 = vcombine.low %v886_v5, %v900_v27 }
 0x1a4   :  { %v1005_v55 = vrot.slane %v977_v28, %v16835_v59  ;;  %v1007_v1 = vcombine.high %v991_v40, %v991_v40  ;;  %v1017_v2 = vcombine.high %v1016_v46, %v1016_v46  ;;  %v1024_v4 = vrot.slane %v1016_v46, %v16835_v59 }
 0x1a5   :  { %v1008_v60 = vcombine.high %v998_v50, %v998_v50  ;;  %v15672_v6 = vcombine.high %v886_v5, %v900_v27  ;;  %v1521_v7 = vrot.slane %v15671_v54, %v16835_v59  ;;  %v1528_v41 = vrot.slane %v1513_v0, %v16835_v59 }
 0x1a6   :  { %v1009_v10 = vcombine.high %v1005_v55, %v1005_v55  ;;  %v1031_v25 = vrot.slane %v1017_v2, %v16835_v59  ;;  %v1542_v29 = vrot.slane %v893_v26, %v16835_v59  ;;  %v1560_v3 = vcombine.low %v907_v38, %v909_v51 }
 0x1a7   :  { %v1535_v19 = vrot.slane %v15672_v6, %v16835_v59  ;;  %v1543_v8 = vcombine.low %v1521_v7, %v1528_v41  ;;  %v1561_v36 = vcombine.low %v911_v35, %v935_v9  ;;  %v1562_v28 = vcombine.low %v949_v33, %v957_v34 }
 0x1a8   :  { %v1569_v20 = vrot.slane %v1560_v3, %v16835_v59  ;;  %v1590_v46 = vrot.slane %v959_v18, %v16835_v59  ;;  %v1608_v5 = vcombine.low %v942_v32, %v956_v62  ;;  %v15673_v27 = vcombine.high %v942_v32, %v956_v62 }
 0x1a9   :  { %v1544_v54 = vcombine.low %v1535_v19, %v1542_v29  ;;  %v1551_v0 = vrot.slane %v1543_v8, %v16835_v59  ;;  %v1576_v16 = vrot.slane %v1561_v36, %v16835_v59  ;;  %v1583_v2 = vrot.slane %v1562_v28, %v16835_v59 }
 0x1aa   :  { %v1610_v26 = vcombine.low %v984_v39, %v998_v50  ;;  %v1617_v38 = vrot.slane %v1608_v5, %v16835_v59  ;;  %v1624_v51 = vrot.slane %v15673_v27, %v16835_v59  ;;  %v1638_v9 = vrot.slane %v1006_v52, %v16835_v59 }
 0x1ab   :  { %v1558_v33 = vrot.slane %v1544_v54, %v16835_v59  ;;  %v1591_v34 = vcombine.low %v1569_v20, %v1576_v16  ;;  %v1592_v35 = vcombine.low %v1583_v2, %v1590_v46  ;;  %v1656_v18 = vcombine.low %v1008_v60, %v991_v40 }
 0x1ac   :  { %v1631_v32 = vrot.slane %v1610_v26, %v16835_v59  ;;  %v1639_v62 = vcombine.low %v1617_v38, %v1624_v51  ;;  %v1657_v6 = vcombine.low %v1005_v55, %v1007_v1  ;;  %v1658_v7 = vcombine.low %v1009_v10, %v1024_v4 }
 0x1ad   :  { %v1559_v41 = vcombine.low %v1551_v0, %v1558_v33  ;;  %v1599_v29 = vrot.slane %v1591_v34, %v16835_v59  ;;  %v1606_v39 = vrot.slane %v1592_v35, %v16835_v59  ;;  %v1665_v50 = vrot.slane %v1656_v18, %v16835_v59 }
 0x1ae   :  { %v1640_v3 = vcombine.low %v1631_v32, %v1638_v9  ;;  %v1647_v52 = vrot.slane %v1639_v62, %v16835_v59  ;;  %v1672_v19 = vrot.slane %v1657_v6, %v16835_v59  ;;  %v1679_v16 = vrot.slane %v1658_v7, %v16835_v59 }
 0x1af   :  { %v1607_v20 = vcombine.low %v1599_v29, %v1606_v39  ;;  %v1686_v40 = vrot.slane %v1031_v25, %v16835_v59  ;;  %1729 = vst [vmem:[#allocation2 + $0xd1] sm:$0x7f] %v1559_v41  ;;  %v422_v55 = vcombine.high %v16942_v42, %v16942_v42  ;;  %v429_v1 = vrot.slane %v16942_v42, %v16835_v59 }
 0x1b0   :  { %v1654_v4 = vrot.slane %v1640_v3, %v16835_v59  ;;  %v1687_v60 = vcombine.low %v1665_v50, %v1672_v19  ;;  %v471_v10 = vcombine.high %v16944_v43, %v16944_v43  ;;  %v478_v8 = vrot.slane %v16944_v43, %v16835_v59 }
 0x1b1   :  { %v1688_v36 = vcombine.low %v1679_v16, %v1686_v40  ;;  %1730 = vst [vmem:[#allocation2 + $0xe1] sm:$0x7f] %v1607_v20  ;;  %v436_v25 = vrot.slane %v422_v55, %v16835_v59  ;;  %v437_v28 = vcombine.high %v429_v1, %v429_v1  ;;  %v445_v46 = vrot.slane %v429_v1, %v16835_v59 }
 0x1b2   :  { %v1655_v5 = vcombine.low %v1647_v52, %v1654_v4  ;;  %v1695_v27 = vrot.slane %v1687_v60, %v16835_v59  ;;  %v485_v42 = vrot.slane %v471_v10, %v16835_v59  ;;  %v486_v54 = vcombine.high %v478_v8, %v478_v8 }
 0x1b3   :  { %v1702_v0 = vrot.slane %v1688_v36, %v16835_v59  ;;  %v438_v2 = vcombine.high %v436_v25, %v436_v25  ;;  %v452_v26 = vrot.slane %v436_v25, %v16835_v59  ;;  %v459_v43 = vrot.slane %v437_v28, %v16835_v59 }
 0x1b4   :  { %1731 = vst [vmem:[#allocation2 + $0xf1] sm:$0x7f] %v1655_v5  ;;  %v487_v38 = vcombine.high %v485_v42, %v485_v42  ;;  %v494_v51 = vrot.slane %v478_v8, %v16835_v59  ;;  %v501_v9 = vrot.slane %v485_v42, %v16835_v59  ;;  %v508_v33 = vrot.slane %v486_v54, %v16835_v59 }
 0x1b5   :  { %v1703_v34 = vcombine.low %v1695_v27, %v1702_v0  ;;  %v466_v35 = vrot.slane %v438_v2, %v16835_v59  ;;  %v468_v18 = vcombine.high %v452_v26, %v452_v26  ;;  %v1032_v32 = vcombine.low %v445_v46, %v459_v43 }
 0x1b6   :  { %v15664_v62 = vcombine.high %v445_v46, %v459_v43  ;;  %v515_v6 = vrot.slane %v487_v38, %v16835_v59  ;;  %v516_v7 = vcombine.high %v494_v51, %v494_v51  ;;  %v518_v41 = vcombine.high %v508_v33, %v508_v33 }
 0x1b7   :  { %1732 = vst [vmem:[#allocation2 + $0x101] sm:$0x7f] %v1703_v34  ;;  %v1034_v29 = vcombine.low %v452_v26, %v466_v35  ;;  %v1041_v39 = vrot.slane %v1032_v32, %v16835_v59  ;;  %v1062_v50 = vrot.slane %v468_v18, %v16835_v59  ;;  %v470_v3 = vcombine.high %v466_v35, %v466_v35 }
 0x1b8   :  { %v1048_v52 = vrot.slane %v15664_v62, %v16835_v59  ;;  %v1081_v19 = vcombine.low %v508_v33, %v516_v7  ;;  %v1082_v16 = vcombine.low %v518_v41, %v501_v9  ;;  %v1110_v20 = vrot.slane %v515_v6, %v16835_v59 }
 0x1b9   :  { %v1055_v40 = vrot.slane %v1034_v29, %v16835_v59  ;;  %v1080_v55 = vcombine.low %v470_v3, %v494_v51  ;;  %v520_v1 = vcombine.high %v16946_v45, %v16946_v45  ;;  %v527_v4 = vrot.slane %v16946_v45, %v16835_v59 }
 0x1ba   :  { %v1063_v60 = vcombine.low %v1041_v39, %v1048_v52  ;;  %v1096_v10 = vrot.slane %v1081_v19, %v16835_v59  ;;  %v1103_v8 = vrot.slane %v1082_v16, %v16835_v59  ;;  %v15665_v36 = vcombine.high %v501_v9, %v515_v6 }
 0x1bb   :  { %v1064_v25 = vcombine.low %v1055_v40, %v1062_v50  ;;  %v1089_v28 = vrot.slane %v1080_v55, %v16835_v59  ;;  %v534_v46 = vrot.slane %v520_v1, %v16835_v59  ;;  %v535_v5 = vcombine.high %v527_v4, %v527_v4 }
 0x1bc   :  { %v1071_v27 = vrot.slane %v1063_v60, %v16835_v59  ;;  %v1112_v42 = vcombine.low %v1103_v8, %v1110_v20  ;;  %v543_v54 = vrot.slane %v527_v4, %v16835_v59  ;;  %v1137_v0 = vrot.slane %v15665_v36, %v16835_v59 }
 0x1bd   :  { %v1078_v45 = vrot.slane %v1064_v25, %v16835_v59  ;;  %v1111_v2 = vcombine.low %v1089_v28, %v1096_v10  ;;  %v550_v26 = vrot.slane %v534_v46, %v16835_v59  ;;  %v557_v43 = vrot.slane %v535_v5, %v16835_v59 }
 0x1be   :  { %v1126_v38 = vrot.slane %v1112_v42, %v16835_v59  ;;  %v386_v51 = vadd.f32 %v16914_v31, %v16924_v13  ;;  %v536_v9 = vcombine.high %v534_v46, %v534_v46  ;;  %v387_v33 = vadd.f32 %v16914_v31, %v16928_v22 }
 0x1bf   :  { %v1079_v34 = vcombine.low %v1071_v27, %v1078_v45  ;;  %v1119_v35 = vrot.slane %v1111_v2, %v16835_v59  ;;  %v1129_v18 = vcombine.low %v543_v54, %v557_v43  ;;  %v15666_v32 = vcombine.high %v543_v54, %v557_v43 }
 0x1c0   :  { %v1158_v62 = vrot.slane %v550_v26, %v16835_v59  ;;  %v399_v6 = vmax.f32 %v386_v51, 0.0  ;;  %v564_v7 = vrot.slane %v536_v9, %v16835_v59  ;;  %v566_v41 = vcombine.high %v550_v26, %v550_v26 }
 0x1c1   :  { %1719 = vst [vmem:[#allocation2 + $0x11] sm:$0x7f] %v1079_v34  ;;  %v1127_v29 = vcombine.low %v1119_v35, %v1126_v38  ;;  %v1144_v39 = vrot.slane %v1129_v18, %v16835_v59  ;;  %v1151_v13 = vrot.slane %v15666_v32, %v16835_v59  ;;  %v17058_v50 = vmax.f32 %v387_v33, 0.0 }
 0x1c2   :  { %v568_v22 = vcombine.high %v564_v7, %v564_v7  ;;  %v576_v3 = vrot.slane %v399_v6, %v16835_v59  ;;  %v17061_v52 = vcombine.low %v564_v7, %v566_v41  ;;  %v569_v19 = vcombine.high %v399_v6, %v399_v6 }
 0x1c3   :  { %1720 = vst [vmem:[#allocation2 + $0x21] sm:$0x7f] %v1127_v29  ;;  %v1159_v16 = vcombine.low %v1137_v0, %v1144_v39  ;;  %v1160_v20 = vcombine.low %v1151_v13, %v1158_v62  ;;  %v625_v40 = vrot.slane %v17058_v50, %v16835_v59  ;;  %v17067_v55 = vadd.f32 %v16914_v31, %v16932_v30 }
 0x1c4   :  { %v584_v1 = vcombine.high %v576_v3, %v576_v3  ;;  %v592_v4 = vrot.slane %v576_v3, %v16835_v59  ;;  %v1185_v60 = vrot.slane %v17061_v52, %v16835_v59  ;;  %v583_v10 = vrot.slane %v569_v19, %v16835_v59 }
 0x1c5   :  { %v1167_v8 = vrot.slane %v1159_v16, %v16835_v59  ;;  %v1174_v36 = vrot.slane %v1160_v20, %v16835_v59  ;;  %v633_v25 = vcombine.high %v625_v40, %v625_v40  ;;  %v17076_v28 = vrot.slane %v625_v40, %v16835_v59 }
 0x1c6   :  { %v17079_v46 = vrot.slane %v584_v1, %v16835_v59  ;;  %v614_v30 = vcombine.high %v592_v4, %v592_v4  ;;  %v17081_v5 = vcombine.low %v568_v22, %v592_v4  ;;  %v585_v27 = vcombine.high %v583_v10, %v583_v10 }
 0x1c7   :  { %v1175_v42 = vcombine.low %v1167_v8, %v1174_v36  ;;  %v17084_v54 = vrot.slane %v583_v10, %v16835_v59  ;;  %v17087_v0 = vrot.slane %v633_v25, %v16835_v59  ;;  %v20537_v10 = vcombine.high %v16865_v57, %v16865_v57 }
 0x1c8   :  { %v3100_v2 = vld [vmem:[#allocation2 + $0x11] sm:$0x7f]  ;;  %v616_v38 = vcombine.high %v17079_v46, %v17079_v46  ;;  %v17096_v51 = vcombine.low %v17079_v46, %v614_v30  ;;  %v1192_v9 = vrot.slane %v17081_v5, %v16835_v59  ;;  %v17101_v33 = vrot.slane %v585_v27, %v16835_v59 }
 0x1c9   :  { %v17091_v26 = vld [vmem:[#allocation2 + $0x10] sm:$0x7f]  ;;  %v3175_v34 = vcombine.high %v3100_v2, %v3100_v2  ;;  %v3182_v35 = vrot.slane %v3100_v2, %v16835_v59  ;;  %1721 = vst [vmem:[#allocation2 + $0x31] sm:$0x7f] %v1175_v42 }
 0x1ca   :  { %v5757_v43 = vld [vmem:[#allocation2 + $0x10] sm:$0x7f]  ;;  %v17106_v18 = vrot.slane %v17091_v26, %v16835_v59  ;;  %v17110_v6 = vld [vmem:[#allocation2 + $0x21] sm:$0x7f]  ;;  %v1846_v41 = vcombine.high %v17091_v26, %v17091_v26 }
 0x1cb   :  { %v5785_v32 = vcombine.high %v5757_v43, %v5757_v43  ;;  %v17108_v62 = vld [vmem:[#allocation2 + $0x12] sm:$0x7f]  ;;  %v5792_v7 = vrot.slane %v5757_v43, %v16835_v59  ;;  %v3198_v13 = vrot.slane %v3182_v35, %v16835_v59  ;;  %v3189_v3 = vrot.slane %v3175_v34, %v16835_v59  ;;  %v17176_v45 = vld [vmem:[#allocation2 + $0x20] sm:$0x7f] }
 0x1cc   :  { %v17117_v29 = vrot.slane %v17108_v62, %v16835_v59  ;;  %v4504_v39 = vcombine.high %v17108_v62, %v17108_v62  ;;  %v17124_v22 = vrot.slane %v17106_v18, %v16835_v59  ;;  %v3190_v19 = vcombine.high %v3182_v35, %v3182_v35 }
 0x1cd   :  { %v3230_v16 = vrot.slane %v17110_v6, %v16835_v59  ;;  %v5799_v20 = vrot.slane %v5785_v32, %v16835_v59  ;;  %v5800_v40 = vcombine.high %v5792_v7, %v5792_v7  ;;  %v5808_v1 = vrot.slane %v5792_v7, %v16835_v59 }
 0x1ce   :  { %v3802_v4 = vcombine.low %v3173_v12, %v3198_v13  ;;  %v2473_v8 = vcombine.low %v20537_v10, %v17124_v22  ;;  %v3191_v36 = vcombine.high %v3189_v3, %v3189_v3  ;;  %v3205_v25 = vrot.slane %v3189_v3, %v16835_v59 }
 0x1cf   :  { %v3212_v30 = vrot.slane %v3190_v19, %v16835_v59  ;;  %v3220_v27 = vcombine.high %v3198_v13, %v3198_v13  ;;  %v3238_v42 = vcombine.high %v3230_v16, %v3230_v16  ;;  %v17141_v2 = vrot.slane %v3230_v16, %v16835_v59  ;;  %v17151_v19 = vld [vmem:[#allocation2 + $0x20] sm:$0x7f] }
 0x1d0   :  { %v3830_v26 = vrot.slane %v3802_v4, %v16835_v59  ;;  %v2501_v49 = vrot.slane %v2473_v8, %v16835_v59  ;;  %v3219_v12 = vrot.slane %v3191_v36, %v16835_v59  ;;  %v3221_v43 = vcombine.high %v3205_v25, %v3205_v25 }
 0x1d1   :  { %v3222_v34 = vcombine.high %v3212_v30, %v3212_v30  ;;  %v17147_v57 = vrot.slane %v3238_v42, %v16835_v59  ;;  %v3848_v35 = vcombine.low %v3212_v30, %v3220_v27  ;;  %v5801_v32 = vcombine.high %v5799_v20, %v5799_v20 }
 0x1d2   :  { %v3832_v7 = vcombine.low %v16882_v14, %v3830_v26  ;;  %v2503_v13 = vcombine.low %v16890_v17, %v2501_v49  ;;  %v3850_v3 = vcombine.low %v3219_v12, %v3221_v43  ;;  %v5815_v16 = vrot.slane %v5799_v20, %v16835_v59 }
 0x1d3   :  { %v3849_v4 = vcombine.low %v3222_v34, %v3205_v25  ;;  %v3851_v10 = vcombine.low %v17141_v2, %v17147_v57  ;;  %v3858_v8 = vrot.slane %v3848_v35, %v16835_v59  ;;  %v5822_v36 = vrot.slane %v5800_v40, %v16835_v59  ;;  %v13928_v34 = vld [vmem:[#allocation10 + $0x278] sm:$0xff] }
 0x1d4   :  { %v3846_v30 = vrot.slane %v3832_v7, %v16835_v59  ;;  %v2517_v27 = vrot.slane %v2503_v13, %v16835_v59  ;;  %v3872_v14 = vrot.slane %v3850_v3, %v16835_v59  ;;  %v5829_v17 = vrot.slane %v5801_v32, %v16835_v59 }
 0x1d5   :  { %v3865_v42 = vrot.slane %v3849_v4, %v16835_v59  ;;  %v3879_v20 = vrot.slane %v3851_v10, %v16835_v59  ;;  %v5831_v25 = vcombine.high %v5815_v16, %v5815_v16  ;;  %v17166_v26 = vrot.slane %v17151_v19, %v16835_v59  ;;  %v13943_v10 = vld [vmem:[#allocation10 + $0x2f0] sm:$0xff] }
 0x1d6   :  { %v3847_v49 = vcombine.low %v16885_v15, %v3846_v30  ;;  %v2518_v40 = vcombine.low %v16893_v63, %v2517_v27  ;;  %v6457_v12 = vcombine.low %v5808_v1, %v5822_v36  ;;  %v15698_v43 = vcombine.high %v5808_v1, %v5822_v36  ;;  %v13927_v30 = vld [vmem:[#allocation10 + $0x270] sm:$0xff] }
 0x1d7   :  { %v3880_v35 = vcombine.low %v3858_v8, %v3865_v42  ;;  %v3881_v7 = vcombine.low %v3872_v14, %v3879_v20  ;;  %v17172_v32 = vrot.slane %v17166_v26, %v16835_v59  ;;  %v6459_v13 = vcombine.low %v5815_v16, %v5829_v17 }
 0x1d8   :  { %14057 = vmatprep.mubr.f32.mxu1 %v3847_v49  ;;  %v6467_v3 = vrot.slane %v6457_v12, %v16835_v59  ;;  %v6474_v4 = vrot.slane %v15698_v43, %v16835_v59  ;;  %v1860_v15 = vrot.slane %v1846_v41, %v16835_v59  ;;  %v1861_v63 = vcombine.high %v17106_v18, %v17106_v18  ;;  %v13942_v49 = vld [vmem:[#allocation10 + $0x2e8] sm:$0xff] }
 0x1d9   :  { %14058 = vmatmul.mubr.f32.vlgmr.msra.gmra.mxu1 %v2518_v40  ;;  %v3888_v1 = vrot.slane %v3880_v35, %v16835_v59  ;;  %v3895_v8 = vrot.slane %v3881_v7, %v16835_v59  ;;  %v6460_v16 = vcombine.low %v5831_v25, %v17172_v32  ;;  %v6481_v36 = vrot.slane %v6459_v13, %v16835_v59  ;;  %v17194_v35 = vld [vmem:[#allocation2 + $0x31] sm:$0x7f]  ;;  %v13926_v7 = vld [vmem:[#allocation10 + $0x268] sm:$0xff] }
 0x1da   :  { %15918 = vmatpush3.msra.mxu1 %v13928_v34  ;;  %v6489_v27 = vcombine.low %v6467_v3, %v6474_v4  ;;  %v1862_v14 = vcombine.high %v1860_v15, %v1860_v15  ;;  %v1876_v17 = vrot.slane %v1860_v15, %v16835_v59  ;;  %v1883_v41 = vrot.slane %v1861_v63, %v16835_v59 }
 0x1db   :  { %v3896_v42 = vcombine.low %v3888_v1, %v3895_v8  ;;  %v6488_v18 = vrot.slane %v6460_v16, %v16835_v59  ;;  %15919 = vmatprep.subr.mxu1 %v13943_v10  ;;  %v1891_v20 = vcombine.high %v17124_v22, %v17124_v22  ;;  %v1901_v25 = vrot.slane %v17176_v45, %v16835_v59  ;;  %v13941_v10 = vld [vmem:[#allocation10 + $0x2e0] sm:$0xff] }
 0x1dc   :  { %v6497_v40 = vrot.slane %v6489_v27, %v16835_v59  ;;  %v1890_v12 = vrot.slane %v1862_v14, %v16835_v59  ;;  %v1892_v43 = vcombine.high %v1876_v17, %v1876_v17  ;;  %v1893_v34 = vcombine.high %v1883_v41, %v1883_v41  ;;  %15920 = vmatpush3.msra.mxu1 %v13927_v30  ;;  %v13925_v16 = vld [vmem:[#allocation10 + $0x260] sm:$0xff] }
 0x1dd   :  { %14062 = vmatprep.mubr.f32.mxu1 %v3896_v42  ;;  %v6490_v13 = vcombine.low %v6481_v36, %v6488_v18  ;;  %v1909_v3 = vcombine.high %v1901_v25, %v1901_v25  ;;  %v17197_v4 = vrot.slane %v1901_v25, %v16835_v59  ;;  %v2519_v22 = vcombine.low %v1883_v41, %v1891_v20 }
 0x1de   :  { %v2520_v15 = vcombine.low %v1893_v34, %v1876_v17  ;;  %v2521_v63 = vcombine.low %v1890_v12, %v1892_v43  ;;  %v17201_v1 = vrot.slane %v17117_v29, %v16835_v59  ;;  %v3223_v8 = vcombine.high %v17110_v6, %v17110_v6  ;;  %15921 = vmatprep.subr.mxu1 %v13942_v49  ;;  %v13940_v17 = vld [vmem:[#allocation10 + $0x2d8] sm:$0xff] }
 0x1df   :  { %v6504_v30 = vrot.slane %v6490_v13, %v16835_v59  ;;  %v17207_v36 = vrot.slane %v1909_v3, %v16835_v59  ;;  %v2529_v27 = vrot.slane %v2519_v22, %v16835_v59  ;;  %v3278_v14 = vrot.slane %v17194_v35, %v16835_v59  ;;  %15922 = vmatpush3.msra.mxu1 %v13926_v7  ;;  %v13924_v34 = vld [vmem:[#allocation10 + $0x258] sm:$0xff] }
 0x1e0   :  { %v2536_v41 = vrot.slane %v2520_v15, %v16835_v59  ;;  %v2543_v42 = vrot.slane %v2521_v63, %v16835_v59  ;;  %v20538_v6 = vcombine.high %v16872_v61, %v16872_v61  ;;  %v3237_v20 = vrot.slane %v3223_v8, %v16835_v59  ;;  %15923 = vmatprep.subr.mxu1 %v13941_v10  ;;  %v13939_v61 = vld [vmem:[#allocation10 + $0x2d0] sm:$0xff] }
 0x1e1   :  { %v6505_v25 = vcombine.low %v6497_v40, %v6504_v30  ;;  %v2522_v49 = vcombine.low %v17197_v4, %v17207_v36  ;;  %v3286_v12 = vcombine.high %v3278_v14, %v3278_v14  ;;  %v3294_v43 = vrot.slane %v3278_v14, %v16835_v59  ;;  %15924 = vmatpush3.msra.mxu1 %v13925_v16  ;;  %v13923_v8 = vld [vmem:[#allocation10 + $0x250] sm:$0xff] }
 0x1e2   :  { %v5131_v18 = vcombine.low %v20538_v6, %v17201_v1  ;;  %v2551_v7 = vcombine.low %v2529_v27, %v2536_v41  ;;  %v3239_v3 = vcombine.high %v3237_v20, %v3237_v20  ;;  %v3253_v22 = vrot.slane %v3237_v20, %v16835_v59  ;;  %15925 = vmatprep.subr.mxu1 %v13940_v17  ;;  %v13938_v17 = vld [vmem:[#allocation10 + $0x2c8] sm:$0xff] }
 0x1e3   :  { %14187 = vmatprep.mubr.f32.mxu0 %v6505_v25  ;;  %v2550_v10 = vrot.slane %v2522_v49, %v16835_v59  ;;  %v17226_v40 = vrot.slane %v3286_v12, %v16835_v59  ;;  %v3316_v15 = vcombine.high %v3294_v43, %v3294_v43  ;;  %v15683_v63 = vcombine.high %v17141_v2, %v17147_v57  ;;  %v13922_v2 = vld [vmem:[#allocation10 + $0x248] sm:$0xff] }
 0x1e4   :  { %v5159_v13 = vrot.slane %v5131_v18, %v16835_v59  ;;  %v2559_v16 = vrot.slane %v2551_v7, %v16835_v59  ;;  %v3267_v27 = vrot.slane %v3239_v3, %v16835_v59  ;;  %v3269_v14 = vcombine.high %v3253_v22, %v3253_v22  ;;  %15926 = vmatpush3.msra.mxu1 %v13924_v34 }
 0x1e5   :  { %v2552_v41 = vcombine.low %v2543_v42, %v2550_v10  ;;  %v3900_v6 = vcombine.low %v17226_v40, %v3316_v15  ;;  %v3907_v18 = vrot.slane %v15683_v63, %v16835_v59  ;;  %v5833_v20 = vcombine.high %v17151_v19, %v17151_v19  ;;  %15927 = vmatprep.subr.mxu1 %v13939_v61 }
 0x1e6   :  { %v5161_v30 = vcombine.low %v16898_v21, %v5159_v13  ;;  %v3898_v25 = vcombine.low %v3253_v22, %v3267_v27  ;;  %v3899_v49 = vcombine.low %v3269_v14, %v3294_v43  ;;  %v17238_v21 = vld [vmem:[#allocation2 + $0x30] sm:$0x7f]  ;;  %v5848_v12 = vcombine.high %v17166_v26, %v17166_v26  ;;  %15928 = vmatpush3.msra.mxu1 %v13923_v8 }
 0x1e7   :  { %v2566_v42 = vrot.slane %v2552_v41, %v16835_v59  ;;  %v3928_v34 = vrot.slane %v3900_v6, %v16835_v59  ;;  %v5847_v7 = vrot.slane %v5833_v20, %v16835_v59  ;;  %v5878_v19 = vcombine.high %v17172_v32, %v17172_v32  ;;  %15929 = vmatprep.subr.mxu1 %v13938_v17 }
 0x1e8   :  { %v5175_v57 = vrot.slane %v5161_v30, %v16835_v59  ;;  %v3914_v43 = vrot.slane %v3898_v25, %v16835_v59  ;;  %v3921_v3 = vrot.slane %v3899_v49, %v16835_v59  ;;  %v5870_v22 = vrot.slane %v5848_v12, %v16835_v59  ;;  %15930 = vmatpush3.msra.mxu1 %v13922_v2 }
 0x1e9   :  { %v2567_v26 = vcombine.low %v2559_v16, %v2566_v42  ;;  %v5849_v61 = vcombine.high %v5847_v7, %v5847_v7  ;;  %v5863_v10 = vrot.slane %v5847_v7, %v16835_v59  ;;  %v5888_v15 = vrot.slane %v17238_v21, %v16835_v59 }
 0x1ea   :  { %v5176_v13 = vcombine.low %v16901_v23, %v5175_v57  ;;  %v3929_v63 = vcombine.low %v3907_v18, %v3914_v43  ;;  %v3930_v32 = vcombine.low %v3921_v3, %v3928_v34  ;;  %v5880_v8 = vcombine.high %v5870_v22, %v5870_v22  ;;  %v17254_v23 = vld [vmem:[#allocation2 + $0x30] sm:$0x7f] }
 0x1eb   :  { %v6506_v30 = vcombine.low %v5870_v22, %v5878_v19  ;;  %14063 = vmatmul.mubr.f32.gmra.mxu1 %v2567_v26  ;;  %v5877_v27 = vrot.slane %v5849_v61, %v16835_v59  ;;  %v5879_v14 = vcombine.high %v5863_v10, %v5863_v10  ;;  %v5896_v17 = vcombine.high %v5888_v15, %v5888_v15 }
 0x1ec   :  { %14188 = vmatmul.mubr.f32.vlgmr.msra.gmra.mxu0 %v5176_v13  ;;  %v17258_v16 = vrot.slane %v5888_v15, %v16835_v59  ;;  %v3937_v41 = vrot.slane %v3929_v63, %v16835_v59  ;;  %v3944_v6 = vrot.slane %v3930_v32, %v16835_v59  ;;  %v6507_v20 = vcombine.low %v5880_v8, %v5863_v10 }
 0x1ed   :  { %v6516_v18 = vrot.slane %v6506_v30, %v16835_v59  ;;  %v17264_v2 = vrot.slane %v5896_v17, %v16835_v59  ;;  %v6508_v57 = vcombine.low %v5877_v27, %v5879_v14  ;;  %v1894_v25 = vcombine.high %v17176_v45, %v17176_v45  ;;  %v17293_v14 = vld [vmem:[#allocation2 + $0x22] sm:$0x7f] }
 0x1ee   :  { %v1949_v49 = vrot.slane %v17254_v23, %v16835_v59  ;;  %v3945_v12 = vcombine.low %v3937_v41, %v3944_v6  ;;  %v6523_v42 = vrot.slane %v6507_v20, %v16835_v59  ;;  %v15675_v34 = vcombine.high %v17197_v4, %v17207_v36 }
 0x1ef   :  { %v4518_v7 = vrot.slane %v4504_v39, %v16835_v59  ;;  %v6509_v19 = vcombine.low %v17258_v16, %v17264_v2  ;;  %v6530_v13 = vrot.slane %v6508_v57, %v16835_v59  ;;  %v1908_v45 = vrot.slane %v1894_v25, %v16835_v59 }
 0x1f0   :  { %v1957_v43 = vcombine.high %v1949_v49, %v1949_v49  ;;  %14067 = vmatprep.mubr.f32.mxu1 %v3945_v12  ;;  %v6538_v3 = vcombine.low %v6516_v18, %v6523_v42  ;;  %v1965_v22 = vrot.slane %v1949_v49, %v16835_v59  ;;  %v2578_v26 = vrot.slane %v15675_v34, %v16835_v59 }
 0x1f1   :  { %v4519_v4 = vcombine.high %v17117_v29, %v17117_v29  ;;  %v6537_v62 = vrot.slane %v6509_v19, %v16835_v59  ;;  %v1910_v39 = vcombine.high %v1908_v45, %v1908_v45  ;;  %v1924_v36 = vrot.slane %v1908_v45, %v16835_v59 }
 0x1f2   :  { %v17288_v61 = vrot.slane %v1957_v43, %v16835_v59  ;;  %v6546_v10 = vrot.slane %v6538_v3, %v16835_v59  ;;  %v1987_v15 = vcombine.high %v1965_v22, %v1965_v22  ;;  %v4520_v63 = vcombine.high %v4518_v7, %v4518_v7 }
 0x1f3   :  { %v4534_v32 = vrot.slane %v4518_v7, %v16835_v59  ;;  %v6539_v8 = vcombine.low %v6530_v13, %v6537_v62  ;;  %v1938_v30 = vrot.slane %v1910_v39, %v16835_v59  ;;  %v1940_v27 = vcombine.high %v1924_v36, %v1924_v36 }
 0x1f4   :  { %v4541_v29 = vrot.slane %v4519_v4, %v16835_v59  ;;  %v2571_v17 = vcombine.low %v17288_v61, %v1987_v15  ;;  %v4548_v41 = vrot.slane %v4520_v63, %v16835_v59  ;;  %v4549_v6 = vcombine.high %v17201_v1, %v17201_v1 }
 0x1f5   :  { %v4550_v20 = vcombine.high %v4534_v32, %v4534_v32  ;;  %v6553_v18 = vrot.slane %v6539_v8, %v16835_v59  ;;  %v2569_v57 = vcombine.low %v1924_v36, %v1938_v30  ;;  %v2570_v25 = vcombine.low %v1940_v27, %v1965_v22 }
 0x1f6   :  { %v4551_v49 = vcombine.high %v4541_v29, %v4541_v29  ;;  %v2599_v12 = vrot.slane %v2571_v17, %v16835_v59  ;;  %v4559_v42 = vrot.slane %v17293_v14, %v16835_v59  ;;  %v5177_v34 = vcombine.low %v4541_v29, %v4549_v6 }
 0x1f7   :  { %v5179_v7 = vcombine.low %v4548_v41, %v4550_v20  ;;  %v6554_v19 = vcombine.low %v6546_v10, %v6553_v18  ;;  %v2585_v13 = vrot.slane %v2569_v57, %v16835_v59  ;;  %v2592_v45 = vrot.slane %v2570_v25, %v16835_v59  ;;  %v17351_v25 = vld [vmem:[#allocation2 + $0x32] sm:$0x7f] }
 0x1f8   :  { %v5178_v43 = vcombine.low %v4551_v49, %v4534_v32  ;;  %v4567_v1 = vcombine.high %v4559_v42, %v4559_v42  ;;  %v17307_v3 = vrot.slane %v4559_v42, %v16835_v59  ;;  %v5187_v22 = vrot.slane %v5177_v34, %v16835_v59 }
 0x1f9   :  { %v5201_v4 = vrot.slane %v5179_v7, %v16835_v59  ;;  %14192 = vmatprep.mubr.f32.mxu0 %v6554_v19  ;;  %v2600_v62 = vcombine.low %v2578_v26, %v2585_v13  ;;  %v2601_v39 = vcombine.low %v2592_v45, %v2599_v12  ;;  %v1199_v10 = vrot.slane %v17096_v51, %v16835_v59 }
 0x1fa   :  { %v5194_v36 = vrot.slane %v5178_v43, %v16835_v59  ;;  %v17315_v15 = vrot.slane %v4567_v1, %v16835_v59  ;;  %v1206_v63 = vrot.slane %v616_v38, %v16835_v59  ;;  %v1207_v26 = vcombine.low %v1185_v60, %v1192_v9 }
 0x1fb   :  { %v3271_v32 = vcombine.high %v17194_v35, %v17194_v35  ;;  %v2608_v51 = vrot.slane %v2600_v62, %v16835_v59  ;;  %v2615_v8 = vrot.slane %v2601_v39, %v16835_v59  ;;  %v3318_v27 = vcombine.high %v17226_v40, %v17226_v40 }
 0x1fc   :  { %v5209_v30 = vcombine.low %v5187_v22, %v5194_v36  ;;  %v5180_v46 = vcombine.low %v17307_v3, %v17315_v15  ;;  %v1208_v38 = vcombine.low %v1199_v10, %v1206_v63  ;;  %v1215_v5 = vrot.slane %v1207_v26, %v16835_v59  ;;  %v13937_v63 = vld [vmem:[#allocation10 + $0x2c0] sm:$0xff] }
 0x1fd   :  { %v3285_v52 = vrot.slane %v3271_v32, %v16835_v59  ;;  %v2616_v60 = vcombine.low %v2608_v51, %v2615_v8  ;;  %v5881_v35 = vcombine.high %v17238_v21, %v17238_v21  ;;  %v15699_v29 = vcombine.high %v17258_v16, %v17264_v2  ;;  %15931 = vmatprep.subr.mxu1 %v13937_v63 }
 0x1fe   :  { %v5217_v9 = vrot.slane %v5209_v30, %v16835_v59  ;;  %v5208_v17 = vrot.slane %v5180_v46, %v16835_v59  ;;  %v1222_v40 = vrot.slane %v1208_v38, %v16835_v59  ;;  %v1942_v57 = vcombine.high %v17254_v23, %v17254_v23  ;;  %v13976_v30 = vld [vmem:[#allocation10 + $0x3f8] sm:$0xff] }
 0x1ff   :  { %v3287_v41 = vcombine.high %v3285_v52, %v3285_v52  ;;  %v3301_v6 = vrot.slane %v3285_v52, %v16835_v59  ;;  %14068 = vmatmul.mubr.f32.gmra.mxu1 %v2616_v60  ;;  %v5895_v20 = vrot.slane %v5881_v35, %v16835_v59  ;;  %v6565_v18 = vrot.slane %v15699_v29, %v16835_v59 }
 0x200   :  { %v1989_v21 = vcombine.high %v17288_v61, %v17288_v61  ;;  %v5210_v16 = vcombine.low %v5201_v4, %v5208_v17  ;;  %v1223_v2 = vcombine.low %v1215_v5, %v1222_v40  ;;  %v1956_v19 = vrot.slane %v1942_v57, %v16835_v59  ;;  %15988 = vmatprep.subr.mxu0 %v13976_v30 }
 0x201   :  { %v3315_v49 = vrot.slane %v3287_v41, %v16835_v59  ;;  %v3317_v12 = vcombine.high %v3301_v6, %v3301_v6  ;;  %v3946_v42 = vcombine.low %v3318_v27, %v3301_v6  ;;  %v5897_v34 = vcombine.high %v5895_v20, %v5895_v20 }
 0x202   :  { %v17355_v7 = vrot.slane %v5895_v20, %v16835_v59  ;;  %v5224_v13 = vrot.slane %v5210_v16, %v16835_v59  ;;  %1722 = vst [vmem:[#allocation2 + $0x41] sm:$0x7f] %v1223_v2  ;;  %v4552_v61 = vcombine.high %v17293_v14, %v17293_v14  ;;  %v4607_v45 = vrot.slane %v17351_v25, %v16835_v59  ;;  %v13921_v14 = vld [vmem:[#allocation10 + $0x240] sm:$0xff] }
 0x203   :  { %v3947_v23 = vcombine.low %v3315_v49, %v3317_v12  ;;  %v3956_v43 = vrot.slane %v3946_v42, %v16835_v59  ;;  %v5925_v1 = vrot.slane %v5897_v34, %v16835_v59  ;;  %v1958_v4 = vcombine.high %v1956_v19, %v1956_v19  ;;  %15932 = vmatpush3.msra.mxu1 %v13921_v14 }
 0x204   :  { %v5927_v22 = vcombine.high %v17355_v7, %v17355_v7  ;;  %v5225_v62 = vcombine.low %v5217_v9, %v5224_v13  ;;  %v1972_v36 = vrot.slane %v1956_v19, %v16835_v59  ;;  %v4566_v10 = vrot.slane %v4552_v61, %v16835_v59 }
 0x205   :  { %v3963_v39 = vrot.slane %v3947_v23, %v16835_v59  ;;  %v6556_v26 = vcombine.low %v17355_v7, %v5925_v1  ;;  %v1986_v32 = vrot.slane %v1958_v4, %v16835_v59  ;;  %v4615_v51 = vcombine.high %v4607_v45, %v4607_v45 }
 0x206   :  { %v4623_v8 = vrot.slane %v4607_v45, %v16835_v59  ;;  %14193 = vmatmul.mubr.f32.gmra.mxu0 %v5225_v62  ;;  %v1988_v46 = vcombine.high %v1972_v36, %v1972_v36  ;;  %v2617_v38 = vcombine.low %v1989_v21, %v1972_v36  ;;  %v4568_v5 = vcombine.high %v4566_v10, %v4566_v10 }
 0x207   :  { %v17373_v27 = vcombine.low %v3956_v43, %v3963_v39  ;;  %v6572_v52 = vrot.slane %v6556_v26, %v16835_v59  ;;  %v4582_v60 = vrot.slane %v4566_v10, %v16835_v59  ;;  %v17378_v9 = vrot.slane %v4615_v51, %v16835_v59 }
 0x208   :  { %v4645_v35 = vcombine.high %v4623_v8, %v4623_v8  ;;  %v2618_v17 = vcombine.low %v1986_v32, %v1988_v46  ;;  %v2627_v40 = vrot.slane %v2617_v38, %v16835_v59  ;;  %v4596_v41 = vrot.slane %v4568_v5, %v16835_v59 }
 0x209   :  { %v3986_v29 = vrot.slane %v17373_v27, %v16835_v59  ;;  %v17384_v6 = vld [vmem:[#allocation2 + $0x41] sm:$0x7f]  ;;  %v6587_v57 = vcombine.low %v6565_v18, %v6572_v52  ;;  %v4598_v16 = vcombine.high %v4582_v60, %v4582_v60  ;;  %v15691_v2 = vcombine.high %v17307_v3, %v17315_v15 }
 0x20a   :  { %v17386_v20 = vld [vmem:[#allocation2 + $0x40] sm:$0x7f]  ;;  %v5229_v49 = vcombine.low %v17378_v9, %v4645_v35  ;;  %v3326_v12 = vrot.slane %v17384_v6, %v16835_v59  ;;  %v2634_v7 = vrot.slane %v2618_v17, %v16835_v59  ;;  %v5227_v19 = vcombine.low %v4582_v60, %v4596_v41 }
 0x20b   :  { %v17388_v21 = vld [vmem:[#allocation2 + $0x40] sm:$0x7f]  ;;  %v5936_v42 = vrot.slane %v17386_v20, %v16835_v59  ;;  %v6595_v18 = vrot.slane %v6587_v57, %v16835_v59  ;;  %v5228_v13 = vcombine.low %v4598_v16, %v4623_v8  ;;  %v5236_v23 = vrot.slane %v15691_v2, %v16835_v59 }
 0x20c   :  { %v1997_v34 = vrot.slane %v17388_v21, %v16835_v59  ;;  %v3334_v3 = vcombine.high %v3326_v12, %v3326_v12  ;;  %v3342_v15 = vrot.slane %v3326_v12, %v16835_v59  ;;  %v2649_v4 = vcombine.low %v2627_v40, %v2634_v7 }
 0x20d   :  { %v5944_v61 = vcombine.high %v5936_v42, %v5936_v42  ;;  %v5952_v45 = vrot.slane %v5936_v42, %v16835_v59  ;;  %v5243_v62 = vrot.slane %v5227_v19, %v16835_v59  ;;  %v5250_v32 = vrot.slane %v5228_v13, %v16835_v59 }
 0x20e   :  { %v2005_v43 = vcombine.high %v1997_v34, %v1997_v34  ;;  %v2013_v1 = vrot.slane %v1997_v34, %v16835_v59  ;;  %v3356_v39 = vrot.slane %v3334_v3, %v16835_v59  ;;  %v2657_v26 = vrot.slane %v2649_v4, %v16835_v59 }
 0x20f   :  { %v17408_v36 = vrot.slane %v5944_v61, %v16835_v59  ;;  %v5974_v10 = vcombine.high %v5952_v45, %v5952_v45  ;;  %v6557_v63 = vcombine.low %v5927_v22, %v5952_v45  ;;  %v5257_v51 = vrot.slane %v5229_v49, %v16835_v59 }
 0x210   :  { %v2027_v14 = vrot.slane %v2005_v43, %v16835_v59  ;;  %v3948_v8 = vcombine.low %v3342_v15, %v3356_v39  ;;  %v15684_v30 = vcombine.high %v3342_v15, %v3356_v39  ;;  %v5258_v60 = vcombine.low %v5236_v23, %v5243_v62 }
 0x211   :  { %v6558_v46 = vcombine.low %v17408_v36, %v5974_v10  ;;  %v6579_v38 = vrot.slane %v6557_v63, %v16835_v59  ;;  %v5259_v35 = vcombine.low %v5250_v32, %v5257_v51  ;;  %v1224_v41 = vcombine.low %v17084_v54, %v17101_v33 }
 0x212   :  { %v2619_v5 = vcombine.low %v2013_v1, %v2027_v14  ;;  %v15676_v52 = vcombine.high %v2013_v1, %v2027_v14  ;;  %v3970_v22 = vrot.slane %v3948_v8, %v16835_v59  ;;  %v3977_v17 = vrot.slane %v15684_v30, %v16835_v59  ;;  %v13960_v30 = vld [vmem:[#allocation10 + $0x378] sm:$0xff] }
 0x213   :  { %v6586_v40 = vrot.slane %v6558_v46, %v16835_v59  ;;  %v5266_v2 = vrot.slane %v5258_v60, %v16835_v59  ;;  %v5273_v49 = vrot.slane %v5259_v35, %v16835_v59  ;;  %v15667_v34 = vcombine.high %v17084_v54, %v17101_v33  ;;  %v13920_v46 = vld [vmem:[#allocation10 + $0x238] sm:$0xff]  ;;  %v17464_v60 = vld [vmem:[#allocation2 + $0x42] sm:$0x7f]  ;;  %15989 = vmatpush3.msra.mxu0 %v13960_v30 }
 0x214   :  { %v2641_v57 = vrot.slane %v2619_v5, %v16835_v59  ;;  %v2648_v16 = vrot.slane %v15676_v52, %v16835_v59  ;;  %v3979_v12 = vcombine.low %v3970_v22, %v3977_v17  ;;  %v1226_v7 = vcombine.low %v17076_v28, %v17087_v0  ;;  %v13975_v35 = vld [vmem:[#allocation10 + $0x3f0] sm:$0xff] }
 0x215   :  { %v6588_v42 = vcombine.low %v6579_v38, %v6586_v40  ;;  %v5274_v13 = vcombine.low %v5266_v2, %v5273_v49  ;;  %v1233_v23 = vrot.slane %v1224_v41, %v16835_v59  ;;  %v20539_v3 = vcombine.high %v17076_v28, %v17076_v28  ;;  %v13959_v41 = vld [vmem:[#allocation10 + $0x370] sm:$0xff]  ;;  %15990 = vmatprep.subr.mxu0 %v13975_v35 }
 0x216   :  { %v2650_v19 = vcombine.low %v2641_v57, %v2648_v16  ;;  %v3993_v61 = vrot.slane %v3979_v12, %v16835_v59  ;;  %v1240_v43 = vrot.slane %v15667_v34, %v16835_v59  ;;  %v1247_v54 = vrot.slane %v1226_v7, %v16835_v59  ;;  %15991 = vmatpush3.msra.mxu0 %v13959_v41 }
 0x217   :  { %v1254_v15 = vrot.slane %v20539_v3, %v16835_v59  ;;  %v6602_v45 = vrot.slane %v6588_v42, %v16835_v59  ;;  %v3319_v1 = vcombine.high %v17384_v6, %v17384_v6  ;;  %v5929_v4 = vcombine.high %v17386_v20, %v17386_v20 }
 0x218   :  { %v2664_v33 = vrot.slane %v2650_v19, %v16835_v59  ;;  %v5976_v28 = vcombine.high %v17408_v36, %v17408_v36  ;;  %v3994_v62 = vcombine.low %v3986_v29, %v3993_v61  ;;  %v1255_v10 = vcombine.low %v1233_v23, %v1240_v43 }
 0x219   :  { %v6603_v39 = vcombine.low %v6595_v18, %v6602_v45  ;;  %v1256_v63 = vcombine.low %v1247_v54, %v1254_v15  ;;  %v3333_v32 = vrot.slane %v3319_v1, %v16835_v59  ;;  %v5943_v51 = vrot.slane %v5929_v4, %v16835_v59 }
 0x21a   :  { %v2665_v14 = vcombine.low %v2657_v26, %v2664_v33  ;;  %v1990_v6 = vcombine.high %v17388_v21, %v17388_v21  ;;  %14072 = vmatprep.mubr.f32.mxu1 %v3994_v62  ;;  %v1263_v20 = vrot.slane %v1255_v10, %v16835_v59  ;;  %v4600_v27 = vcombine.high %v17351_v25, %v17351_v25  ;;  %v13936_v21 = vld [vmem:[#allocation10 + $0x2b8] sm:$0xff] }
 0x21b   :  { %14197 = vmatprep.mubr.f32.mxu0 %v6603_v39  ;;  %v1270_v36 = vrot.slane %v1256_v63, %v16835_v59  ;;  %v3335_v29 = vcombine.high %v3333_v32, %v3333_v32  ;;  %v17457_v18 = vrot.slane %v3333_v32, %v16835_v59  ;;  %v5945_v26 = vcombine.high %v5943_v51, %v5943_v51 }
 0x21c   :  { %14073 = vmatmul.mubr.f32.gmra.mxu1 %v2665_v14  ;;  %14198 = vmatmul.mubr.f32.gmra.mxu0 %v5274_v13  ;;  %v17460_v8 = vmax.f32 %v17067_v55, 0.0  ;;  %v5959_v5 = vrot.slane %v5943_v51, %v16835_v59  ;;  %v2004_v52 = vrot.slane %v1990_v6, %v16835_v59  ;;  %v4614_v25 = vrot.slane %v4600_v27, %v16835_v59  ;;  %v13974_v51 = vld [vmem:[#allocation10 + $0x3e8] sm:$0xff] }
 0x21d   :  { %v1271_v38 = vcombine.low %v1263_v20, %v1270_v36  ;;  %15933 = vmatprep.subr.mxu1 %v13936_v21  ;;  %v3363_v22 = vrot.slane %v3335_v29, %v16835_v59  ;;  %v3365_v55 = vcombine.high %v17457_v18, %v17457_v18  ;;  %v5973_v17 = vrot.slane %v5945_v26, %v16835_v59 }
 0x21e   :  { %v4647_v40 = vcombine.high %v17378_v9, %v17378_v9  ;;  %v5975_v57 = vcombine.high %v5959_v5, %v5959_v5  ;;  %v6604_v16 = vcombine.low %v5976_v28, %v5959_v5  ;;  %v2006_v2 = vcombine.high %v2004_v52, %v2004_v52  ;;  %15934 = vmatpush3.msra.mxu1 %v13920_v46 }
 0x21f   :  { %1723 = vst [vmem:[#allocation2 + $0x51] sm:$0x7f] %v1271_v38  ;;  %v17474_v49 = vrot.slane %v2004_v52, %v16835_v59  ;;  %v3995_v12 = vcombine.low %v17457_v18, %v3363_v22  ;;  %v4616_v42 = vcombine.high %v4614_v25, %v4614_v25  ;;  %v4630_v34 = vrot.slane %v4614_v25, %v16835_v59 }
 0x220   :  { %v4655_v7 = vrot.slane %v17464_v60, %v16835_v59  ;;  %v6605_v9 = vcombine.low %v5973_v17, %v5975_v57  ;;  %v6614_v19 = vrot.slane %v6604_v16, %v16835_v59  ;;  %v2034_v13 = vrot.slane %v2006_v2, %v16835_v59  ;;  %15992 = vmatprep.subr.mxu0 %v13974_v51 }
 0x221   :  { %v2036_v23 = vcombine.high %v17474_v49, %v17474_v49  ;;  %v4005_v3 = vrot.slane %v3995_v12, %v16835_v59  ;;  %v4644_v15 = vrot.slane %v4616_v42, %v16835_v59  ;;  %v4646_v61 = vcombine.high %v4630_v34, %v4630_v34 }
 0x222   :  { %v4663_v45 = vcombine.high %v4655_v7, %v4655_v7  ;;  %v6621_v43 = vrot.slane %v6605_v9, %v16835_v59  ;;  %v2666_v54 = vcombine.low %v17474_v49, %v2034_v13  ;;  %v4671_v33 = vrot.slane %v4655_v7, %v16835_v59 }
 0x223   :  { %v5275_v1 = vcombine.low %v4647_v40, %v4630_v34  ;;  %v5276_v28 = vcombine.low %v4644_v15, %v4646_v61  ;;  %v618_v62 = vcombine.high %v17058_v50, %v17058_v50  ;;  %v665_v39 = vcombine.high %v17087_v0, %v17087_v0 }
 0x224   :  { %v4685_v4 = vrot.slane %v4663_v45, %v16835_v59  ;;  %v17494_v10 = vcombine.low %v6614_v19, %v6621_v43  ;;  %v2676_v63 = vrot.slane %v2666_v54, %v16835_v59  ;;  %v17500_v32 = vrot.slane %v17460_v8, %v16835_v59 }
 0x225   :  { %v5285_v14 = vrot.slane %v5275_v1, %v16835_v59  ;;  %v5292_v29 = vrot.slane %v5276_v28, %v16835_v59  ;;  %v632_v26 = vrot.slane %v618_v62, %v16835_v59 }
 0x226   :  { %v3104_v6 = vld [vmem:[#allocation2 + $0x51] sm:$0x7f]  ;;  %v5277_v27 = vcombine.low %v4671_v33, %v4685_v4  ;;  %v15692_v50 = vcombine.high %v4671_v33, %v4685_v4  ;;  %v6644_v38 = vrot.slane %v17494_v10, %v16835_v59 }
 0x227   :  { %v17502_v20 = vld [vmem:[#allocation2 + $0x50] sm:$0x7f]  ;;  %v3367_v21 = vcombine.high %v3104_v6, %v3104_v6  ;;  %v3374_v30 = vrot.slane %v3104_v6, %v16835_v59 }
 0x228   :  { %v1775_v36 = vld [vmem:[#allocation2 + $0x50] sm:$0x7f]  ;;  %v5984_v46 = vrot.slane %v17502_v20, %v16835_v59  ;;  %v5299_v25 = vrot.slane %v5277_v27, %v16835_v59  ;;  %v5306_v35 = vrot.slane %v15692_v50, %v16835_v59 }
 0x229   :  { %v2038_v5 = vcombine.high %v1775_v36, %v1775_v36  ;;  %v2045_v52 = vrot.slane %v1775_v36, %v16835_v59  ;;  %v17515_v22 = vrot.slane %v3367_v21, %v16835_v59  ;;  %v3382_v17 = vcombine.high %v3374_v30, %v3374_v30 }
 0x22a   :  { %v3390_v40 = vrot.slane %v3374_v30, %v16835_v59  ;;  %v5992_v41 = vcombine.high %v5984_v46, %v5984_v46  ;;  %v6000_v57 = vrot.slane %v5984_v46, %v16835_v59  ;;  %v5307_v30 = vcombine.low %v5285_v14, %v5292_v29 }
 0x22b   :  { %v17520_v16 = vrot.slane %v2038_v5, %v16835_v59  ;;  %v2053_v2 = vcombine.high %v2045_v52, %v2045_v52  ;;  %v2061_v49 = vrot.slane %v2045_v52, %v16835_v59  ;;  %v17525_v12 = vrot.slane %v17515_v22, %v16835_v59 }
 0x22c   :  { %v3404_v42 = vrot.slane %v3382_v17, %v16835_v59  ;;  %v3412_v34 = vcombine.high %v3390_v40, %v3390_v40  ;;  %v3996_v7 = vcombine.low %v3365_v55, %v3390_v40  ;;  %v6014_v9 = vrot.slane %v5992_v41, %v16835_v59 }
 0x22d   :  { %v17534_v19 = vrot.slane %v17520_v16, %v16835_v59  ;;  %v2075_v13 = vrot.slane %v2053_v2, %v16835_v59  ;;  %v2083_v15 = vcombine.high %v2061_v49, %v2061_v49  ;;  %v2667_v54 = vcombine.low %v2036_v23, %v2061_v49 }
 0x22e   :  { %v3414_v61 = vcombine.high %v3404_v42, %v3404_v42  ;;  %v3997_v45 = vcombine.low %v3404_v42, %v3412_v34  ;;  %v4012_v43 = vrot.slane %v3996_v7, %v16835_v59  ;;  %v6606_v33 = vcombine.low %v6000_v57, %v6014_v9 }
 0x22f   :  { %v15700_v1 = vcombine.high %v6000_v57, %v6014_v9  ;;  %v2085_v4 = vcombine.high %v2075_v13, %v2075_v13  ;;  %v2668_v28 = vcombine.low %v2075_v13, %v2083_v15  ;;  %v2683_v10 = vrot.slane %v2667_v54, %v16835_v59 }
 0x230   :  { %v3998_v18 = vcombine.low %v3414_v61, %v17525_v12  ;;  %v4019_v55 = vrot.slane %v3997_v45, %v16835_v59  ;;  %v4027_v62 = vcombine.low %v4005_v3, %v4012_v43  ;;  %v6628_v51 = vrot.slane %v6606_v33, %v16835_v59  ;;  %v4433_v33 = vld [vmem:[#allocation2 + $0x52] sm:$0x7f] }
 0x231   :  { %v6635_v6 = vrot.slane %v15700_v1, %v16835_v59  ;;  %v2669_v36 = vcombine.low %v2085_v4, %v17534_v19  ;;  %v2690_v27 = vrot.slane %v2668_v28, %v16835_v59  ;;  %v2698_v21 = vcombine.low %v2676_v63, %v2683_v10  ;;  %v13958_v28 = vld [vmem:[#allocation10 + $0x368] sm:$0xff] }
 0x232   :  { %v4026_v23 = vrot.slane %v3998_v18, %v16835_v59  ;;  %v4035_v50 = vrot.slane %v4027_v62, %v16835_v59  ;;  %v5308_v3 = vcombine.low %v5299_v25, %v5306_v35  ;;  %v634_v52 = vcombine.high %v632_v26, %v632_v26  ;;  %v13919_v62 = vld [vmem:[#allocation10 + $0x230] sm:$0xff]  ;;  %15993 = vmatpush3.msra.mxu0 %v13958_v28 }
 0x233   :  { %v6637_v46 = vcombine.low %v6628_v51, %v6635_v6  ;;  %v2697_v5 = vrot.slane %v2669_v36, %v16835_v59  ;;  %v2706_v40 = vrot.slane %v2698_v21, %v16835_v59  ;;  %v5315_v41 = vrot.slane %v5307_v30, %v16835_v59 }
 0x234   :  { %v4028_v17 = vcombine.low %v4019_v55, %v4026_v23  ;;  %v648_v57 = vrot.slane %v632_v26, %v16835_v59  ;;  %v5322_v42 = vrot.slane %v5308_v3, %v16835_v59  ;;  %v662_v63 = vrot.slane %v634_v52, %v16835_v59 }
 0x235   :  { %v6651_v2 = vrot.slane %v6637_v46, %v16835_v59  ;;  %v2699_v49 = vcombine.low %v2690_v27, %v2697_v5  ;;  %v682_v25 = vcombine.high %v17500_v32, %v17500_v32  ;;  %v17559_v35 = vrot.slane %v17500_v32, %v16835_v59  ;;  %v13973_v27 = vld [vmem:[#allocation10 + $0x3e0] sm:$0xff] }
 0x236   :  { %v4042_v14 = vrot.slane %v4028_v17, %v16835_v59  ;;  %v664_v29 = vcombine.high %v648_v57, %v648_v57  ;;  %v5323_v7 = vcombine.low %v5315_v41, %v5322_v42  ;;  %v666_v9 = vcombine.high %v662_v63, %v662_v63  ;;  %15994 = vmatprep.subr.mxu0 %v13973_v27  ;;  %v13972_v41 = vld [vmem:[#allocation10 + $0x3d8] sm:$0xff] }
 0x237   :  { %v6652_v34 = vcombine.low %v6644_v38, %v6651_v2  ;;  %v2713_v26 = vrot.slane %v2699_v49, %v16835_v59  ;;  %v17563_v15 = vrot.slane %v682_v25, %v16835_v59  ;;  %v1272_v61 = vcombine.low %v665_v39, %v648_v57  ;;  %v13935_v39 = vld [vmem:[#allocation10 + $0x2b0] sm:$0xff] }
 0x238   :  { %v4043_v13 = vcombine.low %v4035_v50, %v4042_v14  ;;  %v1273_v45 = vcombine.low %v662_v63, %v664_v29  ;;  %v1274_v54 = vcombine.low %v666_v9, %v17559_v35  ;;  %v3383_v32 = vcombine.high %v17515_v22, %v17515_v22  ;;  %15935 = vmatprep.subr.mxu1 %v13935_v39  ;;  %v3106_v63 = vld [vmem:[#allocation2 + $0x91] sm:$0x7f] }
 0x239   :  { %14202 = vmatprep.mubr.f32.mxu0 %v6652_v34  ;;  %v2714_v43 = vcombine.low %v2706_v40, %v2713_v26  ;;  %v3413_v38 = vcombine.high %v17525_v12, %v17525_v12  ;;  %v1281_v1 = vrot.slane %v1272_v61, %v16835_v59  ;;  %v1302_v0 = vrot.slane %v17563_v15, %v16835_v59  ;;  %v13934_v40 = vld [vmem:[#allocation10 + $0x2a8] sm:$0xff] }
 0x23a   :  { %14077 = vmatprep.mubr.f32.mxu1 %v4043_v13  ;;  %14203 = vmatmul.mubr.f32.gmra.mxu0 %v5323_v7  ;;  %v1288_v4 = vrot.slane %v1273_v45, %v16835_v59  ;;  %v1295_v18 = vrot.slane %v1274_v54, %v16835_v59  ;;  %v3411_v22 = vrot.slane %v3383_v32, %v16835_v59 }
 0x23b   :  { %14078 = vmatmul.mubr.f32.gmra.mxu1 %v2714_v43  ;;  %v5977_v12 = vcombine.high %v17502_v20, %v17502_v20  ;;  %v2054_v55 = vcombine.high %v17520_v16, %v17520_v16  ;;  %v2084_v51 = vcombine.high %v17534_v19, %v17534_v19  ;;  %v4648_v6 = vcombine.high %v17464_v60, %v17464_v60  ;;  %v13957_v16 = vld [vmem:[#allocation10 + $0x360] sm:$0xff] }
 0x23c   :  { %v1303_v10 = vcombine.low %v1281_v1, %v1288_v4  ;;  %v4696_v36 = vcombine.high %v4433_v33, %v4433_v33  ;;  %v1304_v23 = vcombine.low %v1295_v18, %v1302_v0  ;;  %v17587_v50 = vcombine.low %v3411_v22, %v3413_v38  ;;  %15936 = vmatpush3.msra.mxu1 %v13919_v62 }
 0x23d   :  { %v5991_v21 = vrot.slane %v5977_v12, %v16835_v59  ;;  %v2082_v20 = vrot.slane %v2054_v55, %v16835_v59  ;;  %v4662_v46 = vrot.slane %v4648_v6, %v16835_v59  ;;  %v4703_v19 = vrot.slane %v4433_v33, %v16835_v59  ;;  %15995 = vmatpush3.msra.mxu0 %v13957_v16 }
 0x23e   :  { %v1311_v30 = vrot.slane %v1303_v10, %v16835_v59  ;;  %v17595_v60 = vrot.slane %v4696_v36, %v16835_v59  ;;  %v1318_v5 = vrot.slane %v1304_v23, %v16835_v59  ;;  %v4054_v3 = vrot.slane %v17587_v50, %v16835_v59  ;;  %15937 = vmatprep.subr.mxu1 %v13934_v40 }
 0x23f   :  { %v5993_v52 = vcombine.high %v5991_v21, %v5991_v21  ;;  %v17601_v17 = vrot.slane %v5991_v21, %v16835_v59  ;;  %v17603_v57 = vcombine.low %v2082_v20, %v2084_v51  ;;  %v4664_v2 = vcombine.high %v4662_v46, %v4662_v46  ;;  %15996 = vmatprep.subr.mxu0 %v13972_v41 }
 0x240   :  { %v4678_v49 = vrot.slane %v4662_v46, %v16835_v59  ;;  %v4711_v42 = vcombine.high %v4703_v19, %v4703_v19  ;;  %v1319_v14 = vcombine.low %v1311_v30, %v1318_v5  ;;  %v4719_v34 = vrot.slane %v4703_v19, %v16835_v59 }
 0x241   :  { %v6021_v29 = vrot.slane %v5993_v52, %v16835_v59  ;;  %v6023_v25 = vcombine.high %v17601_v17, %v17601_v17  ;;  %v2725_v26 = vrot.slane %v17603_v57, %v16835_v59  ;;  %v4692_v7 = vrot.slane %v4664_v2, %v16835_v59 }
 0x242   :  { %v4694_v9 = vcombine.high %v4678_v49, %v4678_v49  ;;  %v17615_v13 = vrot.slane %v17595_v60, %v16835_v59  ;;  %1724 = vst [vmem:[#allocation2 + $0x61] sm:$0x7f] %v1319_v14  ;;  %v4733_v45 = vrot.slane %v4711_v42, %v16835_v59  ;;  %v4741_v43 = vcombine.high %v4719_v34, %v4719_v34 }
 0x243   :  { %v6653_v61 = vcombine.low %v17601_v17, %v6021_v29  ;;  %v3463_v54 = vcombine.high %v3106_v63, %v3106_v63  ;;  %v5324_v32 = vcombine.low %v4678_v49, %v4692_v7  ;;  %v3470_v33 = vrot.slane %v3106_v63, %v16835_v59 }
 0x244   :  { %v5325_v38 = vcombine.low %v4694_v9, %v4719_v34  ;;  %v370_v1 = vmul.f32 %v16877_v11, %v16777_v37  ;;  %v4743_v0 = vcombine.high %v4733_v45, %v4733_v45  ;;  %v5326_v39 = vcombine.low %v4733_v45, %v4741_v43  ;;  %v13956_v45 = vld [vmem:[#allocation10 + $0x358] sm:$0xff]  ;;  %v13971_v43 = vld [vmem:[#allocation10 + $0x3d0] sm:$0xff] }
 0x245   :  { %v17623_v4 = vrot.slane %v6653_v61, %v16835_v59  ;;  %v3477_v28 = vrot.slane %v3463_v54, %v16835_v59  ;;  %v5334_v18 = vrot.slane %v5324_v32, %v16835_v59  ;;  %v3478_v12 = vcombine.high %v3470_v33, %v3470_v33  ;;  %v13918_v61 = vld [vmem:[#allocation10 + $0x228] sm:$0xff]  ;;  %15997 = vmatpush3.msra.mxu0 %v13956_v45 }
 0x246   :  { %v5341_v22 = vrot.slane %v5325_v38, %v16835_v59  ;;  %v17629_v55 = vrot.slane %v3470_v33, %v16835_v59  ;;  %v5327_v62 = vcombine.low %v4743_v0, %v17615_v13  ;;  %v5348_v10 = vrot.slane %v5326_v39, %v16835_v59  ;;  %15938 = vmatpush3.msra.mxu1 %v13918_v61 }
 0x247   :  { %v3479_v37 = vcombine.high %v3477_v28, %v3477_v28  ;;  %v17634_v51 = vrot.slane %v3477_v28, %v16835_v59  ;;  %v3500_v36 = vrot.slane %v3478_v12, %v16835_v59  ;;  %v17642_v23 = vadd.f32 %v16914_v31, %v370_v1  ;;  %v13933_v1 = vld [vmem:[#allocation10 + $0x2a0] sm:$0xff]  ;;  %15998 = vmatprep.subr.mxu0 %v13971_v43 }
 0x248   :  { %v17636_v6 = vcombine.low %v5334_v18, %v5341_v22  ;;  %v3508_v27 = vcombine.high %v17629_v55, %v17629_v55  ;;  %v5355_v21 = vrot.slane %v5327_v62, %v16835_v59  ;;  %v667_v30 = vcombine.high %v17460_v8, %v17460_v8  ;;  %v13955_v22 = vld [vmem:[#allocation10 + $0x350] sm:$0xff]  ;;  %15939 = vmatprep.subr.mxu1 %v13933_v1 }
 0x249   :  { %v17646_v20 = vrot.slane %v3479_v37, %v16835_v59  ;;  %v3509_v16 = vcombine.high %v17634_v51, %v17634_v51  ;;  %v3105_v46 = vld [vmem:[#allocation2 + $0x61] sm:$0x7f]  ;;  %v3510_v40 = vcombine.high %v3500_v36, %v3500_v36  ;;  %v15668_v2 = vcombine.high %v17559_v35, %v17563_v15  ;;  %15999 = vmatpush3.msra.mxu0 %v13955_v22 }
 0x24a   :  { %v5762_v19 = vld [vmem:[#allocation2 + $0x60] sm:$0x7f]  ;;  %v5364_v52 = vrot.slane %v17636_v6, %v16835_v59  ;;  %v17654_v41 = vcombine.low %v3500_v36, %v3508_v27  ;;  %v3415_v49 = vcombine.high %v3105_v46, %v3105_v46  ;;  %v3422_v42 = vrot.slane %v3105_v46, %v16835_v59 }
 0x24b   :  { %v1776_v5 = vld [vmem:[#allocation2 + $0x60] sm:$0x7f]  ;;  %v6025_v63 = vcombine.high %v5762_v19, %v5762_v19  ;;  %v6032_v14 = vrot.slane %v5762_v19, %v16835_v59  ;;  %v5357_v7 = vcombine.low %v5348_v10, %v5355_v21  ;;  %v17662_v9 = vcombine.low %v3510_v40, %v17634_v51 }
 0x24c   :  { %v2086_v29 = vcombine.high %v1776_v5, %v1776_v5  ;;  %v2093_v34 = vrot.slane %v1776_v5, %v16835_v59  ;;  %v3429_v54 = vrot.slane %v3415_v49, %v16835_v59  ;;  %v3430_v32 = vcombine.high %v3422_v42, %v3422_v42 }
 0x24d   :  { %v3438_v38 = vrot.slane %v3422_v42, %v16835_v59  ;;  %v17667_v33 = vrot.slane %v6025_v63, %v16835_v59  ;;  %v6040_v0 = vcombine.high %v6032_v14, %v6032_v14  ;;  %v6048_v39 = vrot.slane %v6032_v14, %v16835_v59 }
 0x24e   :  { %v2100_v28 = vrot.slane %v2086_v29, %v16835_v59  ;;  %v2101_v18 = vcombine.high %v2093_v34, %v2093_v34  ;;  %v3431_v12 = vcombine.high %v3429_v54, %v3429_v54  ;;  %v3445_v62 = vrot.slane %v3429_v54, %v16835_v59 }
 0x24f   :  { %v3452_v10 = vrot.slane %v3430_v32, %v16835_v59  ;;  %v17675_v37 = vrot.slane %v17667_v33, %v16835_v59  ;;  %v6062_v36 = vrot.slane %v6040_v0, %v16835_v59  ;;  %v6070_v27 = vcombine.high %v6048_v39, %v6048_v39 }
 0x250   :  { %v6654_v21 = vcombine.low %v6023_v25, %v6048_v39  ;;  %v2102_v46 = vcombine.high %v2100_v28, %v2100_v28  ;;  %v3459_v19 = vrot.slane %v3431_v12, %v16835_v59  ;;  %v2109_v49 = vrot.slane %v2093_v34, %v16835_v59 }
 0x251   :  { %v4045_v5 = vcombine.low %v3438_v38, %v3452_v10  ;;  %v15685_v40 = vcombine.high %v3438_v38, %v3452_v10  ;;  %v6072_v42 = vcombine.high %v6062_v36, %v6062_v36  ;;  %v6655_v63 = vcombine.low %v6062_v36, %v6070_v27 }
 0x252   :  { %v6670_v14 = vrot.slane %v6654_v21, %v16835_v59  ;;  %v17685_v29 = vrot.slane %v2100_v28, %v16835_v59  ;;  %v4047_v61 = vcombine.low %v3445_v62, %v3459_v19  ;;  %v2123_v45 = vrot.slane %v2101_v18, %v16835_v59 }
 0x253   :  { %v4061_v17 = vrot.slane %v4045_v5, %v16835_v59  ;;  %v4068_v25 = vrot.slane %v15685_v40, %v16835_v59  ;;  %v6656_v43 = vcombine.low %v6072_v42, %v17675_v37  ;;  %v6677_v54 = vrot.slane %v6655_v63, %v16835_v59  ;;  %v13970_v63 = vld [vmem:[#allocation10 + $0x3c8] sm:$0xff] }
 0x254   :  { %v6685_v34 = vcombine.low %v17623_v4, %v6670_v14  ;;  %v2130_v32 = vrot.slane %v2102_v46, %v16835_v59  ;;  %v4075_v38 = vrot.slane %v4047_v61, %v16835_v59  ;;  %v2716_v0 = vcombine.low %v2109_v49, %v2123_v45  ;;  %16000 = vmatprep.subr.mxu0 %v13970_v63 }
 0x255   :  { %v4076_v1 = vcombine.low %v4054_v3, %v4061_v17  ;;  %v15677_v39 = vcombine.high %v2109_v49, %v2123_v45  ;;  %v6684_v28 = vrot.slane %v6656_v43, %v16835_v59  ;;  %v5371_v12 = vrot.slane %v5357_v7, %v16835_v59 }
 0x256   :  { %v6693_v18 = vrot.slane %v6685_v34, %v16835_v59  ;;  %v2718_v22 = vcombine.low %v17685_v29, %v2130_v32  ;;  %v4077_v10 = vcombine.low %v4068_v25, %v4075_v38  ;;  %v2732_v36 = vrot.slane %v2716_v0, %v16835_v59  ;;  %v1777_v25 = vld [vmem:[#allocation2 + $0x90] sm:$0x7f] }
 0x257   :  { %v4084_v4 = vrot.slane %v4076_v1, %v16835_v59  ;;  %v2739_v27 = vrot.slane %v15677_v39, %v16835_v59  ;;  %v6686_v21 = vcombine.low %v6677_v54, %v6684_v28  ;;  %v5372_v3 = vcombine.low %v5364_v52, %v5371_v12 }
 0x258   :  { %v2746_v50 = vrot.slane %v2718_v22, %v16835_v59  ;;  %v3461_v46 = vcombine.high %v3445_v62, %v3445_v62  ;;  %v4091_v19 = vrot.slane %v4077_v10, %v16835_v59  ;;  %v2747_v7 = vcombine.low %v2725_v26, %v2732_v36  ;;  %v13917_v62 = vld [vmem:[#allocation10 + $0x220] sm:$0xff]  ;;  %v4434_v36 = vld [vmem:[#allocation2 + $0x62] sm:$0x7f] }
 0x259   :  { %v4096_v5 = vcombine.low %v17646_v20, %v3509_v16  ;;  %v4110_v40 = vrot.slane %v17654_v41, %v16835_v59  ;;  %v6700_v49 = vrot.slane %v6686_v21, %v16835_v59  ;;  %v4117_v52 = vrot.slane %v17662_v9, %v16835_v59  ;;  %15940 = vmatpush3.msra.mxu1 %v13917_v62 }
 0x25a   :  { %v2748_v42 = vcombine.low %v2739_v27, %v2746_v50  ;;  %v4093_v6 = vcombine.low %v3461_v46, %v17629_v55  ;;  %v4092_v57 = vcombine.low %v4084_v4, %v4091_v19  ;;  %v2755_v26 = vrot.slane %v2747_v7, %v16835_v59  ;;  %v13954_v46 = vld [vmem:[#allocation10 + $0x348] sm:$0xff]  ;;  %v13932_v19 = vld [vmem:[#allocation10 + $0x298] sm:$0xff]  ;;  %v13969_v7 = vld [vmem:[#allocation10 + $0x3c0] sm:$0xff] }
 0x25b   :  { %v4124_v51 = vrot.slane %v4096_v5, %v16835_v59  ;;  %v17726_v20 = vmax.f32 %v17642_v23, 0.0  ;;  %v6701_v16 = vcombine.low %v6693_v18, %v6700_v49  ;;  %v681_v9 = vrot.slane %v667_v30, %v16835_v59  ;;  %16001 = vmatpush3.msra.mxu0 %v13954_v46  ;;  %15941 = vmatprep.subr.mxu1 %v13932_v19 }
 0x25c   :  { %v2762_v41 = vrot.slane %v2748_v42, %v16835_v59  ;;  %v4103_v55 = vrot.slane %v4093_v6, %v16835_v59  ;;  %14082 = vmatprep.mubr.f32.mxu1 %v4092_v57  ;;  %v1329_v23 = vrot.slane %v15668_v2, %v16835_v59  ;;  %v6041_v17 = vcombine.high %v17667_v33, %v17667_v33  ;;  %v13916_v6 = vld [vmem:[#allocation10 + $0x218] sm:$0xff] }
 0x25d   :  { %v4126_v14 = vcombine.low %v4117_v52, %v4124_v51  ;;  %v17736_v61 = vrot.slane %v17726_v20, %v16835_v59  ;;  %14207 = vmatprep.mubr.f32.mxu0 %v6701_v16  ;;  %v683_v8 = vcombine.high %v681_v9, %v681_v9  ;;  %v697_v30 = vrot.slane %v681_v9, %v16835_v59 }
 0x25e   :  { %v2763_v45 = vcombine.low %v2755_v26, %v2762_v41  ;;  %v4125_v43 = vcombine.low %v4103_v55, %v4110_v40  ;;  %14208 = vmatmul.mubr.f32.gmra.mxu0 %v5372_v3  ;;  %v6069_v35 = vrot.slane %v6041_v17, %v16835_v59  ;;  %v6071_v15 = vcombine.high %v17675_v37, %v17675_v37  ;;  %v13953_v26 = vld [vmem:[#allocation10 + $0x340] sm:$0xff] }
 0x25f   :  { %v4140_v54 = vrot.slane %v4126_v14, %v16835_v59  ;;  %v17748_v34 = vrot.slane %v17736_v61, %v16835_v59  ;;  %v711_v33 = vrot.slane %v683_v8, %v16835_v59  ;;  %v2132_v32 = vcombine.high %v17685_v29, %v17685_v29  ;;  %16002 = vmatprep.subr.mxu0 %v13969_v7 }
 0x260   :  { %14083 = vmatmul.mubr.f32.gmra.mxu1 %v2763_v45  ;;  %v4133_v2 = vrot.slane %v4125_v43, %v16835_v59  ;;  %v2134_v38 = vcombine.high %v1777_v25, %v1777_v25  ;;  %v17759_v0 = vcombine.low %v6069_v35, %v6071_v15  ;;  %v2141_v39 = vrot.slane %v1777_v25, %v16835_v59 }
 0x261   :  { %v1350_v1 = vrot.slane %v17748_v34, %v16835_v59  ;;  %v4712_v28 = vcombine.high %v17595_v60, %v17595_v60  ;;  %v1321_v18 = vcombine.low %v697_v30, %v711_v33  ;;  %v15669_v22 = vcombine.high %v697_v30, %v711_v33  ;;  %15942 = vmatpush3.msra.mxu1 %v13916_v6 }
 0x262   :  { %v4141_v37 = vcombine.low %v4133_v2, %v4140_v54  ;;  %v2148_v12 = vrot.slane %v2134_v38, %v16835_v59  ;;  %v6712_v10 = vrot.slane %v17759_v0, %v16835_v59  ;;  %v2149_v29 = vcombine.high %v2141_v39, %v2141_v39  ;;  %16003 = vmatpush3.msra.mxu0 %v13953_v26 }
 0x263   :  { %v2157_v4 = vrot.slane %v2141_v39, %v16835_v59  ;;  %v4740_v27 = vrot.slane %v4712_v28, %v16835_v59  ;;  %v1336_v21 = vrot.slane %v1321_v18, %v16835_v59  ;;  %v1343_v50 = vrot.slane %v15669_v22, %v16835_v59 }
 0x264   :  { %14087 = vmatprep.mubr.f32.mxu1 %v4141_v37  ;;  %v2150_v60 = vcombine.high %v2148_v12, %v2148_v12  ;;  %v2164_v3 = vrot.slane %v2148_v12, %v16835_v59  ;;  %v2171_v5 = vrot.slane %v2149_v29, %v16835_v59  ;;  %v4742_v42 = vcombine.high %v17615_v13, %v17615_v13 }
 0x265   :  { %v2179_v40 = vcombine.high %v2157_v4, %v2157_v4  ;;  %v2764_v49 = vcombine.low %v2132_v32, %v2157_v4  ;;  %v1351_v52 = vcombine.low %v1329_v23, %v1336_v21  ;;  %v1352_v62 = vcombine.low %v1343_v50, %v1350_v1 }
 0x266   :  { %v2178_v63 = vrot.slane %v2150_v60, %v16835_v59  ;;  %v2180_v57 = vcombine.high %v2164_v3, %v2164_v3  ;;  %v2181_v51 = vcombine.high %v2171_v5, %v2171_v5  ;;  %v4744_v55 = vcombine.high %v4434_v36, %v4434_v36 }
 0x267   :  { %v2765_v16 = vcombine.low %v2171_v5, %v2179_v40  ;;  %v2774_v41 = vrot.slane %v2764_v49, %v16835_v59  ;;  %v1359_v9 = vrot.slane %v1351_v52, %v16835_v59  ;;  %v1366_v14 = vrot.slane %v1352_v62, %v16835_v59  ;;  %v13968_v5 = vld [vmem:[#allocation10 + $0x3b8] sm:$0xff] }
 0x268   :  { %v2767_v13 = vcombine.low %v2178_v63, %v2180_v57  ;;  %v4751_v17 = vrot.slane %v4434_v36, %v16835_v59  ;;  %v2766_v23 = vcombine.low %v2181_v51, %v2164_v3  ;;  %v4758_v45 = vrot.slane %v4744_v55, %v16835_v59  ;;  %16004 = vmatprep.subr.mxu0 %v13968_v5 }
 0x269   :  { %v2781_v25 = vrot.slane %v2765_v16, %v16835_v59  ;;  %v5373_v43 = vcombine.low %v4740_v27, %v4742_v42  ;;  %v1367_v8 = vcombine.low %v1359_v9, %v1366_v14  ;;  %v371_v39 = vmul.f32 %v16877_v11, %v16787_v44 }
 0x26a   :  { %v2795_v30 = vrot.slane %v2767_v13, %v16835_v59  ;;  %v4759_v54 = vcombine.high %v4751_v17, %v4751_v17  ;;  %v4767_v35 = vrot.slane %v4751_v17, %v16835_v59  ;;  %v2788_v15 = vrot.slane %v2766_v23, %v16835_v59 }
 0x26b   :  { %v2796_v2 = vcombine.low %v2774_v41, %v2781_v25  ;;  %v4760_v33 = vcombine.high %v4758_v45, %v4758_v45  ;;  %v17786_v32 = vrot.slane %v4758_v45, %v16835_v59  ;;  %1725 = vst [vmem:[#allocation2 + $0x71] sm:$0x7f] %v1367_v8  ;;  %v5383_v1 = vrot.slane %v5373_v43, %v16835_v59 }
 0x26c   :  { %v4781_v38 = vrot.slane %v4759_v54, %v16835_v59  ;;  %v716_v28 = vcombine.high %v17726_v20, %v17726_v20  ;;  %v2797_v37 = vcombine.low %v2788_v15, %v2795_v30  ;;  %v731_v12 = vcombine.high %v17736_v61, %v17736_v61 }
 0x26d   :  { %v2804_v18 = vrot.slane %v2796_v2, %v16835_v59  ;;  %v4788_v22 = vrot.slane %v4760_v33, %v16835_v59  ;;  %v390_v36 = vadd.f32 %v16914_v31, %v371_v39  ;;  %v761_v20 = vcombine.high %v17748_v34, %v17748_v34 }
 0x26e   :  { %v5374_v29 = vcombine.low %v4767_v35, %v4781_v38  ;;  %v15693_v4 = vcombine.high %v4767_v35, %v4781_v38  ;;  %v730_v27 = vrot.slane %v716_v28, %v16835_v59  ;;  %v2811_v21 = vrot.slane %v2797_v37, %v16835_v59 }
 0x26f   :  { %v5376_v44 = vcombine.low %v17786_v32, %v4788_v22  ;;  %v753_v11 = vrot.slane %v731_v12, %v16835_v59  ;;  %v403_v61 = vmax.f32 %v390_v36, 0.0 }
 0x270   :  { %v5390_v50 = vrot.slane %v5374_v29, %v16835_v59  ;;  %v5397_v60 = vrot.slane %v15693_v4, %v16835_v59  ;;  %v732_v3 = vcombine.high %v730_v27, %v730_v27  ;;  %v2812_v46 = vcombine.low %v2804_v18, %v2811_v21 }
 0x271   :  { %v5404_v31 = vrot.slane %v5376_v44, %v16835_v59  ;;  %v746_v19 = vrot.slane %v730_v27, %v16835_v59  ;;  %v763_v7 = vcombine.high %v753_v11, %v753_v11  ;;  %v765_v42 = vcombine.high %v403_v61, %v403_v61 }
 0x272   :  { %v5405_v40 = vcombine.low %v5383_v1, %v5390_v50  ;;  %v760_v49 = vrot.slane %v732_v3, %v16835_v59  ;;  %v772_v6 = vrot.slane %v403_v61, %v16835_v59  ;;  %v5763_v34 = vld [vmem:[#allocation2 + $0x70] sm:$0x7f]  ;;  %14088 = vmatmul.mubr.f32.gmra.mxu1 %v2812_v46  ;;  %v1368_v63 = vcombine.low %v753_v11, %v761_v20 }
 0x273   :  { %v5406_v52 = vcombine.low %v5397_v60, %v5404_v31  ;;  %v762_v62 = vcombine.high %v746_v19, %v746_v19  ;;  %v1369_v57 = vcombine.low %v763_v7, %v746_v19  ;;  %v6073_v26 = vcombine.high %v5763_v34, %v5763_v34  ;;  %v4435_v50 = vld [vmem:[#allocation2 + $0x92] sm:$0x7f] }
 0x274   :  { %v6080_v51 = vrot.slane %v5763_v34, %v16835_v59  ;;  %v5413_v16 = vrot.slane %v5405_v40, %v16835_v59  ;;  %v764_v41 = vcombine.high %v760_v49, %v760_v49  ;;  %v779_v9 = vrot.slane %v765_v42, %v16835_v59  ;;  %v13952_v34 = vld [vmem:[#allocation10 + $0x338] sm:$0xff] }
 0x275   :  { %v5420_v55 = vrot.slane %v5406_v52, %v16835_v59  ;;  %v780_v14 = vcombine.high %v772_v6, %v772_v6  ;;  %v788_v13 = vrot.slane %v772_v6, %v16835_v59  ;;  %v6087_v17 = vrot.slane %v6073_v26, %v16835_v59  ;;  %v13931_v52 = vld [vmem:[#allocation10 + $0x290] sm:$0xff]  ;;  %16005 = vmatpush3.msra.mxu0 %v13952_v34 }
 0x276   :  { %v6088_v23 = vcombine.high %v6080_v51, %v6080_v51  ;;  %v6096_v25 = vrot.slane %v6080_v51, %v16835_v59  ;;  %v1370_v45 = vcombine.low %v760_v49, %v762_v62  ;;  %v781_v8 = vcombine.high %v779_v9, %v779_v9  ;;  %v13967_v62 = vld [vmem:[#allocation10 + $0x3b0] sm:$0xff]  ;;  %15943 = vmatprep.subr.mxu1 %v13931_v52 }
 0x277   :  { %v17818_v43 = vcombine.low %v5413_v16, %v5420_v55  ;;  %v795_v30 = vrot.slane %v779_v9, %v16835_v59  ;;  %v802_v54 = vrot.slane %v780_v14, %v16835_v59  ;;  %v6089_v35 = vcombine.high %v6087_v17, %v6087_v17  ;;  %v13915_v26 = vld [vmem:[#allocation10 + $0x210] sm:$0xff]  ;;  %16006 = vmatprep.subr.mxu0 %v13967_v62 }
 0x278   :  { %v17823_v15 = vrot.slane %v6087_v17, %v16835_v59  ;;  %v6110_v2 = vrot.slane %v6088_v23, %v16835_v59  ;;  %v1377_v33 = vrot.slane %v1368_v63, %v16835_v59  ;;  %v809_v38 = vrot.slane %v781_v8, %v16835_v59  ;;  %15944 = vmatpush3.msra.mxu1 %v13915_v26 }
 0x279   :  { %v811_v1 = vcombine.high %v795_v30, %v795_v30  ;;  %v1384_v39 = vrot.slane %v1369_v57, %v16835_v59  ;;  %v1391_v28 = vrot.slane %v1370_v45, %v16835_v59  ;;  %v6117_v37 = vrot.slane %v6089_v35, %v16835_v59 }
 0x27a   :  { %v6703_v18 = vcombine.low %v6096_v25, %v6110_v2  ;;  %v15701_v22 = vcombine.high %v6096_v25, %v6110_v2  ;;  %v1398_v12 = vrot.slane %v764_v41, %v16835_v59  ;;  %v1416_v4 = vcombine.low %v788_v13, %v802_v54 }
 0x27b   :  { %v1399_v29 = vcombine.low %v1377_v33, %v1384_v39  ;;  %v15670_v36 = vcombine.high %v788_v13, %v802_v54  ;;  %v1418_v27 = vcombine.low %v795_v30, %v809_v38  ;;  %v6705_v21 = vcombine.low %v17823_v15, %v6117_v37  ;;  %v17863_v33 = vld [vmem:[#allocation2 + $0xd1] sm:$0x7f] }
 0x27c   :  { %v6719_v44 = vrot.slane %v6703_v18, %v16835_v59  ;;  %v6726_v11 = vrot.slane %v15701_v22, %v16835_v59  ;;  %v1400_v20 = vcombine.low %v1391_v28, %v1398_v12  ;;  %v1425_v61 = vrot.slane %v1416_v4, %v16835_v59  ;;  %v17867_v39 = vld [vmem:[#allocation2 + $0xd0] sm:$0x7f] }
 0x27d   :  { %v1407_v60 = vrot.slane %v1399_v29, %v16835_v59  ;;  %v1432_v3 = vrot.slane %v15670_v36, %v16835_v59  ;;  %v1439_v46 = vrot.slane %v1418_v27, %v16835_v59  ;;  %v6733_v31 = vrot.slane %v6705_v21, %v16835_v59 }
 0x27e   :  { %v6734_v19 = vcombine.low %v6712_v10, %v6719_v44  ;;  %v1414_v7 = vrot.slane %v1400_v20, %v16835_v59  ;;  %v1446_v5 = vrot.slane %v811_v1, %v16835_v59  ;;  %v6119_v49 = vcombine.high %v17823_v15, %v17823_v15 }
 0x27f   :  { %v1447_v40 = vcombine.low %v1425_v61, %v1432_v3  ;;  %v4790_v42 = vcombine.high %v17786_v32, %v17786_v32  ;;  %v4792_v6 = vcombine.high %v4435_v50, %v4435_v50  ;;  %v6735_v63 = vcombine.low %v6726_v11, %v6733_v31  ;;  %v13951_v32 = vld [vmem:[#allocation10 + $0x330] sm:$0xff] }
 0x280   :  { %v6742_v57 = vrot.slane %v6734_v19, %v16835_v59  ;;  %v1415_v0 = vcombine.low %v1407_v60, %v1414_v7  ;;  %v1448_v10 = vcombine.low %v1439_v46, %v1446_v5  ;;  %v4799_v16 = vrot.slane %v4435_v50, %v16835_v59  ;;  %16007 = vmatpush3.msra.mxu0 %v13951_v32 }
 0x281   :  { %v1455_v51 = vrot.slane %v1447_v40, %v16835_v59  ;;  %v4806_v41 = vrot.slane %v4792_v6, %v16835_v59  ;;  %v813_v55 = vcombine.high %v809_v38, %v809_v38  ;;  %v6749_v9 = vrot.slane %v6735_v63, %v16835_v59  ;;  %v13966_v6 = vld [vmem:[#allocation10 + $0x3a8] sm:$0xff] }
 0x282   :  { %v1462_v14 = vrot.slane %v1448_v10, %v16835_v59  ;;  %1726 = vst [vmem:[#allocation2 + $0xa1] sm:$0x7f] %v1415_v0  ;;  %v837_v13 = vrot.slane %v16949_v47, %v16835_v59  ;;  %v1487_v17 = vrot.slane %v16980_v48, %v16835_v59  ;;  %v4807_v23 = vcombine.high %v4799_v16, %v4799_v16 }
 0x283   :  { %v4808_v25 = vcombine.high %v4806_v41, %v4806_v41  ;;  %v4815_v45 = vrot.slane %v4799_v16, %v16835_v59  ;;  %v4822_v8 = vrot.slane %v4806_v41, %v16835_v59  ;;  %v6750_v30 = vcombine.low %v6742_v57, %v6749_v9  ;;  %16008 = vmatprep.subr.mxu0 %v13966_v6  ;;  %v13914_v6 = vld [vmem:[#allocation10 + $0x208] sm:$0xff] }
 0x284   :  { %v1463_v54 = vcombine.low %v1455_v51, %v1462_v14  ;;  %v859_v35 = vcombine.high %v837_v13, %v837_v13  ;;  %v17861_v2 = vcombine.low %v813_v55, %v837_v13  ;;  %v4829_v47 = vrot.slane %v4807_v23, %v16835_v59 }
 0x285   :  { %v4836_v48 = vrot.slane %v4808_v25, %v16835_v59  ;;  %v4837_v38 = vcombine.high %v4815_v45, %v4815_v45  ;;  %v4838_v1 = vcombine.high %v4822_v8, %v4822_v8  ;;  %14212 = vmatprep.mubr.f32.mxu0 %v6750_v30  ;;  %v5422_v28 = vcombine.low %v4790_v42, %v4815_v45 }
 0x286   :  { %1727 = vst [vmem:[#allocation2 + $0xb1] sm:$0x7f] %v1463_v54  ;;  %v17870_v37 = vcombine.low %v16963_v24, %v859_v35  ;;  %v1473_v18 = vrot.slane %v17861_v2, %v16835_v59  ;;  %v1494_v22 = vrot.slane %v16969_v53, %v16835_v59  ;;  %14213 = vmatmul.mubr.f32.gmra.mxu0 %v17818_v43 }
 0x287   :  { %v4839_v12 = vcombine.high %v4829_v47, %v4829_v47  ;;  %v5423_v29 = vcombine.low %v4829_v47, %v4837_v38  ;;  %v17877_v4 = vcombine.low %v4836_v48, %v4838_v1  ;;  %v17881_v36 = vrot.slane %v17863_v33, %v16835_v59 }
 0x288   :  { %v5432_v27 = vrot.slane %v5422_v28, %v16835_v59  ;;  %v1480_v24 = vrot.slane %v17870_v37, %v16835_v59  ;;  %v17886_v21 = vcombine.low %v1487_v17, %v1494_v22  ;;  %v17890_v53 = vrot.slane %v17867_v39, %v16835_v59  ;;  %v13964_v37 = vld [vmem:[#allocation10 + $0x398] sm:$0xff] }
 0x289   :  { %v3107_v43 = vld [vmem:[#allocation2 + $0xa1] sm:$0x7f]  ;;  %v17892_v20 = vcombine.low %v4839_v12, %v4822_v8  ;;  %v5439_v50 = vrot.slane %v5423_v29, %v16835_v59  ;;  %v5453_v60 = vrot.slane %v17877_v4, %v16835_v59  ;;  %v3670_v61 = vcombine.high %v17881_v36, %v17881_v36 }
 0x28a   :  { %v5764_v44 = vld [vmem:[#allocation2 + $0xa0] sm:$0x7f]  ;;  %v3511_v3 = vcombine.high %v3107_v43, %v3107_v43  ;;  %v3518_v46 = vrot.slane %v3107_v43, %v16835_v59  ;;  %v1495_v4 = vcombine.low %v1473_v18, %v1480_v24 }
 0x28b   :  { %v1778_v11 = vld [vmem:[#allocation2 + $0xa0] sm:$0x7f]  ;;  %v6121_v31 = vcombine.high %v5764_v44, %v5764_v44  ;;  %v6128_v19 = vrot.slane %v5764_v44, %v16835_v59  ;;  %v5446_v40 = vrot.slane %v17892_v20, %v16835_v59  ;;  %v17904_v42 = vcombine.low %v5432_v27, %v5439_v50 }
 0x28c   :  { %v2182_v7 = vcombine.high %v1778_v11, %v1778_v11  ;;  %v2189_v5 = vrot.slane %v1778_v11, %v16835_v59  ;;  %v3525_v34 = vrot.slane %v3511_v3, %v16835_v59  ;;  %v3526_v52 = vcombine.high %v3518_v46, %v3518_v46 }
 0x28d   :  { %v3534_v62 = vrot.slane %v3518_v46, %v16835_v59  ;;  %v6135_v63 = vrot.slane %v6121_v31, %v16835_v59  ;;  %v17909_v57 = vld [vmem:[#allocation2 + $0xb1] sm:$0x7f]  ;;  %v6136_v0 = vcombine.high %v6128_v19, %v6128_v19  ;;  %v6144_v10 = vrot.slane %v6128_v19, %v16835_v59  ;;  %v13930_v19 = vld [vmem:[#allocation10 + $0x288] sm:$0xff] }
 0x28e   :  { %v2196_v26 = vrot.slane %v2182_v7, %v16835_v59  ;;  %v2197_v51 = vcombine.high %v2189_v5, %v2189_v5  ;;  %v3527_v16 = vcombine.high %v3525_v34, %v3525_v34  ;;  %v3541_v41 = vrot.slane %v3525_v34, %v16835_v59  ;;  %v17936_v50 = vld [vmem:[#allocation2 + $0xb0] sm:$0x7f]  ;;  %v13950_v7 = vld [vmem:[#allocation10 + $0x328] sm:$0xff]  ;;  %15945 = vmatprep.subr.mxu1 %v13930_v19 }
 0x28f   :  { %v3548_v55 = vrot.slane %v3526_v52, %v16835_v59  ;;  %v17917_v32 = vrot.slane %v17909_v57, %v16835_v59  ;;  %v6137_v9 = vcombine.high %v6135_v63, %v6135_v63  ;;  %v6151_v14 = vrot.slane %v6135_v63, %v16835_v59  ;;  %16009 = vmatpush3.msra.mxu0 %v13950_v7 }
 0x290   :  { %v6158_v13 = vrot.slane %v6136_v0, %v16835_v59  ;;  %v6166_v17 = vcombine.high %v6144_v10, %v6144_v10  ;;  %v3555_v23 = vrot.slane %v3527_v16, %v16835_v59  ;;  %v3557_v25 = vcombine.high %v3541_v41, %v3541_v41  ;;  %v13965_v0 = vld [vmem:[#allocation10 + $0x3a0] sm:$0xff]  ;;  %15946 = vmatpush3.msra.mxu1 %v13914_v6 }
 0x291   :  { %v17924_v45 = vrot.slane %v17917_v32, %v16835_v59  ;;  %v4142_v8 = vcombine.low %v3534_v62, %v3548_v55  ;;  %v15686_v30 = vcombine.high %v3534_v62, %v3548_v55  ;;  %v6165_v54 = vrot.slane %v6137_v9, %v16835_v59  ;;  %v13949_v9 = vld [vmem:[#allocation10 + $0x320] sm:$0xff]  ;;  %16010 = vmatprep.subr.mxu0 %v13965_v0 }
 0x292   :  { %v6167_v35 = vcombine.high %v6151_v14, %v6151_v14  ;;  %v6168_v47 = vcombine.high %v6158_v13, %v6158_v13  ;;  %v4144_v48 = vcombine.low %v3541_v41, %v3555_v23  ;;  %v6751_v28 = vcombine.low %v6119_v49, %v6144_v10  ;;  %16011 = vmatpush3.msra.mxu0 %v13949_v9 }
 0x293   :  { %v4145_v38 = vcombine.low %v3557_v25, %v17924_v45  ;;  %v4152_v1 = vrot.slane %v4142_v8, %v16835_v59  ;;  %v4159_v22 = vrot.slane %v15686_v30, %v16835_v59  ;;  %v6752_v12 = vcombine.low %v6158_v13, %v6166_v17  ;;  %16012 = vmatprep.subr.mxu0 %v13964_v37 }
 0x294   :  { %v6753_v29 = vcombine.low %v6168_v47, %v6151_v14  ;;  %v6754_v27 = vcombine.low %v6165_v54, %v6167_v35  ;;  %v4166_v43 = vrot.slane %v4144_v48, %v16835_v59  ;;  %v6761_v11 = vrot.slane %v6751_v28, %v16835_v59  ;;  %v5765_v28 = vld [vmem:[#allocation2 + $0xb0] sm:$0x7f] }
 0x295   :  { %v4173_v44 = vrot.slane %v4145_v38, %v16835_v59  ;;  %v2198_v3 = vcombine.high %v2196_v26, %v2196_v26  ;;  %v4174_v46 = vcombine.low %v4152_v1, %v4159_v22  ;;  %v6768_v31 = vrot.slane %v6752_v12, %v16835_v59 }
 0x296   :  { %v6775_v15 = vrot.slane %v6753_v29, %v16835_v59  ;;  %v6782_v49 = vrot.slane %v6754_v27, %v16835_v59  ;;  %v2205_v52 = vrot.slane %v2189_v5, %v16835_v59  ;;  %v2212_v62 = vrot.slane %v2196_v26, %v16835_v59  ;;  %v13929_v27 = vld [vmem:[#allocation10 + $0x280] sm:$0xff] }
 0x297   :  { %v4175_v34 = vcombine.low %v4166_v43, %v4173_v44  ;;  %v2219_v63 = vrot.slane %v2197_v51, %v16835_v59  ;;  %v4182_v10 = vrot.slane %v4174_v46, %v16835_v59  ;;  %v6783_v16 = vcombine.low %v6761_v11, %v6768_v31  ;;  %15947 = vmatprep.subr.mxu1 %v13929_v27  ;;  %v13913_v31 = vld [vmem:[#allocation10 + $0x200] sm:$0xff] }
 0x298   :  { %v6784_v41 = vcombine.low %v6775_v15, %v6782_v49  ;;  %v2226_v55 = vrot.slane %v2198_v3, %v16835_v59  ;;  %v2228_v13 = vcombine.high %v2212_v62, %v2212_v62  ;;  %v17949_v5 = vrot.slane %v17936_v50, %v16835_v59  ;;  %15948 = vmatpush3.msra.mxu1 %v13913_v31 }
 0x299   :  { %v4189_v14 = vrot.slane %v4175_v34, %v16835_v59  ;;  %v2813_v26 = vcombine.low %v2205_v52, %v2219_v63  ;;  %v6791_v51 = vrot.slane %v6783_v16, %v16835_v59  ;;  %v15678_v23 = vcombine.high %v2205_v52, %v2219_v63  ;;  %v16378_v63 = vld [vmem:[#allocation2] sm:$0xff] }
 0x29a   :  { %v6798_v17 = vrot.slane %v6784_v41, %v16835_v59  ;;  %v2815_v25 = vcombine.low %v2212_v62, %v2226_v55  ;;  %v17955_v30 = vrot.slane %v17949_v5, %v16835_v59  ;;  %v5455_v35 = vcombine.low %v5446_v40, %v5453_v60  ;;  %16159 = vmatprep.subr.mxu1 %v16378_v63 }
 0x29b   :  { %v4190_v8 = vcombine.low %v4182_v10, %v4189_v14  ;;  %v2823_v54 = vrot.slane %v2813_v26, %v16835_v59  ;;  %v2830_v48 = vrot.slane %v15678_v23, %v16835_v59  ;;  %v5462_v1 = vrot.slane %v17904_v42, %v16835_v59  ;;  %v13963_v26 = vld [vmem:[#allocation10 + $0x390] sm:$0xff] }
 0x29c   :  { %v6799_v47 = vcombine.low %v6791_v51, %v6798_v17  ;;  %v2837_v38 = vrot.slane %v2815_v25, %v16835_v59  ;;  %v2816_v22 = vcombine.low %v2228_v13, %v17955_v30  ;;  %v5469_v12 = vrot.slane %v5455_v35, %v16835_v59  ;;  %v13948_v13 = vld [vmem:[#allocation10 + $0x318] sm:$0xff] }
 0x29d   :  { %14092 = vmatprep.mubr.f32.mxu1 %v4190_v8  ;;  %v1510_v20 = vrot.slane %v17886_v21, %v16835_v59  ;;  %v2845_v60 = vcombine.low %v2823_v54, %v2830_v48  ;;  %v3559_v40 = vcombine.high %v17909_v57, %v17909_v57  ;;  %v3574_v42 = vcombine.high %v17917_v32, %v17917_v32  ;;  %v13947_v8 = vld [vmem:[#allocation10 + $0x310] sm:$0xff] }
 0x29e   :  { %14217 = vmatprep.mubr.f32.mxu0 %v6799_v47  ;;  %v3604_v29 = vcombine.high %v17924_v45, %v17924_v45  ;;  %v2844_v43 = vrot.slane %v2816_v22, %v16835_v59  ;;  %v5470_v2 = vcombine.low %v5462_v1, %v5469_v12  ;;  %v1503_v18 = vrot.slane %v1495_v4, %v16835_v59 }
 0x29f   :  { %v6169_v24 = vcombine.high %v5765_v28, %v5765_v28  ;;  %v2853_v21 = vrot.slane %v2845_v60, %v16835_v59  ;;  %v3573_v44 = vrot.slane %v3559_v40, %v16835_v59  ;;  %v3596_v57 = vrot.slane %v3574_v42, %v16835_v59  ;;  %16013 = vmatpush3.msra.mxu0 %v13948_v13  ;;  %v4436_v60 = vld [vmem:[#allocation2 + $0xa2] sm:$0x7f] }
 0x2a0   :  { %v6176_v32 = vrot.slane %v5765_v28, %v16835_v59  ;;  %v2846_v11 = vcombine.low %v2837_v38, %v2844_v43  ;;  %14218 = vmatmul.mubr.f32.gmra.mxu0 %v5470_v2  ;;  %v1511_v45 = vcombine.low %v1503_v18, %v1510_v20  ;;  %v2230_v46 = vcombine.high %v17936_v50, %v17936_v50 }
 0x2a1   :  { %v6183_v3 = vrot.slane %v6169_v24, %v16835_v59  ;;  %v3575_v15 = vcombine.high %v3573_v44, %v3573_v44  ;;  %v3589_v49 = vrot.slane %v3573_v44, %v16835_v59  ;;  %v3606_v19 = vcombine.high %v3596_v57, %v3596_v57  ;;  %16014 = vmatprep.subr.mxu0 %v13963_v26 }
 0x2a2   :  { %v4191_v7 = vcombine.low %v3596_v57, %v3604_v29  ;;  %v2860_v6 = vrot.slane %v2846_v11, %v16835_v59  ;;  %1728 = vst [vmem:[#allocation2 + $0xc1] sm:$0x7f] %v1511_v45  ;;  %v6184_v34 = vcombine.high %v6176_v32, %v6176_v32  ;;  %v6192_v62 = vrot.slane %v6176_v32, %v16835_v59 }
 0x2a3   :  { %v6185_v52 = vcombine.high %v6183_v3, %v6183_v3  ;;  %v3603_v0 = vrot.slane %v3575_v15, %v16835_v59  ;;  %v3605_v10 = vcombine.high %v3589_v49, %v3589_v49  ;;  %v4192_v50 = vcombine.low %v3606_v19, %v3589_v49  ;;  %16015 = vmatpush3.msra.mxu0 %v13947_v8  ;;  %v18043_v15 = vld [vmem:[#allocation2 + $0xb2] sm:$0x7f]  ;;  %v13962_v49 = vld [vmem:[#allocation10 + $0x388] sm:$0xff] }
 0x2a4   :  { %v4201_v16 = vrot.slane %v4191_v7, %v16835_v59  ;;  %v2861_v41 = vcombine.low %v2853_v21, %v2860_v6  ;;  %v6199_v55 = vrot.slane %v6183_v3, %v16835_v59  ;;  %v6206_v9 = vrot.slane %v6184_v34, %v16835_v59  ;;  %16016 = vmatprep.subr.mxu0 %v13962_v49 }
 0x2a5   :  { %v6213_v14 = vrot.slane %v6185_v52, %v16835_v59  ;;  %v18001_v51 = vcombine.low %v3603_v0, %v3605_v10  ;;  %v4208_v17 = vrot.slane %v4192_v50, %v16835_v59  ;;  %v2244_v23 = vrot.slane %v2230_v46, %v16835_v59 }
 0x2a6   :  { %v2245_v25 = vcombine.high %v17949_v5, %v17949_v5  ;;  %14093 = vmatmul.mubr.f32.gmra.mxu1 %v2861_v41  ;;  %v6215_v54 = vcombine.high %v6199_v55, %v6199_v55  ;;  %v6800_v35 = vcombine.low %v6192_v62, %v6206_v9  ;;  %v15702_v47 = vcombine.high %v6192_v62, %v6206_v9 }
 0x2a7   :  { %v6802_v48 = vcombine.low %v6199_v55, %v6213_v14  ;;  %v4215_v38 = vrot.slane %v18001_v51, %v16835_v59  ;;  %v18009_v1 = vcombine.low %v4201_v16, %v4208_v17  ;;  %v2246_v28 = vcombine.high %v2244_v23, %v2244_v23 }
 0x2a8   :  { %v2260_v22 = vrot.slane %v2244_v23, %v16835_v59  ;;  %v6810_v12 = vrot.slane %v6800_v35, %v16835_v59  ;;  %v6817_v5 = vrot.slane %v15702_v47, %v16835_v59  ;;  %v2267_v20 = vrot.slane %v2245_v25, %v16835_v59 }
 0x2a9   :  { %v6824_v4 = vrot.slane %v6802_v48, %v16835_v59  ;;  %v18016_v40 = vld [vmem:[#allocation2 + $0xc1] sm:$0x7f]  ;;  %v4231_v42 = vrot.slane %v18009_v1, %v16835_v59  ;;  %v2274_v37 = vrot.slane %v2246_v28, %v16835_v59  ;;  %v2275_v43 = vcombine.high %v17955_v30, %v17955_v30 }
 0x2aa   :  { %v18020_v29 = vld [vmem:[#allocation2 + $0xc0] sm:$0x7f]  ;;  %v2276_v2 = vcombine.high %v2260_v22, %v2260_v22  ;;  %v3614_v18 = vrot.slane %v18016_v40, %v16835_v59  ;;  %v6832_v21 = vcombine.low %v6810_v12, %v6817_v5  ;;  %v2277_v44 = vcombine.high %v2267_v20, %v2267_v20 }
 0x2ab   :  { %v18022_v27 = vld [vmem:[#allocation2 + $0xc0] sm:$0x7f]  ;;  %v18031_v24 = vrot.slane %v18020_v29, %v16835_v59  ;;  %v2862_v32 = vcombine.low %v2267_v20, %v2275_v43  ;;  %v4840_v45 = vcombine.high %v4436_v60, %v4436_v60  ;;  %v4847_v0 = vrot.slane %v4436_v60, %v16835_v59 }
 0x2ac   :  { %v2285_v57 = vrot.slane %v18022_v27, %v16835_v59  ;;  %v2864_v11 = vcombine.low %v2274_v37, %v2276_v2  ;;  %v3622_v3 = vcombine.high %v3614_v18, %v3614_v18  ;;  %v18036_v46 = vrot.slane %v3614_v18, %v16835_v59  ;;  %v13946_v48 = vld [vmem:[#allocation10 + $0x308] sm:$0xff] }
 0x2ad   :  { %v18040_v30 = vrot.slane %v18031_v24, %v16835_v59  ;;  %v6840_v31 = vrot.slane %v6832_v21, %v16835_v59  ;;  %v2863_v6 = vcombine.low %v2277_v44, %v2260_v22  ;;  %v2872_v34 = vrot.slane %v2862_v32, %v16835_v59  ;;  %16017 = vmatpush3.msra.mxu0 %v13946_v48 }
 0x2ae   :  { %v2293_v19 = vcombine.high %v2285_v57, %v2285_v57  ;;  %v18046_v7 = vrot.slane %v2285_v57, %v16835_v59  ;;  %v18050_v52 = vrot.slane %v3622_v3, %v16835_v59  ;;  %v2886_v63 = vrot.slane %v2864_v11, %v16835_v59 }
 0x2af   :  { %v6803_v62 = vcombine.low %v6215_v54, %v18040_v30  ;;  %v2879_v50 = vrot.slane %v2863_v6, %v16835_v59  ;;  %v4854_v16 = vrot.slane %v4840_v45, %v16835_v59  ;;  %v18062_v41 = vrot.slane %v18043_v15, %v16835_v59 }
 0x2b0   :  { %v18056_v10 = vrot.slane %v2293_v19, %v16835_v59  ;;  %v4194_v55 = vcombine.low %v18036_v46, %v18050_v52  ;;  %v4855_v14 = vcombine.high %v4847_v0, %v4847_v0  ;;  %v4863_v13 = vrot.slane %v4847_v0, %v16835_v59  ;;  %v13961_v0 = vld [vmem:[#allocation10 + $0x380] sm:$0xff] }
 0x2b1   :  { %v6831_v9 = vrot.slane %v6803_v62, %v16835_v59  ;;  %v2894_v17 = vcombine.low %v2872_v34, %v2879_v50  ;;  %v4856_v23 = vcombine.high %v4854_v16, %v4854_v16  ;;  %v4870_v25 = vrot.slane %v4854_v16, %v16835_v59  ;;  %16018 = vmatprep.subr.mxu0 %v13961_v0 }
 0x2b2   :  { %v2865_v26 = vcombine.low %v18046_v7, %v18056_v10  ;;  %v4222_v8 = vrot.slane %v4194_v55, %v16835_v59  ;;  %v4877_v35 = vrot.slane %v4855_v14, %v16835_v59  ;;  %v18075_v47 = vrot.slane %v18062_v41, %v16835_v59  ;;  %v13945_v55 = vld [vmem:[#allocation10 + $0x300] sm:$0xff] }
 0x2b3   :  { %v6833_v54 = vcombine.low %v6824_v4, %v6831_v9  ;;  %v2902_v22 = vrot.slane %v2894_v17, %v16835_v59  ;;  %v4884_v12 = vrot.slane %v4856_v23, %v16835_v59  ;;  %v4886_v5 = vcombine.high %v4870_v25, %v4870_v25  ;;  %16019 = vmatpush3.msra.mxu0 %v13945_v55  ;;  %v18159_v55 = vld [vmem:[#allocation2 + $0xc2] sm:$0x7f] }
 0x2b4   :  { %v2893_v28 = vrot.slane %v2865_v26, %v16835_v59  ;;  %v4224_v20 = vcombine.low %v4215_v38, %v4222_v8  ;;  %v5471_v60 = vcombine.low %v4863_v13, %v4877_v35  ;;  %v15694_v37 = vcombine.high %v4863_v13, %v4877_v35 }
 0x2b5   :  { %v6847_v4 = vrot.slane %v6833_v54, %v16835_v59  ;;  %v5473_v2 = vcombine.low %v4870_v25, %v4884_v12  ;;  %v5474_v18 = vcombine.low %v4886_v5, %v18075_v47  ;;  %v3607_v21 = vcombine.high %v18016_v40, %v18016_v40  ;;  %v18131_v12 = vld [vmem:[#allocation2 + $0xd0] sm:$0x7f] }
 0x2b6   :  { %v2895_v43 = vcombine.low %v2886_v63, %v2893_v28  ;;  %v4238_v44 = vrot.slane %v4224_v20, %v16835_v59  ;;  %v5481_v32 = vrot.slane %v5471_v60, %v16835_v59  ;;  %v5488_v11 = vrot.slane %v15694_v37, %v16835_v59 }
 0x2b7   :  { %v6848_v57 = vcombine.low %v6840_v31, %v6847_v4  ;;  %v5495_v38 = vrot.slane %v5473_v2, %v16835_v59  ;;  %v5502_v45 = vrot.slane %v5474_v18, %v16835_v59  ;;  %v3621_v3 = vrot.slane %v3607_v21, %v16835_v59 }
 0x2b8   :  { %v2909_v51 = vrot.slane %v2895_v43, %v16835_v59  ;;  %v4239_v49 = vcombine.low %v4231_v42, %v4238_v44  ;;  %v5503_v40 = vcombine.low %v5481_v32, %v5488_v11  ;;  %v3678_v31 = vrot.slane %v17881_v36, %v16835_v59 }
 0x2b9   :  { %14222 = vmatprep.mubr.f32.mxu0 %v6848_v57  ;;  %v18103_v19 = vrot.slane %v3670_v61, %v16835_v59  ;;  %v5504_v34 = vcombine.low %v5495_v38, %v5502_v45  ;;  %v3623_v62 = vcombine.high %v3621_v3, %v3621_v3  ;;  %v3637_v63 = vrot.slane %v3621_v3, %v16835_v59 }
 0x2ba   :  { %v2910_v6 = vcombine.low %v2902_v22, %v2909_v51  ;;  %14097 = vmatprep.mubr.f32.mxu1 %v4239_v49  ;;  %v5511_v1 = vrot.slane %v5503_v40, %v16835_v59  ;;  %v3700_v42 = vcombine.high %v3678_v31, %v3678_v31  ;;  %v15687_v50 = vcombine.high %v18036_v46, %v18050_v52 }
 0x2bb   :  { %v6217_v16 = vcombine.high %v18020_v29, %v18020_v29  ;;  %v5518_v36 = vrot.slane %v5504_v34, %v16835_v59  ;;  %v3651_v61 = vrot.slane %v3623_v62, %v16835_v59  ;;  %v3653_v9 = vcombine.high %v3637_v63, %v3637_v63 }
 0x2bc   :  { %14098 = vmatmul.mubr.f32.gmra.mxu1 %v2910_v6  ;;  %v6232_v14 = vcombine.high %v18031_v24, %v18031_v24  ;;  %v4243_v13 = vcombine.low %v18103_v19, %v3700_v42  ;;  %v4250_v26 = vrot.slane %v15687_v50, %v16835_v59  ;;  %v6262_v46 = vcombine.high %v18040_v30, %v18040_v30 }
 0x2bd   :  { %v6231_v17 = vrot.slane %v6217_v16, %v16835_v59  ;;  %v5519_v29 = vcombine.low %v5511_v1, %v5518_v36  ;;  %v4241_v52 = vcombine.low %v3637_v63, %v3651_v61  ;;  %v4242_v23 = vcombine.low %v3653_v9, %v3678_v31 }
 0x2be   :  { %v6254_v25 = vrot.slane %v6232_v14, %v16835_v59  ;;  %v4271_v8 = vrot.slane %v4243_v13, %v16835_v59  ;;  %v6280_v35 = vcombine.high %v17890_v53, %v17890_v53  ;;  %v18129_v22 = vrot.slane %v17890_v53, %v16835_v59 }
 0x2bf   :  { %v6233_v54 = vcombine.high %v6231_v17, %v6231_v17  ;;  %v6247_v24 = vrot.slane %v6231_v17, %v16835_v59  ;;  %14223 = vmatmul.mubr.f32.gmra.mxu0 %v5519_v29  ;;  %v4257_v48 = vrot.slane %v4241_v52, %v16835_v59  ;;  %v4264_v30 = vrot.slane %v4242_v23, %v16835_v59 }
 0x2c0   :  { %v6264_v28 = vcombine.high %v6254_v25, %v6254_v25  ;;  %v18135_v4 = vrot.slane %v6280_v35, %v16835_v59  ;;  %v6849_v60 = vcombine.low %v6254_v25, %v6262_v46  ;;  %v2278_v18 = vcombine.high %v18022_v27, %v18022_v27 }
 0x2c1   :  { %v6261_v5 = vrot.slane %v6233_v54, %v16835_v59  ;;  %v6263_v20 = vcombine.high %v6247_v24, %v6247_v24  ;;  %v4272_v37 = vcombine.low %v4250_v26, %v4257_v48  ;;  %v4273_v43 = vcombine.low %v4264_v30, %v4271_v8 }
 0x2c2   :  { %v6850_v2 = vcombine.low %v6264_v28, %v6247_v24  ;;  %v6852_v53 = vcombine.low %v18129_v22, %v18135_v4  ;;  %v6859_v44 = vrot.slane %v6849_v60, %v16835_v59  ;;  %v2333_v57 = vrot.slane %v18131_v12, %v16835_v59 }
 0x2c3   :  { %v6851_v21 = vcombine.low %v6261_v5, %v6263_v20  ;;  %v4280_v32 = vrot.slane %v4272_v37, %v16835_v59  ;;  %v4287_v11 = vrot.slane %v4273_v43, %v16835_v59  ;;  %v2292_v38 = vrot.slane %v2278_v18, %v16835_v59  ;;  %v18182_v20 = vld [vmem:[#allocation2 + $0xe1] sm:$0x7f] }
 0x2c4   :  { %v6866_v51 = vrot.slane %v6850_v2, %v16835_v59  ;;  %v6880_v27 = vrot.slane %v6852_v53, %v16835_v59  ;;  %v2341_v3 = vcombine.high %v2333_v57, %v2333_v57  ;;  %v2349_v49 = vrot.slane %v2333_v57, %v16835_v59  ;;  %v18190_v18 = vld [vmem:[#allocation2 + $0xe0] sm:$0x7f] }
 0x2c5   :  { %v6873_v45 = vrot.slane %v6851_v21, %v16835_v59  ;;  %v4288_v40 = vcombine.low %v4280_v32, %v4287_v11  ;;  %v2294_v6 = vcombine.high %v2292_v38, %v2292_v38  ;;  %v2308_v34 = vrot.slane %v2292_v38, %v16835_v59 }
 0x2c6   :  { %v6881_v31 = vcombine.low %v6859_v44, %v6866_v51  ;;  %v18153_v63 = vrot.slane %v2341_v3, %v16835_v59  ;;  %v2371_v0 = vcombine.high %v2349_v49, %v2349_v49  ;;  %v15679_v1 = vcombine.high %v18046_v7, %v18056_v10 }
 0x2c7   :  { %v6882_v62 = vcombine.low %v6873_v45, %v6880_v27  ;;  %14102 = vmatprep.mubr.f32.mxu1 %v4288_v40  ;;  %v2322_v50 = vrot.slane %v2294_v6, %v16835_v59  ;;  %v2324_v16 = vcombine.high %v2308_v34, %v2308_v34  ;;  %v4888_v36 = vcombine.high %v18043_v15, %v18043_v15 }
 0x2c8   :  { %v6889_v42 = vrot.slane %v6881_v31, %v16835_v59  ;;  %v2914_v9 = vcombine.low %v18153_v63, %v2371_v0  ;;  %v2921_v14 = vrot.slane %v15679_v1, %v16835_v59  ;;  %v4903_v7 = vcombine.high %v18062_v41, %v18062_v41 }
 0x2c9   :  { %v6896_v61 = vrot.slane %v6882_v62, %v16835_v59  ;;  %v2912_v10 = vcombine.low %v2308_v34, %v2322_v50  ;;  %v2913_v13 = vcombine.low %v2324_v16, %v2349_v49  ;;  %v4902_v26 = vrot.slane %v4888_v36, %v16835_v59 }
 0x2ca   :  { %v4933_v17 = vcombine.high %v18075_v47, %v18075_v47  ;;  %v2942_v29 = vrot.slane %v2914_v9, %v16835_v59  ;;  %v4925_v15 = vrot.slane %v4903_v7, %v16835_v59  ;;  %v4943_v52 = vrot.slane %v18159_v55, %v16835_v59 }
 0x2cb   :  { %v6897_v46 = vcombine.low %v6889_v42, %v6896_v61  ;;  %v2928_v23 = vrot.slane %v2912_v10, %v16835_v59  ;;  %v2935_v25 = vrot.slane %v2913_v13, %v16835_v59  ;;  %v4904_v41 = vcombine.high %v4902_v26, %v4902_v26 }
 0x2cc   :  { %v4918_v8 = vrot.slane %v4902_v26, %v16835_v59  ;;  %v4935_v54 = vcombine.high %v4925_v15, %v4925_v15  ;;  %v4951_v24 = vcombine.high %v4943_v52, %v4943_v52  ;;  %v18179_v47 = vrot.slane %v4943_v52, %v16835_v59 }
 0x2cd   :  { %14227 = vmatprep.mubr.f32.mxu0 %v6897_v46  ;;  %v5520_v35 = vcombine.low %v4925_v15, %v4933_v17  ;;  %v2943_v48 = vcombine.low %v2921_v14, %v2928_v23  ;;  %v2944_v30 = vcombine.low %v2935_v25, %v2942_v29  ;;  %v4932_v28 = vrot.slane %v4904_v41, %v16835_v59 }
 0x2ce   :  { %v4934_v5 = vcombine.high %v4918_v8, %v4918_v8  ;;  %v18185_v60 = vrot.slane %v4951_v24, %v16835_v59  ;;  %v5521_v37 = vcombine.low %v4935_v54, %v4918_v8  ;;  %v3655_v2 = vcombine.high %v17863_v33, %v17863_v33 }
 0x2cf   :  { %v5530_v43 = vrot.slane %v5520_v35, %v16835_v59  ;;  %v2951_v21 = vrot.slane %v2943_v48, %v16835_v59  ;;  %v2958_v53 = vrot.slane %v2944_v30, %v16835_v59  ;;  %v3702_v57 = vcombine.high %v18103_v19, %v18103_v19 }
 0x2d0   :  { %v5522_v44 = vcombine.low %v4932_v28, %v4934_v5  ;;  %v5523_v32 = vcombine.low %v18179_v47, %v18185_v60  ;;  %v5537_v11 = vrot.slane %v5521_v37, %v16835_v59  ;;  %v3669_v51 = vrot.slane %v3655_v2, %v16835_v59  ;;  %v18228_v28 = vld [vmem:[#allocation2 + $0xe0] sm:$0x7f] }
 0x2d1   :  { %v3710_v33 = vrot.slane %v18182_v20, %v16835_v59  ;;  %v2959_v38 = vcombine.low %v2951_v21, %v2958_v53  ;;  %v6265_v27 = vcombine.high %v17867_v39, %v17867_v39  ;;  %v6320_v3 = vrot.slane %v18190_v18, %v16835_v59 }
 0x2d2   :  { %v5544_v45 = vrot.slane %v5522_v44, %v16835_v59  ;;  %v5551_v19 = vrot.slane %v5523_v32, %v16835_v59  ;;  %v5552_v49 = vcombine.low %v5530_v43, %v5537_v11  ;;  %v3671_v40 = vcombine.high %v3669_v51, %v3669_v51 }
 0x2d3   :  { %v3685_v31 = vrot.slane %v3669_v51, %v16835_v59  ;;  %14103 = vmatmul.mubr.f32.gmra.mxu1 %v2959_v38  ;;  %v3718_v6 = vcombine.high %v3710_v33, %v3710_v33  ;;  %v3726_v34 = vrot.slane %v3710_v33, %v16835_v59  ;;  %v6279_v62 = vrot.slane %v6265_v27, %v16835_v59 }
 0x2d4   :  { %v6328_v0 = vcombine.high %v6320_v3, %v6320_v3  ;;  %v5553_v1 = vcombine.low %v5544_v45, %v5551_v19  ;;  %v5560_v42 = vrot.slane %v5552_v49, %v16835_v59  ;;  %v3699_v39 = vrot.slane %v3671_v40, %v16835_v59 }
 0x2d5   :  { %v3701_v50 = vcombine.high %v3685_v31, %v3685_v31  ;;  %v3740_v16 = vrot.slane %v3718_v6, %v16835_v59  ;;  %v4289_v36 = vcombine.low %v3702_v57, %v3685_v31  ;;  %v6281_v61 = vcombine.high %v6279_v62, %v6279_v62 }
 0x2d6   :  { %v6295_v9 = vrot.slane %v6279_v62, %v16835_v59  ;;  %v5567_v14 = vrot.slane %v5553_v1, %v16835_v59  ;;  %v6336_v10 = vrot.slane %v6320_v3, %v16835_v59  ;;  %v18218_v13 = vrot.slane %v6328_v0, %v16835_v59 }
 0x2d7   :  { %v4290_v7 = vcombine.low %v3699_v39, %v3701_v50  ;;  %v4291_v26 = vcombine.low %v3726_v34, %v3740_v16  ;;  %v15688_v17 = vcombine.high %v3726_v34, %v3740_v16  ;;  %v4299_v46 = vrot.slane %v4289_v36, %v16835_v59 }
 0x2d8   :  { %v6309_v29 = vrot.slane %v6281_v61, %v16835_v59  ;;  %v5568_v15 = vcombine.low %v5560_v42, %v5567_v14  ;;  %v6311_v23 = vcombine.high %v6295_v9, %v6295_v9  ;;  %v6358_v25 = vcombine.high %v6336_v10, %v6336_v10 }
 0x2d9   :  { %v4306_v52 = vrot.slane %v4290_v7, %v16835_v59  ;;  %v4313_v41 = vrot.slane %v4291_v26, %v16835_v59  ;;  %v4320_v8 = vrot.slane %v15688_v17, %v16835_v59  ;;  %v15703_v54 = vcombine.high %v18129_v22, %v18135_v4  ;;  %v18236_v22 = vld [vmem:[#allocation2 + $0xd2] sm:$0x7f] }
 0x2da   :  { %v6899_v24 = vcombine.low %v6295_v9, %v6309_v29  ;;  %14228 = vmatmul.mubr.f32.gmra.mxu0 %v5568_v15  ;;  %v6900_v48 = vcombine.low %v6311_v23, %v6336_v10  ;;  %v6901_v30 = vcombine.low %v18218_v13, %v6358_v25  ;;  %v2326_v5 = vcombine.high %v18131_v12, %v18131_v12  ;;  %v3112_v7 = vld [vmem:[#allocation2 + $0xf1] sm:$0x7f] }
 0x2db   :  { %v4321_v35 = vcombine.low %v4299_v46, %v4306_v52  ;;  %v4322_v37 = vcombine.low %v4313_v41, %v4320_v8  ;;  %v6908_v43 = vrot.slane %v15703_v54, %v16835_v59  ;;  %v2373_v21 = vcombine.high %v18153_v63, %v18153_v63 }
 0x2dc   :  { %v6915_v2 = vrot.slane %v6899_v24, %v16835_v59  ;;  %v6922_v53 = vrot.slane %v6900_v48, %v16835_v59  ;;  %v6929_v44 = vrot.slane %v6901_v30, %v16835_v59  ;;  %v2340_v57 = vrot.slane %v2326_v5, %v16835_v59 }
 0x2dd   :  { %v4329_v4 = vrot.slane %v4321_v35, %v16835_v59  ;;  %v4336_v12 = vrot.slane %v4322_v37, %v16835_v59  ;;  %v2381_v11 = vrot.slane %v18228_v28, %v16835_v59  ;;  %v4936_v51 = vcombine.high %v18159_v55, %v18159_v55 }
 0x2de   :  { %v6930_v32 = vcombine.low %v6908_v43, %v6915_v2  ;;  %v6931_v63 = vcombine.low %v6922_v53, %v6929_v44  ;;  %v2342_v33 = vcombine.high %v2340_v57, %v2340_v57  ;;  %v2356_v38 = vrot.slane %v2340_v57, %v16835_v59 }
 0x2df   :  { %v4991_v45 = vrot.slane %v18236_v22, %v16835_v59  ;;  %v4337_v27 = vcombine.low %v4329_v4, %v4336_v12  ;;  %v2389_v19 = vcombine.high %v2381_v11, %v2381_v11  ;;  %v2397_v49 = vrot.slane %v2381_v11, %v16835_v59 }
 0x2e0   :  { %v6938_v3 = vrot.slane %v6930_v32, %v16835_v59  ;;  %v6945_v40 = vrot.slane %v6931_v63, %v16835_v59  ;;  %v2370_v31 = vrot.slane %v2342_v33, %v16835_v59  ;;  %v2372_v6 = vcombine.high %v2356_v38, %v2356_v38 }
 0x2e1   :  { %v2960_v34 = vcombine.low %v2373_v21, %v2356_v38  ;;  %14107 = vmatprep.mubr.f32.mxu1 %v4337_v27  ;;  %v2411_v55 = vrot.slane %v2389_v19, %v16835_v59  ;;  %v4950_v62 = vrot.slane %v4936_v51, %v16835_v59  ;;  %v4999_v0 = vcombine.high %v4991_v45, %v4991_v45 }
 0x2e2   :  { %v5007_v1 = vrot.slane %v4991_v45, %v16835_v59  ;;  %v6946_v42 = vcombine.low %v6938_v3, %v6945_v40  ;;  %v2961_v39 = vcombine.low %v2370_v31, %v2372_v6  ;;  %v15695_v16 = vcombine.high %v18179_v47, %v18185_v60  ;;  %v18290_v45 = vld [vmem:[#allocation2 + $0xf0] sm:$0x7f] }
 0x2e3   :  { %v2970_v50 = vrot.slane %v2960_v34, %v16835_v59  ;;  %v2962_v36 = vcombine.low %v2397_v49, %v2411_v55  ;;  %v15680_v61 = vcombine.high %v2397_v49, %v2411_v55  ;;  %v4952_v9 = vcombine.high %v4950_v62, %v4950_v62 }
 0x2e4   :  { %v4966_v14 = vrot.slane %v4950_v62, %v16835_v59  ;;  %14232 = vmatprep.mubr.f32.mxu0 %v6946_v42  ;;  %v2977_v10 = vrot.slane %v2961_v39, %v16835_v59  ;;  %v18263_v26 = vrot.slane %v4999_v0, %v16835_v59  ;;  %v5029_v17 = vcombine.high %v5007_v1, %v5007_v1 }
 0x2e5   :  { %v5579_v46 = vrot.slane %v15695_v16, %v16835_v59  ;;  %v2984_v29 = vrot.slane %v2962_v36, %v16835_v59  ;;  %v2991_v15 = vrot.slane %v15680_v61, %v16835_v59  ;;  %v4980_v47 = vrot.slane %v4952_v9, %v16835_v59 }
 0x2e6   :  { %v4982_v60 = vcombine.high %v4966_v14, %v4966_v14  ;;  %v2992_v52 = vcombine.low %v2970_v50, %v2977_v10  ;;  %v5572_v23 = vcombine.low %v18263_v26, %v5029_v17  ;;  %v3703_v25 = vcombine.high %v18182_v20, %v18182_v20 }
 0x2e7   :  { %v3751_v41 = vcombine.high %v3112_v7, %v3112_v7  ;;  %v2993_v8 = vcombine.low %v2984_v29, %v2991_v15  ;;  %v5570_v54 = vcombine.low %v4966_v14, %v4980_v47  ;;  %v3758_v35 = vrot.slane %v3112_v7, %v16835_v59 }
 0x2e8   :  { %v5571_v24 = vcombine.low %v4982_v60, %v5007_v1  ;;  %v3000_v48 = vrot.slane %v2992_v52, %v16835_v59  ;;  %v5600_v30 = vrot.slane %v5572_v23, %v16835_v59  ;;  %v3717_v5 = vrot.slane %v3703_v25, %v16835_v59  ;;  %v1783_v1 = vld [vmem:[#allocation2 + $0xf0] sm:$0x7f] }
 0x2e9   :  { %v18277_v37 = vrot.slane %v3751_v41, %v16835_v59  ;;  %v3007_v43 = vrot.slane %v2993_v8, %v16835_v59  ;;  %v5586_v2 = vrot.slane %v5570_v54, %v16835_v59  ;;  %v3766_v21 = vcombine.high %v3758_v35, %v3758_v35 }
 0x2ea   :  { %v5593_v20 = vrot.slane %v5571_v24, %v16835_v59  ;;  %v3719_v4 = vcombine.high %v3717_v5, %v3717_v5  ;;  %v3733_v53 = vrot.slane %v3717_v5, %v16835_v59  ;;  %v3774_v44 = vrot.slane %v3758_v35, %v16835_v59 }
 0x2eb   :  { %v18286_v57 = vrot.slane %v18277_v37, %v16835_v59  ;;  %v3008_v12 = vcombine.low %v3000_v48, %v3007_v43  ;;  %v5601_v32 = vcombine.low %v5579_v46, %v5586_v2  ;;  %v3788_v51 = vrot.slane %v3766_v21, %v16835_v59 }
 0x2ec   :  { %v5602_v11 = vcombine.low %v5593_v20, %v5600_v30  ;;  %v3747_v63 = vrot.slane %v3719_v4, %v16835_v59  ;;  %v3749_v33 = vcombine.high %v3733_v53, %v3733_v53  ;;  %v3796_v38 = vcombine.high %v3774_v44, %v3774_v44 }
 0x2ed   :  { %v6313_v27 = vcombine.high %v18190_v18, %v18190_v18  ;;  %14108 = vmatmul.mubr.f32.gmra.mxu1 %v3008_v12  ;;  %v5609_v3 = vrot.slane %v5601_v32, %v16835_v59  ;;  %v3798_v49 = vcombine.high %v3788_v51, %v3788_v51  ;;  %v6360_v40 = vcombine.high %v18218_v13, %v18218_v13  ;;  %v18330_v32 = vld [vmem:[#allocation2 + $0xe2] sm:$0x7f] }
 0x2ee   :  { %v5616_v19 = vrot.slane %v5602_v11, %v16835_v59  ;;  %v4338_v31 = vcombine.low %v3733_v53, %v3747_v63  ;;  %v4339_v6 = vcombine.low %v3749_v33, %v3774_v44  ;;  %v4340_v34 = vcombine.low %v3788_v51, %v3796_v38 }
 0x2ef   :  { %v6327_v55 = vrot.slane %v6313_v27, %v16835_v59  ;;  %v4341_v0 = vcombine.low %v3798_v49, %v18286_v57  ;;  %v6368_v18 = vrot.slane %v18290_v45, %v16835_v59  ;;  %v2374_v42 = vcombine.high %v18228_v28, %v18228_v28 }
 0x2f0   :  { %v5617_v62 = vcombine.low %v5609_v3, %v5616_v19  ;;  %v4348_v39 = vrot.slane %v4338_v31, %v16835_v59  ;;  %v4355_v50 = vrot.slane %v4339_v6, %v16835_v59  ;;  %v4362_v13 = vrot.slane %v4340_v34, %v16835_v59 }
 0x2f1   :  { %v6329_v16 = vcombine.high %v6327_v55, %v6327_v55  ;;  %v4369_v36 = vrot.slane %v4341_v0, %v16835_v59  ;;  %v6343_v61 = vrot.slane %v6327_v55, %v16835_v59  ;;  %v6376_v9 = vcombine.high %v6368_v18, %v6368_v18 }
 0x2f2   :  { %14233 = vmatmul.mubr.f32.gmra.mxu0 %v5617_v62  ;;  %v6384_v14 = vrot.slane %v6368_v18, %v16835_v59  ;;  %v4370_v7 = vcombine.low %v4348_v39, %v4355_v50  ;;  %v2388_v28 = vrot.slane %v2374_v42, %v16835_v59  ;;  %v2422_v17 = vcombine.high %v1783_v1, %v1783_v1 }
 0x2f3   :  { %v6357_v10 = vrot.slane %v6329_v16, %v16835_v59  ;;  %v4371_v46 = vcombine.low %v4362_v13, %v4369_v36  ;;  %v6359_v29 = vcombine.high %v6343_v61, %v6343_v61  ;;  %v6398_v15 = vrot.slane %v6376_v9, %v16835_v59 }
 0x2f4   :  { %v6947_v47 = vcombine.low %v6360_v40, %v6343_v61  ;;  %v4378_v60 = vrot.slane %v4370_v7, %v16835_v59  ;;  %v2390_v52 = vcombine.high %v2388_v28, %v2388_v28  ;;  %v2404_v23 = vrot.slane %v2388_v28, %v16835_v59 }
 0x2f5   :  { %v2429_v25 = vrot.slane %v1783_v1, %v16835_v59  ;;  %v4385_v41 = vrot.slane %v4371_v46, %v16835_v59  ;;  %v6948_v8 = vcombine.low %v6357_v10, %v6359_v29  ;;  %v6949_v54 = vcombine.low %v6384_v14, %v6398_v15 }
 0x2f6   :  { %v15704_v24 = vcombine.high %v6384_v14, %v6398_v15  ;;  %v6957_v35 = vrot.slane %v6947_v47, %v16835_v59  ;;  %v2418_v48 = vrot.slane %v2390_v52, %v16835_v59  ;;  %v2420_v30 = vcombine.high %v2404_v23, %v2404_v23 }
 0x2f7   :  { %v18320_v5 = vrot.slane %v2422_v17, %v16835_v59  ;;  %v4386_v43 = vcombine.low %v4378_v60, %v4385_v41  ;;  %v6964_v2 = vrot.slane %v6948_v8, %v16835_v59  ;;  %v6971_v20 = vrot.slane %v6949_v54, %v16835_v59 }
 0x2f8   :  { %v6978_v21 = vrot.slane %v15704_v24, %v16835_v59  ;;  %v2437_v4 = vcombine.high %v2429_v25, %v2429_v25  ;;  %v2445_v53 = vrot.slane %v2429_v25, %v16835_v59  ;;  %v3009_v12 = vcombine.low %v2404_v23, %v2418_v48 }
 0x2f9   :  { %v18328_v44 = vrot.slane %v18320_v5, %v16835_v59  ;;  %14112 = vmatprep.mubr.f32.mxu1 %v4386_v43  ;;  %v6979_v11 = vcombine.low %v6957_v35, %v6964_v2  ;;  %v4984_v63 = vcombine.high %v18236_v22, %v18236_v22  ;;  %v5031_v33 = vcombine.high %v18263_v26, %v18263_v26 }
 0x2fa   :  { %v6980_v51 = vcombine.low %v6971_v20, %v6978_v21  ;;  %v2459_v38 = vrot.slane %v2437_v4, %v16835_v59  ;;  %v2467_v27 = vcombine.high %v2445_v53, %v2445_v53  ;;  %v3010_v3 = vcombine.low %v2420_v30, %v2445_v53 }
 0x2fb   :  { %v3019_v19 = vrot.slane %v3009_v12, %v16835_v59  ;;  %v6987_v49 = vrot.slane %v6979_v11, %v16835_v59  ;;  %v4998_v31 = vrot.slane %v4984_v63, %v16835_v59  ;;  %v5039_v6 = vrot.slane %v18330_v32, %v16835_v59 }
 0x2fc   :  { %v6994_v40 = vrot.slane %v6980_v51, %v16835_v59  ;;  %v2469_v34 = vcombine.high %v2459_v38, %v2459_v38  ;;  %v3011_v22 = vcombine.low %v2459_v38, %v2467_v27  ;;  %v3026_v55 = vrot.slane %v3010_v3, %v16835_v59 }
 0x2fd   :  { %v3767_v26 = vcombine.high %v18277_v37, %v18277_v37  ;;  %v5000_v0 = vcombine.high %v4998_v31, %v4998_v31  ;;  %v5014_v18 = vrot.slane %v4998_v31, %v16835_v59  ;;  %v5047_v1 = vcombine.high %v5039_v6, %v5039_v6  ;;  %v5770_v37 = vld [vmem:[#allocation2 + $0x100] sm:$0x7f] }
 0x2fe   :  { %v6995_v62 = vcombine.low %v6987_v49, %v6994_v40  ;;  %v3012_v42 = vcombine.low %v2469_v34, %v18328_v44  ;;  %v3033_v39 = vrot.slane %v3011_v22, %v16835_v59  ;;  %v3041_v50 = vcombine.low %v3019_v19, %v3026_v55 }
 0x2ff   :  { %v5055_v13 = vrot.slane %v5039_v6, %v16835_v59  ;;  %v5028_v16 = vrot.slane %v5000_v0, %v16835_v59  ;;  %v5030_v36 = vcombine.high %v5014_v18, %v5014_v18  ;;  %v5069_v61 = vrot.slane %v5047_v1, %v16835_v59 }
 0x300   :  { %14237 = vmatprep.mubr.f32.mxu0 %v6995_v62  ;;  %v5618_v9 = vcombine.low %v5031_v33, %v5014_v18  ;;  %v3040_v14 = vrot.slane %v3012_v42, %v16835_v59  ;;  %v3049_v7 = vrot.slane %v3041_v50, %v16835_v59  ;;  %v3795_v10 = vrot.slane %v3767_v26, %v16835_v59  ;;  %v4441_v33 = vld [vmem:[#allocation2 + $0xf2] sm:$0x7f] }
 0x301   :  { %v3797_v28 = vcombine.high %v18286_v57, %v18286_v57  ;;  %v5619_v17 = vcombine.low %v5028_v16, %v5030_v36  ;;  %v5620_v46 = vcombine.low %v5055_v13, %v5069_v61  ;;  %v15696_v29 = vcombine.high %v5055_v13, %v5069_v61 }
 0x302   :  { %v5628_v15 = vrot.slane %v5618_v9, %v16835_v59  ;;  %v3042_v47 = vcombine.low %v3033_v39, %v3040_v14  ;;  %v6361_v52 = vcombine.high %v18290_v45, %v18290_v45  ;;  %v6409_v23 = vcombine.high %v5770_v37, %v5770_v37 }
 0x303   :  { %v4387_v60 = vcombine.low %v3795_v10, %v3797_v28  ;;  %v5635_v25 = vrot.slane %v5619_v17, %v16835_v59  ;;  %v5642_v41 = vrot.slane %v5620_v46, %v16835_v59  ;;  %v5649_v8 = vrot.slane %v15696_v29, %v16835_v59  ;;  %v8415_v46 = vld [vmem:[#allocation2 + $0x12] sm:$0x7f] }
 0x304   :  { %v6416_v54 = vrot.slane %v5770_v37, %v16835_v59  ;;  %v3056_v57 = vrot.slane %v3042_v47, %v16835_v59  ;;  %v6375_v35 = vrot.slane %v6361_v52, %v16835_v59  ;;  %v18368_v48 = vrot.slane %v6409_v23, %v16835_v59 }
 0x305   :  { %v4394_v24 = vrot.slane %v4387_v60, %v16835_v59  ;;  %v5650_v30 = vcombine.low %v5628_v15, %v5635_v25  ;;  %v5651_v45 = vcombine.low %v5642_v41, %v5649_v8  ;;  %v2438_v3 = vcombine.high %v18320_v5, %v18320_v5 }
 0x306   :  { %v6424_v43 = vcombine.high %v6416_v54, %v6416_v54  ;;  %v6432_v2 = vrot.slane %v6416_v54, %v16835_v59  ;;  %v3057_v20 = vcombine.low %v3049_v7, %v3056_v57  ;;  %v6377_v21 = vcombine.high %v6375_v35, %v6375_v35  ;;  %v18408_v57 = vld [vmem:[#allocation2 + $0x22] sm:$0x7f] }
 0x307   :  { %15689 = vst.sshfl [vmem:[#allocation3 + $0x368] sm:$0x5 pattern:$0x73625140] %v4394_v24  ;;  %v6391_v4 = vrot.slane %v6375_v35, %v16835_v59  ;;  %v18374_v53 = vrot.slane %v18368_v48, %v16835_v59  ;;  %v5658_v12 = vrot.slane %v5650_v30, %v16835_v59  ;;  %v5665_v11 = vrot.slane %v5651_v45, %v16835_v59 }
 0x308   :  { %v6446_v51 = vrot.slane %v6424_v43, %v16835_v59  ;;  %v6454_v63 = vcombine.high %v6432_v2, %v6432_v2  ;;  %14113 = vmatmul.mubr.f32.gmra.mxu1 %v3057_v20  ;;  %v6405_v38 = vrot.slane %v6377_v21, %v16835_v59  ;;  %v2468_v19 = vcombine.high %v18328_v44, %v18328_v44 }
 0x309   :  { %v6407_v27 = vcombine.high %v6391_v4, %v6391_v4  ;;  %v5666_v49 = vcombine.low %v5658_v12, %v5665_v11  ;;  %v5032_v6 = vcombine.high %v18330_v32, %v18330_v32  ;;  %v2466_v55 = vrot.slane %v2438_v3, %v16835_v59  ;;  %v7086_v3 = vld [vmem:[#allocation2 + $0x11] sm:$0x7f] }
 0x30a   :  { %v6456_v40 = vcombine.high %v6446_v51, %v6446_v51  ;;  %v6998_v31 = vcombine.low %v6446_v51, %v6454_v63  ;;  %v6996_v34 = vcombine.low %v6391_v4, %v6405_v38  ;;  %v5080_v26 = vcombine.high %v4441_v33, %v4441_v33 }
 0x30b   :  { %v6997_v22 = vcombine.low %v6407_v27, %v6432_v2  ;;  %14238 = vmatmul.mubr.f32.gmra.mxu0 %v5666_v49  ;;  %v5046_v5 = vrot.slane %v5032_v6, %v16835_v59  ;;  %v5087_v44 = vrot.slane %v4441_v33, %v16835_v59  ;;  %v3058_v42 = vcombine.low %v2466_v55, %v2468_v19 }
 0x30c   :  { %v6999_v62 = vcombine.low %v6456_v40, %v18374_v53  ;;  %v7020_v0 = vrot.slane %v6998_v31, %v16835_v59  ;;  %v7006_v18 = vrot.slane %v6996_v34, %v16835_v59  ;;  %v5094_v32 = vrot.slane %v5080_v26, %v16835_v59 }
 0x30d   :  { %v7013_v1 = vrot.slane %v6997_v22, %v16835_v59  ;;  %v5048_v13 = vcombine.high %v5046_v5, %v5046_v5  ;;  %v5062_v16 = vrot.slane %v5046_v5, %v16835_v59  ;;  %v5095_v36 = vcombine.high %v5087_v44, %v5087_v44 }
 0x30e   :  { %v13841_v39 = vld [vmem:[#allocation3 + $0x368] sm:$0x3]  ;;  %v7027_v50 = vrot.slane %v6999_v62, %v16835_v59  ;;  %v3065_v9 = vrot.slane %v3058_v42, %v16835_v59  ;;  %v5103_v37 = vrot.slane %v5087_v44, %v16835_v59  ;;  %v5110_v14 = vrot.slane %v5094_v32, %v16835_v59  ;;  %v18429_v44 = vld [vmem:[#allocation2 + $0x21] sm:$0x7f] }
 0x30f   :  { %14117 = vmatprep.mubr.f32.mxu1 %v13841_v39  ;;  %v7028_v61 = vcombine.low %v7006_v18, %v7013_v1  ;;  %v5076_v10 = vrot.slane %v5048_v13, %v16835_v59  ;;  %v5078_v28 = vcombine.high %v5062_v16, %v5062_v16  ;;  %v5117_v17 = vrot.slane %v5095_v36, %v16835_v59 }
 0x310   :  { %v7029_v7 = vcombine.low %v7020_v0, %v7027_v50  ;;  %15681 = vst.sshfl [vmem:[#allocation3 + $0x360] sm:$0x5 pattern:$0x73625140] %v3065_v9  ;;  %v5125_v15 = vcombine.high %v5103_v37, %v5103_v37  ;;  %v6425_v47 = vcombine.high %v18368_v48, %v18368_v48  ;;  %v6455_v60 = vcombine.high %v18374_v53, %v18374_v53 }
 0x311   :  { %v7036_v29 = vrot.slane %v7028_v61, %v16835_v59  ;;  %v5127_v23 = vcombine.high %v5117_v17, %v5117_v17  ;;  %v5667_v25 = vcombine.low %v5062_v16, %v5076_v10  ;;  %v5668_v41 = vcombine.low %v5078_v28, %v5103_v37 }
 0x312   :  { %v7043_v52 = vrot.slane %v7029_v7, %v16835_v59  ;;  %v5669_v8 = vcombine.low %v5117_v17, %v5125_v15  ;;  %v6453_v54 = vrot.slane %v6425_v47, %v16835_v59  ;;  %v8443_v24 = vcombine.high %v8415_v46, %v8415_v46 }
 0x313   :  { %v8450_v35 = vrot.slane %v8415_v46, %v16835_v59  ;;  %v5670_v45 = vcombine.low %v5127_v23, %v5110_v14  ;;  %v5677_v48 = vrot.slane %v5667_v25, %v16835_v59  ;;  %v5684_v43 = vrot.slane %v5668_v41, %v16835_v59  ;;  %v18444_v46 = vld [vmem:[#allocation2 + $0x32] sm:$0x7f] }
 0x314   :  { %v7044_v30 = vcombine.low %v7036_v29, %v7043_v52  ;;  %v5691_v2 = vrot.slane %v5669_v8, %v16835_v59  ;;  %v7045_v20 = vcombine.low %v6453_v54, %v6455_v60  ;;  %v8457_v21 = vrot.slane %v8443_v24, %v16835_v59 }
 0x315   :  { %v8458_v4 = vcombine.high %v8450_v35, %v8450_v35  ;;  %v5698_v53 = vrot.slane %v5670_v45, %v16835_v59  ;;  %v5699_v12 = vcombine.low %v5677_v48, %v5684_v43  ;;  %v8466_v11 = vrot.slane %v8450_v35, %v16835_v59 }
 0x316   :  { %14242 = vmatprep.mubr.f32.mxu0 %v7044_v30  ;;  %v8498_v51 = vrot.slane %v18408_v57, %v16835_v59  ;;  %v7052_v63 = vrot.slane %v7045_v20, %v16835_v59  ;;  %v8459_v33 = vcombine.high %v8457_v21, %v8457_v21  ;;  %v8473_v38 = vrot.slane %v8457_v21, %v16835_v59 }
 0x317   :  { %v8480_v27 = vrot.slane %v8458_v4, %v16835_v59  ;;  %v13840_v19 = vld [vmem:[#allocation3 + $0x360] sm:$0x3]  ;;  %v5700_v49 = vcombine.low %v5691_v2, %v5698_v53  ;;  %v5707_v40 = vrot.slane %v5699_v12, %v16835_v59  ;;  %v5096_v6 = vcombine.high %v5094_v32, %v5094_v32 }
 0x318   :  { %v18424_v31 = vrot.slane %v8498_v51, %v16835_v59  ;;  %14118 = vmatmul.mubr.f32.gmra.mxu1 %v13840_v19  ;;  %15705 = vst.sshfl [vmem:[#allocation3 + $0x378] sm:$0x5 pattern:$0x73625140] %v7052_v63  ;;  %v8487_v34 = vrot.slane %v8459_v33, %v16835_v59  ;;  %v8489_v22 = vcombine.high %v8473_v38, %v8473_v38  ;;  %v11074_v63 = vld [vmem:[#allocation2 + $0x21] sm:$0x7f] }
 0x319   :  { %v9115_v55 = vcombine.low %v8466_v11, %v8480_v27  ;;  %v15714_v26 = vcombine.high %v8466_v11, %v8480_v27  ;;  %v5714_v62 = vrot.slane %v5700_v49, %v16835_v59  ;;  %v5124_v0 = vrot.slane %v5096_v6, %v16835_v59 }
 0x31a   :  { %v5126_v5 = vcombine.high %v5110_v14, %v5110_v14  ;;  %v7114_v18 = vcombine.high %v7086_v3, %v7086_v3  ;;  %v9117_v1 = vcombine.low %v8473_v38, %v8487_v34  ;;  %v9118_v42 = vcombine.low %v8489_v22, %v18424_v31 }
 0x31b   :  { %v9125_v32 = vrot.slane %v9115_v55, %v16835_v59  ;;  %v9132_v39 = vrot.slane %v15714_v26, %v16835_v59  ;;  %v5715_v50 = vcombine.low %v5707_v40, %v5714_v62  ;;  %v7121_v16 = vrot.slane %v7086_v3, %v16835_v59  ;;  %v18476_v26 = vld [vmem:[#allocation2 + $0x31] sm:$0x7f] }
 0x31c   :  { %v5716_v13 = vcombine.low %v5124_v0, %v5126_v5  ;;  %v7128_v36 = vrot.slane %v7114_v18, %v16835_v59  ;;  %v9139_v61 = vrot.slane %v9117_v1, %v16835_v59  ;;  %v9146_v9 = vrot.slane %v9118_v42, %v16835_v59 }
 0x31d   :  { %v9147_v37 = vcombine.low %v9125_v32, %v9132_v39  ;;  %v18440_v14 = vrot.slane %v18429_v44, %v16835_v59  ;;  %14243 = vmatmul.mubr.f32.gmra.mxu0 %v5715_v50  ;;  %v7129_v10 = vcombine.high %v7121_v16, %v7121_v16  ;;  %v7137_v17 = vrot.slane %v7121_v16, %v16835_v59 }
 0x31e   :  { %v5723_v7 = vrot.slane %v5716_v13, %v16835_v59  ;;  %v7130_v28 = vcombine.high %v7128_v36, %v7128_v36  ;;  %v9148_v29 = vcombine.low %v9139_v61, %v9146_v9  ;;  %v7144_v47 = vrot.slane %v7128_v36, %v16835_v59 }
 0x31f   :  { %v9155_v15 = vrot.slane %v9147_v37, %v16835_v59  ;;  %v18450_v60 = vrot.slane %v18440_v14, %v16835_v59  ;;  %v13843_v52 = vld [vmem:[#allocation3 + $0x378] sm:$0x3]  ;;  %v7151_v23 = vrot.slane %v7129_v10, %v16835_v59  ;;  %v8491_v41 = vcombine.high %v18408_v57, %v18408_v57  ;;  %v13992_v37 = vld [vmem:[#allocation10 + $0x478] sm:$0xff] }
 0x320   :  { %15697 = vst.sshfl [vmem:[#allocation3 + $0x370] sm:$0x5 pattern:$0x73625140] %v5723_v7  ;;  %v7158_v25 = vrot.slane %v7130_v28, %v16835_v59  ;;  %v8506_v8 = vcombine.high %v8498_v51, %v8498_v51  ;;  %14247 = vmatprep.mubr.f32.mxu0 %v13843_v52  ;;  %v9162_v54 = vrot.slane %v9148_v29, %v16835_v59 }
 0x321   :  { %v7160_v24 = vcombine.high %v7144_v47, %v7144_v47  ;;  %v8536_v35 = vcombine.high %v18424_v31, %v18424_v31  ;;  %v8546_v30 = vrot.slane %v18444_v46, %v16835_v59  ;;  %v7786_v45 = vcombine.low %v7137_v17, %v7151_v23 }
 0x322   :  { %v15706_v48 = vcombine.high %v7137_v17, %v7151_v23  ;;  %v7788_v43 = vcombine.low %v7144_v47, %v7158_v25  ;;  %v8505_v2 = vrot.slane %v8491_v41, %v16835_v59  ;;  %v9163_v20 = vcombine.low %v9155_v15, %v9162_v54 }
 0x323   :  { %v7789_v21 = vcombine.low %v7160_v24, %v18450_v60  ;;  %v8528_v57 = vrot.slane %v8506_v8, %v16835_v59  ;;  %v8554_v4 = vcombine.high %v8546_v30, %v8546_v30  ;;  %v7796_v53 = vrot.slane %v7786_v45, %v16835_v59  ;;  %v13991_v8 = vld [vmem:[#allocation10 + $0x470] sm:$0xff] }
 0x324   :  { %v7803_v12 = vrot.slane %v15706_v48, %v16835_v59  ;;  %v7810_v11 = vrot.slane %v7788_v43, %v16835_v59  ;;  %v8507_v51 = vcombine.high %v8505_v2, %v8505_v2  ;;  %14317 = vmatprep.mubr.f32.mxu1 %v9163_v20  ;;  %v8521_v38 = vrot.slane %v8505_v2, %v16835_v59  ;;  %v18510_v43 = vld [vmem:[#allocation2 + $0x31] sm:$0x7f]  ;;  %v13990_v20 = vld [vmem:[#allocation10 + $0x468] sm:$0xff] }
 0x325   :  { %v7817_v33 = vrot.slane %v7789_v21, %v16835_v59  ;;  %v8538_v27 = vcombine.high %v8528_v57, %v8528_v57  ;;  %v18470_v3 = vrot.slane %v8546_v30, %v16835_v59  ;;  %v18474_v40 = vrot.slane %v8554_v4, %v16835_v59 }
 0x326   :  { %v7818_v19 = vcombine.low %v7796_v53, %v7803_v12  ;;  %v8535_v49 = vrot.slane %v8507_v51, %v16835_v59  ;;  %v9164_v31 = vcombine.low %v8528_v57, %v8536_v35  ;;  %v8537_v22 = vcombine.high %v8521_v38, %v8521_v38  ;;  %v9745_v12 = vld [vmem:[#allocation2 + $0x20] sm:$0x7f] }
 0x327   :  { %v13842_v6 = vld [vmem:[#allocation3 + $0x370] sm:$0x3]  ;;  %v7819_v34 = vcombine.low %v7810_v11, %v7817_v33  ;;  %v9165_v55 = vcombine.low %v8538_v27, %v8521_v38  ;;  %v11102_v62 = vcombine.high %v11074_v63, %v11074_v63  ;;  %v9167_v5 = vcombine.low %v18470_v3, %v18474_v40 }
 0x328   :  { %14248 = vmatmul.mubr.f32.gmra.mxu0 %v13842_v6  ;;  %v7826_v0 = vrot.slane %v7818_v19, %v16835_v59  ;;  %v9174_v18 = vrot.slane %v9164_v31, %v16835_v59  ;;  %v11109_v1 = vrot.slane %v11074_v63, %v16835_v59  ;;  %v9166_v32 = vcombine.low %v8535_v49, %v8537_v22  ;;  %v13989_v49 = vld [vmem:[#allocation10 + $0x460] sm:$0xff] }
 0x329   :  { %v7833_v42 = vrot.slane %v7819_v34, %v16835_v59  ;;  %v9181_v39 = vrot.slane %v9165_v55, %v16835_v59  ;;  %v11116_v50 = vrot.slane %v11102_v62, %v16835_v59  ;;  %v9195_v13 = vrot.slane %v9167_v5, %v16835_v59  ;;  %v18525_v22 = vld [vmem:[#allocation2 + $0x30] sm:$0x7f] }
 0x32a   :  { %v11117_v16 = vcombine.high %v11109_v1, %v11109_v1  ;;  %v11125_v36 = vrot.slane %v11109_v1, %v16835_v59  ;;  %v18490_v61 = vrot.slane %v18476_v26, %v16835_v59  ;;  %v9188_v7 = vrot.slane %v9166_v32, %v16835_v59  ;;  %v13988_v1 = vld [vmem:[#allocation10 + $0x458] sm:$0xff] }
 0x32b   :  { %v7834_v9 = vcombine.low %v7826_v0, %v7833_v42  ;;  %v9196_v10 = vcombine.low %v9174_v18, %v9181_v39  ;;  %v11118_v28 = vcombine.high %v11116_v50, %v11116_v50  ;;  %v11132_v17 = vrot.slane %v11116_v50, %v16835_v59 }
 0x32c   :  { %v11139_v29 = vrot.slane %v11117_v16, %v16835_v59  ;;  %v18497_v15 = vrot.slane %v18490_v61, %v16835_v59  ;;  %v7162_v47 = vcombine.high %v18429_v44, %v18429_v44  ;;  %v9197_v52 = vcombine.low %v9188_v7, %v9195_v13  ;;  %v18507_v44 = vld [vmem:[#allocation2] sm:$0xff] }
 0x32d   :  { %14318 = vmatmul.mubr.f32.vlgmr.msra.gmra.mxu1 %v7834_v9  ;;  %v9204_v23 = vrot.slane %v9196_v10, %v16835_v59  ;;  %v11146_v25 = vrot.slane %v11118_v28, %v16835_v59  ;;  %v7177_v41 = vcombine.high %v18440_v14, %v18440_v14  ;;  %v11148_v54 = vcombine.high %v11132_v17, %v11132_v17 }
 0x32e   :  { %16160 = vmatpush3.msra.mxu1 %v13992_v37  ;;  %v11774_v24 = vcombine.low %v11125_v36, %v11139_v29  ;;  %v15730_v35 = vcombine.high %v11125_v36, %v11139_v29  ;;  %v7176_v30 = vrot.slane %v7162_v47, %v16835_v59  ;;  %v9211_v45 = vrot.slane %v9197_v52, %v16835_v59  ;;  %v13987_v37 = vld [vmem:[#allocation10 + $0x450] sm:$0xff] }
 0x32f   :  { %v11776_v48 = vcombine.low %v11132_v17, %v11146_v25  ;;  %16161 = vmatprep.subr.mxu1 %v18507_v44  ;;  %v7199_v2 = vrot.slane %v7177_v41, %v16835_v59  ;;  %v7207_v14 = vcombine.high %v18450_v60, %v18450_v60  ;;  %v11777_v21 = vcombine.low %v11148_v54, %v18497_v15  ;;  %v18547_v29 = vld [vmem:[#allocation2 + $0x42] sm:$0x7f] }
 0x330   :  { %v11784_v57 = vrot.slane %v11774_v24, %v16835_v59  ;;  %v11791_v4 = vrot.slane %v15730_v35, %v16835_v59  ;;  %v7178_v53 = vcombine.high %v7176_v30, %v7176_v30  ;;  %16162 = vmatpush3.msra.mxu1 %v13991_v8  ;;  %v9212_v11 = vcombine.low %v9204_v23, %v9211_v45  ;;  %v13986_v35 = vld [vmem:[#allocation10 + $0x448] sm:$0xff] }
 0x331   :  { %v11798_v51 = vrot.slane %v11776_v48, %v16835_v59  ;;  %v7192_v63 = vrot.slane %v7176_v30, %v16835_v59  ;;  %v7209_v33 = vcombine.high %v7199_v2, %v7199_v2  ;;  %16163 = vmatprep.subr.mxu1 %v18507_v44  ;;  %v11805_v60 = vrot.slane %v11777_v21, %v16835_v59 }
 0x332   :  { %v11806_v38 = vcombine.low %v11784_v57, %v11791_v4  ;;  %v7206_v27 = vrot.slane %v7178_v53, %v16835_v59  ;;  %v7217_v19 = vrot.slane %v18510_v43, %v16835_v59  ;;  %16164 = vmatpush3.msra.mxu1 %v13990_v20  ;;  %14322 = vmatprep.mubr.f32.mxu1 %v9212_v11 }
 0x333   :  { %v7208_v31 = vcombine.high %v7192_v63, %v7192_v63  ;;  %v7835_v6 = vcombine.low %v7199_v2, %v7207_v14  ;;  %v7836_v34 = vcombine.low %v7209_v33, %v7192_v63  ;;  %v9773_v55 = vcombine.high %v9745_v12, %v9745_v12  ;;  %16165 = vmatprep.subr.mxu1 %v18507_v44 }
 0x334   :  { %v11807_v62 = vcombine.low %v11798_v51, %v11805_v60  ;;  %v11814_v0 = vrot.slane %v11806_v38, %v16835_v59  ;;  %v7225_v5 = vcombine.high %v7217_v19, %v7217_v19  ;;  %v18529_v18 = vrot.slane %v7217_v19, %v16835_v59  ;;  %16166 = vmatpush3.msra.mxu1 %v13989_v49 }
 0x335   :  { %v7837_v42 = vcombine.low %v7206_v27, %v7208_v31  ;;  %v7845_v32 = vrot.slane %v7835_v6, %v16835_v59  ;;  %v7852_v39 = vrot.slane %v7836_v34, %v16835_v59  ;;  %v9780_v50 = vrot.slane %v9745_v12, %v16835_v59  ;;  %16167 = vmatprep.subr.mxu1 %v18507_v44 }
 0x336   :  { %v11821_v13 = vrot.slane %v11807_v62, %v16835_v59  ;;  %v18537_v16 = vrot.slane %v7225_v5, %v16835_v59  ;;  %v9787_v36 = vrot.slane %v9773_v55, %v16835_v59  ;;  %v18542_v9 = vrot.slane %v18525_v22, %v16835_v59  ;;  %16168 = vmatpush3.msra.mxu1 %v13988_v1  ;;  %v18584_v5 = vld [vmem:[#allocation2 + $0x41] sm:$0x7f] }
 0x337   :  { %v7859_v7 = vrot.slane %v7837_v42, %v16835_v59  ;;  %v7867_v10 = vcombine.low %v7845_v32, %v7852_v39  ;;  %v9788_v28 = vcombine.high %v9780_v50, %v9780_v50  ;;  %v9796_v17 = vrot.slane %v9780_v50, %v16835_v59  ;;  %16169 = vmatprep.subr.mxu1 %v18507_v44 }
 0x338   :  { %v11822_v47 = vcombine.low %v11814_v0, %v11821_v13  ;;  %v7838_v52 = vcombine.low %v18529_v18, %v18537_v16  ;;  %v9789_v23 = vcombine.high %v9787_v36, %v9787_v36  ;;  %v9803_v25 = vrot.slane %v9787_v36, %v16835_v59  ;;  %16170 = vmatpush3.msra.mxu1 %v13987_v37 }
 0x339   :  { %v7875_v41 = vrot.slane %v7867_v10, %v16835_v59  ;;  %v9810_v8 = vrot.slane %v9788_v28, %v16835_v59  ;;  %v18557_v54 = vrot.slane %v18542_v9, %v16835_v59  ;;  %v8539_v24 = vcombine.high %v18444_v46, %v18444_v46  ;;  %16171 = vmatprep.subr.mxu1 %v18507_v44  ;;  %v13985_v46 = vld [vmem:[#allocation10 + $0x440] sm:$0xff] }
 0x33a   :  { %14447 = vmatprep.mubr.f32.mxu0 %v11822_v47  ;;  %v7866_v30 = vrot.slane %v7838_v52, %v16835_v59  ;;  %v9817_v45 = vrot.slane %v9789_v23, %v16835_v59  ;;  %v9819_v48 = vcombine.high %v9803_v25, %v9803_v25  ;;  %v8594_v2 = vrot.slane %v18547_v29, %v16835_v59 }
 0x33b   :  { %v10445_v14 = vcombine.low %v9796_v17, %v9810_v8  ;;  %v15722_v20 = vcombine.high %v9796_v17, %v9810_v8  ;;  %v8553_v21 = vrot.slane %v8539_v24, %v16835_v59  ;;  %v15715_v57 = vcombine.high %v18470_v3, %v18474_v40  ;;  %16172 = vmatpush3.msra.mxu1 %v13986_v35 }
 0x33c   :  { %v7868_v4 = vcombine.low %v7859_v7, %v7866_v30  ;;  %v10447_v53 = vcombine.low %v9803_v25, %v9817_v45  ;;  %v10448_v12 = vcombine.low %v9819_v48, %v18557_v54  ;;  %v8602_v11 = vcombine.high %v8594_v2, %v8594_v2  ;;  %16173 = vmatprep.subr.mxu1 %v18507_v44  ;;  %v18608_v45 = vld [vmem:[#allocation2 + $0x41] sm:$0x7f] }
 0x33d   :  { %v10455_v51 = vrot.slane %v10445_v14, %v16835_v59  ;;  %v10462_v63 = vrot.slane %v15722_v20, %v16835_v59  ;;  %v8555_v33 = vcombine.high %v8553_v21, %v8553_v21  ;;  %v8569_v60 = vrot.slane %v8553_v21, %v16835_v59  ;;  %16174 = vmatpush3.msra.mxu1 %v13985_v46 }
 0x33e   :  { %v7882_v3 = vrot.slane %v7868_v4, %v16835_v59  ;;  %v10469_v40 = vrot.slane %v10447_v53, %v16835_v59  ;;  %v10476_v38 = vrot.slane %v10448_v12, %v16835_v59  ;;  %v8610_v27 = vrot.slane %v8594_v2, %v16835_v59  ;;  %16175 = vmatprep.subr.mxu1 %v18507_v44 }
 0x33f   :  { %v10477_v19 = vcombine.low %v10455_v51, %v10462_v63  ;;  %v8583_v49 = vrot.slane %v8555_v33, %v16835_v59  ;;  %v8585_v31 = vcombine.high %v8569_v60, %v8569_v60  ;;  %v18580_v6 = vrot.slane %v8602_v11, %v16835_v59 }
 0x340   :  { %v7883_v34 = vcombine.low %v7875_v41, %v7882_v3  ;;  %v10478_v55 = vcombine.low %v10469_v40, %v10476_v38  ;;  %v8632_v62 = vcombine.high %v8610_v27, %v8610_v27  ;;  %v9223_v0 = vrot.slane %v15715_v57, %v16835_v59 }
 0x341   :  { %v10485_v1 = vrot.slane %v10477_v19, %v16835_v59  ;;  %v9214_v42 = vcombine.low %v8569_v60, %v8583_v49  ;;  %v9215_v32 = vcombine.low %v8585_v31, %v8610_v27  ;;  %v11150_v39 = vcombine.high %v18476_v26, %v18476_v26 }
 0x342   :  { %14323 = vmatmul.mubr.f32.gmra.mxu1 %v7883_v34  ;;  %v10492_v50 = vrot.slane %v10478_v55, %v16835_v59  ;;  %v9216_v13 = vcombine.low %v18580_v6, %v8632_v62  ;;  %v11165_v36 = vcombine.high %v18490_v61, %v18490_v61  ;;  %v11195_v37 = vcombine.high %v18497_v15, %v18497_v15  ;;  %v18634_v62 = vld [vmem:[#allocation2 + $0x40] sm:$0x7f] }
 0x343   :  { %v9230_v7 = vrot.slane %v9214_v42, %v16835_v59  ;;  %v9237_v10 = vrot.slane %v9215_v32, %v16835_v59  ;;  %v11164_v28 = vrot.slane %v11150_v39, %v16835_v59  ;;  %v11205_v26 = vrot.slane %v18584_v5, %v16835_v59 }
 0x344   :  { %v10493_v17 = vcombine.low %v10485_v1, %v10492_v50  ;;  %v9244_v47 = vrot.slane %v9216_v13, %v16835_v59  ;;  %v11187_v52 = vrot.slane %v11165_v36, %v16835_v59  ;;  %v7210_v61 = vcombine.high %v18510_v43, %v18510_v43 }
 0x345   :  { %v9245_v23 = vcombine.low %v9223_v0, %v9230_v7  ;;  %v11166_v25 = vcombine.high %v11164_v28, %v11164_v28  ;;  %v11180_v15 = vrot.slane %v11164_v28, %v16835_v59  ;;  %v11213_v41 = vcombine.high %v11205_v26, %v11205_v26 }
 0x346   :  { %14448 = vmatmul.mubr.f32.vlgmr.msra.gmra.mxu0 %v10493_v17  ;;  %v9246_v8 = vcombine.low %v9237_v10, %v9244_v47  ;;  %v11197_v24 = vcombine.high %v11187_v52, %v11187_v52  ;;  %v18606_v35 = vrot.slane %v11205_v26, %v16835_v59  ;;  %v11823_v30 = vcombine.low %v11187_v52, %v11195_v37 }
 0x347   :  { %v9253_v48 = vrot.slane %v9245_v23, %v16835_v59  ;;  %v11194_v2 = vrot.slane %v11166_v25, %v16835_v59  ;;  %v11196_v14 = vcombine.high %v11180_v15, %v11180_v15  ;;  %v18613_v43 = vrot.slane %v11213_v41, %v16835_v59 }
 0x348   :  { %v9260_v20 = vrot.slane %v9246_v8, %v16835_v59  ;;  %v11824_v21 = vcombine.low %v11197_v24, %v11180_v15  ;;  %v11833_v57 = vrot.slane %v11823_v30, %v16835_v59  ;;  %v7224_v46 = vrot.slane %v7210_v61, %v16835_v59  ;;  %v18657_v24 = vld [vmem:[#allocation2 + $0x52] sm:$0x7f]  ;;  %v13984_v30 = vld [vmem:[#allocation10 + $0x438] sm:$0xff] }
 0x349   :  { %v11825_v4 = vcombine.low %v11194_v2, %v11196_v14  ;;  %v11826_v53 = vcombine.low %v18606_v35, %v18613_v43  ;;  %v7265_v12 = vrot.slane %v18608_v45, %v16835_v59  ;;  %v15707_v11 = vcombine.high %v18529_v18, %v18537_v16  ;;  %16176 = vmatpush3.msra.mxu1 %v13984_v30  ;;  %v18704_v30 = vld [vmem:[#allocation2 + $0x51] sm:$0x7f] }
 0x34a   :  { %v9261_v51 = vcombine.low %v9253_v48, %v9260_v20  ;;  %v11840_v63 = vrot.slane %v11824_v21, %v16835_v59  ;;  %v7226_v33 = vcombine.high %v7224_v46, %v7224_v46  ;;  %v7240_v60 = vrot.slane %v7224_v46, %v16835_v59  ;;  %v18665_v21 = vld [vmem:[#allocation2 + $0x51] sm:$0x7f]  ;;  %16177 = vmatprep.subr.mxu1 %v18507_v44 }
 0x34b   :  { %v11847_v3 = vrot.slane %v11825_v4, %v16835_v59  ;;  %v11854_v40 = vrot.slane %v11826_v53, %v16835_v59  ;;  %v7273_v38 = vcombine.high %v7265_v12, %v7265_v12  ;;  %v7281_v27 = vrot.slane %v7265_v12, %v16835_v59 }
 0x34c   :  { %14327 = vmatprep.mubr.f32.mxu1 %v9261_v51  ;;  %v11855_v19 = vcombine.low %v11833_v57, %v11840_v63  ;;  %v7254_v49 = vrot.slane %v7226_v33, %v16835_v59  ;;  %v7256_v31 = vcombine.high %v7240_v60, %v7240_v60  ;;  %v7894_v18 = vrot.slane %v15707_v11, %v16835_v59 }
 0x34d   :  { %v11856_v16 = vcombine.low %v11847_v3, %v11854_v40  ;;  %v18632_v34 = vrot.slane %v7273_v38, %v16835_v59  ;;  %v7303_v55 = vcombine.high %v7281_v27, %v7281_v27  ;;  %v9821_v0 = vcombine.high %v18525_v22, %v18525_v22 }
 0x34e   :  { %v11863_v1 = vrot.slane %v11855_v19, %v16835_v59  ;;  %v7885_v42 = vcombine.low %v7240_v60, %v7254_v49  ;;  %v7886_v32 = vcombine.low %v7256_v31, %v7281_v27  ;;  %v9836_v39 = vcombine.high %v18542_v9, %v18542_v9 }
 0x34f   :  { %v11870_v50 = vrot.slane %v11856_v16, %v16835_v59  ;;  %v7887_v13 = vcombine.low %v18632_v34, %v7303_v55  ;;  %v9835_v36 = vrot.slane %v9821_v0, %v16835_v59  ;;  %v9866_v37 = vcombine.high %v18557_v54, %v18557_v54 }
 0x350   :  { %v7901_v7 = vrot.slane %v7885_v42, %v16835_v59  ;;  %v7908_v22 = vrot.slane %v7886_v32, %v16835_v59  ;;  %v9858_v10 = vrot.slane %v9836_v39, %v16835_v59  ;;  %v9876_v28 = vrot.slane %v18634_v62, %v16835_v59 }
 0x351   :  { %v11871_v26 = vcombine.low %v11863_v1, %v11870_v50  ;;  %v7915_v9 = vrot.slane %v7887_v13, %v16835_v59  ;;  %v9837_v17 = vcombine.high %v9835_v36, %v9835_v36  ;;  %v9851_v47 = vrot.slane %v9835_v36, %v16835_v59 }
 0x352   :  { %v7916_v52 = vcombine.low %v7894_v18, %v7901_v7  ;;  %v9868_v61 = vcombine.high %v9858_v10, %v9858_v10  ;;  %v9884_v23 = vcombine.high %v9876_v28, %v9876_v28  ;;  %v18654_v54 = vrot.slane %v9876_v28, %v16835_v59 }
 0x353   :  { %14452 = vmatprep.mubr.f32.mxu0 %v11871_v26  ;;  %v7917_v25 = vcombine.low %v7908_v22, %v7915_v9  ;;  %v9865_v15 = vrot.slane %v9837_v17, %v16835_v59  ;;  %v9867_v41 = vcombine.high %v9851_v47, %v9851_v47  ;;  %v10494_v8 = vcombine.low %v9858_v10, %v9866_v37 }
 0x354   :  { %v7924_v48 = vrot.slane %v7916_v52, %v16835_v59  ;;  %v18661_v2 = vrot.slane %v9884_v23, %v16835_v59  ;;  %v10495_v14 = vcombine.low %v9868_v61, %v9851_v47  ;;  %v8587_v20 = vcombine.high %v18547_v29, %v18547_v29 }
 0x355   :  { %v7931_v57 = vrot.slane %v7917_v25, %v16835_v59  ;;  %v10496_v46 = vcombine.low %v9865_v15, %v9867_v41  ;;  %v10504_v4 = vrot.slane %v10494_v8, %v16835_v59  ;;  %v8634_v53 = vcombine.high %v18580_v6, %v18580_v6 }
 0x356   :  { %v10497_v12 = vcombine.low %v18654_v54, %v18661_v2  ;;  %v10511_v11 = vrot.slane %v10495_v14, %v16835_v59  ;;  %v8601_v29 = vrot.slane %v8587_v20, %v16835_v59  ;;  %v8642_v51 = vrot.slane %v18657_v24, %v16835_v59 }
 0x357   :  { %v7932_v63 = vcombine.low %v7924_v48, %v7931_v57  ;;  %v10518_v33 = vrot.slane %v10496_v46, %v16835_v59  ;;  %v11198_v60 = vcombine.high %v18584_v5, %v18584_v5  ;;  %v11253_v6 = vrot.slane %v18665_v21, %v16835_v59 }
 0x358   :  { %v10525_v3 = vrot.slane %v10497_v12, %v16835_v59  ;;  %v10526_v40 = vcombine.low %v10504_v4, %v10511_v11  ;;  %v8603_v38 = vcombine.high %v8601_v29, %v8601_v29  ;;  %v8617_v27 = vrot.slane %v8601_v29, %v16835_v59 }
 0x359   :  { %14328 = vmatmul.mubr.f32.gmra.mxu1 %v7932_v63  ;;  %v8650_v19 = vcombine.high %v8642_v51, %v8642_v51  ;;  %v8658_v49 = vrot.slane %v8642_v51, %v16835_v59  ;;  %v11212_v31 = vrot.slane %v11198_v60, %v16835_v59  ;;  %v11261_v18 = vcombine.high %v11253_v6, %v11253_v6 }
 0x35a   :  { %v10527_v16 = vcombine.low %v10518_v33, %v10525_v3  ;;  %v10534_v55 = vrot.slane %v10526_v40, %v16835_v59  ;;  %v8631_v5 = vrot.slane %v8603_v38, %v16835_v59  ;;  %v8633_v0 = vcombine.high %v8617_v27, %v8617_v27 }
 0x35b   :  { %v8672_v1 = vrot.slane %v8650_v19, %v16835_v59  ;;  %v9262_v42 = vcombine.low %v8634_v53, %v8617_v27  ;;  %v11214_v32 = vcombine.high %v11212_v31, %v11212_v31  ;;  %v11228_v39 = vrot.slane %v11212_v31, %v16835_v59 }
 0x35c   :  { %v10541_v50 = vrot.slane %v10527_v16, %v16835_v59  ;;  %v9263_v13 = vcombine.low %v8631_v5, %v8633_v0  ;;  %v11269_v36 = vrot.slane %v11253_v6, %v16835_v59  ;;  %v18694_v37 = vrot.slane %v11261_v18, %v16835_v59 }
 0x35d   :  { %v9264_v7 = vcombine.low %v8658_v49, %v8672_v1  ;;  %v15716_v22 = vcombine.high %v8658_v49, %v8672_v1  ;;  %v9272_v10 = vrot.slane %v9262_v42, %v16835_v59  ;;  %v11242_v28 = vrot.slane %v11214_v32, %v16835_v59 }
 0x35e   :  { %v10542_v26 = vcombine.low %v10534_v55, %v10541_v50  ;;  %v9279_v9 = vrot.slane %v9263_v13, %v16835_v59  ;;  %v11244_v17 = vcombine.high %v11228_v39, %v11228_v39  ;;  %v11291_v47 = vcombine.high %v11269_v36, %v11269_v36 }
 0x35f   :  { %v9286_v52 = vrot.slane %v9264_v7, %v16835_v59  ;;  %v9293_v61 = vrot.slane %v15716_v22, %v16835_v59  ;;  %v15731_v23 = vcombine.high %v18606_v35, %v18613_v43  ;;  %v11873_v25 = vcombine.low %v11228_v39, %v11242_v28  ;;  %v18712_v35 = vld [vmem:[#allocation2 + $0x50] sm:$0x7f] }
 0x360   :  { %14453 = vmatmul.mubr.f32.gmra.mxu0 %v10542_v26  ;;  %v9294_v15 = vcombine.low %v9272_v10, %v9279_v9  ;;  %v11874_v41 = vcombine.low %v11244_v17, %v11269_v36  ;;  %v11875_v8 = vcombine.low %v18694_v37, %v11291_v47  ;;  %v7258_v48 = vcombine.high %v18608_v45, %v18608_v45  ;;  %v8420_v36 = vld [vmem:[#allocation2 + $0x62] sm:$0x7f] }
 0x361   :  { %v9295_v14 = vcombine.low %v9286_v52, %v9293_v61  ;;  %v11882_v20 = vrot.slane %v15731_v23, %v16835_v59  ;;  %v11889_v57 = vrot.slane %v11873_v25, %v16835_v59  ;;  %v7305_v46 = vcombine.high %v18632_v34, %v18632_v34  ;;  %v13983_v23 = vld [vmem:[#allocation10 + $0x430] sm:$0xff] }
 0x362   :  { %v9302_v43 = vrot.slane %v9294_v15, %v16835_v59  ;;  %v11896_v4 = vrot.slane %v11874_v41, %v16835_v59  ;;  %v11903_v53 = vrot.slane %v11875_v8, %v16835_v59  ;;  %v7272_v12 = vrot.slane %v7258_v48, %v16835_v59  ;;  %16178 = vmatpush3.msra.mxu1 %v13983_v23 }
 0x363   :  { %v9309_v45 = vrot.slane %v9295_v14, %v16835_v59  ;;  %v11904_v11 = vcombine.low %v11882_v20, %v11889_v57  ;;  %v7313_v29 = vrot.slane %v18704_v30, %v16835_v59  ;;  %v9869_v51 = vcombine.high %v18634_v62, %v18634_v62  ;;  %16179 = vmatprep.subr.mxu1 %v18507_v44 }
 0x364   :  { %v11905_v34 = vcombine.low %v11896_v4, %v11903_v53  ;;  %v7274_v63 = vcombine.high %v7272_v12, %v7272_v12  ;;  %v7288_v33 = vrot.slane %v7272_v12, %v16835_v59  ;;  %v9924_v60 = vrot.slane %v18712_v35, %v16835_v59 }
 0x365   :  { %v9310_v6 = vcombine.low %v9302_v43, %v9309_v45  ;;  %v11912_v3 = vrot.slane %v11904_v11, %v16835_v59  ;;  %v7321_v40 = vcombine.high %v7313_v29, %v7313_v29  ;;  %v7329_v38 = vrot.slane %v7313_v29, %v16835_v59 }
 0x366   :  { %v11919_v27 = vrot.slane %v11905_v34, %v16835_v59  ;;  %v7302_v19 = vrot.slane %v7274_v63, %v16835_v59  ;;  %v7304_v49 = vcombine.high %v7288_v33, %v7288_v33  ;;  %v7933_v31 = vcombine.low %v7305_v46, %v7288_v33 }
 0x367   :  { %14332 = vmatprep.mubr.f32.mxu1 %v9310_v6  ;;  %v7343_v62 = vrot.slane %v7321_v40, %v16835_v59  ;;  %v9883_v18 = vrot.slane %v9869_v51, %v16835_v59  ;;  %v9932_v16 = vcombine.high %v9924_v60, %v9924_v60  ;;  %v9940_v55 = vrot.slane %v9924_v60, %v16835_v59 }
 0x368   :  { %v11920_v5 = vcombine.low %v11912_v3, %v11919_v27  ;;  %v7934_v0 = vcombine.low %v7302_v19, %v7304_v49  ;;  %v7943_v1 = vrot.slane %v7933_v31, %v16835_v59  ;;  %v15723_v42 = vcombine.high %v18654_v54, %v18661_v2  ;;  %v18767_v3 = vld [vmem:[#allocation2 + $0x61] sm:$0x7f] }
 0x369   :  { %v7935_v32 = vcombine.low %v7329_v38, %v7343_v62  ;;  %v15708_v39 = vcombine.high %v7329_v38, %v7343_v62  ;;  %v9885_v50 = vcombine.high %v9883_v18, %v9883_v18  ;;  %v9899_v13 = vrot.slane %v9883_v18, %v16835_v59 }
 0x36a   :  { %14457 = vmatprep.mubr.f32.mxu0 %v11920_v5  ;;  %v7950_v7 = vrot.slane %v7934_v0, %v16835_v59  ;;  %v18739_v22 = vrot.slane %v9932_v16, %v16835_v59  ;;  %v9962_v10 = vcombine.high %v9940_v55, %v9940_v55  ;;  %v10553_v28 = vrot.slane %v15723_v42, %v16835_v59  ;;  %v7091_v0 = vld [vmem:[#allocation2 + $0x61] sm:$0x7f] }
 0x36b   :  { %v7957_v26 = vrot.slane %v7935_v32, %v16835_v59  ;;  %v7964_v9 = vrot.slane %v15708_v39, %v16835_v59  ;;  %v9913_v54 = vrot.slane %v9885_v50, %v16835_v59  ;;  %v9915_v2 = vcombine.high %v9899_v13, %v9899_v13 }
 0x36c   :  { %v7965_v17 = vcombine.low %v7943_v1, %v7950_v7  ;;  %v10546_v47 = vcombine.low %v18739_v22, %v9962_v10  ;;  %v8635_v52 = vcombine.high %v18657_v24, %v18657_v24  ;;  %v8683_v61 = vcombine.high %v8420_v36, %v8420_v36 }
 0x36d   :  { %v7966_v25 = vcombine.low %v7957_v26, %v7964_v9  ;;  %v10544_v15 = vcombine.low %v9899_v13, %v9913_v54  ;;  %v10545_v41 = vcombine.low %v9915_v2, %v9940_v55  ;;  %v8690_v8 = vrot.slane %v8420_v36, %v16835_v59 }
 0x36e   :  { %v7973_v48 = vrot.slane %v7965_v17, %v16835_v59  ;;  %v10574_v14 = vrot.slane %v10546_v47, %v16835_v59  ;;  %v8649_v20 = vrot.slane %v8635_v52, %v16835_v59  ;;  %v18753_v57 = vrot.slane %v8683_v61, %v16835_v59 }
 0x36f   :  { %v7980_v24 = vrot.slane %v7966_v25, %v16835_v59  ;;  %v10560_v46 = vrot.slane %v10544_v15, %v16835_v59  ;;  %v10567_v43 = vrot.slane %v10545_v41, %v16835_v59  ;;  %v8698_v4 = vcombine.high %v8690_v8, %v8690_v8 }
 0x370   :  { %v8651_v53 = vcombine.high %v8649_v20, %v8649_v20  ;;  %v8665_v12 = vrot.slane %v8649_v20, %v16835_v59  ;;  %v8706_v45 = vrot.slane %v8690_v8, %v16835_v59  ;;  %v18763_v11 = vrot.slane %v18753_v57, %v16835_v59 }
 0x371   :  { %v7981_v29 = vcombine.low %v7973_v48, %v7980_v24  ;;  %v10575_v51 = vcombine.low %v10553_v28, %v10560_v46  ;;  %v10576_v34 = vcombine.low %v10567_v43, %v10574_v14  ;;  %v8720_v63 = vrot.slane %v8698_v4, %v16835_v59 }
 0x372   :  { %v8679_v33 = vrot.slane %v8651_v53, %v16835_v59  ;;  %v8681_v60 = vcombine.high %v8665_v12, %v8665_v12  ;;  %v8728_v6 = vcombine.high %v8706_v45, %v8706_v45  ;;  %v11246_v40 = vcombine.high %v18665_v21, %v18665_v21 }
 0x373   :  { %14333 = vmatmul.mubr.f32.gmra.mxu1 %v7981_v29  ;;  %v10583_v38 = vrot.slane %v10575_v51, %v16835_v59  ;;  %v10590_v27 = vrot.slane %v10576_v34, %v16835_v59  ;;  %v8730_v19 = vcombine.high %v8720_v63, %v8720_v63  ;;  %v11293_v49 = vcombine.high %v18694_v37, %v18694_v37  ;;  %v18807_v34 = vld [vmem:[#allocation2 + $0x60] sm:$0x7f] }
 0x374   :  { %v9311_v31 = vcombine.low %v8665_v12, %v8679_v33  ;;  %v9312_v62 = vcombine.low %v8681_v60, %v8706_v45  ;;  %v9313_v18 = vcombine.low %v8720_v63, %v8728_v6  ;;  %v11260_v16 = vrot.slane %v11246_v40, %v16835_v59 }
 0x375   :  { %v10591_v55 = vcombine.low %v10583_v38, %v10590_v27  ;;  %v9314_v5 = vcombine.low %v8730_v19, %v18763_v11  ;;  %v11301_v21 = vrot.slane %v18767_v3, %v16835_v59  ;;  %v7306_v1 = vcombine.high %v18704_v30, %v18704_v30 }
 0x376   :  { %v9321_v42 = vrot.slane %v9311_v31, %v16835_v59  ;;  %v9328_v32 = vrot.slane %v9312_v62, %v16835_v59  ;;  %v9335_v37 = vrot.slane %v9313_v18, %v16835_v59  ;;  %v11262_v39 = vcombine.high %v11260_v16, %v11260_v16 }
 0x377   :  { %14458 = vmatmul.mubr.f32.gmra.mxu0 %v10591_v55  ;;  %v9342_v50 = vrot.slane %v9314_v5, %v16835_v59  ;;  %v11276_v13 = vrot.slane %v11260_v16, %v16835_v59  ;;  %v11309_v36 = vcombine.high %v11301_v21, %v11301_v21  ;;  %v11317_v7 = vrot.slane %v11301_v21, %v16835_v59 }
 0x378   :  { %v9343_v10 = vcombine.low %v9321_v42, %v9328_v32  ;;  %v11290_v28 = vrot.slane %v11262_v39, %v16835_v59  ;;  %v7320_v30 = vrot.slane %v7306_v1, %v16835_v59  ;;  %v7354_v26 = vcombine.high %v7091_v0, %v7091_v0 }
 0x379   :  { %v9344_v9 = vcombine.low %v9335_v37, %v9342_v50  ;;  %v11292_v54 = vcombine.high %v11276_v13, %v11276_v13  ;;  %v11331_v2 = vrot.slane %v11309_v36, %v16835_v59  ;;  %v11921_v17 = vcombine.low %v11293_v49, %v11276_v13 }
 0x37a   :  { %v9351_v47 = vrot.slane %v9343_v10, %v16835_v59  ;;  %v7322_v52 = vcombine.high %v7320_v30, %v7320_v30  ;;  %v7336_v61 = vrot.slane %v7320_v30, %v16835_v59  ;;  %v7361_v23 = vrot.slane %v7091_v0, %v16835_v59 }
 0x37b   :  { %v9358_v25 = vrot.slane %v9344_v9, %v16835_v59  ;;  %v11922_v15 = vcombine.low %v11290_v28, %v11292_v54  ;;  %v11923_v41 = vcombine.low %v11317_v7, %v11331_v2  ;;  %v15732_v8 = vcombine.high %v11317_v7, %v11331_v2 }
 0x37c   :  { %v11931_v48 = vrot.slane %v11921_v17, %v16835_v59  ;;  %v7350_v14 = vrot.slane %v7322_v52, %v16835_v59  ;;  %v7352_v20 = vcombine.high %v7336_v61, %v7336_v61  ;;  %v18797_v24 = vrot.slane %v7354_v26, %v16835_v59 }
 0x37d   :  { %v9359_v46 = vcombine.low %v9351_v47, %v9358_v25  ;;  %v11938_v43 = vrot.slane %v11922_v15, %v16835_v59  ;;  %v11945_v4 = vrot.slane %v11923_v41, %v16835_v59  ;;  %v11952_v53 = vrot.slane %v15732_v8, %v16835_v59  ;;  %v13982_v47 = vld [vmem:[#allocation10 + $0x428] sm:$0xff] }
 0x37e   :  { %v7369_v12 = vcombine.high %v7361_v23, %v7361_v23  ;;  %v7377_v45 = vrot.slane %v7361_v23, %v16835_v59  ;;  %v18805_v29 = vrot.slane %v18797_v24, %v16835_v59  ;;  %v7982_v51 = vcombine.low %v7336_v61, %v7350_v14  ;;  %16180 = vmatpush3.msra.mxu1 %v13982_v47 }
 0x37f   :  { %14337 = vmatprep.mubr.f32.mxu1 %v9359_v46  ;;  %v11953_v63 = vcombine.low %v11931_v48, %v11938_v43  ;;  %v11954_v33 = vcombine.low %v11945_v4, %v11952_v53  ;;  %v9917_v60 = vcombine.high %v18712_v35, %v18712_v35  ;;  %v9964_v6 = vcombine.high %v18739_v22, %v18739_v22 }
 0x380   :  { %v7391_v40 = vrot.slane %v7369_v12, %v16835_v59  ;;  %v7399_v38 = vcombine.high %v7377_v45, %v7377_v45  ;;  %v7983_v27 = vcombine.low %v7352_v20, %v7377_v45  ;;  %v7992_v19 = vrot.slane %v7982_v51, %v16835_v59  ;;  %16181 = vmatprep.subr.mxu1 %v18507_v44  ;;  %v11079_v12 = vld [vmem:[#allocation2 + $0x71] sm:$0x7f] }
 0x381   :  { %v11961_v49 = vrot.slane %v11953_v63, %v16835_v59  ;;  %v11968_v31 = vrot.slane %v11954_v33, %v16835_v59  ;;  %v9931_v62 = vrot.slane %v9917_v60, %v16835_v59  ;;  %v9972_v18 = vrot.slane %v18807_v34, %v16835_v59 }
 0x382   :  { %v7401_v16 = vcombine.high %v7391_v40, %v7391_v40  ;;  %v7984_v35 = vcombine.low %v7391_v40, %v7399_v38  ;;  %v7999_v55 = vrot.slane %v7983_v27, %v16835_v59  ;;  %v8699_v22 = vcombine.high %v18753_v57, %v18753_v57  ;;  %v8421_v57 = vld [vmem:[#allocation2 + $0x72] sm:$0x7f] }
 0x383   :  { %v11969_v5 = vcombine.low %v11961_v49, %v11968_v31  ;;  %v9933_v21 = vcombine.high %v9931_v62, %v9931_v62  ;;  %v9947_v0 = vrot.slane %v9931_v62, %v16835_v59  ;;  %v9980_v1 = vcombine.high %v9972_v18, %v9972_v18 }
 0x384   :  { %v7985_v42 = vcombine.low %v7401_v16, %v18805_v29  ;;  %v8006_v32 = vrot.slane %v7984_v35, %v16835_v59  ;;  %v8014_v37 = vcombine.low %v7992_v19, %v7999_v55  ;;  %v9988_v39 = vrot.slane %v9972_v18, %v16835_v59 }
 0x385   :  { %14462 = vmatprep.mubr.f32.mxu0 %v11969_v5  ;;  %v9961_v50 = vrot.slane %v9933_v21, %v16835_v59  ;;  %v9963_v13 = vcombine.high %v9947_v0, %v9947_v0  ;;  %v10002_v36 = vrot.slane %v9980_v1, %v16835_v59  ;;  %v10592_v7 = vcombine.low %v9964_v6, %v9947_v0 }
 0x386   :  { %v8013_v10 = vrot.slane %v7985_v42, %v16835_v59  ;;  %v8022_v28 = vrot.slane %v8014_v37, %v16835_v59  ;;  %v8727_v30 = vrot.slane %v8699_v22, %v16835_v59  ;;  %v8729_v26 = vcombine.high %v18763_v11, %v18763_v11 }
 0x387   :  { %v10593_v9 = vcombine.low %v9961_v50, %v9963_v13  ;;  %v10594_v54 = vcombine.low %v9988_v39, %v10002_v36  ;;  %v15724_v2 = vcombine.high %v9988_v39, %v10002_v36  ;;  %v10602_v17 = vrot.slane %v10592_v7, %v16835_v59 }
 0x388   :  { %v8015_v52 = vcombine.low %v8006_v32, %v8013_v10  ;;  %v8731_v61 = vcombine.high %v8421_v57, %v8421_v57  ;;  %v8738_v23 = vrot.slane %v8421_v57, %v16835_v59  ;;  %v9360_v25 = vcombine.low %v8727_v30, %v8729_v26  ;;  %v7092_v32 = vld [vmem:[#allocation2 + $0x71] sm:$0x7f] }
 0x389   :  { %v10609_v15 = vrot.slane %v10593_v9, %v16835_v59  ;;  %v10616_v41 = vrot.slane %v10594_v54, %v16835_v59  ;;  %v10623_v8 = vrot.slane %v15724_v2, %v16835_v59  ;;  %v11294_v11 = vcombine.high %v18767_v3, %v18767_v3  ;;  %v13981_v30 = vld [vmem:[#allocation10 + $0x420] sm:$0xff] }
 0x38a   :  { %v8029_v48 = vrot.slane %v8015_v52, %v16835_v59  ;;  %v8745_v14 = vrot.slane %v8731_v61, %v16835_v59  ;;  %v8746_v20 = vcombine.high %v8738_v23, %v8738_v23  ;;  %v8754_v46 = vrot.slane %v8738_v23, %v16835_v59  ;;  %16182 = vmatpush3.msra.mxu1 %v13981_v30 }
 0x38b   :  { %v10624_v43 = vcombine.low %v10602_v17, %v10609_v15  ;;  %v10625_v4 = vcombine.low %v10616_v41, %v10623_v8  ;;  %v9370_v53 = vrot.slane %v9360_v25, %v16835_v59  ;;  %v11308_v45 = vrot.slane %v11294_v11, %v16835_v59  ;;  %16183 = vmatprep.subr.mxu1 %v18507_v44 }
 0x38c   :  { %v8030_v51 = vcombine.low %v8022_v28, %v8029_v48  ;;  %v8747_v63 = vcombine.high %v8745_v14, %v8745_v14  ;;  %v18848_v3 = vrot.slane %v8745_v14, %v16835_v59  ;;  %v8768_v33 = vrot.slane %v8746_v20, %v16835_v59  ;;  %v9750_v48 = vld [vmem:[#allocation2 + $0x70] sm:$0x7f] }
 0x38d   :  { %v10632_v60 = vrot.slane %v10624_v43, %v16835_v59  ;;  %v10639_v6 = vrot.slane %v10625_v4, %v16835_v59  ;;  %v11310_v40 = vcombine.high %v11308_v45, %v11308_v45  ;;  %v11324_v38 = vrot.slane %v11308_v45, %v16835_v59 }
 0x38e   :  { %14338 = vmatmul.mubr.f32.gmra.mxu1 %v8030_v51  ;;  %v8775_v27 = vrot.slane %v8747_v63, %v16835_v59  ;;  %v9361_v19 = vcombine.low %v8754_v46, %v8768_v33  ;;  %v15717_v49 = vcombine.high %v8754_v46, %v8768_v33  ;;  %v11342_v31 = vcombine.high %v11079_v12, %v11079_v12 }
 0x38f   :  { %v10640_v62 = vcombine.low %v10632_v60, %v10639_v6  ;;  %v11338_v18 = vrot.slane %v11310_v40, %v16835_v59  ;;  %v11340_v16 = vcombine.high %v11324_v38, %v11324_v38  ;;  %v11349_v35 = vrot.slane %v11079_v12, %v16835_v59 }
 0x390   :  { %v9363_v55 = vcombine.low %v18848_v3, %v8775_v27  ;;  %v9377_v22 = vrot.slane %v9361_v19, %v16835_v59  ;;  %v9384_v5 = vrot.slane %v15717_v49, %v16835_v59  ;;  %v18861_v21 = vrot.slane %v11342_v31, %v16835_v59 }
 0x391   :  { %14463 = vmatmul.mubr.f32.gmra.mxu0 %v10640_v62  ;;  %v11357_v0 = vcombine.high %v11349_v35, %v11349_v35  ;;  %v11365_v1 = vrot.slane %v11349_v35, %v16835_v59  ;;  %v11970_v42 = vcombine.low %v11324_v38, %v11338_v18  ;;  %v7370_v37 = vcombine.high %v18797_v24, %v18797_v24 }
 0x392   :  { %v9391_v39 = vrot.slane %v9363_v55, %v16835_v59  ;;  %v9392_v50 = vcombine.low %v9370_v53, %v9377_v22  ;;  %v18869_v13 = vrot.slane %v18861_v21, %v16835_v59  ;;  %v7400_v36 = vcombine.high %v18805_v29, %v18805_v29 }
 0x393   :  { %v11379_v7 = vrot.slane %v11357_v0, %v16835_v59  ;;  %v11387_v57 = vcombine.high %v11365_v1, %v11365_v1  ;;  %v11971_v10 = vcombine.low %v11340_v16, %v11365_v1  ;;  %v11980_v28 = vrot.slane %v11970_v42, %v16835_v59 }
 0x394   :  { %v9393_v26 = vcombine.low %v9384_v5, %v9391_v39  ;;  %v9400_v24 = vrot.slane %v9392_v50, %v16835_v59  ;;  %v7398_v9 = vrot.slane %v7370_v37, %v16835_v59  ;;  %v7402_v54 = vcombine.high %v7092_v32, %v7092_v32  ;;  %v8422_v5 = vld [vmem:[#allocation2 + $0xa2] sm:$0x7f]  ;;  %v13980_v37 = vld [vmem:[#allocation10 + $0x418] sm:$0xff] }
 0x395   :  { %v11389_v2 = vcombine.high %v11379_v7, %v11379_v7  ;;  %v11972_v17 = vcombine.low %v11379_v7, %v11387_v57  ;;  %v11987_v47 = vrot.slane %v11971_v10, %v16835_v59  ;;  %v7409_v29 = vrot.slane %v7092_v32, %v16835_v59  ;;  %16184 = vmatpush3.msra.mxu1 %v13980_v37 }
 0x396   :  { %v9407_v52 = vrot.slane %v9393_v26, %v16835_v59  ;;  %v7416_v61 = vrot.slane %v7402_v54, %v16835_v59  ;;  %v8031_v23 = vcombine.low %v7398_v9, %v7400_v36  ;;  %v9965_v25 = vcombine.high %v18807_v34, %v18807_v34 }
 0x397   :  { %v11973_v15 = vcombine.low %v11389_v2, %v18869_v13  ;;  %v11994_v41 = vrot.slane %v11972_v17, %v16835_v59  ;;  %v12002_v8 = vcombine.low %v11980_v28, %v11987_v47  ;;  %v7417_v11 = vcombine.high %v7409_v29, %v7409_v29  ;;  %v18920_v2 = vld [vmem:[#allocation2] sm:$0xff] }
 0x398   :  { %v9408_v14 = vcombine.low %v9400_v24, %v9407_v52  ;;  %v7418_v20 = vcombine.high %v7416_v61, %v7416_v61  ;;  %v7425_v46 = vrot.slane %v7409_v29, %v16835_v59  ;;  %v18888_v44 = vrot.slane %v7416_v61, %v16835_v59  ;;  %16185 = vmatprep.subr.mxu1 %v18920_v2 }
 0x399   :  { %v12001_v43 = vrot.slane %v11973_v15, %v16835_v59  ;;  %v12010_v4 = vrot.slane %v12002_v8, %v16835_v59  ;;  %v7439_v34 = vrot.slane %v7417_v11, %v16835_v59  ;;  %v8041_v53 = vrot.slane %v8031_v23, %v16835_v59 }
 0x39a   :  { %14342 = vmatprep.mubr.f32.mxu1 %v9408_v14  ;;  %v7446_v12 = vrot.slane %v7418_v20, %v16835_v59  ;;  %v9979_v45 = vrot.slane %v9965_v25, %v16835_v59  ;;  %v10013_v51 = vcombine.high %v9750_v48, %v9750_v48  ;;  %v10020_v63 = vrot.slane %v9750_v48, %v16835_v59  ;;  %v11080_v14 = vld [vmem:[#allocation2 + $0x81] sm:$0x7f] }
 0x39b   :  { %v12003_v33 = vcombine.low %v11994_v41, %v12001_v43  ;;  %v8032_v60 = vcombine.low %v7425_v46, %v7439_v34  ;;  %v15709_v6 = vcombine.high %v7425_v46, %v7439_v34  ;;  %v8777_v40 = vcombine.high %v18848_v3, %v18848_v3 }
 0x39c   :  { %v8034_v38 = vcombine.low %v18888_v44, %v7446_v12  ;;  %v9981_v27 = vcombine.high %v9979_v45, %v9979_v45  ;;  %v9995_v19 = vrot.slane %v9979_v45, %v16835_v59  ;;  %v18902_v49 = vrot.slane %v10013_v51, %v16835_v59 }
 0x39d   :  { %v12017_v31 = vrot.slane %v12003_v33, %v16835_v59  ;;  %v8048_v62 = vrot.slane %v8032_v60, %v16835_v59  ;;  %v8055_v18 = vrot.slane %v15709_v6, %v16835_v59  ;;  %v10028_v16 = vcombine.high %v10020_v63, %v10020_v63 }
 0x39e   :  { %v8062_v35 = vrot.slane %v8034_v38, %v16835_v59  ;;  %v10009_v55 = vrot.slane %v9981_v27, %v16835_v59  ;;  %v10011_v3 = vcombine.high %v9995_v19, %v9995_v19  ;;  %v10036_v22 = vrot.slane %v10020_v63, %v16835_v59 }
 0x39f   :  { %v12018_v0 = vcombine.low %v12010_v4, %v12017_v31  ;;  %v8063_v1 = vcombine.low %v8041_v53, %v8048_v62  ;;  %v18912_v42 = vrot.slane %v18902_v49, %v16835_v59  ;;  %v10050_v32 = vrot.slane %v10028_v16, %v16835_v59  ;;  %v7093_v62 = vld [vmem:[#allocation2 + $0xa1] sm:$0x7f] }
 0x3a0   :  { %v8064_v39 = vcombine.low %v8055_v18, %v8062_v35  ;;  %v10058_v50 = vcombine.high %v10036_v22, %v10036_v22  ;;  %v10641_v36 = vcombine.low %v9995_v19, %v10009_v55  ;;  %v10642_v7 = vcombine.low %v10011_v3, %v10036_v22 }
 0x3a1   :  { %14467 = vmatprep.mubr.f32.mxu0 %v12018_v0  ;;  %v8071_v57 = vrot.slane %v8063_v1, %v16835_v59  ;;  %v10060_v10 = vcombine.high %v10050_v32, %v10050_v32  ;;  %v8779_v28 = vcombine.high %v8422_v5, %v8422_v5  ;;  %v8786_v30 = vrot.slane %v8422_v5, %v16835_v59 }
 0x3a2   :  { %v8078_v26 = vrot.slane %v8064_v39, %v16835_v59  ;;  %v10643_v24 = vcombine.low %v10050_v32, %v10058_v50  ;;  %v10651_v9 = vrot.slane %v10641_v36, %v16835_v59  ;;  %v10658_v54 = vrot.slane %v10642_v7, %v16835_v59 }
 0x3a3   :  { %v10644_v17 = vcombine.low %v10060_v10, %v18912_v42  ;;  %v8793_v47 = vrot.slane %v8779_v28, %v16835_v59  ;;  %v8794_v29 = vcombine.high %v8786_v30, %v8786_v30  ;;  %v8802_v52 = vrot.slane %v8786_v30, %v16835_v59 }
 0x3a4   :  { %v8079_v61 = vcombine.low %v8071_v57, %v8078_v26  ;;  %v10665_v23 = vrot.slane %v10643_v24, %v16835_v59  ;;  %v10673_v25 = vcombine.low %v10651_v9, %v10658_v54  ;;  %v11358_v15 = vcombine.high %v18861_v21, %v18861_v21 }
 0x3a5   :  { %v10672_v41 = vrot.slane %v10644_v17, %v16835_v59  ;;  %v8795_v8 = vcombine.high %v8793_v47, %v8793_v47  ;;  %v8809_v11 = vrot.slane %v8793_v47, %v16835_v59  ;;  %v8816_v48 = vrot.slane %v8794_v29, %v16835_v59 }
 0x3a6   :  { %14343 = vmatmul.mubr.f32.gmra.mxu1 %v8079_v61  ;;  %v10681_v20 = vrot.slane %v10673_v25, %v16835_v59  ;;  %v8824_v46 = vcombine.high %v8802_v52, %v8802_v52  ;;  %v9409_v43 = vcombine.low %v8777_v40, %v8802_v52  ;;  %v11386_v4 = vrot.slane %v11358_v15, %v16835_v59  ;;  %v9751_v15 = vld [vmem:[#allocation2 + $0x80] sm:$0x7f] }
 0x3a7   :  { %v10674_v34 = vcombine.low %v10665_v23, %v10672_v41  ;;  %v8823_v53 = vrot.slane %v8795_v8, %v16835_v59  ;;  %v8825_v12 = vcombine.high %v8809_v11, %v8809_v11  ;;  %v8826_v21 = vcombine.high %v8816_v48, %v8816_v48 }
 0x3a8   :  { %v9410_v45 = vcombine.low %v8816_v48, %v8824_v46  ;;  %v9419_v51 = vrot.slane %v9409_v43, %v16835_v59  ;;  %v11388_v63 = vcombine.high %v18869_v13, %v18869_v13  ;;  %v11390_v33 = vcombine.high %v11080_v14, %v11080_v14 }
 0x3a9   :  { %v10688_v60 = vrot.slane %v10674_v34, %v16835_v59  ;;  %v9411_v6 = vcombine.low %v8826_v21, %v8809_v11  ;;  %v9412_v38 = vcombine.low %v8823_v53, %v8825_v12  ;;  %v11397_v40 = vrot.slane %v11080_v14, %v16835_v59 }
 0x3aa   :  { %v9426_v27 = vrot.slane %v9410_v45, %v16835_v59  ;;  %v11404_v19 = vrot.slane %v11390_v33, %v16835_v59  ;;  %v12019_v31 = vcombine.low %v11386_v4, %v11388_v63  ;;  %v7448_v18 = vcombine.high %v18888_v44, %v18888_v44 }
 0x3ab   :  { %v10689_v16 = vcombine.low %v10681_v20, %v10688_v60  ;;  %v9433_v35 = vrot.slane %v9411_v6, %v16835_v59  ;;  %v9440_v13 = vrot.slane %v9412_v38, %v16835_v59  ;;  %v11405_v55 = vcombine.high %v11397_v40, %v11397_v40  ;;  %v8423_v38 = vld [vmem:[#allocation2 + $0xb2] sm:$0x7f] }
 0x3ac   :  { %v9441_v3 = vcombine.low %v9419_v51, %v9426_v27  ;;  %v11406_v22 = vcombine.high %v11404_v19, %v11404_v19  ;;  %v11413_v5 = vrot.slane %v11397_v40, %v16835_v59  ;;  %v18948_v0 = vrot.slane %v11404_v19, %v16835_v59  ;;  %v13979_v40 = vld [vmem:[#allocation10 + $0x410] sm:$0xff] }
 0x3ad   :  { %14468 = vmatmul.mubr.f32.gmra.mxu0 %v10689_v16  ;;  %v9442_v1 = vcombine.low %v9433_v35, %v9440_v13  ;;  %v11427_v32 = vrot.slane %v11405_v55, %v16835_v59  ;;  %v12029_v37 = vrot.slane %v12019_v31, %v16835_v59  ;;  %v7450_v44 = vcombine.high %v7093_v62, %v7093_v62 }
 0x3ae   :  { %v9449_v39 = vrot.slane %v9441_v3, %v16835_v59  ;;  %v11434_v50 = vrot.slane %v11406_v22, %v16835_v59  ;;  %v7457_v36 = vrot.slane %v7093_v62, %v16835_v59  ;;  %v10029_v7 = vcombine.high %v18902_v49, %v18902_v49  ;;  %16186 = vmatpush3.msra.mxu1 %v13979_v40  ;;  %v19023_v40 = vld [vmem:[#allocation2 + $0xc1] sm:$0x7f] }
 0x3af   :  { %v9456_v57 = vrot.slane %v9442_v1, %v16835_v59  ;;  %v12020_v10 = vcombine.low %v11413_v5, %v11427_v32  ;;  %v15733_v28 = vcombine.high %v11413_v5, %v11427_v32  ;;  %v7464_v30 = vrot.slane %v7450_v44, %v16835_v59  ;;  %16187 = vmatprep.subr.mxu1 %v18920_v2 }
 0x3b0   :  { %v12022_v26 = vcombine.low %v18948_v0, %v11434_v50  ;;  %v7465_v24 = vcombine.high %v7457_v36, %v7457_v36  ;;  %v7473_v9 = vrot.slane %v7457_v36, %v16835_v59  ;;  %v10057_v54 = vrot.slane %v10029_v7, %v16835_v59 }
 0x3b1   :  { %v9457_v17 = vcombine.low %v9449_v39, %v9456_v57  ;;  %v12036_v47 = vrot.slane %v12020_v10, %v16835_v59  ;;  %v12043_v29 = vrot.slane %v15733_v28, %v16835_v59  ;;  %v7466_v52 = vcombine.high %v7464_v30, %v7464_v30  ;;  %v11081_v10 = vld [vmem:[#allocation2 + $0xb1] sm:$0x7f] }
 0x3b2   :  { %v12050_v49 = vrot.slane %v12022_v26, %v16835_v59  ;;  %v7480_v61 = vrot.slane %v7464_v30, %v16835_v59  ;;  %v7487_v23 = vrot.slane %v7465_v24, %v16835_v59  ;;  %v7495_v25 = vcombine.high %v7473_v9, %v7473_v9 }
 0x3b3   :  { %14347 = vmatprep.mubr.f32.mxu1 %v9457_v17  ;;  %v12051_v41 = vcombine.low %v12029_v37, %v12036_v47  ;;  %v7494_v8 = vrot.slane %v7466_v52, %v16835_v59  ;;  %v8080_v11 = vcombine.low %v7448_v18, %v7473_v9  ;;  %v10059_v48 = vcombine.high %v18912_v42, %v18912_v42  ;;  %v18979_v18 = vld [vmem:[#allocation2 + $0xc2] sm:$0x7f] }
 0x3b4   :  { %v12052_v14 = vcombine.low %v12043_v29, %v12050_v49  ;;  %v7496_v20 = vcombine.high %v7480_v61, %v7480_v61  ;;  %v7497_v46 = vcombine.high %v7487_v23, %v7487_v23  ;;  %v8081_v43 = vcombine.low %v7487_v23, %v7495_v25 }
 0x3b5   :  { %v12059_v4 = vrot.slane %v12051_v41, %v16835_v59  ;;  %v8090_v34 = vrot.slane %v8080_v11, %v16835_v59  ;;  %v10061_v53 = vcombine.high %v9751_v15, %v9751_v15  ;;  %v10068_v12 = vrot.slane %v9751_v15, %v16835_v59 }
 0x3b6   :  { %v12066_v21 = vrot.slane %v12052_v14, %v16835_v59  ;;  %v8082_v45 = vcombine.low %v7497_v46, %v7480_v61  ;;  %v8083_v51 = vcombine.low %v7494_v8, %v7496_v20  ;;  %v8097_v63 = vrot.slane %v8081_v43, %v16835_v59 }
 0x3b7   :  { %v10075_v33 = vrot.slane %v10061_v53, %v16835_v59  ;;  %v10076_v42 = vcombine.high %v10068_v12, %v10068_v12  ;;  %v10084_v60 = vrot.slane %v10068_v12, %v16835_v59  ;;  %v10690_v6 = vcombine.low %v10057_v54, %v10059_v48 }
 0x3b8   :  { %v12067_v27 = vcombine.low %v12059_v4, %v12066_v21  ;;  %v8104_v19 = vrot.slane %v8082_v45, %v16835_v59  ;;  %v8111_v31 = vrot.slane %v8083_v51, %v16835_v59  ;;  %v8112_v62 = vcombine.low %v8090_v34, %v8097_v63 }
 0x3b9   :  { %v10077_v16 = vcombine.high %v10075_v33, %v10075_v33  ;;  %v18982_v35 = vrot.slane %v10075_v33, %v16835_v59  ;;  %v10098_v13 = vrot.slane %v10076_v42, %v16835_v59  ;;  %v10700_v55 = vrot.slane %v10690_v6, %v16835_v59  ;;  %v7094_v33 = vld [vmem:[#allocation2 + $0xb1] sm:$0x7f] }
 0x3ba   :  { %14472 = vmatprep.mubr.f32.mxu0 %v12067_v27  ;;  %v8113_v3 = vcombine.low %v8104_v19, %v8111_v31  ;;  %v8120_v22 = vrot.slane %v8112_v62, %v16835_v59  ;;  %v8827_v5 = vcombine.high %v8423_v38, %v8423_v38  ;;  %v8834_v1 = vrot.slane %v8423_v38, %v16835_v59 }
 0x3bb   :  { %v10105_v32 = vrot.slane %v10077_v16, %v16835_v59  ;;  %v10691_v37 = vcombine.low %v10084_v60, %v10098_v13  ;;  %v15725_v44 = vcombine.high %v10084_v60, %v10098_v13  ;;  %v18992_v39 = vrot.slane %v18979_v18, %v16835_v59 }
 0x3bc   :  { %v8127_v50 = vrot.slane %v8113_v3, %v16835_v59  ;;  %v8841_v36 = vrot.slane %v8827_v5, %v16835_v59  ;;  %v8842_v7 = vcombine.high %v8834_v1, %v8834_v1  ;;  %v8850_v57 = vrot.slane %v8834_v1, %v16835_v59 }
 0x3bd   :  { %v10693_v28 = vcombine.low %v18982_v35, %v10105_v32  ;;  %v10707_v30 = vrot.slane %v10691_v37, %v16835_v59  ;;  %v10714_v26 = vrot.slane %v15725_v44, %v16835_v59  ;;  %v19002_v24 = vrot.slane %v18992_v39, %v16835_v59 }
 0x3be   :  { %v8128_v9 = vcombine.low %v8120_v22, %v8127_v50  ;;  %v8843_v54 = vcombine.high %v8841_v36, %v8841_v36  ;;  %v8857_v17 = vrot.slane %v8841_v36, %v16835_v59  ;;  %v8864_v47 = vrot.slane %v8842_v7, %v16835_v59  ;;  %v9752_v7 = vld [vmem:[#allocation2 + $0xb0] sm:$0x7f] }
 0x3bf   :  { %v10721_v29 = vrot.slane %v10693_v28, %v16835_v59  ;;  %v10722_v52 = vcombine.low %v10700_v55, %v10707_v30  ;;  %v11436_v49 = vcombine.high %v18948_v0, %v18948_v0  ;;  %v11438_v61 = vcombine.high %v11081_v10, %v11081_v10 }
 0x3c0   :  { %14348 = vmatmul.mubr.f32.gmra.mxu1 %v8128_v9  ;;  %v8871_v23 = vrot.slane %v8843_v54, %v16835_v59  ;;  %v8873_v25 = vcombine.high %v8857_v17, %v8857_v17  ;;  %v9458_v15 = vcombine.low %v8850_v57, %v8864_v47  ;;  %v15718_v41 = vcombine.high %v8850_v57, %v8864_v47 }
 0x3c1   :  { %v10723_v8 = vcombine.low %v10714_v26, %v10721_v29  ;;  %v10730_v11 = vrot.slane %v10722_v52, %v16835_v59  ;;  %v11445_v48 = vrot.slane %v11081_v10, %v16835_v59  ;;  %v11452_v14 = vrot.slane %v11438_v61, %v16835_v59 }
 0x3c2   :  { %v9460_v20 = vcombine.low %v8857_v17, %v8871_v23  ;;  %v9461_v46 = vcombine.low %v8873_v25, %v19002_v24  ;;  %v9468_v43 = vrot.slane %v9458_v15, %v16835_v59  ;;  %v9475_v0 = vrot.slane %v15718_v41, %v16835_v59 }
 0x3c3   :  { %v10737_v4 = vrot.slane %v10723_v8, %v16835_v59  ;;  %v11453_v34 = vcombine.high %v11445_v48, %v11445_v48  ;;  %v11454_v53 = vcombine.high %v11452_v14, %v11452_v14  ;;  %v11461_v12 = vrot.slane %v11445_v48, %v16835_v59 }
 0x3c4   :  { %v9482_v21 = vrot.slane %v9460_v20, %v16835_v59  ;;  %v9489_v45 = vrot.slane %v9461_v46, %v16835_v59  ;;  %v9490_v51 = vcombine.low %v9468_v43, %v9475_v0  ;;  %v11468_v63 = vrot.slane %v11452_v14, %v16835_v59 }
 0x3c5   :  { %v10738_v42 = vcombine.low %v10730_v11, %v10737_v4  ;;  %v11475_v60 = vrot.slane %v11453_v34, %v16835_v59  ;;  %v11482_v6 = vrot.slane %v11454_v53, %v16835_v59  ;;  %v11483_v38 = vcombine.high %v11461_v12, %v11461_v12  ;;  %v13978_v53 = vld [vmem:[#allocation10 + $0x408] sm:$0xff] }
 0x3c6   :  { %v9491_v27 = vcombine.low %v9482_v21, %v9489_v45  ;;  %v9498_v19 = vrot.slane %v9490_v51, %v16835_v59  ;;  %v11484_v31 = vcombine.high %v11468_v63, %v11468_v63  ;;  %v12068_v62 = vcombine.low %v11436_v49, %v11461_v12  ;;  %16188 = vmatpush3.msra.mxu1 %v13978_v53 }
 0x3c7   :  { %14473 = vmatmul.mubr.f32.gmra.mxu0 %v10738_v42  ;;  %v11485_v16 = vcombine.high %v11475_v60, %v11475_v60  ;;  %v12069_v13 = vcombine.low %v11475_v60, %v11483_v38  ;;  %v7498_v55 = vcombine.high %v7094_v33, %v7094_v33  ;;  %v7505_v3 = vrot.slane %v7094_v33, %v16835_v59 }
 0x3c8   :  { %v9505_v22 = vrot.slane %v9491_v27, %v16835_v59  ;;  %v12071_v5 = vcombine.low %v11482_v6, %v11484_v31  ;;  %v12078_v1 = vrot.slane %v12068_v62, %v16835_v59  ;;  %v19031_v32 = vrot.slane %v19023_v40, %v16835_v59  ;;  %16189 = vmatprep.subr.mxu1 %v18920_v2  ;;  %v19068_v2 = vld [vmem:[#allocation2 + $0xd2] sm:$0x7f] }
 0x3c9   :  { %v12070_v37 = vcombine.low %v11485_v16, %v11468_v63  ;;  %v12085_v44 = vrot.slane %v12069_v13, %v16835_v59  ;;  %v7512_v50 = vrot.slane %v7498_v55, %v16835_v59  ;;  %v7513_v36 = vcombine.high %v7505_v3, %v7505_v3 }
 0x3ca   :  { %v9506_v57 = vcombine.low %v9498_v19, %v9505_v22  ;;  %v12099_v10 = vrot.slane %v12071_v5, %v16835_v59  ;;  %v7521_v28 = vrot.slane %v7505_v3, %v16835_v59  ;;  %v19039_v30 = vrot.slane %v19031_v32, %v16835_v59 }
 0x3cb   :  { %v12092_v26 = vrot.slane %v12070_v37, %v16835_v59  ;;  %v12100_v9 = vcombine.low %v12078_v1, %v12085_v44  ;;  %v7514_v54 = vcombine.high %v7512_v50, %v7512_v50  ;;  %v7528_v17 = vrot.slane %v7512_v50, %v16835_v59  ;;  %v11082_v50 = vld [vmem:[#allocation2 + $0xc1] sm:$0x7f] }
 0x3cc   :  { %14352 = vmatprep.mubr.f32.mxu1 %v9506_v57  ;;  %v7535_v47 = vrot.slane %v7513_v36, %v16835_v59  ;;  %v10107_v29 = vcombine.high %v18982_v35, %v18982_v35  ;;  %v10109_v52 = vcombine.high %v9752_v7, %v9752_v7  ;;  %v10116_v49 = vrot.slane %v9752_v7, %v16835_v59 }
 0x3cd   :  { %v12101_v61 = vcombine.low %v12092_v26, %v12099_v10  ;;  %v12108_v23 = vrot.slane %v12100_v9, %v16835_v59  ;;  %v7542_v25 = vrot.slane %v7514_v54, %v16835_v59  ;;  %v7544_v15 = vcombine.high %v7528_v17, %v7528_v17  ;;  %v13977_v10 = vld [vmem:[#allocation10 + $0x400] sm:$0xff] }
 0x3ce   :  { %v8129_v41 = vcombine.low %v7521_v28, %v7535_v47  ;;  %v15710_v8 = vcombine.high %v7521_v28, %v7535_v47  ;;  %v10123_v11 = vrot.slane %v10109_v52, %v16835_v59  ;;  %v10124_v48 = vcombine.high %v10116_v49, %v10116_v49  ;;  %16190 = vmatpush3.msra.mxu1 %v13977_v10 }
 0x3cf   :  { %v12115_v14 = vrot.slane %v12101_v61, %v16835_v59  ;;  %v8131_v20 = vcombine.low %v7528_v17, %v7542_v25  ;;  %v8132_v46 = vcombine.low %v7544_v15, %v19039_v30  ;;  %v10132_v35 = vrot.slane %v10116_v49, %v16835_v59 }
 0x3d0   :  { %v8139_v43 = vrot.slane %v8129_v41, %v16835_v59  ;;  %v8146_v0 = vrot.slane %v15710_v8, %v16835_v59  ;;  %v10125_v4 = vcombine.high %v10123_v11, %v10123_v11  ;;  %v10139_v34 = vrot.slane %v10123_v11, %v16835_v59 }
 0x3d1   :  { %v12116_v12 = vcombine.low %v12108_v23, %v12115_v14  ;;  %v8153_v21 = vrot.slane %v8131_v20, %v16835_v59  ;;  %v8160_v45 = vrot.slane %v8132_v46, %v16835_v59  ;;  %v10146_v51 = vrot.slane %v10124_v48, %v16835_v59 }
 0x3d2   :  { %v8161_v63 = vcombine.low %v8139_v43, %v8146_v0  ;;  %v10153_v33 = vrot.slane %v10125_v4, %v16835_v59  ;;  %v10154_v42 = vcombine.high %v10132_v35, %v10132_v35  ;;  %v10155_v60 = vcombine.high %v10139_v34, %v10139_v34 }
 0x3d3   :  { %14477 = vmatprep.mubr.f32.mxu0 %v12116_v12  ;;  %v8162_v6 = vcombine.low %v8153_v21, %v8160_v45  ;;  %v10156_v38 = vcombine.high %v10146_v51, %v10146_v51  ;;  %v10739_v27 = vcombine.low %v10107_v29, %v10132_v35  ;;  %v8875_v19 = vcombine.high %v18979_v18, %v18979_v18  ;;  %v19081_v29 = vld [vmem:[#allocation2 + $0xd1] sm:$0x7f] }
 0x3d4   :  { %v8169_v31 = vrot.slane %v8161_v63, %v16835_v59  ;;  %v10740_v62 = vcombine.low %v10146_v51, %v10154_v42  ;;  %v10742_v16 = vcombine.low %v10153_v33, %v10155_v60  ;;  %v8890_v13 = vcombine.high %v18992_v39, %v18992_v39 }
 0x3d5   :  { %v8176_v55 = vrot.slane %v8162_v6, %v16835_v59  ;;  %v10741_v3 = vcombine.low %v10156_v38, %v10139_v34  ;;  %v10749_v22 = vrot.slane %v10739_v27, %v16835_v59  ;;  %v8889_v5 = vrot.slane %v8875_v19, %v16835_v59 }
 0x3d6   :  { %v10756_v1 = vrot.slane %v10740_v62, %v16835_v59  ;;  %v10770_v18 = vrot.slane %v10742_v16, %v16835_v59  ;;  %v8912_v37 = vrot.slane %v8890_v13, %v16835_v59  ;;  %v8920_v44 = vcombine.high %v19002_v24, %v19002_v24 }
 0x3d7   :  { %v8177_v39 = vcombine.low %v8169_v31, %v8176_v55  ;;  %v10763_v36 = vrot.slane %v10741_v3, %v16835_v59  ;;  %v8891_v7 = vcombine.high %v8889_v5, %v8889_v5  ;;  %v8905_v57 = vrot.slane %v8889_v5, %v16835_v59  ;;  %v19119_v55 = vld [vmem:[#allocation2 + $0xd1] sm:$0x7f] }
 0x3d8   :  { %v10771_v28 = vcombine.low %v10749_v22, %v10756_v1  ;;  %v8922_v26 = vcombine.high %v8912_v37, %v8912_v37  ;;  %v8930_v9 = vrot.slane %v19068_v2, %v16835_v59  ;;  %v9507_v54 = vcombine.low %v8912_v37, %v8920_v44 }
 0x3d9   :  { %14353 = vmatmul.mubr.f32.gmra.mxu1 %v8177_v39  ;;  %v10772_v17 = vcombine.low %v10763_v36, %v10770_v18  ;;  %v8919_v47 = vrot.slane %v8891_v7, %v16835_v59  ;;  %v8921_v24 = vcombine.high %v8905_v57, %v8905_v57  ;;  %v11486_v52 = vcombine.high %v11082_v50, %v11082_v50 }
 0x3da   :  { %v10779_v49 = vrot.slane %v10771_v28, %v16835_v59  ;;  %v8938_v61 = vcombine.high %v8930_v9, %v8930_v9  ;;  %v19085_v23 = vrot.slane %v8930_v9, %v16835_v59  ;;  %v9508_v25 = vcombine.low %v8922_v26, %v8905_v57  ;;  %v9753_v57 = vld [vmem:[#allocation2 + $0xc0] sm:$0x7f] }
 0x3db   :  { %v10786_v15 = vrot.slane %v10772_v17, %v16835_v59  ;;  %v9509_v41 = vcombine.low %v8919_v47, %v8921_v24  ;;  %v9517_v8 = vrot.slane %v9507_v54, %v16835_v59  ;;  %v11493_v11 = vrot.slane %v11082_v50, %v16835_v59  ;;  %v19132_v54 = vld [vmem:[#allocation2 + $0xd0] sm:$0x7f] }
 0x3dc   :  { %v19091_v48 = vrot.slane %v8938_v61, %v16835_v59  ;;  %v9524_v14 = vrot.slane %v9508_v25, %v16835_v59  ;;  %v11500_v20 = vrot.slane %v11486_v52, %v16835_v59  ;;  %v19097_v46 = vrot.slane %v19081_v29, %v16835_v59 }
 0x3dd   :  { %v10787_v35 = vcombine.low %v10779_v49, %v10786_v15  ;;  %v9531_v43 = vrot.slane %v9509_v41, %v16835_v59  ;;  %v11501_v0 = vcombine.high %v11493_v11, %v11493_v11  ;;  %v11509_v4 = vrot.slane %v11493_v11, %v16835_v59 }
 0x3de   :  { %v9510_v34 = vcombine.low %v19085_v23, %v19091_v48  ;;  %v9539_v53 = vcombine.low %v9517_v8, %v9524_v14  ;;  %v11502_v12 = vcombine.high %v11500_v20, %v11500_v20  ;;  %v11516_v21 = vrot.slane %v11500_v20, %v16835_v59 }
 0x3df   :  { %14478 = vmatmul.mubr.f32.gmra.mxu0 %v10787_v35  ;;  %v11523_v45 = vrot.slane %v11501_v0, %v16835_v59  ;;  %v19107_v51 = vrot.slane %v19097_v46, %v16835_v59  ;;  %v7546_v63 = vcombine.high %v19023_v40, %v19023_v40  ;;  %v7561_v33 = vcombine.high %v19031_v32, %v19031_v32  ;;  %v19151_v0 = vld [vmem:[#allocation2 + $0xe2] sm:$0x7f] }
 0x3e0   :  { %v9538_v42 = vrot.slane %v9510_v34, %v16835_v59  ;;  %v9547_v60 = vrot.slane %v9539_v53, %v16835_v59  ;;  %v11530_v6 = vrot.slane %v11502_v12, %v16835_v59  ;;  %v11532_v38 = vcombine.high %v11516_v21, %v11516_v21 }
 0x3e1   :  { %v12117_v27 = vcombine.low %v11509_v4, %v11523_v45  ;;  %v15734_v19 = vcombine.high %v11509_v4, %v11523_v45  ;;  %v7560_v31 = vrot.slane %v7546_v63, %v16835_v59  ;;  %v7583_v62 = vrot.slane %v7561_v33, %v16835_v59 }
 0x3e2   :  { %v9540_v16 = vcombine.low %v9531_v43, %v9538_v42  ;;  %v12119_v13 = vcombine.low %v11516_v21, %v11530_v6  ;;  %v12120_v40 = vcombine.low %v11532_v38, %v19107_v51  ;;  %v7591_v32 = vcombine.high %v19039_v30, %v19039_v30 }
 0x3e3   :  { %v12127_v3 = vrot.slane %v12117_v27, %v16835_v59  ;;  %v12134_v22 = vrot.slane %v15734_v19, %v16835_v59  ;;  %v7562_v5 = vcombine.high %v7560_v31, %v7560_v31  ;;  %v7576_v1 = vrot.slane %v7560_v31, %v16835_v59 }
 0x3e4   :  { %v9554_v18 = vrot.slane %v9540_v16, %v16835_v59  ;;  %v12141_v37 = vrot.slane %v12119_v13, %v16835_v59  ;;  %v12148_v44 = vrot.slane %v12120_v40, %v16835_v59  ;;  %v7593_v50 = vcombine.high %v7583_v62, %v7583_v62 }
 0x3e5   :  { %v12149_v39 = vcombine.low %v12127_v3, %v12134_v22  ;;  %v7590_v36 = vrot.slane %v7562_v5, %v16835_v59  ;;  %v7592_v7 = vcombine.high %v7576_v1, %v7576_v1  ;;  %v7601_v30 = vrot.slane %v19119_v55, %v16835_v59 }
 0x3e6   :  { %v9555_v10 = vcombine.low %v9547_v60, %v9554_v18  ;;  %v12150_v28 = vcombine.low %v12141_v37, %v12148_v44  ;;  %v8178_v26 = vcombine.low %v7583_v62, %v7591_v32  ;;  %v8179_v9 = vcombine.low %v7593_v50, %v7576_v1 }
 0x3e7   :  { %v12157_v17 = vrot.slane %v12149_v39, %v16835_v59  ;;  %v7609_v47 = vcombine.high %v7601_v30, %v7601_v30  ;;  %v19136_v24 = vrot.slane %v7601_v30, %v16835_v59  ;;  %v8180_v52 = vcombine.low %v7590_v36, %v7592_v7 }
 0x3e8   :  { %14357 = vmatprep.mubr.f32.mxu1 %v9555_v10  ;;  %v12164_v49 = vrot.slane %v12150_v28, %v16835_v59  ;;  %v8188_v61 = vrot.slane %v8178_v26, %v16835_v59  ;;  %v8195_v25 = vrot.slane %v8179_v9, %v16835_v59  ;;  %v10157_v15 = vcombine.high %v9753_v57, %v9753_v57 }
 0x3e9   :  { %v19142_v41 = vrot.slane %v7609_v47, %v16835_v59  ;;  %v8202_v8 = vrot.slane %v8180_v52, %v16835_v59  ;;  %v10164_v11 = vrot.slane %v9753_v57, %v16835_v59  ;;  %v19148_v14 = vrot.slane %v19132_v54, %v16835_v59 }
 0x3ea   :  { %v12165_v20 = vcombine.low %v12157_v17, %v12164_v49  ;;  %v8210_v35 = vcombine.low %v8188_v61, %v8195_v25  ;;  %v10171_v43 = vrot.slane %v10157_v15, %v16835_v59  ;;  %v8923_v4 = vcombine.high %v19068_v2, %v19068_v2  ;;  %v19186_v17 = vld [vmem:[#allocation2 + $0xe1] sm:$0x7f] }
 0x3eb   :  { %v8181_v34 = vcombine.low %v19136_v24, %v19142_v41  ;;  %v10172_v53 = vcombine.high %v10164_v11, %v10164_v11  ;;  %v10180_v12 = vrot.slane %v10164_v11, %v16835_v59  ;;  %v19160_v21 = vrot.slane %v19148_v14, %v16835_v59 }
 0x3ec   :  { %14482 = vmatprep.mubr.f32.mxu0 %v12165_v20  ;;  %v8218_v45 = vrot.slane %v8210_v35, %v16835_v59  ;;  %v10173_v63 = vcombine.high %v10171_v43, %v10171_v43  ;;  %v10187_v33 = vrot.slane %v10171_v43, %v16835_v59  ;;  %v8937_v42 = vrot.slane %v8923_v4, %v16835_v59 }
 0x3ed   :  { %v8209_v2 = vrot.slane %v8181_v34, %v16835_v59  ;;  %v10194_v60 = vrot.slane %v10172_v53, %v16835_v59  ;;  %v8978_v6 = vrot.slane %v19151_v0, %v16835_v59  ;;  %v15719_v38 = vcombine.high %v19085_v23, %v19091_v48 }
 0x3ee   :  { %v10201_v27 = vrot.slane %v10173_v63, %v16835_v59  ;;  %v10203_v19 = vcombine.high %v10187_v33, %v10187_v33  ;;  %v8939_v31 = vcombine.high %v8937_v42, %v8937_v42  ;;  %v8953_v62 = vrot.slane %v8937_v42, %v16835_v59 }
 0x3ef   :  { %v8211_v16 = vcombine.low %v8202_v8, %v8209_v2  ;;  %v10788_v13 = vcombine.low %v10180_v12, %v10194_v60  ;;  %v15726_v40 = vcombine.high %v10180_v12, %v10194_v60  ;;  %v8986_v32 = vcombine.high %v8978_v6, %v8978_v6 }
 0x3f0   :  { %v10790_v3 = vcombine.low %v10187_v33, %v10201_v27  ;;  %v10791_v22 = vcombine.low %v10203_v19, %v19160_v21  ;;  %v8967_v5 = vrot.slane %v8939_v31, %v16835_v59  ;;  %v8969_v1 = vcombine.high %v8953_v62, %v8953_v62 }
 0x3f1   :  { %v8225_v18 = vrot.slane %v8211_v16, %v16835_v59  ;;  %v10798_v23 = vrot.slane %v10788_v13, %v16835_v59  ;;  %v10805_v48 = vrot.slane %v15726_v40, %v16835_v59  ;;  %v8994_v37 = vrot.slane %v8978_v6, %v16835_v59 }
 0x3f2   :  { %v10812_v44 = vrot.slane %v10790_v3, %v16835_v59  ;;  %v10819_v50 = vrot.slane %v10791_v22, %v16835_v59  ;;  %v19182_v39 = vrot.slane %v8986_v32, %v16835_v59  ;;  %v9557_v36 = vcombine.low %v8953_v62, %v8967_v5 }
 0x3f3   :  { %v8226_v7 = vcombine.low %v8218_v45, %v8225_v18  ;;  %v10820_v30 = vcombine.low %v10798_v23, %v10805_v48  ;;  %v9016_v57 = vcombine.high %v8994_v37, %v8994_v37  ;;  %v9558_v10 = vcombine.low %v8969_v1, %v8994_v37  ;;  %v19207_v45 = vld [vmem:[#allocation2 + $0xe1] sm:$0x7f] }
 0x3f4   :  { %v10821_v28 = vcombine.low %v10812_v44, %v10819_v50  ;;  %v9566_v26 = vrot.slane %v15719_v38, %v16835_v59  ;;  %v9573_v9 = vrot.slane %v9557_v36, %v16835_v59  ;;  %v11534_v47 = vcombine.high %v19081_v29, %v19081_v29 }
 0x3f5   :  { %14358 = vmatmul.mubr.f32.gmra.mxu1 %v8226_v7  ;;  %v10828_v52 = vrot.slane %v10820_v30, %v16835_v59  ;;  %v9559_v49 = vcombine.low %v19182_v39, %v9016_v57  ;;  %v9580_v61 = vrot.slane %v9558_v10, %v16835_v59  ;;  %v11549_v25 = vcombine.high %v19097_v46, %v19097_v46  ;;  %v19234_v10 = vld [vmem:[#allocation2 + $0xe0] sm:$0x7f] }
 0x3f6   :  { %v10835_v15 = vrot.slane %v10821_v28, %v16835_v59  ;;  %v9588_v8 = vcombine.low %v9566_v26, %v9573_v9  ;;  %v11548_v11 = vrot.slane %v11534_v47, %v16835_v59  ;;  %v11579_v20 = vcombine.high %v19107_v51, %v19107_v51 }
 0x3f7   :  { %v9587_v29 = vrot.slane %v9559_v49, %v16835_v59  ;;  %v11571_v35 = vrot.slane %v11549_v25, %v16835_v59  ;;  %v11589_v43 = vrot.slane %v19186_v17, %v16835_v59  ;;  %v7594_v4 = vcombine.high %v19119_v55, %v19119_v55 }
 0x3f8   :  { %v10836_v34 = vcombine.low %v10828_v52, %v10835_v15  ;;  %v9596_v46 = vrot.slane %v9588_v8, %v16835_v59  ;;  %v11550_v53 = vcombine.high %v11548_v11, %v11548_v11  ;;  %v11564_v12 = vrot.slane %v11548_v11, %v16835_v59 }
 0x3f9   :  { %v9589_v63 = vcombine.low %v9580_v61, %v9587_v29  ;;  %v11581_v51 = vcombine.high %v11571_v35, %v11571_v35  ;;  %v11597_v33 = vcombine.high %v11589_v43, %v11589_v43  ;;  %v19210_v42 = vrot.slane %v11589_v43, %v16835_v59 }
 0x3fa   :  { %14483 = vmatmul.mubr.f32.gmra.mxu0 %v10836_v34  ;;  %v11578_v2 = vrot.slane %v11550_v53, %v16835_v59  ;;  %v11580_v60 = vcombine.high %v11564_v12, %v11564_v12  ;;  %v12166_v6 = vcombine.low %v11571_v35, %v11579_v20  ;;  %v7608_v55 = vrot.slane %v7594_v4, %v16835_v59 }
 0x3fb   :  { %v9603_v38 = vrot.slane %v9589_v63, %v16835_v59  ;;  %v19216_v27 = vrot.slane %v11597_v33, %v16835_v59  ;;  %v12167_v19 = vcombine.low %v11581_v51, %v11564_v12  ;;  %v7649_v31 = vrot.slane %v19207_v45, %v16835_v59 }
 0x3fc   :  { %v12168_v62 = vcombine.low %v11578_v2, %v11580_v60  ;;  %v12176_v16 = vrot.slane %v12166_v6, %v16835_v59  ;;  %v7610_v13 = vcombine.high %v7608_v55, %v7608_v55  ;;  %v7624_v40 = vrot.slane %v7608_v55, %v16835_v59 }
 0x3fd   :  { %v9604_v32 = vcombine.low %v9596_v46, %v9603_v38  ;;  %v12169_v3 = vcombine.low %v19210_v42, %v19216_v27  ;;  %v12183_v22 = vrot.slane %v12167_v19, %v16835_v59  ;;  %v7657_v5 = vcombine.high %v7649_v31, %v7649_v31  ;;  %v19257_v46 = vld [vmem:[#allocation2 + $0xf2] sm:$0x7f] }
 0x3fe   :  { %v12190_v1 = vrot.slane %v12168_v62, %v16835_v59  ;;  %v7638_v18 = vrot.slane %v7610_v13, %v16835_v59  ;;  %v7640_v23 = vcombine.high %v7624_v40, %v7624_v40  ;;  %v7665_v48 = vrot.slane %v7649_v31, %v16835_v59 }
 0x3ff   :  { %14362 = vmatprep.mubr.f32.mxu1 %v9604_v32  ;;  %v12197_v37 = vrot.slane %v12169_v3, %v16835_v59  ;;  %v12198_v44 = vcombine.low %v12176_v16, %v12183_v22  ;;  %v19230_v50 = vrot.slane %v7657_v5, %v16835_v59  ;;  %v15711_v36 = vcombine.high %v19136_v24, %v19142_v41 }
 0x400   :  { %v7687_v7 = vcombine.high %v7665_v48, %v7665_v48  ;;  %v8228_v30 = vcombine.low %v7624_v40, %v7638_v18  ;;  %v8229_v57 = vcombine.low %v7640_v23, %v7665_v48  ;;  %v10205_v28 = vcombine.high %v19132_v54, %v19132_v54  ;;  %v19276_v40 = vld [vmem:[#allocation2 + $0xf1] sm:$0x7f] }
 0x401   :  { %v12199_v26 = vcombine.low %v12190_v1, %v12197_v37  ;;  %v12206_v9 = vrot.slane %v12198_v44, %v16835_v59  ;;  %v8237_v47 = vrot.slane %v15711_v36, %v16835_v59  ;;  %v10220_v52 = vcombine.high %v19148_v14, %v19148_v14 }
 0x402   :  { %v8230_v49 = vcombine.low %v19230_v50, %v7687_v7  ;;  %v8244_v24 = vrot.slane %v8228_v30, %v16835_v59  ;;  %v8251_v41 = vrot.slane %v8229_v57, %v16835_v59  ;;  %v10219_v61 = vrot.slane %v10205_v28, %v16835_v59 }
 0x403   :  { %v12213_v25 = vrot.slane %v12199_v26, %v16835_v59  ;;  %v10242_v54 = vrot.slane %v10220_v52, %v16835_v59  ;;  %v10250_v15 = vcombine.high %v19160_v21, %v19160_v21  ;;  %v10260_v8 = vrot.slane %v19234_v10, %v16835_v59 }
 0x404   :  { %v8258_v14 = vrot.slane %v8230_v49, %v16835_v59  ;;  %v8259_v11 = vcombine.low %v8237_v47, %v8244_v24  ;;  %v10221_v20 = vcombine.high %v10219_v61, %v10219_v61  ;;  %v10235_v29 = vrot.slane %v10219_v61, %v16835_v59 }
 0x405   :  { %v12214_v35 = vcombine.low %v12206_v9, %v12213_v25  ;;  %v10252_v43 = vcombine.high %v10242_v54, %v10242_v54  ;;  %v10268_v4 = vcombine.high %v10260_v8, %v10260_v8  ;;  %v19255_v34 = vrot.slane %v10260_v8, %v16835_v59 }
 0x406   :  { %v8260_v53 = vcombine.low %v8251_v41, %v8258_v14  ;;  %v8267_v21 = vrot.slane %v8259_v11, %v16835_v59  ;;  %v10249_v12 = vrot.slane %v10221_v20, %v16835_v59  ;;  %v10251_v63 = vcombine.high %v10235_v29, %v10235_v29  ;;  %v19302_v14 = vld [vmem:[#allocation2 + $0xf1] sm:$0x7f] }
 0x407   :  { %14487 = vmatprep.mubr.f32.mxu0 %v12214_v35  ;;  %v19262_v51 = vrot.slane %v10268_v4, %v16835_v59  ;;  %v10837_v33 = vcombine.low %v10242_v54, %v10250_v15  ;;  %v10838_v2 = vcombine.low %v10252_v43, %v10235_v29  ;;  %v8971_v60 = vcombine.high %v19151_v0, %v19151_v0 }
 0x408   :  { %v8274_v6 = vrot.slane %v8260_v53, %v16835_v59  ;;  %v10839_v55 = vcombine.low %v10249_v12, %v10251_v63  ;;  %v9018_v38 = vcombine.high %v19182_v39, %v19182_v39  ;;  %v9026_v19 = vrot.slane %v19257_v46, %v16835_v59 }
 0x409   :  { %v10840_v31 = vcombine.low %v19255_v34, %v19262_v51  ;;  %v10847_v62 = vrot.slane %v10837_v33, %v16835_v59  ;;  %v10854_v16 = vrot.slane %v10838_v2, %v16835_v59  ;;  %v8985_v13 = vrot.slane %v8971_v60, %v16835_v59 }
 0x40a   :  { %v8275_v0 = vcombine.low %v8267_v21, %v8274_v6  ;;  %v10861_v32 = vrot.slane %v10839_v55, %v16835_v59  ;;  %v9034_v3 = vcombine.high %v9026_v19, %v9026_v19  ;;  %v9042_v39 = vrot.slane %v9026_v19, %v16835_v59 }
 0x40b   :  { %v10868_v22 = vrot.slane %v10840_v31, %v16835_v59  ;;  %v10869_v5 = vcombine.low %v10847_v62, %v10854_v16  ;;  %v8987_v1 = vcombine.high %v8985_v13, %v8985_v13  ;;  %v9001_v18 = vrot.slane %v8985_v13, %v16835_v59 }
 0x40c   :  { %14363 = vmatmul.mubr.f32.gmra.mxu1 %v8275_v0  ;;  %v9056_v23 = vrot.slane %v9034_v3, %v16835_v59  ;;  %v11582_v48 = vcombine.high %v19186_v17, %v19186_v17  ;;  %v11637_v37 = vrot.slane %v19276_v40, %v16835_v59  ;;  %v15735_v44 = vcombine.high %v19210_v42, %v19216_v27 }
 0x40d   :  { %v10870_v36 = vcombine.low %v10861_v32, %v10868_v22  ;;  %v10877_v7 = vrot.slane %v10869_v5, %v16835_v59  ;;  %v9015_v30 = vrot.slane %v8987_v1, %v16835_v59  ;;  %v9017_v57 = vcombine.high %v9001_v18, %v9001_v18 }
 0x40e   :  { %v9605_v28 = vcombine.low %v9018_v38, %v9001_v18  ;;  %v9607_v26 = vcombine.low %v9042_v39, %v9056_v23  ;;  %v15720_v9 = vcombine.high %v9042_v39, %v9056_v23  ;;  %v11596_v47 = vrot.slane %v11582_v48, %v16835_v59  ;;  %v19316_v38 = vld [vmem:[#allocation2 + $0xf0] sm:$0x7f] }
 0x40f   :  { %v10884_v52 = vrot.slane %v10870_v36, %v16835_v59  ;;  %v9606_v17 = vcombine.low %v9015_v30, %v9017_v57  ;;  %v11645_v49 = vcombine.high %v11637_v37, %v11637_v37  ;;  %v11653_v24 = vrot.slane %v11637_v37, %v16835_v59 }
 0x410   :  { %v9615_v41 = vrot.slane %v9605_v28, %v16835_v59  ;;  %v9629_v42 = vrot.slane %v9607_v26, %v16835_v59  ;;  %v9636_v27 = vrot.slane %v15720_v9, %v16835_v59  ;;  %v11598_v61 = vcombine.high %v11596_v47, %v11596_v47 }
 0x411   :  { %v10885_v25 = vcombine.low %v10877_v7, %v10884_v52  ;;  %v9622_v54 = vrot.slane %v9606_v17, %v16835_v59  ;;  %v11612_v15 = vrot.slane %v11596_v47, %v16835_v59  ;;  %v19300_v8 = vrot.slane %v11645_v49, %v16835_v59 }
 0x412   :  { %v9638_v11 = vcombine.low %v9629_v42, %v9636_v27  ;;  %v11626_v20 = vrot.slane %v11598_v61, %v16835_v59  ;;  %v11675_v29 = vcombine.high %v11653_v24, %v11653_v24  ;;  %v12225_v35 = vrot.slane %v15735_v44, %v16835_v59  ;;  %v8428_v42 = vld [vmem:[#allocation2 + $0x102] sm:$0x7f] }
 0x413   :  { %14488 = vmatmul.mubr.f32.gmra.mxu0 %v10885_v25  ;;  %v9637_v43 = vcombine.low %v9615_v41, %v9622_v54  ;;  %v11628_v4 = vcombine.high %v11612_v15, %v11612_v15  ;;  %v7642_v53 = vcombine.high %v19207_v45, %v19207_v45  ;;  %v7689_v21 = vcombine.high %v19230_v50, %v19230_v50 }
 0x414   :  { %v9652_v12 = vrot.slane %v9638_v11, %v16835_v59  ;;  %v12216_v63 = vcombine.low %v11612_v15, %v11626_v20  ;;  %v12218_v33 = vcombine.low %v19300_v8, %v11675_v29  ;;  %v7697_v2 = vrot.slane %v19302_v14, %v16835_v59 }
 0x415   :  { %v9645_v60 = vrot.slane %v9637_v43, %v16835_v59  ;;  %v12217_v6 = vcombine.low %v11628_v4, %v11653_v24  ;;  %v7656_v55 = vrot.slane %v7642_v53, %v16835_v59  ;;  %v10253_v45 = vcombine.high %v19234_v10, %v19234_v10 }
 0x416   :  { %v12232_v50 = vrot.slane %v12216_v63, %v16835_v59  ;;  %v12246_v19 = vrot.slane %v12218_v33, %v16835_v59  ;;  %v7705_v31 = vcombine.high %v7697_v2, %v7697_v2  ;;  %v7713_v62 = vrot.slane %v7697_v2, %v16835_v59 }
 0x417   :  { %v9653_v16 = vcombine.low %v9645_v60, %v9652_v12  ;;  %v12239_v13 = vrot.slane %v12217_v6, %v16835_v59  ;;  %v7658_v0 = vcombine.high %v7656_v55, %v7656_v55  ;;  %v7672_v32 = vrot.slane %v7656_v55, %v16835_v59 }
 0x418   :  { %v12247_v3 = vcombine.low %v12225_v35, %v12232_v50  ;;  %v7727_v39 = vrot.slane %v7705_v31, %v16835_v59  ;;  %v10267_v22 = vrot.slane %v10253_v45, %v16835_v59  ;;  %v10308_v10 = vrot.slane %v19316_v38, %v16835_v59  ;;  %v19361_v50 = vld [vmem:[#allocation2 + $0x101] sm:$0x7f] }
 0x419   :  { %14367 = vmatprep.mubr.f32.mxu1 %v9653_v16  ;;  %v12248_v5 = vcombine.low %v12239_v13, %v12246_v19  ;;  %v7686_v1 = vrot.slane %v7658_v0, %v16835_v59  ;;  %v7688_v18 = vcombine.high %v7672_v32, %v7672_v32  ;;  %v8276_v23 = vcombine.low %v7689_v21, %v7672_v32 }
 0x41a   :  { %v12255_v48 = vrot.slane %v12247_v3, %v16835_v59  ;;  %v8278_v37 = vcombine.low %v7713_v62, %v7727_v39  ;;  %v15712_v44 = vcombine.high %v7713_v62, %v7727_v39  ;;  %v10269_v36 = vcombine.high %v10267_v22, %v10267_v22 }
 0x41b   :  { %v12262_v7 = vrot.slane %v12248_v5, %v16835_v59  ;;  %v8277_v30 = vcombine.low %v7686_v1, %v7688_v18  ;;  %v8286_v57 = vrot.slane %v8276_v23, %v16835_v59  ;;  %v10283_v28 = vrot.slane %v10267_v22, %v16835_v59 }
 0x41c   :  { %v8300_v26 = vrot.slane %v8278_v37, %v16835_v59  ;;  %v8307_v9 = vrot.slane %v15712_v44, %v16835_v59  ;;  %v10297_v47 = vrot.slane %v10269_v36, %v16835_v59  ;;  %v10316_v52 = vcombine.high %v10308_v10, %v10308_v10 }
 0x41d   :  { %v12263_v17 = vcombine.low %v12255_v48, %v12262_v7  ;;  %v8293_v49 = vrot.slane %v8277_v30, %v16835_v59  ;;  %v10299_v24 = vcombine.high %v10283_v28, %v10283_v28  ;;  %v10324_v41 = vrot.slane %v10308_v10, %v16835_v59 }
 0x41e   :  { %v8309_v27 = vcombine.low %v8300_v26, %v8307_v9  ;;  %v19340_v61 = vrot.slane %v10316_v52, %v16835_v59  ;;  %v15727_v25 = vcombine.high %v19255_v34, %v19262_v51  ;;  %v10887_v54 = vcombine.low %v10283_v28, %v10297_v47  ;;  %v7099_v28 = vld [vmem:[#allocation2 + $0x101] sm:$0x7f] }
 0x41f   :  { %14492 = vmatprep.mubr.f32.mxu0 %v12263_v17  ;;  %v8308_v15 = vcombine.low %v8286_v57, %v8293_v49  ;;  %v10346_v11 = vcombine.high %v10324_v41, %v10324_v41  ;;  %v10888_v20 = vcombine.low %v10299_v24, %v10324_v41  ;;  %v9019_v29 = vcombine.high %v19257_v46, %v19257_v46 }
 0x420   :  { %v8323_v35 = vrot.slane %v8309_v27, %v16835_v59  ;;  %v10896_v43 = vrot.slane %v15727_v25, %v16835_v59  ;;  %v10903_v4 = vrot.slane %v10887_v54, %v16835_v59  ;;  %v9067_v53 = vcombine.high %v8428_v42, %v8428_v42  ;;  %v15192_v27 = vld [vmem:[#allocation15 + $0xf8] sm:$0xff] }
 0x421   :  { %v8316_v21 = vrot.slane %v8308_v15, %v16835_v59  ;;  %v10889_v12 = vcombine.low %v19340_v61, %v10346_v11  ;;  %v10910_v34 = vrot.slane %v10888_v20, %v16835_v59  ;;  %v9033_v51 = vrot.slane %v9019_v29, %v16835_v59  ;;  %15193 = vmatprep.subr.mxu1 %v15192_v27 }
 0x422   :  { %v10918_v63 = vcombine.low %v10896_v43, %v10903_v4  ;;  %v9074_v33 = vrot.slane %v8428_v42, %v16835_v59  ;;  %v19355_v46 = vrot.slane %v9067_v53, %v16835_v59  ;;  %v11630_v2 = vcombine.high %v19276_v40, %v19276_v40  ;;  %v19387_v42 = vpop.f32.mrf.mxu1 }
 0x423   :  { %v8324_v60 = vcombine.low %v8316_v21, %v8323_v35  ;;  %v10917_v6 = vrot.slane %v10889_v12, %v16835_v59  ;;  %v9035_v55 = vcombine.high %v9033_v51, %v9033_v51  ;;  %v9049_v45 = vrot.slane %v9033_v51, %v16835_v59 }
 0x424   :  { %v10926_v19 = vrot.slane %v10918_v63, %v16835_v59  ;;  %v9082_v31 = vcombine.high %v9074_v33, %v9074_v33  ;;  %v9090_v62 = vrot.slane %v9074_v33, %v16835_v59  ;;  %v19367_v16 = vrot.slane %v19355_v46, %v16835_v59  ;;  %v19393_v4 = vpop.f32.mrf.mxu1 }
 0x425   :  { %14368 = vmatmul.mubr.f32.gmra.mxu1 %v8324_v60  ;;  %v10919_v13 = vcombine.low %v10910_v34, %v10917_v6  ;;  %v9063_v40 = vrot.slane %v9035_v55, %v16835_v59  ;;  %v9065_v0 = vcombine.high %v9049_v45, %v9049_v45  ;;  %v11644_v32 = vrot.slane %v11630_v2, %v16835_v59 }
 0x426   :  { %v9104_v3 = vrot.slane %v9082_v31, %v16835_v59  ;;  %v9112_v39 = vcombine.high %v9090_v62, %v9090_v62  ;;  %v11677_v22 = vcombine.high %v19300_v8, %v19300_v8  ;;  %v11685_v10 = vrot.slane %v19361_v50, %v16835_v59  ;;  %v19403_v2 = vpop.f32.mrf.mxu1 }
 0x427   :  { %v10933_v5 = vrot.slane %v10919_v13, %v16835_v59  ;;  %v9654_v1 = vcombine.low %v9049_v45, %v9063_v40  ;;  %v9655_v18 = vcombine.low %v9065_v0, %v9090_v62  ;;  %v11646_v23 = vcombine.high %v11644_v32, %v11644_v32  ;;  %v19412_v40 = vld [vmem:[#allocation2 + $0x100] sm:$0x7f] }
 0x428   :  { %v9114_v48 = vcombine.high %v9104_v3, %v9104_v3  ;;  %v9656_v37 = vcombine.low %v9104_v3, %v9112_v39  ;;  %v11660_v44 = vrot.slane %v11644_v32, %v16835_v59  ;;  %v11693_v36 = vcombine.high %v11685_v10, %v11685_v10  ;;  %v19414_v0 = vpop.f32.mrf.mxu1 }
 0x429   :  { %v10934_v7 = vcombine.low %v10926_v19, %v10933_v5  ;;  %v9664_v30 = vrot.slane %v9654_v1, %v16835_v59  ;;  %v9671_v57 = vrot.slane %v9655_v18, %v16835_v59  ;;  %v11674_v8 = vrot.slane %v11646_v23, %v16835_v59 }
 0x42a   :  { %v9657_v26 = vcombine.low %v9114_v48, %v19367_v16  ;;  %v9678_v9 = vrot.slane %v9656_v37, %v16835_v59  ;;  %v11676_v47 = vcombine.high %v11660_v44, %v11660_v44  ;;  %v11701_v52 = vrot.slane %v11685_v10, %v16835_v59  ;;  %v19421_v23 = vpop.f32.mrf.mxu1 }
 0x42b   :  { %14493 = vmatmul.mubr.f32.gmra.mxu0 %v10934_v7  ;;  %v9686_v17 = vcombine.low %v9664_v30, %v9671_v57  ;;  %v11715_v49 = vrot.slane %v11693_v36, %v16835_v59  ;;  %v12264_v24 = vcombine.low %v11677_v22, %v11660_v44  ;;  %v7690_v41 = vcombine.high %v19302_v14, %v19302_v14 }
 0x42c   :  { %v9685_v25 = vrot.slane %v9657_v26, %v16835_v59  ;;  %v12265_v54 = vcombine.low %v11674_v8, %v11676_v47  ;;  %v7738_v15 = vcombine.high %v7099_v28, %v7099_v28  ;;  %v7745_v11 = vrot.slane %v7099_v28, %v16835_v59  ;;  %v19430_v28 = vpop.f32.mrf.mxu1 }
 0x42d   :  { %v9694_v20 = vrot.slane %v9686_v17, %v16835_v59  ;;  %v12266_v29 = vcombine.low %v11701_v52, %v11715_v49  ;;  %v15736_v35 = vcombine.high %v11701_v52, %v11715_v49  ;;  %v12274_v43 = vrot.slane %v12264_v24, %v16835_v59 }
 0x42e   :  { %v9687_v53 = vcombine.low %v9678_v9, %v9685_v25  ;;  %v12281_v14 = vrot.slane %v12265_v54, %v16835_v59  ;;  %v7704_v21 = vrot.slane %v7690_v41, %v16835_v59  ;;  %v19398_v12 = vrot.slane %v7738_v15, %v16835_v59  ;;  %v19439_v24 = vpop.f32.mrf.mxu1 }
 0x42f   :  { %v12288_v34 = vrot.slane %v12266_v29, %v16835_v59  ;;  %v12295_v51 = vrot.slane %v15736_v35, %v16835_v59  ;;  %v7753_v63 = vcombine.high %v7745_v11, %v7745_v11  ;;  %v7761_v33 = vrot.slane %v7745_v11, %v16835_v59 }
 0x430   :  { %v9701_v60 = vrot.slane %v9687_v53, %v16835_v59  ;;  %v12296_v6 = vcombine.low %v12274_v43, %v12281_v14  ;;  %v7706_v55 = vcombine.high %v7704_v21, %v7704_v21  ;;  %v7720_v45 = vrot.slane %v7704_v21, %v16835_v59  ;;  %v19447_v35 = vpop.f32.mrf.mxu1 }
 0x431   :  { %v12297_v19 = vcombine.low %v12288_v34, %v12295_v51  ;;  %v19409_v31 = vrot.slane %v19398_v12, %v16835_v59  ;;  %v7775_v62 = vrot.slane %v7753_v63, %v16835_v59  ;;  %v7783_v13 = vcombine.high %v7761_v33, %v7761_v33  ;;  %v11087_v51 = vld [vmem:[#allocation2 + $0x111] sm:$0x7f] }
 0x432   :  { %v9702_v32 = vcombine.low %v9694_v20, %v9701_v60  ;;  %v12304_v3 = vrot.slane %v12296_v6, %v16835_v59  ;;  %v7734_v39 = vrot.slane %v7706_v55, %v16835_v59  ;;  %v7736_v22 = vcombine.high %v7720_v45, %v7720_v45  ;;  %v19454_v63 = vpop.f32.mrf.mxu1 }
 0x433   :  { %v12311_v10 = vrot.slane %v12297_v19, %v16835_v59  ;;  %v7785_v5 = vcombine.high %v7775_v62, %v7775_v62  ;;  %v8327_v1 = vcombine.low %v7775_v62, %v7783_v13  ;;  %v10301_v18 = vcombine.high %v19316_v38, %v19316_v38 }
 0x434   :  { %14372 = vmatprep.mubr.f32.mxu1 %v9702_v32  ;;  %v8325_v48 = vcombine.low %v7720_v45, %v7734_v39  ;;  %v8326_v37 = vcombine.low %v7736_v22, %v7761_v33  ;;  %v10348_v44 = vcombine.high %v19340_v61, %v19340_v61  ;;  %v10356_v36 = vrot.slane %v19412_v40, %v16835_v59  ;;  %v19460_v32 = vpop.f32.mrf.mxu1 }
 0x435   :  { %v12312_v7 = vcombine.low %v12304_v3, %v12311_v10  ;;  %v8328_v30 = vcombine.low %v7785_v5, %v19409_v31  ;;  %v8349_v57 = vrot.slane %v8327_v1, %v16835_v59  ;;  %v10315_v8 = vrot.slane %v10301_v18, %v16835_v59 }
 0x436   :  { %v8335_v38 = vrot.slane %v8325_v48, %v16835_v59  ;;  %v8342_v26 = vrot.slane %v8326_v37, %v16835_v59  ;;  %v10364_v9 = vcombine.high %v10356_v36, %v10356_v36  ;;  %v10372_v47 = vrot.slane %v10356_v36, %v16835_v59  ;;  %v19468_v37 = vpop.f32.mrf.mxu1 }
 0x437   :  { %14497 = vmatprep.mubr.f32.mxu0 %v12312_v7  ;;  %v8356_v61 = vrot.slane %v8328_v30, %v16835_v59  ;;  %v10317_v52 = vcombine.high %v10315_v8, %v10315_v8  ;;  %v10331_v17 = vrot.slane %v10315_v8, %v16835_v59  ;;  %v9083_v49 = vcombine.high %v19355_v46, %v19355_v46 }
 0x438   :  { %v8357_v41 = vcombine.low %v8335_v38, %v8342_v26  ;;  %v10386_v27 = vrot.slane %v10364_v9, %v16835_v59  ;;  %v9113_v25 = vcombine.high %v19367_v16, %v19367_v16  ;;  %v11678_v54 = vcombine.high %v19361_v50, %v19361_v50  ;;  %v19477_v9 = vpop.f32.mrf.mxu1 }
 0x439   :  { %v8358_v15 = vcombine.low %v8349_v57, %v8356_v61  ;;  %v10345_v11 = vrot.slane %v10317_v52, %v16835_v59  ;;  %v10347_v20 = vcombine.high %v10331_v17, %v10331_v17  ;;  %v10935_v29 = vcombine.low %v10348_v44, %v10331_v17  ;;  %v9758_v52 = vld [vmem:[#allocation2 + $0x110] sm:$0x7f] }
 0x43a   :  { %v8365_v46 = vrot.slane %v8357_v41, %v16835_v59  ;;  %v10937_v43 = vcombine.low %v10372_v47, %v10386_v27  ;;  %v15728_v53 = vcombine.high %v10372_v47, %v10386_v27  ;;  %v9111_v14 = vrot.slane %v9083_v49, %v16835_v59 }
 0x43b   :  { %v8372_v21 = vrot.slane %v8358_v15, %v16835_v59  ;;  %v10936_v34 = vcombine.low %v10345_v11, %v10347_v20  ;;  %v10945_v16 = vrot.slane %v10935_v29, %v16835_v59  ;;  %v11692_v50 = vrot.slane %v11678_v54, %v16835_v59  ;;  %v19483_v54 = vpop.f32.mrf.mxu1 }
 0x43c   :  { %v10959_v33 = vrot.slane %v10937_v43, %v16835_v59  ;;  %v10966_v60 = vrot.slane %v15728_v53, %v16835_v59  ;;  %v9703_v6 = vcombine.low %v9111_v14, %v9113_v25  ;;  %v11726_v55 = vcombine.high %v11087_v51, %v11087_v51 }
 0x43d   :  { %v8373_v45 = vcombine.low %v8365_v46, %v8372_v21  ;;  %v10952_v19 = vrot.slane %v10936_v34, %v16835_v59  ;;  %v11694_v62 = vcombine.high %v11692_v50, %v11692_v50  ;;  %v11708_v13 = vrot.slane %v11692_v50, %v16835_v59  ;;  %v19490_v53 = vpop.f32.mrf.mxu1 }
 0x43e   :  { %v10968_v3 = vcombine.low %v10959_v33, %v10966_v60  ;;  %v9710_v39 = vrot.slane %v9703_v6, %v16835_v59  ;;  %v11733_v22 = vrot.slane %v11087_v51, %v16835_v59  ;;  %v11740_v10 = vrot.slane %v11726_v55, %v16835_v59 }
 0x43f   :  { %14373 = vmatmul.mubr.f32.gmra.mxu1 %v8373_v45  ;;  %v10967_v5 = vcombine.low %v10945_v16, %v10952_v19  ;;  %v11722_v1 = vrot.slane %v11694_v62, %v16835_v59  ;;  %v11724_v18 = vcombine.high %v11708_v13, %v11708_v13  ;;  %v7754_v48 = vcombine.high %v19398_v12, %v19398_v12  ;;  %v19496_v55 = vpop.f32.mrf.mxu1 }
 0x440   :  { %v10982_v44 = vrot.slane %v10968_v3, %v16835_v59  ;;  %15721 = vst.sshfl [vmem:[#allocation3 + $0x388] sm:$0x5 pattern:$0x73625140] %v9710_v39  ;;  %v11741_v36 = vcombine.high %v11733_v22, %v11733_v22  ;;  %v11749_v7 = vrot.slane %v11733_v22, %v16835_v59  ;;  %v11756_v30 = vrot.slane %v11740_v10, %v16835_v59 }
 0x441   :  { %v10975_v57 = vrot.slane %v10967_v5, %v16835_v59  ;;  %v12313_v8 = vcombine.low %v11708_v13, %v11722_v1  ;;  %v7782_v38 = vrot.slane %v7754_v48, %v16835_v59  ;;  %v7784_v26 = vcombine.high %v19409_v31, %v19409_v31  ;;  %v12403_v5 = vld [vmem:[#allocation2 + $0x22] sm:$0x7f]  ;;  %v19503_v1 = vpop.f32.mrf.mxu1 }
 0x442   :  { %v11763_v12 = vrot.slane %v11741_v36, %v16835_v59  ;;  %v11771_v47 = vcombine.high %v11749_v7, %v11749_v7  ;;  %v12314_v61 = vcombine.low %v11724_v18, %v11749_v7  ;;  %v10349_v17 = vcombine.high %v19412_v40, %v19412_v40 }
 0x443   :  { %v10983_v49 = vcombine.low %v10975_v57, %v10982_v44  ;;  %v12323_v41 = vrot.slane %v12313_v8, %v16835_v59  ;;  %v8374_v27 = vcombine.low %v7782_v38, %v7784_v26  ;;  %v10397_v25 = vcombine.high %v9758_v52, %v9758_v52  ;;  %v19505_v26 = vpop.f32.mrf.mxu1 }
 0x444   :  { %v11773_v15 = vcombine.high %v11763_v12, %v11763_v12  ;;  %v12315_v11 = vcombine.low %v11763_v12, %v11771_v47  ;;  %v12330_v31 = vrot.slane %v12314_v61, %v16835_v59  ;;  %v10363_v20 = vrot.slane %v10349_v17, %v16835_v59 }
 0x445   :  { %14498 = vmatmul.mubr.f32.gmra.mxu0 %v10983_v49  ;;  %v8381_v29 = vrot.slane %v8374_v27, %v16835_v59  ;;  %v10404_v46 = vrot.slane %v9758_v52, %v16835_v59  ;;  %v10411_v40 = vrot.slane %v10397_v25, %v16835_v59  ;;  %v11742_v43 = vcombine.high %v11740_v10, %v11740_v10  ;;  %v19513_v25 = vpop.f32.mrf.mxu1 }
 0x446   :  { %v12316_v14 = vcombine.low %v11773_v15, %v11756_v30  ;;  %v12337_v21 = vrot.slane %v12315_v11, %v16835_v59  ;;  %v12345_v34 = vcombine.low %v12323_v41, %v12330_v31  ;;  %v10365_v16 = vcombine.high %v10363_v20, %v10363_v20  ;;  %20540 = vst [vmem:[#allocation25_spill] sm:$0xff] %v19513_v25 }
 0x447   :  { %v13845_v51 = vld [vmem:[#allocation3 + $0x388] sm:$0x3]  ;;  %15713 = vst.sshfl [vmem:[#allocation3 + $0x380] sm:$0x5 pattern:$0x73625140] %v8381_v29  ;;  %v10379_v50 = vrot.slane %v10363_v20, %v16835_v59  ;;  %v10412_v33 = vcombine.high %v10404_v46, %v10404_v46  ;;  %v10420_v60 = vrot.slane %v10404_v46, %v16835_v59  ;;  %v10427_v6 = vrot.slane %v10411_v40, %v16835_v59 }
 0x448   :  { %14377 = vmatprep.mubr.f32.mxu1 %v13845_v51  ;;  %v12344_v45 = vrot.slane %v12316_v14, %v16835_v59  ;;  %v12353_v19 = vrot.slane %v12345_v34, %v16835_v59  ;;  %v10393_v62 = vrot.slane %v10365_v16, %v16835_v59  ;;  %v11770_v13 = vrot.slane %v11742_v43, %v16835_v59  ;;  %v19521_v34 = vld [vmem:[#allocation2] sm:$0xff] }
 0x449   :  { %v10395_v3 = vcombine.high %v10379_v50, %v10379_v50  ;;  %v10434_v39 = vrot.slane %v10412_v33, %v16835_v59  ;;  %v10442_v22 = vcombine.high %v10420_v60, %v10420_v60  ;;  %v11772_v10 = vcombine.high %v11756_v30, %v11756_v30  ;;  %v12404_v30 = vld [vmem:[#allocation2 + $0x32] sm:$0x7f]  ;;  %v12405_v33 = vld [vmem:[#allocation2 + $0x42] sm:$0x7f] }
 0x44a   :  { %v12346_v18 = vcombine.low %v12337_v21, %v12344_v45  ;;  %v10984_v48 = vcombine.low %v10379_v50, %v10393_v62  ;;  %v10413_v44 = vcombine.high %v10411_v40, %v10411_v40  ;;  %v10443_v36 = vcombine.high %v10427_v6, %v10427_v6  ;;  %v19519_v21 = vpop.f32.mrf.mxu1 }
 0x44b   :  { %v10444_v7 = vcombine.high %v10434_v39, %v10434_v39  ;;  %v10985_v57 = vcombine.low %v10395_v3, %v10420_v60  ;;  %v10986_v8 = vcombine.low %v10434_v39, %v10442_v22  ;;  %v12362_v38 = vcombine.low %v11770_v13, %v11772_v10  ;;  %20541 = vst [vmem:[#allocation26_spill] sm:$0xff] %v19519_v21 }
 0x44c   :  { %v12360_v12 = vrot.slane %v12346_v18, %v16835_v59  ;;  %v10994_v47 = vrot.slane %v10984_v48, %v16835_v59  ;;  %v10441_v61 = vrot.slane %v10413_v44, %v16835_v59  ;;  %v12431_v52 = vcombine.high %v12403_v5, %v12403_v5  ;;  %v19529_v62 = vpop.f32.mrf.mxu1 }
 0x44d   :  { %v10987_v17 = vcombine.low %v10444_v7, %v10427_v6  ;;  %v11001_v49 = vrot.slane %v10985_v57, %v16835_v59  ;;  %v11008_v41 = vrot.slane %v10986_v8, %v16835_v59  ;;  %v12369_v27 = vrot.slane %v12362_v38, %v16835_v59  ;;  %20542 = vst [vmem:[#allocation27_spill] sm:$0xff] %v19529_v62 }
 0x44e   :  { %v12361_v15 = vcombine.low %v12353_v19, %v12360_v12  ;;  %v13844_v11 = vld [vmem:[#allocation3 + $0x380] sm:$0x3]  ;;  %v11033_v31 = vcombine.low %v10441_v61, %v10443_v36  ;;  %v12438_v20 = vrot.slane %v12403_v5, %v16835_v59  ;;  %v12445_v29 = vrot.slane %v12431_v52, %v16835_v59  ;;  %v19539_v61 = vpop.f32.mrf.mxu1 }
 0x44f   :  { %14378 = vmatmul.mubr.f32.gmra.mxu1 %v13844_v11  ;;  %v11015_v46 = vrot.slane %v10987_v17, %v16835_v59  ;;  %v11016_v40 = vcombine.low %v10994_v47, %v11001_v49  ;;  %15737 = vst.sshfl [vmem:[#allocation3 + $0x398] sm:$0x5 pattern:$0x73625140] %v12369_v27  ;;  %v12486_v43 = vrot.slane %v12404_v30, %v16835_v59  ;;  %20543 = vst [vmem:[#allocation28_spill] sm:$0xff] %v19539_v61 }
 0x450   :  { %v12479_v14 = vcombine.high %v12404_v30, %v12404_v30  ;;  %14502 = vmatprep.mubr.f32.mxu0 %v12361_v15  ;;  %16191 = vmatprep.mubr.msk.f32.mxu1 %vm16578_vm0, %v19521_v34  ;;  %v11040_v16 = vrot.slane %v11033_v31, %v16835_v59  ;;  %v12446_v51 = vcombine.high %v12438_v20, %v12438_v20 }
 0x451   :  { %v12447_v50 = vcombine.high %v12445_v29, %v12445_v29  ;;  %v11017_v60 = vcombine.low %v11008_v41, %v11015_v46  ;;  %v11024_v6 = vrot.slane %v11016_v40, %v16835_v59  ;;  %v12454_v45 = vrot.slane %v12438_v20, %v16835_v59  ;;  %v12406_v20 = vld [vmem:[#allocation2 + $0x52] sm:$0x7f] }
 0x452   :  { %v12461_v19 = vrot.slane %v12445_v29, %v16835_v59  ;;  %15729 = vst.sshfl [vmem:[#allocation3 + $0x390] sm:$0x5 pattern:$0x73625140] %v11040_v16  ;;  %v12468_v13 = vrot.slane %v12446_v51, %v16835_v59  ;;  %v12502_v39 = vrot.slane %v12486_v43, %v16835_v59  ;;  %v12493_v22 = vrot.slane %v12479_v14, %v16835_v59 }
 0x453   :  { %v12475_v3 = vrot.slane %v12447_v50, %v16835_v59  ;;  %v11031_v10 = vrot.slane %v11017_v60, %v16835_v59  ;;  %v12494_v18 = vcombine.high %v12486_v43, %v12486_v43  ;;  %v12534_v48 = vrot.slane %v12405_v33, %v16835_v59 }
 0x454   :  { %v12477_v5 = vcombine.high %v12461_v19, %v12461_v19  ;;  %v13103_v44 = vcombine.low %v12454_v45, %v12468_v13  ;;  %v15738_v36 = vcombine.high %v12454_v45, %v12468_v13  ;;  %v12495_v57 = vcombine.high %v12493_v22, %v12493_v22 }
 0x455   :  { %v13105_v7 = vcombine.low %v12461_v19, %v12475_v3  ;;  %v11032_v8 = vcombine.low %v11024_v6, %v11031_v10  ;;  %v12509_v12 = vrot.slane %v12493_v22, %v16835_v59  ;;  %v12516_v47 = vrot.slane %v12494_v18, %v16835_v59  ;;  %v19547_v6 = vpop.f32.mrf.mxu1 }
 0x456   :  { %v13106_v38 = vcombine.low %v12477_v5, %v12502_v39  ;;  %v13847_v30 = vld [vmem:[#allocation3 + $0x398] sm:$0x3]  ;;  %v13113_v52 = vrot.slane %v13103_v44, %v16835_v59  ;;  %v13120_v17 = vrot.slane %v15738_v36, %v16835_v59  ;;  %v12523_v41 = vrot.slane %v12495_v57, %v16835_v59  ;;  %20544 = vst [vmem:[#allocation29_spill] sm:$0xff] %v19547_v6 }
 0x457   :  { %v13127_v49 = vrot.slane %v13105_v7, %v16835_v59  ;;  %14503 = vmatmul.mubr.f32.gmra.mxu0 %v11032_v8  ;;  %v12524_v15 = vcombine.high %v12502_v39, %v12502_v39  ;;  %v12525_v11 = vcombine.high %v12509_v12, %v12509_v12  ;;  %v12526_v31 = vcombine.high %v12516_v47, %v12516_v47 }
 0x458   :  { %v13134_v27 = vrot.slane %v13106_v38, %v16835_v59  ;;  %14507 = vmatprep.mubr.f32.mxu0 %v13847_v30  ;;  %v13135_v29 = vcombine.low %v13113_v52, %v13120_v17  ;;  %v12542_v46 = vcombine.high %v12534_v48, %v12534_v48  ;;  %v12550_v40 = vrot.slane %v12534_v48, %v16835_v59  ;;  %v19560_v38 = vpop.f32.mrf.mxu1  ;;  %v12407_v17 = vld [vmem:[#allocation2 + $0x62] sm:$0x7f] }
 0x459   :  { %v12527_v43 = vcombine.high %v12405_v33, %v12405_v33  ;;  %v13846_v14 = vld [vmem:[#allocation3 + $0x390] sm:$0x3]  ;;  %v13152_v51 = vcombine.low %v12516_v47, %v12524_v15  ;;  %v13153_v50 = vcombine.low %v12526_v31, %v12509_v12  ;;  %v13154_v60 = vcombine.low %v12523_v41, %v12525_v11  ;;  %20545 = vst [vmem:[#allocation30_spill] sm:$0xff] %v19560_v38  ;;  %v19567_v31 = vld [vmem:[#allocation2 + $0x72] sm:$0x7f] }
 0x45a   :  { %v13136_v16 = vcombine.low %v13127_v49, %v13134_v27  ;;  %v13143_v45 = vrot.slane %v13135_v29, %v16835_v59  ;;  %v12564_v19 = vrot.slane %v12542_v46, %v16835_v59  ;;  %v12582_v3 = vrot.slane %v12406_v20, %v16835_v59  ;;  %v15191_v49 = vld [vmem:[#allocation15 + $0xf0] sm:$0xff]  ;;  %v15190_v29 = vld [vmem:[#allocation15 + $0xe8] sm:$0xff] }
 0x45b   :  { %v12541_v13 = vrot.slane %v12527_v43, %v16835_v59  ;;  %14508 = vmatmul.mubr.f32.gmra.mxu0 %v13846_v14  ;;  %v13162_v33 = vrot.slane %v13152_v51, %v16835_v59  ;;  %v13169_v22 = vrot.slane %v13153_v50, %v16835_v59  ;;  %v13176_v10 = vrot.slane %v13154_v60, %v16835_v59 }
 0x45c   :  { %v13150_v39 = vrot.slane %v13136_v16, %v16835_v59  ;;  %v13155_v5 = vcombine.low %v12550_v40, %v12564_v19  ;;  %v12590_v44 = vcombine.high %v12582_v3, %v12582_v3  ;;  %14852 = vmatprep.mubr.f32.mxu0 %v19521_v34  ;;  %v12598_v57 = vrot.slane %v12582_v3, %v16835_v59  ;;  %v15189_v16 = vld [vmem:[#allocation15 + $0xe0] sm:$0xff] }
 0x45d   :  { %v12543_v18 = vcombine.high %v12541_v13, %v12541_v13  ;;  %v12557_v48 = vrot.slane %v12541_v13, %v16835_v59  ;;  %v13184_v7 = vcombine.low %v13162_v33, %v13169_v22  ;;  %v15739_v8 = vcombine.high %v12550_v40, %v12564_v19  ;;  %v19573_v19 = vpop.f32.mrf.mxu1  ;;  %v15187_v22 = vld [vmem:[#allocation15 + $0xd0] sm:$0xff] }
 0x45e   :  { %v13151_v36 = vcombine.low %v13143_v45, %v13150_v39  ;;  %v13183_v12 = vrot.slane %v13155_v5, %v16835_v59  ;;  %v12612_v52 = vrot.slane %v12590_v44, %v16835_v59  ;;  %v12620_v27 = vcombine.high %v12598_v57, %v12598_v57  ;;  %20546 = vst [vmem:[#allocation31_spill] sm:$0xff] %v19573_v19 }
 0x45f   :  { %v12571_v47 = vrot.slane %v12543_v18, %v16835_v59  ;;  %v12573_v30 = vcombine.high %v12557_v48, %v12557_v48  ;;  %v13192_v41 = vrot.slane %v13184_v7, %v16835_v59  ;;  %v13211_v15 = vrot.slane %v15739_v8, %v16835_v59 }
 0x460   :  { %16192 = vmatmul.mubr.f32.vlgmr.msra.gmra.mxu1 %v13151_v36  ;;  %v12575_v11 = vcombine.high %v12406_v20, %v12406_v20  ;;  %v13185_v46 = vcombine.low %v13176_v10, %v13183_v12  ;;  %v12622_v14 = vcombine.high %v12612_v52, %v12612_v52  ;;  %v13204_v51 = vcombine.low %v12612_v52, %v12620_v27  ;;  %v15188_v20 = vld [vmem:[#allocation15 + $0xd8] sm:$0xff]  ;;  %v19586_v52 = vpop.f32.mrf.mxu1 }
 0x461   :  { %16194 = vmatprep.mubr.msk.f32.mxu1 %vm16578_vm0, %v19521_v34  ;;  %v13202_v40 = vcombine.low %v12557_v48, %v12571_v47  ;;  %v13203_v43 = vcombine.low %v12573_v30, %v12598_v57  ;;  %v12630_v60 = vrot.slane %v12407_v17, %v16835_v59  ;;  %v12623_v45 = vcombine.high %v12407_v17, %v12407_v17  ;;  %v15186_v17 = vld [vmem:[#allocation15 + $0xc8] sm:$0xff] }
 0x462   :  { %v12589_v50 = vrot.slane %v12575_v11, %v16835_v59  ;;  %15194 = vmatpush1.msra.mxu1 %v15191_v49  ;;  %v13199_v13 = vrot.slane %v13185_v46, %v16835_v59  ;;  %v12671_v33 = vcombine.high %v19567_v31, %v19567_v31  ;;  %v13232_v10 = vrot.slane %v13204_v51, %v16835_v59  ;;  %v15185_v11 = vld [vmem:[#allocation15 + $0xc0] sm:$0xff] }
 0x463   :  { %v13218_v3 = vrot.slane %v13202_v40, %v16835_v59  ;;  %v13225_v39 = vrot.slane %v13203_v43, %v16835_v59  ;;  %15195 = vmatprep.subr.mxu1 %v15190_v29  ;;  %v12638_v48 = vcombine.high %v12630_v60, %v12630_v60  ;;  %v12646_v7 = vrot.slane %v12630_v60, %v16835_v59 }
 0x464   :  { %v12591_v5 = vcombine.high %v12589_v50, %v12589_v50  ;;  %v12605_v18 = vrot.slane %v12589_v50, %v16835_v59  ;;  %15196 = vmatpush1.msra.mxu1 %v15189_v16  ;;  %v13200_v44 = vcombine.low %v13192_v41, %v13199_v13  ;;  %v12637_v57 = vrot.slane %v12623_v45, %v16835_v59  ;;  %v15184_v16 = vld [vmem:[#allocation15 + $0xb8] sm:$0xff]  ;;  %v12409_v45 = vld [vmem:[#allocation2 + $0x82] sm:$0x7f] }
 0x465   :  { %v13233_v36 = vcombine.low %v13211_v15, %v13218_v3  ;;  %15197 = vmatprep.subr.mxu1 %v15188_v20  ;;  %v13234_v8 = vcombine.low %v13225_v39, %v13232_v10  ;;  %v12660_v30 = vrot.slane %v12638_v48, %v16835_v59  ;;  %20547 = vst [vmem:[#allocation32_spill] sm:$0xff] %v19586_v52 }
 0x466   :  { %v12619_v12 = vrot.slane %v12591_v5, %v16835_v59  ;;  %v12621_v47 = vcombine.high %v12605_v18, %v12605_v18  ;;  %15198 = vmatpush1.msra.mxu1 %v15187_v22  ;;  %v13250_v41 = vcombine.low %v12622_v14, %v12605_v18  ;;  %v12639_v27 = vcombine.high %v12637_v57, %v12637_v57  ;;  %v19600_v22 = vpop.f32.mrf.mxu1 }
 0x467   :  { %16195 = vmatmul.mubr.f32.gmra.mxu1 %v13200_v44  ;;  %v13241_v49 = vrot.slane %v13233_v36, %v16835_v59  ;;  %v12653_v15 = vrot.slane %v12637_v57, %v16835_v59  ;;  %v13248_v29 = vrot.slane %v13234_v8, %v16835_v59  ;;  %v13252_v40 = vcombine.low %v12646_v7, %v12660_v30  ;;  %v15182_v8 = vld [vmem:[#allocation15 + $0xa8] sm:$0xff] }
 0x468   :  { %16197 = vmatprep.mubr.msk.f32.mxu1 %vm16578_vm0, %v19521_v34  ;;  %v13251_v46 = vcombine.low %v12619_v12, %v12621_v47  ;;  %v15740_v43 = vcombine.high %v12646_v7, %v12660_v30  ;;  %v13260_v51 = vrot.slane %v13250_v41, %v16835_v59  ;;  %v12667_v50 = vrot.slane %v12639_v27, %v16835_v59 }
 0x469   :  { %v12669_v60 = vcombine.high %v12653_v15, %v12653_v15  ;;  %v12678_v14 = vrot.slane %v19567_v31, %v16835_v59  ;;  %15199 = vmatprep.subr.mxu1 %v15186_v17  ;;  %v13249_v20 = vcombine.low %v13241_v49, %v13248_v29  ;;  %v13274_v3 = vrot.slane %v13252_v40, %v16835_v59  ;;  %v15183_v31 = vld [vmem:[#allocation15 + $0xb0] sm:$0xff]  ;;  %v15181_v17 = vld [vmem:[#allocation15 + $0xa0] sm:$0xff]  ;;  %v15180_v29 = vld [vmem:[#allocation15 + $0x98] sm:$0xff] }
 0x46a   :  { %v13267_v13 = vrot.slane %v13251_v46, %v16835_v59  ;;  %v13281_v39 = vrot.slane %v15740_v43, %v16835_v59  ;;  %20548 = vst [vmem:[#allocation33_spill] sm:$0xff] %v19600_v22  ;;  %15200 = vmatpush1.msra.mxu1 %v15185_v11  ;;  %v12685_v10 = vrot.slane %v12671_v33, %v16835_v59  ;;  %v19612_v11 = vpop.f32.mrf.mxu1 }
 0x46b   :  { %v12686_v5 = vcombine.high %v12678_v14, %v12678_v14  ;;  %v12694_v18 = vrot.slane %v12678_v14, %v16835_v59  ;;  %v13299_v48 = vcombine.low %v12653_v15, %v12667_v50  ;;  %15201 = vmatprep.subr.mxu1 %v15184_v16  ;;  %16198 = vmatmul.mubr.f32.gmra.mxu1 %v13249_v20 }
 0x46c   :  { %v13282_v44 = vcombine.low %v13260_v51, %v13267_v13  ;;  %v13283_v36 = vcombine.low %v13274_v3, %v13281_v39  ;;  %v12719_v7 = vcombine.high %v12409_v45, %v12409_v45  ;;  %v12726_v57 = vrot.slane %v12409_v45, %v16835_v59  ;;  %16200 = vmatprep.mubr.msk.f32.mxu1 %vm16578_vm0, %v19521_v34  ;;  %v12410_v45 = vld [vmem:[#allocation2 + $0xb2] sm:$0x7f] }
 0x46d   :  { %v12701_v12 = vrot.slane %v12685_v10, %v16835_v59  ;;  %v12708_v33 = vrot.slane %v12686_v5, %v16835_v59  ;;  %v12716_v47 = vcombine.high %v12694_v18, %v12694_v18  ;;  %v13300_v30 = vcombine.low %v12669_v60, %v12694_v18  ;;  %15202 = vmatpush1.msra.mxu1 %v15183_v31 }
 0x46e   :  { %v13290_v49 = vrot.slane %v13282_v44, %v16835_v59  ;;  %v13297_v41 = vrot.slane %v13283_v36, %v16835_v59  ;;  %v13309_v27 = vrot.slane %v13299_v48, %v16835_v59  ;;  %v12687_v15 = vcombine.high %v12685_v10, %v12685_v10  ;;  %15203 = vmatprep.subr.mxu1 %v15182_v8  ;;  %v15179_v10 = vld [vmem:[#allocation15 + $0x90] sm:$0xff]  ;;  %v19621_v44 = vpop.f32.mrf.mxu1  ;;  %v15178_v36 = vld [vmem:[#allocation15 + $0x88] sm:$0xff] }
 0x46f   :  { %v12718_v46 = vcombine.high %v12708_v33, %v12708_v33  ;;  %v13301_v40 = vcombine.low %v12708_v33, %v12716_v47  ;;  %v13316_v43 = vrot.slane %v13300_v30, %v16835_v59  ;;  %v12717_v16 = vcombine.high %v12701_v12, %v12701_v12  ;;  %15204 = vmatpush1.msra.mxu1 %v15181_v17  ;;  %v15177_v33 = vld [vmem:[#allocation15 + $0x80] sm:$0xff] }
 0x470   :  { %v13298_v51 = vcombine.low %v13290_v49, %v13297_v41  ;;  %v12715_v50 = vrot.slane %v12687_v15, %v16835_v59  ;;  %v12733_v60 = vrot.slane %v12719_v7, %v16835_v59  ;;  %v12734_v14 = vcombine.high %v12726_v57, %v12726_v57  ;;  %15205 = vmatprep.subr.mxu1 %v15180_v29  ;;  %v15176_v41 = vld [vmem:[#allocation15 + $0x78] sm:$0xff] }
 0x471   :  { %v13302_v20 = vcombine.low %v12718_v46, %v12701_v12  ;;  %v13323_v13 = vrot.slane %v13301_v40, %v16835_v59  ;;  %v13331_v3 = vcombine.low %v13309_v27, %v13316_v43  ;;  %v12742_v39 = vrot.slane %v12726_v57, %v16835_v59  ;;  %15206 = vmatpush1.msra.mxu1 %v15179_v10  ;;  %v15175_v40 = vld [vmem:[#allocation15 + $0x70] sm:$0xff] }
 0x472   :  { %16201 = vmatmul.mubr.f32.gmra.mxu1 %v13298_v51  ;;  %v12735_v5 = vcombine.high %v12733_v60, %v12733_v60  ;;  %v12749_v18 = vrot.slane %v12733_v60, %v16835_v59  ;;  %v12756_v48 = vrot.slane %v12734_v14, %v16835_v59  ;;  %v13348_v31 = vcombine.low %v12715_v50, %v12717_v16  ;;  %v19634_v60 = vpop.f32.mrf.mxu1  ;;  %v15174_v14 = vld [vmem:[#allocation15 + $0x68] sm:$0xff] }
 0x473   :  { %16203 = vmatprep.mubr.msk.f32.mxu1 %vm16578_vm0, %v19521_v34  ;;  %v13330_v7 = vrot.slane %v13302_v20, %v16835_v59  ;;  %v13339_v8 = vrot.slane %v13331_v3, %v16835_v59  ;;  %v12767_v57 = vcombine.high %v12410_v45, %v12410_v45  ;;  %v12774_v12 = vrot.slane %v12410_v45, %v16835_v59 }
 0x474   :  { %v12763_v47 = vrot.slane %v12735_v5, %v16835_v59  ;;  %v13349_v30 = vcombine.low %v12742_v39, %v12756_v48  ;;  %v15741_v17 = vcombine.high %v12742_v39, %v12756_v48  ;;  %v13358_v49 = vrot.slane %v13348_v31, %v16835_v59  ;;  %15207 = vmatprep.subr.mxu1 %v15178_v36  ;;  %v15173_v39 = vld [vmem:[#allocation15 + $0x60] sm:$0xff]  ;;  %v12411_v31 = vld [vmem:[#allocation2 + $0xc2] sm:$0x7f] }
 0x475   :  { %v13332_v27 = vcombine.low %v13323_v13, %v13330_v7  ;;  %v12765_v15 = vcombine.high %v12749_v18, %v12749_v18  ;;  %v12781_v29 = vrot.slane %v12767_v57, %v16835_v59  ;;  %v12782_v46 = vcombine.high %v12774_v12, %v12774_v12  ;;  %15208 = vmatpush1.msra.mxu1 %v15177_v33  ;;  %v12412_v33 = vld [vmem:[#allocation2 + $0xd2] sm:$0x7f] }
 0x476   :  { %v13351_v43 = vcombine.low %v12749_v18, %v12763_v47  ;;  %v13365_v16 = vrot.slane %v13349_v30, %v16835_v59  ;;  %v13372_v51 = vrot.slane %v15741_v17, %v16835_v59  ;;  %v12790_v50 = vrot.slane %v12774_v12, %v16835_v59  ;;  %15209 = vmatprep.subr.mxu1 %v15176_v41  ;;  %v19641_v47 = vpop.f32.mrf.mxu0 }
 0x477   :  { %v13346_v45 = vrot.slane %v13332_v27, %v16835_v59  ;;  %v12783_v20 = vcombine.high %v12781_v29, %v12781_v29  ;;  %v12797_v13 = vrot.slane %v12781_v29, %v16835_v59  ;;  %v12804_v3 = vrot.slane %v12782_v46, %v16835_v59  ;;  %15210 = vmatpush1.msra.mxu1 %v15175_v40 }
 0x478   :  { %v13379_v10 = vrot.slane %v13351_v43, %v16835_v59  ;;  %v13380_v5 = vcombine.low %v13358_v49, %v13365_v16  ;;  %v12812_v18 = vcombine.high %v12790_v50, %v12790_v50  ;;  %v13397_v48 = vcombine.low %v12765_v15, %v12790_v50  ;;  %15211 = vmatprep.subr.mxu1 %v15174_v14  ;;  %v19645_v49 = vpop.f32.mrf.mxu1  ;;  %v15172_v15 = vld [vmem:[#allocation15 + $0x58] sm:$0xff]  ;;  %v15171_v43 = vld [vmem:[#allocation15 + $0x50] sm:$0xff] }
 0x479   :  { %v13347_v36 = vcombine.low %v13339_v8, %v13346_v45  ;;  %v12811_v7 = vrot.slane %v12783_v20, %v16835_v59  ;;  %v12813_v57 = vcombine.high %v12797_v13, %v12797_v13  ;;  %v12814_v12 = vcombine.high %v12804_v3, %v12804_v3  ;;  %15212 = vmatpush1.msra.mxu1 %v15173_v39  ;;  %v15170_v45 = vld [vmem:[#allocation15 + $0x48] sm:$0xff] }
 0x47a   :  { %v13381_v30 = vcombine.low %v13372_v51, %v13379_v10  ;;  %v13388_v17 = vrot.slane %v13380_v5, %v16835_v59  ;;  %v13398_v41 = vcombine.low %v12804_v3, %v12812_v18  ;;  %v13407_v27 = vrot.slane %v13397_v48, %v16835_v59  ;;  %v19656_v10 = vpop.f32.mrf.mxu0  ;;  %15213 = vmatprep.subr.mxu1 %v15172_v15 }
 0x47b   :  { %16204 = vmatmul.mubr.f32.gmra.mxu1 %v13347_v36  ;;  %v13399_v8 = vcombine.low %v12814_v12, %v12797_v13  ;;  %v13400_v29 = vcombine.low %v12811_v7, %v12813_v57  ;;  %v12815_v46 = vcombine.high %v12411_v31, %v12411_v31  ;;  %v12822_v40 = vrot.slane %v12411_v31, %v16835_v59  ;;  %v19660_v36 = vpop.f32.mrf.mxu1 }
 0x47c   :  { %16206 = vmatprep.mubr.msk.f32.mxu1 %vm16578_vm0, %v19521_v34  ;;  %v13395_v16 = vrot.slane %v13381_v30, %v16835_v59  ;;  %v13414_v51 = vrot.slane %v13398_v41, %v16835_v59  ;;  %v12870_v50 = vrot.slane %v12412_v33, %v16835_v59  ;;  %v12863_v14 = vcombine.high %v12412_v33, %v12412_v33  ;;  %v15169_v30 = vld [vmem:[#allocation15 + $0x40] sm:$0xff] }
 0x47d   :  { %v13421_v20 = vrot.slane %v13399_v8, %v16835_v59  ;;  %v13428_v13 = vrot.slane %v13400_v29, %v16835_v59  ;;  %v12829_v3 = vrot.slane %v12815_v46, %v16835_v59  ;;  %v12830_v39 = vcombine.high %v12822_v40, %v12822_v40  ;;  %15214 = vmatpush1.msra.mxu1 %v15171_v43  ;;  %v15168_v8 = vld [vmem:[#allocation15 + $0x38] sm:$0xff] }
 0x47e   :  { %v13396_v5 = vcombine.low %v13388_v17, %v13395_v16  ;;  %v13429_v18 = vcombine.low %v13407_v27, %v13414_v51  ;;  %v12838_v48 = vrot.slane %v12822_v40, %v16835_v59  ;;  %v12886_v31 = vrot.slane %v12870_v50, %v16835_v59  ;;  %15215 = vmatprep.subr.mxu1 %v15170_v45  ;;  %v19670_v16 = vpop.f32.mrf.mxu0  ;;  %v15167_v51 = vld [vmem:[#allocation15 + $0x30] sm:$0xff] }
 0x47f   :  { %v13430_v7 = vcombine.low %v13421_v20, %v13428_v13  ;;  %v12831_v57 = vcombine.high %v12829_v3, %v12829_v3  ;;  %v12845_v12 = vrot.slane %v12829_v3, %v16835_v59  ;;  %v12852_v33 = vrot.slane %v12830_v39, %v16835_v59  ;;  %v12413_v20 = vld [vmem:[#allocation2 + $0xe2] sm:$0x7f]  ;;  %v19674_v3 = vpop.f32.mrf.mxu1  ;;  %15216 = vmatpush1.msra.mxu1 %v15169_v30 }
 0x480   :  { %16207 = vmatmul.mubr.f32.gmra.mxu1 %v13396_v5  ;;  %v13437_v41 = vrot.slane %v13429_v18, %v16835_v59  ;;  %v12877_v17 = vrot.slane %v12863_v14, %v16835_v59  ;;  %v12878_v27 = vcombine.high %v12870_v50, %v12870_v50  ;;  %v12908_v15 = vcombine.high %v12886_v31, %v12886_v31 }
 0x481   :  { %16209 = vmatprep.mubr.msk.f32.mxu1 %vm16578_vm0, %v19521_v34  ;;  %v13444_v29 = vrot.slane %v13430_v7, %v16835_v59  ;;  %v12859_v46 = vrot.slane %v12831_v57, %v16835_v59  ;;  %v12861_v40 = vcombine.high %v12845_v12, %v12845_v12  ;;  %v13446_v43 = vcombine.low %v12838_v48, %v12852_v33 }
 0x482   :  { %v15742_v45 = vcombine.high %v12838_v48, %v12852_v33  ;;  %v12879_v13 = vcombine.high %v12877_v17, %v12877_v17  ;;  %v12893_v14 = vrot.slane %v12877_v17, %v16835_v59  ;;  %v12900_v50 = vrot.slane %v12878_v27, %v16835_v59  ;;  %15217 = vmatprep.subr.mxu1 %v15168_v8 }
 0x483   :  { %v13445_v39 = vcombine.low %v13437_v41, %v13444_v29  ;;  %v13448_v5 = vcombine.low %v12845_v12, %v12859_v46  ;;  %v13449_v18 = vcombine.low %v12861_v40, %v12886_v31  ;;  %v13456_v7 = vrot.slane %v13446_v43, %v16835_v59  ;;  %15218 = vmatpush1.msra.mxu1 %v15167_v51  ;;  %v19682_v31 = vpop.f32.mrf.mxu0  ;;  %v15165_v41 = vld [vmem:[#allocation15 + $0x20] sm:$0xff]  ;;  %v19686_v51 = vpop.f32.mrf.mxu1 }
 0x484   :  { %v13463_v57 = vrot.slane %v15742_v45, %v16835_v59  ;;  %v12907_v56 = vrot.slane %v12879_v13, %v16835_v59  ;;  %v12909_v48 = vcombine.high %v12893_v14, %v12893_v14  ;;  %v12910_v33 = vcombine.high %v12900_v50, %v12900_v50  ;;  %v12414_v40 = vld [vmem:[#allocation2 + $0xf2] sm:$0x7f]  ;;  %15219 = vmatprep.subr.mxu1 %v15166_v58 }
 0x485   :  { %16210 = vmatmul.mubr.f32.gmra.mxu1 %v13445_v39  ;;  %v13470_v17 = vrot.slane %v13448_v5, %v16835_v59  ;;  %v13477_v27 = vrot.slane %v13449_v18, %v16835_v59  ;;  %v12918_v30 = vrot.slane %v12413_v20, %v16835_v59  ;;  %v13495_v12 = vcombine.low %v12900_v50, %v12908_v15  ;;  %v15164_v45 = vld [vmem:[#allocation15 + $0x18] sm:$0xff]  ;;  %v19690_v50 = vld [vmem:[#allocation2 + $0x102] sm:$0x7f]  ;;  %v15161_v58 = vld [vmem:[#allocation15] sm:$0xff] }
 0x486   :  { %16212 = vmatprep.mubr.msk.f32.mxu1 %vm16578_vm0, %v19521_v34  ;;  %v13478_v8 = vcombine.low %v13456_v7, %v13463_v57  ;;  %v13496_v29 = vcombine.low %v12910_v33, %v12893_v14  ;;  %v13497_v46 = vcombine.low %v12907_v56, %v12909_v48  ;;  %v12911_v43 = vcombine.high %v12413_v20, %v12413_v20  ;;  %v15163_v18 = vld [vmem:[#allocation15 + $0x10] sm:$0xff]  ;;  %v15162_v7 = vld [vmem:[#allocation15 + $0x8] sm:$0xff] }
 0x487   :  { %v13479_v13 = vcombine.low %v13470_v17, %v13477_v27  ;;  %v12926_v39 = vcombine.high %v12918_v30, %v12918_v30  ;;  %v12934_v5 = vrot.slane %v12918_v30, %v16835_v59  ;;  %v13505_v15 = vrot.slane %v13495_v12, %v16835_v59  ;;  %15220 = vmatpush1.msra.mxu1 %v15165_v41  ;;  %v19699_v27 = vpop.f32.mrf.mxu0  ;;  %v19704_v41 = vpop.f32.mrf.mxu1 }
 0x488   :  { %v13486_v22 = vrot.slane %v13478_v8, %v16835_v59  ;;  %v13512_v14 = vrot.slane %v13496_v29, %v16835_v59  ;;  %v13519_v56 = vrot.slane %v13497_v46, %v16835_v59  ;;  %v12925_v20 = vrot.slane %v12911_v43, %v16835_v59  ;;  %15221 = vmatprep.subr.mxu1 %v15164_v45 }
 0x489   :  { %v13493_v57 = vrot.slane %v13479_v13, %v16835_v59  ;;  %v12948_v48 = vrot.slane %v12926_v39, %v16835_v59  ;;  %v12966_v33 = vrot.slane %v12414_v40, %v16835_v59  ;;  %v12959_v17 = vcombine.high %v12414_v40, %v12414_v40  ;;  %15222 = vmatpush1.msra.mxu1 %v15163_v18  ;;  %v19712_v18 = vpop.f32.mrf.mxu0 }
 0x48a   :  { %v13527_v30 = vcombine.low %v13505_v15, %v13512_v14  ;;  %v12927_v12 = vcombine.high %v12925_v20, %v12925_v20  ;;  %v12941_v8 = vrot.slane %v12925_v20, %v16835_v59  ;;  %v13014_v29 = vrot.slane %v19690_v50, %v16835_v59  ;;  %15223 = vmatprep.subr.mxu1 %v15162_v7 }
 0x48b   :  { %v13494_v46 = vcombine.low %v13486_v22, %v13493_v57  ;;  %v13498_v43 = vcombine.low %v12934_v5, %v12948_v48  ;;  %v12974_v13 = vcombine.high %v12966_v33, %v12966_v33  ;;  %v12982_v39 = vrot.slane %v12966_v33, %v16835_v59  ;;  %15224 = vmatpush1.msra.mxu1 %v15161_v58 }
 0x48c   :  { %v13535_v40 = vrot.slane %v13527_v30, %v16835_v59  ;;  %v12955_v45 = vrot.slane %v12927_v12, %v16835_v59  ;;  %v12957_v15 = vcombine.high %v12941_v8, %v12941_v8  ;;  %v15743_v14 = vcombine.high %v12934_v5, %v12948_v48  ;;  %v19717_v5 = vpop.f32.mrf.mxu1 }
 0x48d   :  { %16213 = vmatmul.mubr.f32.gmra.mxu1 %v13494_v46  ;;  %v13526_v20 = vrot.slane %v13498_v43, %v16835_v59  ;;  %v12996_v52 = vrot.slane %v12974_v13, %v16835_v59  ;;  %v13004_v19 = vcombine.high %v12982_v39, %v12982_v39  ;;  %v12973_v22 = vrot.slane %v12959_v17, %v16835_v59 }
 0x48e   :  { %16215 = vmatprep.mubr.msk.f32.mxu1 %vm16578_vm0, %v19521_v34  ;;  %v13545_v7 = vcombine.low %v12941_v8, %v12955_v45  ;;  %v13546_v57 = vcombine.low %v12957_v15, %v12982_v39  ;;  %v13554_v33 = vrot.slane %v15743_v14, %v16835_v59  ;;  %v13022_v30 = vcombine.high %v13014_v29, %v13014_v29  ;;  %v19726_v14 = vpop.f32.mrf.mxu0 }
 0x48f   :  { %v13528_v48 = vcombine.low %v13519_v56, %v13526_v20  ;;  %v13547_v58 = vcombine.low %v12996_v52, %v13004_v19  ;;  %v12975_v12 = vcombine.high %v12973_v22, %v12973_v22  ;;  %v12989_v46 = vrot.slane %v12973_v22, %v16835_v59  ;;  %v12416_v22 = vld [vmem:[#allocation2 + $0x112] sm:$0x7f] }
 0x490   :  { %v13561_v43 = vrot.slane %v13545_v7, %v16835_v59  ;;  %v13568_v17 = vrot.slane %v13546_v57, %v16835_v59  ;;  %v13006_v13 = vcombine.high %v12996_v52, %v12996_v52  ;;  %v13030_v38 = vrot.slane %v13014_v29, %v16835_v59  ;;  %v19731_v52 = vpop.f32.mrf.mxu1 }
 0x491   :  { %v13542_v8 = vrot.slane %v13528_v48, %v16835_v59  ;;  %v13575_v39 = vrot.slane %v13547_v58, %v16835_v59  ;;  %v13003_v45 = vrot.slane %v12975_v12, %v16835_v59  ;;  %v13005_v15 = vcombine.high %v12989_v46, %v12989_v46 }
 0x492   :  { %v13576_v19 = vcombine.low %v13554_v33, %v13561_v43  ;;  %v13044_v56 = vrot.slane %v13022_v30, %v16835_v59  ;;  %v13593_v20 = vcombine.low %v13006_v13, %v12989_v46  ;;  %v13007_v7 = vcombine.high %v19690_v50, %v19690_v50  ;;  %v19739_v43 = vpop.f32.mrf.mxu0  ;;  %v15964_v13 = vpop.f32.mrf.mxu1 }
 0x493   :  { %v13543_v29 = vcombine.low %v13535_v40, %v13542_v8  ;;  %v13577_v57 = vcombine.low %v13568_v17, %v13575_v39  ;;  %v13594_v48 = vcombine.low %v13003_v45, %v13005_v15  ;;  %v13055_v6 = vcombine.high %v12416_v22, %v12416_v22 }
 0x494   :  { %v13584_v58 = vrot.slane %v13576_v19, %v16835_v59  ;;  %v13595_v12 = vcombine.low %v13030_v38, %v13044_v56  ;;  %v15744_v61 = vcombine.high %v13030_v38, %v13044_v56  ;;  %v13603_v62 = vrot.slane %v13593_v20, %v16835_v59 }
 0x495   :  { %16216 = vmatmul.mubr.f32.gmra.mxu1 %v13543_v29  ;;  %v13591_v33 = vrot.slane %v13577_v57, %v16835_v59  ;;  %v13610_v30 = vrot.slane %v13594_v48, %v16835_v59  ;;  %v13021_v46 = vrot.slane %v13007_v7, %v16835_v59  ;;  %v13062_v50 = vrot.slane %v12416_v22, %v16835_v59 }
 0x496   :  { %16218 = vmatprep.mubr.msk.f32.mxu1 %vm16578_vm0, %v19521_v34  ;;  %v13617_v40 = vrot.slane %v13595_v12, %v16835_v59  ;;  %v13624_v38 = vrot.slane %v15744_v61, %v16835_v59  ;;  %v13069_v17 = vrot.slane %v13055_v6, %v16835_v59  ;;  %v15890_v6 = vpop.f32.mrf.mxu0 }
 0x497   :  { %v13592_v8 = vcombine.low %v13584_v58, %v13591_v33  ;;  %v13625_v39 = vcombine.low %v13603_v62, %v13610_v30  ;;  %v13023_v45 = vcombine.high %v13021_v46, %v13021_v46  ;;  %v13037_v15 = vrot.slane %v13021_v46, %v16835_v59  ;;  %v15965_v33 = vpop.f32.mrf.mxu1 }
 0x498   :  { %v13626_v19 = vcombine.low %v13617_v40, %v13624_v38  ;;  %v13070_v56 = vcombine.high %v13062_v50, %v13062_v50  ;;  %v13078_v20 = vrot.slane %v13062_v50, %v16835_v59  ;;  %v13085_v22 = vrot.slane %v13069_v17, %v16835_v59  ;;  %v15891_v21 = vpop.f32.mrf.mxu0 }
 0x499   :  { %16219 = vmatmul.mubr.f32.gmra.mxu1 %v13592_v8  ;;  %v13633_v7 = vrot.slane %v13625_v39, %v16835_v59  ;;  %v13051_v29 = vrot.slane %v13023_v45, %v16835_v59  ;;  %v13053_v61 = vcombine.high %v13037_v15, %v13037_v15  ;;  %v13071_v57 = vcombine.high %v13069_v17, %v13069_v17  ;;  %v15967_v25 = vpop.f32.mrf.mxu1 }
 0x49a   :  { %16221 = vmatprep.mubr.msk.f32.mxu1 %vm16578_vm0, %v19521_v34  ;;  %v13640_v62 = vrot.slane %v13626_v19, %v16835_v59  ;;  %v13092_v48 = vrot.slane %v13070_v56, %v16835_v59  ;;  %v13100_v58 = vcombine.high %v13078_v20, %v13078_v20  ;;  %v13101_v12 = vcombine.high %v13085_v22, %v13085_v22 }
 0x49b   :  { %v13642_v30 = vcombine.low %v13037_v15, %v13051_v29  ;;  %v13643_v46 = vcombine.low %v13053_v61, %v13078_v20  ;;  %v13099_v50 = vrot.slane %v13071_v57, %v16835_v59  ;;  %v15893_v29 = vpop.f32.mrf.mxu0 }
 0x49c   :  { %v13641_v40 = vcombine.low %v13633_v7, %v13640_v62  ;;  %v13102_v38 = vcombine.high %v13092_v48, %v13092_v48  ;;  %v13644_v8 = vcombine.low %v13092_v48, %v13100_v58  ;;  %v15968_v62 = vpop.f32.mrf.mxu1 }
 0x49d   :  { %v13652_v17 = vrot.slane %v13642_v30, %v16835_v59  ;;  %v13659_v39 = vrot.slane %v13643_v46, %v16835_v59  ;;  %v13691_v45 = vcombine.low %v13099_v50, %v13101_v12  ;;  %v15892_v30 = vadd.f32 %v15891_v21, %v15890_v6 }
 0x49e   :  { %16222 = vmatmul.mubr.f32.gmra.mxu1 %v13641_v40  ;;  %v13645_v19 = vcombine.low %v13102_v38, %v13085_v22  ;;  %v13666_v56 = vrot.slane %v13644_v8, %v16835_v59  ;;  %v15894_v22 = vpop.f32.mrf.mxu0  ;;  %v15970_v12 = vpop.f32.mrf.mxu1  ;;  %v15821_v40 = vadd.f32 %v19460_v32, %v19454_v63  ;;  %v19771_v38 = vadd.f32 %v19674_v3, %v19660_v36  ;;  %v16383_v3 = vld [vmem:[#allocation4 + $0x8] sm:$0xff] }
 0x49f   :  { %16224 = vmatprep.mubr.msk.f32.mxu1 %vm16578_vm0, %v19521_v34  ;;  %v13674_v15 = vcombine.low %v13652_v17, %v13659_v39  ;;  %v13698_v20 = vrot.slane %v13691_v45, %v16835_v59  ;;  %v15895_v46 = vadd.f32 %v15894_v22, %v15893_v29  ;;  %v15824_v8 = vadd.f32 %v19477_v9, %v19468_v37  ;;  %v16382_v9 = vld [vmem:[#allocation4] sm:$0xff] }
 0x4a0   :  { %v13673_v7 = vrot.slane %v13645_v19, %v16835_v59  ;;  %v19777_v17 = vadd.f32 %v19704_v41, %v19686_v51  ;;  %v15971_v21 = vpop.f32.mrf.mxu1  ;;  %v14210_v6 = vadd.f32 %v15892_v30, %v15821_v40  ;;  %v15963_v39 = vadd.f32 %v19731_v52, %v19717_v5  ;;  %v16385_v52 = vld [vmem:[#allocation4 + $0x18] sm:$0xff] }
 0x4a1   :  { %15745 = vst.sshfl [vmem:[#allocation3 + $0x3a0] sm:$0x5 pattern:$0x73625140] %v13698_v20  ;;  %v13682_v57 = vrot.slane %v13674_v15, %v16835_v59  ;;  %v14215_v45 = vadd.f32 %v15895_v46, %v15824_v8  ;;  %v15966_v19 = vadd.f32 %v15965_v33, %v15964_v13  ;;  %v19781_v63 = vadd.f32 %v15968_v62, %v15967_v25  ;;  %v16384_v25 = vld [vmem:[#allocation4 + $0x10] sm:$0xff]  ;;  %v16386_v13 = vld [vmem:[#allocation4 + $0x20] sm:$0xff] }
 0x4a2   :  { %v13675_v61 = vcombine.low %v13666_v56, %v13673_v7  ;;  %v19783_v32 = vadd.f32 %v15963_v39, %v14210_v6  ;;  %v19785_v36 = vadd.f32 %v15971_v21, %v15970_v12  ;;  %v16387_v33 = vld [vmem:[#allocation4 + $0x28] sm:$0xff]  ;;  %v19798_v56 = vpop.f32.mrf.mxu0  ;;  %v16388_v15 = vld [vmem:[#allocation4 + $0x30] sm:$0xff]  ;;  %v16389_v7 = vld [vmem:[#allocation4 + $0x38] sm:$0xff] }
 0x4a3   :  { %20549 = vst [vmem:[#allocation34_spill] sm:$0xff] %v19781_v63  ;;  %v19788_v37 = vadd.f32 %v15966_v19, %v14215_v45  ;;  %v19811_v12 = vld [vmem:[#allocation2] sm:$0xff]  ;;  %v16393_v46 = vld [vmem:[#allocation4 + $0x50] sm:$0xff]  ;;  %v16395_v8 = vld [vmem:[#allocation4 + $0x60] sm:$0x3] }
 0x4a4   :  { %v13689_v48 = vrot.slane %v13675_v61, %v16835_v59  ;;  %20550 = vst [vmem:[#allocation35_spill] sm:$0xff] %v19783_v32  ;;  %20551 = vst [vmem:[#allocation36_spill] sm:$0xff] %v19785_v36  ;;  %v19801_v20 = vpop.f32.mrf.mxu0  ;;  %v16394_v40 = vld [vmem:[#allocation4 + $0x58] sm:$0xff]  ;;  %v14760_v63 = vld [vmem:[#allocation13 + $0x20] sm:$0xff] }
 0x4a5   :  { %20552 = vst [vmem:[#allocation37_spill] sm:$0xff] %v19788_v37  ;;  %20555 = vst [vmem:[#allocation40_spill] sm:$0xff] %v19811_v12  ;;  %v14785_v59 = vld [vmem:[#allocation13 + $0xe8] sm:$0xff]  ;;  %v14764_v37 = vld [vmem:[#allocation13 + $0x40] sm:$0xff] }
 0x4a6   :  { %v13690_v58 = vcombine.low %v13682_v57, %v13689_v48  ;;  %v19804_v57 = vpop.f32.mrf.mxu0  ;;  %v16390_v48 = vld [vmem:[#allocation4 + $0x40] sm:$0xff] }
 0x4a8   :  { %16225 = vmatmul.mubr.f32.gmra.mxu1 %v13690_v58  ;;  %v13848_v50 = vld [vmem:[#allocation3 + $0x3a0] sm:$0x3]  ;;  %v19809_v22 = vpop.f32.mrf.mxu0  ;;  %v16391_v58 = vld [vmem:[#allocation4 + $0x48] sm:$0xff] }
 0x4a9   :  { %16227 = vmatprep.mubr.msk.f32.mxu1 %vm16578_vm0, %v19521_v34 }
 0x4aa   :  { %v19814_v30 = vpop.f32.mrf.mxu0 }
 0x4ac   :  { %16228 = vmatmul.mubr.f32.gmra.mxu1 %v13848_v50  ;;  %v19817_v50 = vpop.f32.mrf.mxu0 }
 0x4ad   :  { %15257 = vmatprep.mubr.f32.mxu1 %v19521_v34 }
 0x4b0   :  { %15258 = vmatmul.mubr.f32.vlgmr.msra.gmra.mxu1 %v16382_v9 }
 0x4b1   :  { %15263 = vmatprep.mubr.f32.mxu1 %v19521_v34 }
 0x4b4   :  { %15264 = vmatmul.mubr.f32.gmra.mxu1 %v16383_v3  ;;  %v14787_v3 = vld [vmem:[#allocation13 + $0xf8] sm:$0xff] }
 0x4b5   :  { %15269 = vmatprep.mubr.f32.mxu1 %v19521_v34  ;;  %v15973_v51 = vpop.f32.mrf.mxu1  ;;  %14788 = vmatprep.subr.mxu0 %v14787_v3  ;;  %v14786_v3 = vld [vmem:[#allocation13 + $0xf0] sm:$0xff] }
 0x4b6   :  { %14789 = vmatpush1.msra.mxu0 %v14786_v3 }
 0x4b7   :  { %v15974_v41 = vpop.f32.mrf.mxu1  ;;  %14790 = vmatprep.subr.mxu0 %v14785_v59  ;;  %v14775_v59 = vld [vmem:[#allocation13 + $0x98] sm:$0xff] }
 0x4b8   :  { %15270 = vmatmul.mubr.f32.gmra.mxu1 %v16384_v25  ;;  %v19792_v5 = vadd.f32 %v15974_v41, %v15973_v51 }
 0x4b9   :  { %15275 = vmatprep.mubr.f32.mxu1 %v19521_v34 }
 0x4ba   :  { %20553 = vst [vmem:[#allocation38_spill] sm:$0xff] %v19792_v5 }
 0x4bc   :  { %15276 = vmatmul.mubr.f32.gmra.mxu1 %v16385_v52 }
 0x4bd   :  { %15281 = vmatprep.mubr.f32.mxu1 %v19521_v34 }
 0x4c0   :  { %15282 = vmatmul.mubr.f32.gmra.mxu1 %v16386_v13 }
 0x4c1   :  { %15287 = vmatprep.mubr.f32.mxu1 %v19521_v34 }
 0x4c4   :  { %15288 = vmatmul.mubr.f32.gmra.mxu1 %v16387_v33 }
 0x4c5   :  { %15293 = vmatprep.mubr.f32.mxu1 %v19521_v34 }
 0x4c8   :  { %15294 = vmatmul.mubr.f32.gmra.mxu1 %v16388_v15 }
 0x4c9   :  { %15299 = vmatprep.mubr.f32.mxu1 %v19521_v34 }
 0x4cc   :  { %15300 = vmatmul.mubr.f32.gmra.mxu1 %v16389_v7  ;;  %v15976_v29 = vpop.f32.mrf.mxu1 }
 0x4cd   :  { %15305 = vmatprep.mubr.f32.mxu1 %v19521_v34 }
 0x4ce   :  { %v15977_v61 = vpop.f32.mrf.mxu1 }
 0x4cf   :  { %v19806_v62 = vadd.f32 %v15977_v61, %v15976_v29 }
 0x4d0   :  { %15306 = vmatmul.mubr.f32.gmra.mxu1 %v16390_v48 }
 0x4d1   :  { %20554 = vst [vmem:[#allocation39_spill] sm:$0xff] %v19806_v62  ;;  %15311 = vmatprep.mubr.f32.mxu1 %v19521_v34  ;;  %v19820_v34 = vpop.f32.mrf.mxu0 }
 0x4d2   :  { %20556 = vst [vmem:[#allocation41_spill] sm:$0xff] %v19820_v34 }
 0x4d3   :  { %v19822_v21 = vpop.f32.mrf.mxu0 }
 0x4d4   :  { %15312 = vmatmul.mubr.f32.gmra.mxu1 %v16391_v58  ;;  %20557 = vst [vmem:[#allocation42_spill] sm:$0xff] %v19822_v21 }
 0x4d5   :  { %15317 = vmatprep.mubr.f32.mxu1 %v19811_v12  ;;  %v19824_v39 = vpop.f32.mrf.mxu0 }
 0x4d6   :  { %20558 = vst [vmem:[#allocation43_spill] sm:$0xff] %v19824_v39 }
 0x4d7   :  { %v19828_v9 = vpop.f32.mrf.mxu0 }
 0x4d8   :  { %15318 = vmatmul.mubr.f32.gmra.mxu1 %v16393_v46  ;;  %20560 = vst [vmem:[#allocation45_spill] sm:$0xff] %v19828_v9 }
 0x4d9   :  { %15323 = vmatprep.mubr.f32.mxu1 %v19811_v12  ;;  %v19830_v51 = vpop.f32.mrf.mxu0 }
 0x4da   :  { %20561 = vst [vmem:[#allocation46_spill] sm:$0xff] %v19830_v51  ;;  %v14777_v51 = vld [vmem:[#allocation13 + $0xa8] sm:$0xff] }
 0x4db   :  { %v19832_v41 = vpop.f32.mrf.mxu0 }
 0x4dc   :  { %15324 = vmatmul.mubr.f32.gmra.mxu1 %v16394_v40  ;;  %20562 = vst [vmem:[#allocation47_spill] sm:$0xff] %v19832_v41  ;;  %v14778_v41 = vld [vmem:[#allocation13 + $0xb0] sm:$0xff] }
 0x4dd   :  { %15329 = vmatprep.mubr.f32.mxu1 %v19811_v12  ;;  %v19834_v25 = vpop.f32.mrf.mxu0 }
 0x4de   :  { %20563 = vst [vmem:[#allocation48_spill] sm:$0xff] %v19834_v25  ;;  %v14780_v25 = vld [vmem:[#allocation13 + $0xc0] sm:$0xff] }
 0x4df   :  { %v19836_v52 = vpop.f32.mrf.mxu0 }
 0x4e0   :  { %15330 = vmatmul.mubr.f32.gmra.mxu1 %v16395_v8  ;;  %20564 = vst [vmem:[#allocation49_spill] sm:$0xff] %v19836_v52  ;;  %v14781_v52 = vld [vmem:[#allocation13 + $0xc8] sm:$0xff] }
 0x4e1   :  { %v19838_v13 = vpop.f32.mrf.mxu0 }
 0x4e3   :  { %v19842_v29 = vpop.f32.mrf.mxu0 }
 0x4e5   :  { %v15979_v6 = vpop.f32.mrf.mxu1  ;;  %v19844_v61 = vpop.f32.mrf.mxu0 }
 0x4e7   :  { %v15980_v45 = vpop.f32.mrf.mxu1  ;;  %v19846_v48 = vpop.f32.mrf.mxu0 }
 0x4e8   :  { %v19826_v19 = vadd.f32 %v15980_v45, %v15979_v6 }
 0x4e9   :  { %v19848_v58 = vpop.f32.mrf.mxu0 }
 0x4ea   :  { %20559 = vst [vmem:[#allocation44_spill] sm:$0xff] %v19826_v19  ;;  %v14776_v19 = vld [vmem:[#allocation13 + $0xa0] sm:$0xff] }
 0x4eb   :  { %v19852_v6 = vpop.f32.mrf.mxu0 }
 0x4ed   :  { %v19854_v45 = vpop.f32.mrf.mxu0 }
 0x4ef   :  { %v19856_v12 = vpop.f32.mrf.mxu0 }
 0x4ff   :  { %v15982_v33 = vpop.f32.mrf.mxu1 }
 0x501   :  { %v15983_v15 = vpop.f32.mrf.mxu1 }
 0x502   :  { %v19840_v7 = vadd.f32 %v15983_v15, %v15982_v33  ;;  %v14784_v33 = vld [vmem:[#allocation13 + $0xe0] sm:$0xff]  ;;  %v14783_v15 = vld [vmem:[#allocation13 + $0xd8] sm:$0xff] }
 0x503   :  { %14791 = vmatpush1.msra.mxu0 %v14784_v33  ;;  %v14774_v33 = vld [vmem:[#allocation13 + $0x90] sm:$0xff] }
 0x504   :  { %20565 = vst [vmem:[#allocation50_spill] sm:$0xff] %v19840_v7  ;;  %v14782_v7 = vld [vmem:[#allocation13 + $0xd0] sm:$0xff]  ;;  %14792 = vmatprep.subr.mxu0 %v14783_v15  ;;  %v14772_v15 = vld [vmem:[#allocation13 + $0x80] sm:$0xff] }
 0x505   :  { %14793 = vmatpush1.msra.mxu0 %v14782_v7  ;;  %v14773_v7 = vld [vmem:[#allocation13 + $0x88] sm:$0xff] }
 0x506   :  { %14794 = vmatprep.subr.mxu0 %v14781_v52  ;;  %v14771_v52 = vld [vmem:[#allocation13 + $0x78] sm:$0xff] }
 0x507   :  { %14795 = vmatpush1.msra.mxu0 %v14780_v25  ;;  %v14770_v25 = vld [vmem:[#allocation13 + $0x70] sm:$0xff] }
 0x50f   :  { %v15985_v46 = vpop.f32.mrf.mxu1 }
 0x511   :  { %v15986_v40 = vpop.f32.mrf.mxu1 }
 0x512   :  { %v19850_v8 = vadd.f32 %v15986_v40, %v15985_v46  ;;  %v14779_v46 = vld [vmem:[#allocation13 + $0xb8] sm:$0xff]  ;;  %v19858_v40 = vpop.f32.mrf.mxu0 }
 0x513   :  { %14796 = vmatprep.subr.mxu0 %v14779_v46 }
 0x514   :  { %20566 = vst [vmem:[#allocation51_spill] sm:$0xff] %v19850_v8  ;;  %14797 = vmatpush1.msra.mxu0 %v14778_v41  ;;  %v19862_v62 = vpop.f32.mrf.mxu0  ;;  %v14769_v41 = vld [vmem:[#allocation13 + $0x68] sm:$0xff] }
 0x515   :  { %14798 = vmatprep.subr.mxu0 %v14777_v51  ;;  %v14767_v51 = vld [vmem:[#allocation13 + $0x58] sm:$0xff] }
 0x516   :  { %14799 = vmatpush1.msra.mxu0 %v14776_v19  ;;  %v19866_v39 = vpop.f32.mrf.mxu0 }
 0x517   :  { %14800 = vmatprep.subr.mxu0 %v14775_v59  ;;  %v14766_v59 = vld [vmem:[#allocation13 + $0x50] sm:$0xff] }
 0x518   :  { %14801 = vmatpush1.msra.mxu0 %v14774_v33  ;;  %v19868_v5 = vpop.f32.mrf.mxu0  ;;  %v14765_v33 = vld [vmem:[#allocation13 + $0x48] sm:$0xff] }
 0x519   :  { %14802 = vmatprep.subr.mxu0 %v14773_v7  ;;  %v14763_v7 = vld [vmem:[#allocation13 + $0x38] sm:$0xff] }
 0x51a   :  { %14803 = vmatpush1.msra.mxu0 %v14772_v15  ;;  %v14762_v15 = vld [vmem:[#allocation13 + $0x30] sm:$0xff] }
 0x51b   :  { %14804 = vmatprep.subr.mxu0 %v14771_v52  ;;  %v14761_v52 = vld [vmem:[#allocation13 + $0x28] sm:$0xff] }
 0x51c   :  { %14805 = vmatpush1.msra.mxu0 %v14770_v25 }
 0x51d   :  { %14806 = vmatprep.subr.mxu0 %v14769_v41  ;;  %v14759_v41 = vld [vmem:[#allocation13 + $0x18] sm:$0xff] }
 0x520   :  { %v19860_v8 = vpop.f32.mrf.mxu1 }
 0x522   :  { %v16193_v3 = vpop.f32.mrf.mxu1 }
 0x523   :  { %v14768_v3 = vld [vmem:[#allocation13 + $0x60] sm:$0xff] }
 0x524   :  { %14807 = vmatpush1.msra.mxu0 %v14768_v3 }
 0x525   :  { %14808 = vmatprep.subr.mxu0 %v14767_v51  ;;  %v14757_v51 = vld [vmem:[#allocation13 + $0x8] sm:$0xff] }
 0x526   :  { %14809 = vmatpush1.msra.mxu0 %v14766_v59  ;;  %v14756_v59 = vld [vmem:[#allocation13] sm:$0xff] }
 0x527   :  { %v19864_v9 = vpop.f32.mrf.mxu1  ;;  %14810 = vmatprep.subr.mxu0 %v14765_v33 }
 0x528   :  { %14811 = vmatpush1.msra.mxu0 %v14764_v37 }
 0x529   :  { %v16196_v46 = vpop.f32.mrf.mxu1  ;;  %14812 = vmatprep.subr.mxu0 %v14763_v7  ;;  %v15883_v7 = vadd.f32 %v19682_v31, %v19670_v16  ;;  %v15889_v16 = vadd.f32 %v19739_v43, %v19726_v14 }
 0x52a   :  { %v19872_v46 = vpop.f32.mrf.mxu0  ;;  %14813 = vmatpush1.msra.mxu0 %v14762_v15  ;;  %v15880_v15 = vadd.f32 %v19656_v10, %v19641_v47  ;;  %v15815_v47 = vadd.f32 %v19430_v28, %v19421_v23  ;;  %v16028_v23 = vadd.f32 %v19852_v6, %v19848_v58 }
 0x52b   :  { %v19870_v19 = vpop.f32.mrf.mxu1  ;;  %14814 = vmatprep.subr.mxu0 %v14761_v52 }
 0x52c   :  { %v16039_v32 = vpop.f32.mrf.mxu0  ;;  %14815 = vmatpush1.msra.mxu0 %v14760_v63  ;;  %v15812_v63 = vadd.f32 %v19414_v0, %v19403_v2  ;;  %v15951_v2 = vadd.f32 %v19621_v44, %v19612_v11  ;;  %v16025_v0 = vadd.f32 %v19846_v48, %v19844_v61  ;;  %v16031_v44 = vadd.f32 %v19856_v12, %v19854_v45 }
 0x52d   :  { %v16199_v36 = vpop.f32.mrf.mxu1  ;;  %14816 = vmatprep.subr.mxu0 %v14759_v41  ;;  %v15886_v41 = vadd.f32 %v19712_v18, %v19699_v27  ;;  %v16022_v18 = vadd.f32 %v19842_v29, %v19838_v13  ;;  %v16034_v13 = vadd.f32 %v19862_v62, %v19858_v40  ;;  %v15901_v12 = vadd.f32 %v19809_v22, %v19804_v57  ;;  %v20567_v40 = vld [vmem:[#allocation25_spill] sm:$0xff] }
 0x52e   :  { %v14758_v36 = vld [vmem:[#allocation13 + $0x10] sm:$0xff]  ;;  %v16041_v21 = vpop.f32.mrf.mxu0  ;;  %v14195_v10 = vadd.f32 %v15883_v7, %v15812_v63  ;;  %v16040_v57 = vadd.f32 %v16039_v32, %v19872_v46  ;;  %v20568_v22 = vld [vmem:[#allocation41_spill] sm:$0xff] }
 0x52f   :  { %14817 = vmatpush1.msra.mxu0 %v14758_v36  ;;  %v15954_v36 = vadd.f32 %v19645_v49, %v19634_v60  ;;  %v15818_v60 = vadd.f32 %v19447_v35, %v19439_v24  ;;  %v15898_v24 = vadd.f32 %v19801_v20, %v19798_v56  ;;  %v16037_v56 = vadd.f32 %v19868_v5, %v19866_v39  ;;  %v20569_v39 = vld [vmem:[#allocation42_spill] sm:$0xff] }
 0x530   :  { %14818 = vmatprep.subr.mxu0 %v14757_v51  ;;  %v16042_v33 = vpop.f32.mrf.mxu0 }
 0x531   :  { %14819 = vmatpush1.msra.mxu0 %v14756_v59  ;;  %v14205_v14 = vadd.f32 %v15889_v16, %v15818_v60 }
 0x532   :  { %v19874_v25 = vpop.f32.mrf.mxu1 }
 0x533   :  { %v14335_v35 = vadd.f32 %v19777_v17, %v14205_v14  ;;  %v15830_v17 = vadd.f32 %v19503_v1, %v19496_v55  ;;  %v15907_v55 = vadd.f32 %v20569_v39, %v20568_v22 }
 0x534   :  { %v16202_v3 = vpop.f32.mrf.mxu1 }
 0x535   :  { %v16044_v3 = vpop.f32.mrf.mxu0 }
 0x537   :  { %v16045_v49 = vpop.f32.mrf.mxu0 }
 0x539   :  { %v16047_v51 = vpop.f32.mrf.mxu0 }
 0x53b   :  { %v14599_v37 = vpop.f32.mrf.mxu1  ;;  %v16048_v5 = vpop.f32.mrf.mxu0 }
 0x53d   :  { %v16205_v34 = vpop.f32.mrf.mxu1 }
 0x53e   :  { %v15809_v34 = vadd.f32 %v19393_v4, %v19387_v42  ;;  %v14200_v42 = vadd.f32 %v15886_v41, %v15815_v47  ;;  %v14325_v4 = vadd.f32 %v15954_v36, %v14195_v10  ;;  %v16043_v41 = vadd.f32 %v16042_v33, %v16041_v21 }
 0x53f   :  { %v16046_v10 = vadd.f32 %v16045_v49, %v16044_v3 }
 0x540   :  { %v19880_v52 = vpop.f32.mrf.mxu1  ;;  %v14190_v27 = vadd.f32 %v15880_v15, %v15809_v34  ;;  %v14330_v11 = vadd.f32 %v19771_v38, %v14200_v42  ;;  %v14455_v61 = vadd.f32 %v16025_v0, %v14325_v4  ;;  %v15827_v38 = vadd.f32 %v19490_v53, %v19483_v54  ;;  %v20574_v42 = vld [vmem:[#allocation26_spill] sm:$0xff]  ;;  %v20575_v4 = vld [vmem:[#allocation27_spill] sm:$0xff] }
 0x541   :  { %v15833_v54 = vadd.f32 %v20567_v40, %v19505_v26  ;;  %v15904_v53 = vadd.f32 %v19817_v50, %v19814_v30  ;;  %v14225_v15 = vadd.f32 %v15901_v12, %v15830_v17  ;;  %v20571_v26 = vld [vmem:[#allocation34_spill] sm:$0xff]  ;;  %v20572_v30 = vld [vmem:[#allocation37_spill] sm:$0xff]  ;;  %v20579_v17 = vld [vmem:[#allocation28_spill] sm:$0xff] }
 0x542   :  { %v16208_v31 = vpop.f32.mrf.mxu1  ;;  %v14320_v43 = vadd.f32 %v15951_v2, %v14190_v27  ;;  %v19913_v58 = vadd.f32 %v19864_v9, %v14455_v61  ;;  %v14460_v6 = vadd.f32 %v16028_v23, %v14330_v11  ;;  %v14465_v9 = vadd.f32 %v16031_v44, %v14335_v35  ;;  %v16050_v2 = vpop.f32.mrf.mxu0  ;;  %v20577_v61 = vld [vmem:[#allocation43_spill] sm:$0xff] }
 0x543   :  { %v14220_v45 = vadd.f32 %v15898_v24, %v15827_v38  ;;  %v14475_v50 = vadd.f32 %v16037_v56, %v20572_v30  ;;  %v14230_v16 = vadd.f32 %v15904_v53, %v15833_v54  ;;  %v20573_v31 = vld [vmem:[#allocation36_spill] sm:$0xff] }
 0x544   :  { %v14450_v29 = vadd.f32 %v16022_v18, %v14320_v43  ;;  %v19927_v62 = vadd.f32 %v19870_v19, %v14460_v6  ;;  %v14665_v1 = vmul.f32 %v19913_v58, %v19913_v58  ;;  %v20570_v19 = vld [vmem:[#allocation35_spill] sm:$0xff]  ;;  %v14355_v47 = vadd.f32 %v20573_v31, %v14225_v15  ;;  %v20576_v18 = vld [vmem:[#allocation38_spill] sm:$0xff]  ;;  %v16051_v35 = vpop.f32.mrf.mxu0 }
 0x545   :  { %v14609_v28 = vpop.f32.mrf.mxu1  ;;  %v14470_v59 = vadd.f32 %v16034_v13, %v20570_v19  ;;  %v14350_v63 = vadd.f32 %v20571_v26, %v14220_v45  ;;  %v19957_v60 = vadd.f32 %v19880_v52, %v14475_v50  ;;  %v14360_v23 = vadd.f32 %v20576_v18, %v14230_v16  ;;  %v20581_v45 = vld [vmem:[#allocation39_spill] sm:$0xff]  ;;  %v20585_v18 = vld [vmem:[#allocation30_spill] sm:$0xff] }
 0x546   :  { %v19924_v20 = vadd.f32 %v19860_v8, %v14450_v29  ;;  %v19939_v8 = vadd.f32 %v19874_v25, %v14465_v9  ;;  %v14666_v36 = vmul.f32 %v19927_v62, %v19927_v62  ;;  %v14485_v14 = vadd.f32 %v16043_v41, %v14355_v47  ;;  %v20580_v9 = vld [vmem:[#allocation29_spill] sm:$0xff]  ;;  %v16053_v39 = vpop.f32.mrf.mxu0 }
 0x547   :  { %v16211_v48 = vpop.f32.mrf.mxu1  ;;  %v19950_v25 = vadd.f32 %v14599_v37, %v14470_v59  ;;  %v14480_v21 = vadd.f32 %v16040_v57, %v14350_v63  ;;  %v15836_v37 = vadd.f32 %v20575_v4, %v20574_v42  ;;  %v16049_v52 = vadd.f32 %v16048_v5, %v16047_v51  ;;  %v20582_v63 = vld [vmem:[#allocation44_spill] sm:$0xff] }
 0x548   :  { %v14664_v32 = vmul.f32 %v19924_v20, %v19924_v20  ;;  %v14645_v46 = vadd.f32 %v19913_v58, %v19924_v20  ;;  %v14667_v27 = vmul.f32 %v19939_v8, %v19939_v8  ;;  %v20578_v48 = vld [vmem:[#allocation45_spill] sm:$0xff]  ;;  %v14490_v13 = vadd.f32 %v16046_v10, %v14360_v23  ;;  %v20586_v23 = vld [vmem:[#allocation31_spill] sm:$0xff] }
 0x549   :  { %v14668_v49 = vmul.f32 %v19950_v25, %v19950_v25  ;;  %v19965_v11 = vadd.f32 %v14609_v28, %v14480_v21  ;;  %v14235_v44 = vadd.f32 %v15907_v55, %v15836_v37  ;;  %v15910_v24 = vadd.f32 %v20578_v48, %v20577_v61  ;;  %v20584_v21 = vld [vmem:[#allocation47_spill] sm:$0xff]  ;;  %v20587_v61 = vld [vmem:[#allocation48_spill] sm:$0xff]  ;;  %v20588_v48 = vld [vmem:[#allocation49_spill] sm:$0xff] }
 0x54a   :  { %v14677_v33 = vadd.f32 %v14665_v1, %v14664_v32  ;;  %v14646_v0 = vadd.f32 %v14645_v46, %v19927_v62  ;;  %v14669_v38 = vmul.f32 %v19957_v60, %v19957_v60  ;;  %v15839_v28 = vadd.f32 %v20580_v9, %v20579_v17 }
 0x54b   :  { %v14365_v40 = vadd.f32 %v20581_v45, %v14235_v44  ;;  %v14670_v51 = vmul.f32 %v19965_v11, %v19965_v11  ;;  %v16052_v1 = vadd.f32 %v16051_v35, %v16050_v2  ;;  %v20583_v2 = vld [vmem:[#allocation46_spill] sm:$0xff] }
 0x54c   :  { %v14678_v43 = vadd.f32 %v14677_v33, %v14666_v36  ;;  %v14647_v3 = vadd.f32 %v14646_v0, %v19939_v8  ;;  %v14240_v22 = vadd.f32 %v15910_v24, %v15839_v28  ;;  %v16054_v36 = vpop.f32.mrf.mxu0  ;;  %v15913_v33 = vadd.f32 %v20584_v21, %v20583_v2 }
 0x54d   :  { %v14614_v7 = vpop.f32.mrf.mxu1  ;;  %v14495_v55 = vadd.f32 %v16049_v52, %v14365_v40  ;;  %v15916_v24 = vadd.f32 %v20588_v48, %v20587_v61  ;;  %v16055_v52 = vadd.f32 %v16054_v36, %v16053_v39  ;;  %v20593_v61 = vld [vmem:[#allocation24_spill] sm:$0xff] }
 0x54e   :  { %v14679_v29 = vadd.f32 %v14678_v43, %v14667_v27  ;;  %v14648_v6 = vadd.f32 %v14647_v3, %v19950_v25  ;;  %v19972_v12 = vadd.f32 %v14614_v7, %v14485_v14  ;;  %v14370_v41 = vadd.f32 %v20582_v63, %v14240_v22  ;;  %v16056_v4 = vpop.f32.mrf.mxu0 }
 0x54f   :  { %v16214_v34 = vpop.f32.mrf.mxu1  ;;  %v15842_v14 = vadd.f32 %v20586_v23, %v20585_v18 }
 0x550   :  { %v14680_v54 = vadd.f32 %v14679_v29, %v14668_v49  ;;  %v14649_v53 = vadd.f32 %v14648_v6, %v19957_v60  ;;  %v14671_v7 = vmul.f32 %v19972_v12, %v19972_v12  ;;  %v14500_v47 = vadd.f32 %v16052_v1, %v14370_v41  ;;  %v20589_v29 = vld [vmem:[#allocation32_spill] sm:$0xff]  ;;  %v20590_v6 = vld [vmem:[#allocation33_spill] sm:$0xff] }
 0x551   :  { %v14245_v44 = vadd.f32 %v15913_v33, %v15842_v14  ;;  %v14643_v14 = vld [vmem:[#allocation12] sm:$0x1] }
 0x552   :  { %v14681_v19 = vadd.f32 %v14680_v54, %v14669_v38  ;;  %v14650_v59 = vadd.f32 %v14649_v53, %v19965_v11  ;;  %v15845_v38 = vadd.f32 %v20590_v6, %v20589_v29  ;;  %v20592_v54 = vld [vmem:[#allocation51_spill] sm:$0xff] }
 0x554   :  { %v14682_v30 = vadd.f32 %v14681_v19, %v14670_v51  ;;  %v14651_v50 = vadd.f32 %v14650_v59, %v19972_v12  ;;  %v14250_v9 = vadd.f32 %v15916_v24, %v15845_v38 }
 0x555   :  { %v14619_v56 = vpop.f32.mrf.mxu1 }
 0x556   :  { %v19980_v57 = vadd.f32 %v14619_v56, %v14490_v13  ;;  %v14683_v34 = vadd.f32 %v14682_v30, %v14671_v7  ;;  %v16057_v13 = vpop.f32.mrf.mxu0  ;;  %v20591_v56 = vld [vmem:[#allocation50_spill] sm:$0xff]  ;;  %v14380_v53 = vadd.f32 %v20592_v54, %v14250_v9 }
 0x557   :  { %v16217_v5 = vpop.f32.mrf.mxu1  ;;  %v14375_v17 = vadd.f32 %v20591_v56, %v14245_v44  ;;  %v16058_v28 = vadd.f32 %v16057_v13, %v16056_v4 }
 0x558   :  { %v14672_v32 = vmul.f32 %v19980_v57, %v19980_v57  ;;  %v14652_v16 = vadd.f32 %v14651_v50, %v19980_v57 }
 0x559   :  { %v14624_v15 = vpop.f32.mrf.mxu1  ;;  %v14505_v45 = vadd.f32 %v16055_v52, %v14375_v17  ;;  %v14510_v1 = vadd.f32 %v16058_v28, %v14380_v53 }
 0x55a   :  { %v19985_v26 = vadd.f32 %v14624_v15, %v14495_v55  ;;  %v14684_v0 = vadd.f32 %v14683_v34, %v14672_v32 }
 0x55b   :  { %v16220_v46 = vpop.f32.mrf.mxu1 }
 0x55c   :  { %v14673_v31 = vmul.f32 %v19985_v26, %v19985_v26  ;;  %v14653_v27 = vadd.f32 %v14652_v16, %v19985_v26 }
 0x55e   :  { %v14629_v10 = vpop.f32.mrf.mxu1  ;;  %v14685_v43 = vadd.f32 %v14684_v0, %v14673_v31 }
 0x55f   :  { %v19997_v42 = vadd.f32 %v14629_v10, %v14500_v47 }
 0x560   :  { %v16223_v37 = vpop.f32.mrf.mxu1 }
 0x561   :  { %v14654_v3 = vadd.f32 %v14653_v27, %v19997_v42  ;;  %v14674_v49 = vmul.f32 %v19997_v42, %v19997_v42 }
 0x563   :  { %v14686_v35 = vadd.f32 %v14685_v43, %v14674_v49  ;;  %v14644_v49 = vld [vmem:[%s20501_s6] sm:$0x1] }
 0x568   :  { %v14634_v40 = vpop.f32.mrf.mxu1 }
 0x569   :  { %v14635_v51 = vadd.f32 %v14634_v40, %v14505_v45 }
 0x56a   :  { %v16226_v5 = vpop.f32.mrf.mxu1 }
 0x56b   :  { %v14655_v22 = vadd.f32 %v14654_v3, %v14635_v51  ;;  %v14675_v55 = vmul.f32 %v14635_v51, %v14635_v51 }
 0x56c   :  { %v14639_v19 = vpop.f32.mrf.mxu1 }
 0x56d   :  { %v14687_v39 = vadd.f32 %v14686_v35, %v14675_v55  ;;  %v14640_v59 = vadd.f32 %v14639_v19, %v14510_v1 }
 0x56e   :  { %v16229_v7 = vpop.f32.mrf.mxu1 }
 0x56f   :  { %v14656_v15 = vsel %vm308_vm1, %v14640_v59, 0.0  ;;  %v14676_v63 = vmul.f32 %v14640_v59, %v14640_v59 }
 0x570   :  { %v14657_v41 = vadd.f32 %v14656_v15, %v14655_v22 }
 0x571   :  { %v14688_v30 = vsel %vm308_vm1, %v14676_v63, 0.0 }
 0x572   :  { %v14658_v50 = vrot.slane %v14657_v41, 4  ;;  %v14689_v32 = vadd.f32 %v14688_v30, %v14687_v39 }
 0x574   :  { %v14659_v46 = vadd.f32 %v14658_v50, %v14657_v41  ;;  %v14690_v36 = vrot.slane %v14689_v32, 4 }
 0x576   :  { %v14660_v34 = vrot.slane %v14659_v46, 2  ;;  %v14691_v16 = vadd.f32 %v14690_v36, %v14689_v32  ;;  %v20040_v36 = vpop.f32.mrf.mxu1 }
 0x578   :  { %v14661_v31 = vadd.f32 %v14660_v34, %v14659_v46  ;;  %v14692_v47 = vrot.slane %v14691_v16, 2  ;;  %v20042_v34 = vpop.f32.mrf.mxu1 }
 0x57a   :  { %v14662_v10 = vrot.slane %v14661_v31, 1  ;;  %v14693_v2 = vadd.f32 %v14692_v47, %v14691_v16  ;;  %v20044_v16 = vpop.f32.mrf.mxu1 }
 0x57c   :  { %v14663_v21 = vadd.f32 %v14662_v10, %v14661_v31  ;;  %v14694_v33 = vrot.slane %v14693_v2, 1  ;;  %v20046_v31 = vpop.f32.mrf.mxu1 }
 0x57e   :  { %v14695_v0 = vadd.f32 %v14694_v33, %v14693_v2  ;;  %v14696_v27 = vmul.f32 0.010204081, %v14663_v21  ;;  %v20048_v47 = vpop.f32.mrf.mxu1 }
 0x580   :  { %v14697_v4 = vmul.f32 0.010204081, %v14695_v0  ;;  %v14698_v37 = vmul.f32 %v14696_v27, %v14696_v27  ;;  %v20050_v10 = vpop.f32.mrf.mxu1 }
 0x582   :  { %v14699_v18 = vsub.f32 %v14697_v4, %v14698_v37  ;;  %v20052_v2 = vpop.f32.mrf.mxu1 }
 0x584   :  { %v14700_v23 = vadd.f32 1e-05, %v14699_v18  ;;  %v20054_v21 = vpop.f32.mrf.mxu1 }
 0x586   :  { %16368 = vrsqrt.f32 %v14700_v23  ;;  %v20056_v33 = vpop.f32.mrf.mxu1 }
 0x588   :  { %v20058_v0 = vpop.f32.mrf.mxu1 }
 0x593   :  { %v16369_v43 = vpop.eup %16368 }
 0x594   :  { %v14702_v3 = vmul.f32 %v16369_v43, %v14643_v14  ;;  %v15376_v14 = vmul.f32 %v20040_v36, %v20040_v36  ;;  %v15338_v43 = vadd.f32 %v20044_v16, %v20040_v36 }
 0x596   :  { %v14703_v44 = vmul.f32 %v14702_v3, %v14696_v27  ;;  %v14709_v48 = vrot.slane %v14702_v3, %v20593_v61  ;;  %v20060_v27 = vpop.f32.mrf.mxu1  ;;  %v15378_v3 = vmul.f32 %v20044_v16, %v20044_v16 }
 0x598   :  { %v14704_v24 = vsub.f32 %v14644_v49, %v14703_v44  ;;  %v14723_v52 = vmul.f32 %v14709_v48, %v14640_v59  ;;  %v14711_v35 = vmul.f32 %v14709_v48, %v19924_v20  ;;  %v14712_v13 = vmul.f32 %v14709_v48, %v19913_v58  ;;  %v20062_v4 = vpop.f32.mrf.mxu1 }
 0x599   :  { %v14713_v29 = vmul.f32 %v14709_v48, %v19927_v62  ;;  %v14714_v6 = vmul.f32 %v14709_v48, %v19939_v8  ;;  %v14715_v56 = vmul.f32 %v14709_v48, %v19950_v25  ;;  %v14716_v17 = vmul.f32 %v14709_v48, %v19957_v60 }
 0x59a   :  { %v14728_v38 = vrot.slane %v14704_v24, %v20593_v61  ;;  %v14717_v9 = vmul.f32 %v14709_v48, %v19965_v11  ;;  %v14718_v28 = vmul.f32 %v14709_v48, %v19972_v12  ;;  %v14720_v45 = vmul.f32 %v14709_v48, %v19985_v26  ;;  %v20594_v26 = vld [vmem:[#allocation40_spill] sm:$0xff]  ;;  %v20064_v37 = vpop.f32.mrf.mxu1 }
 0x59b   :  { %v14721_v20 = vmul.f32 %v14709_v48, %v19997_v42  ;;  %v14722_v40 = vmul.f32 %v14709_v48, %v14635_v51  ;;  %v14719_v60 = vmul.f32 %v14709_v48, %v19980_v57  ;;  %v15377_v44 = vmul.f32 %v20042_v34, %v20042_v34 }
 0x59c   :  { %v14730_v58 = vadd.f32 %v14728_v38, %v14711_v35  ;;  %v14731_v54 = vadd.f32 %v14728_v38, %v14712_v13  ;;  %v14732_v62 = vadd.f32 %v14728_v38, %v14713_v29  ;;  %v14733_v53 = vadd.f32 %v14728_v38, %v14714_v6  ;;  %v20066_v18 = vpop.f32.mrf.mxu1 }
 0x59d   :  { %v14734_v8 = vadd.f32 %v14728_v38, %v14715_v56  ;;  %v14735_v5 = vadd.f32 %v14728_v38, %v14716_v17  ;;  %v14736_v22 = vadd.f32 %v14728_v38, %v14717_v9  ;;  %v14737_v55 = vadd.f32 %v14728_v38, %v14718_v28 }
 0x59e   :  { %v14743_v25 = vmax.f32 %v14730_v58, 0.0  ;;  %v14738_v11 = vadd.f32 %v14728_v38, %v14719_v60  ;;  %v14739_v1 = vadd.f32 %v14728_v38, %v14720_v45  ;;  %v14740_v12 = vadd.f32 %v14728_v38, %v14721_v20  ;;  %v20068_v23 = vpop.f32.mrf.mxu1 }
 0x59f   :  { %v14741_v19 = vadd.f32 %v14728_v38, %v14722_v40  ;;  %v14742_v42 = vadd.f32 %v14728_v38, %v14723_v52  ;;  %v14744_v51 = vmax.f32 %v14731_v54, 0.0  ;;  %v14745_v39 = vmax.f32 %v14732_v62, 0.0 }
 0x5a0   :  { %14853 = vmatmul.mubr.f32.vlgmr.msra.gmra.mxu0 %v14743_v25  ;;  %v14746_v59 = vmax.f32 %v14733_v53, 0.0  ;;  %v14747_v57 = vmax.f32 %v14734_v8, 0.0  ;;  %v14748_v7 = vmax.f32 %v14735_v5, 0.0  ;;  %v14749_v15 = vmax.f32 %v14736_v22, 0.0  ;;  %v20076_v49 = vpop.f32.mrf.mxu1 }
 0x5a1   :  { %14858 = vmatprep.mubr.f32.mxu0 %v20594_v26  ;;  %v14750_v63 = vmax.f32 %v14737_v55, 0.0  ;;  %v14751_v41 = vmax.f32 %v14738_v11, 0.0  ;;  %v14752_v30 = vmax.f32 %v14739_v1, 0.0  ;;  %v14753_v50 = vmax.f32 %v14740_v12, 0.0 }
 0x5a2   :  { %v14754_v32 = vmax.f32 %v14741_v19, 0.0  ;;  %v14755_v46 = vmax.f32 %v14742_v42, 0.0  ;;  %v15357_v48 = vadd.f32 %v20046_v31, %v20042_v34  ;;  %v15379_v24 = vmul.f32 %v20046_v31, %v20046_v31  ;;  %v20087_v29 = vpop.f32.mrf.mxu1 }
 0x5a3   :  { %v15402_v52 = vadd.f32 %v15378_v3, %v15376_v14  ;;  %v15339_v35 = vadd.f32 %v15338_v43, %v20048_v47  ;;  %v15380_v13 = vmul.f32 %v20048_v47, %v20048_v47  ;;  %v15381_v56 = vmul.f32 %v20050_v10, %v20050_v10 }
 0x5a4   :  { %14859 = vmatmul.mubr.f32.gmra.mxu0 %v14744_v51  ;;  %v15421_v6 = vadd.f32 %v15379_v24, %v15377_v44  ;;  %v15358_v38 = vadd.f32 %v15357_v48, %v20050_v10  ;;  %v15382_v28 = vmul.f32 %v20052_v2, %v20052_v2  ;;  %v20095_v45 = vpop.f32.mrf.mxu1  ;;  %v15383_v58 = vmul.f32 %v20054_v21, %v20054_v21 }
 0x5a5   :  { %14864 = vmatprep.mubr.f32.mxu0 %v20594_v26  ;;  %v15403_v17 = vadd.f32 %v15402_v52, %v15380_v13  ;;  %v15340_v9 = vadd.f32 %v15339_v35, %v20052_v2  ;;  %v15384_v53 = vmul.f32 %v20056_v33, %v20056_v33  ;;  %v15385_v55 = vmul.f32 %v20058_v0, %v20058_v0 }
 0x5a6   :  { %v15422_v20 = vadd.f32 %v15421_v6, %v15381_v56  ;;  %v15359_v40 = vadd.f32 %v15358_v38, %v20054_v21  ;;  %v20103_v8 = vpop.f32.mrf.mxu1  ;;  %v15386_v11 = vmul.f32 %v20060_v27, %v20060_v27  ;;  %v15391_v14 = vmul.f32 %v20076_v49, %v20076_v49 }
 0x5a7   :  { %v15404_v54 = vadd.f32 %v15403_v17, %v15382_v28  ;;  %v15341_v62 = vadd.f32 %v15340_v9, %v20056_v33  ;;  %v15392_v44 = vmul.f32 %v20087_v29, %v20087_v29  ;;  %v15393_v35 = vmul.f32 %v20095_v45, %v20095_v45 }
 0x5a8   :  { %14865 = vmatmul.mubr.f32.gmra.mxu0 %v14745_v39  ;;  %v15423_v5 = vadd.f32 %v15422_v20, %v15383_v58  ;;  %v15360_v22 = vadd.f32 %v15359_v40, %v20058_v0  ;;  %v20111_v1 = vpop.f32.mrf.mxu1  ;;  %v15388_v39 = vmul.f32 %v20064_v37, %v20064_v37  ;;  %v15394_v38 = vmul.f32 %v20103_v8, %v20103_v8 }
 0x5a9   :  { %14870 = vmatprep.mubr.f32.mxu0 %v20594_v26  ;;  %v15405_v25 = vadd.f32 %v15404_v54, %v15384_v53  ;;  %v15342_v60 = vadd.f32 %v15341_v62, %v20060_v27  ;;  %v15395_v28 = vmul.f32 %v20111_v1, %v20111_v1 }
 0x5aa   :  { %v15424_v12 = vadd.f32 %v15423_v5, %v15385_v55  ;;  %v15361_v19 = vadd.f32 %v15360_v22, %v20062_v4 }
 0x5ab   :  { %v15406_v42 = vadd.f32 %v15405_v25, %v15386_v11  ;;  %v15343_v51 = vadd.f32 %v15342_v60, %v20064_v37 }
 0x5ac   :  { %14871 = vmatmul.mubr.f32.gmra.mxu0 %v14746_v59  ;;  %v20119_v59 = vpop.f32.mrf.mxu1 }
 0x5ad   :  { %14876 = vmatprep.mubr.f32.mxu0 %v20594_v26  ;;  %v15396_v58 = vmul.f32 %v20119_v59, %v20119_v59 }
 0x5b0   :  { %14877 = vmatmul.mubr.f32.gmra.mxu0 %v14747_v57 }
 0x5b1   :  { %14882 = vmatprep.mubr.f32.mxu0 %v20594_v26 }
 0x5b4   :  { %14883 = vmatmul.mubr.f32.gmra.mxu0 %v14748_v7  ;;  %v15362_v7 = vadd.f32 %v15361_v19, %v20066_v18 }
 0x5b5   :  { %14888 = vmatprep.mubr.f32.mxu0 %v20594_v26 }
 0x5b8   :  { %14889 = vmatmul.mubr.f32.gmra.mxu0 %v14749_v15  ;;  %v15389_v15 = vmul.f32 %v20066_v18, %v20066_v18 }
 0x5b9   :  { %14894 = vmatprep.mubr.f32.mxu0 %v20594_v26 }
 0x5bc   :  { %14895 = vmatmul.mubr.f32.gmra.mxu0 %v14750_v63  ;;  %v15407_v63 = vadd.f32 %v15406_v42, %v15388_v39 }
 0x5bd   :  { %14900 = vmatprep.mubr.f32.mxu0 %v20594_v26 }
 0x5c0   :  { %14901 = vmatmul.mubr.f32.gmra.mxu0 %v14751_v41  ;;  %v15344_v41 = vadd.f32 %v15343_v51, %v20068_v23 }
 0x5c1   :  { %14906 = vmatprep.mubr.f32.mxu0 %v20594_v26 }
 0x5c2   :  { %v15345_v3 = vadd.f32 %v15344_v41, %v20087_v29 }
 0x5c4   :  { %14907 = vmatmul.mubr.f32.gmra.mxu0 %v14752_v30  ;;  %v15390_v30 = vmul.f32 %v20068_v23, %v20068_v23  ;;  %v15346_v6 = vadd.f32 %v15345_v3, %v20103_v8 }
 0x5c5   :  { %14912 = vmatprep.mubr.f32.mxu0 %v20594_v26 }
 0x5c6   :  { %v15408_v43 = vadd.f32 %v15407_v63, %v15390_v30  ;;  %v15347_v40 = vadd.f32 %v15346_v6, %v20119_v59 }
 0x5c8   :  { %14913 = vmatmul.mubr.f32.gmra.mxu0 %v14753_v50  ;;  %v20127_v50 = vpop.f32.mrf.mxu1  ;;  %v15409_v13 = vadd.f32 %v15408_v43, %v15392_v44 }
 0x5c9   :  { %14918 = vmatprep.mubr.f32.mxu0 %v20594_v26  ;;  %v15397_v5 = vmul.f32 %v20127_v50, %v20127_v50 }
 0x5ca   :  { %v20135_v48 = vpop.f32.mrf.mxu1  ;;  %v15410_v20 = vadd.f32 %v15409_v13, %v15394_v38 }
 0x5cb   :  { %v15348_v55 = vadd.f32 %v15347_v40, %v20135_v48  ;;  %v15398_v25 = vmul.f32 %v20135_v48, %v20135_v48 }
 0x5cc   :  { %14919 = vmatmul.mubr.f32.gmra.mxu0 %v14754_v32  ;;  %v20143_v56 = vpop.f32.mrf.mxu1  ;;  %v15411_v22 = vadd.f32 %v15410_v20, %v15396_v58 }
 0x5cd   :  { %14924 = vmatprep.mubr.f32.mxu0 %v20594_v26  ;;  %v15387_v26 = vmul.f32 %v20062_v4, %v20062_v4  ;;  %v15399_v42 = vmul.f32 %v20143_v56, %v20143_v56 }
 0x5ce   :  { %v20151_v54 = vpop.f32.mrf.mxu1 }
 0x5cf   :  { %v15425_v57 = vadd.f32 %v15424_v12, %v15387_v26  ;;  %v15349_v11 = vsel %vm308_vm1, %v20151_v54, 0.0  ;;  %v15400_v12 = vmul.f32 %v20151_v54, %v20151_v54 }
 0x5d0   :  { %14925 = vmatmul.mubr.f32.gmra.mxu0 %v14755_v46  ;;  %v15363_v46 = vadd.f32 %v15362_v7, %v20076_v49  ;;  %v20159_v60 = vpop.f32.mrf.mxu1  ;;  %v15350_v7 = vadd.f32 %v15349_v11, %v15348_v55 }
 0x5d1   :  { %v15426_v32 = vadd.f32 %v15425_v57, %v15389_v15  ;;  %v15368_v51 = vsel %vm308_vm1, %v20159_v60, 0.0  ;;  %v15401_v39 = vmul.f32 %v20159_v60, %v20159_v60  ;;  %v15412_v57 = vadd.f32 %v15411_v22, %v15398_v25 }
 0x5d2   :  { %v15364_v52 = vadd.f32 %v15363_v46, %v20095_v45  ;;  %v15413_v15 = vsel %vm308_vm1, %v15400_v12, 0.0 }
 0x5d3   :  { %v15427_v24 = vadd.f32 %v15426_v32, %v15391_v14  ;;  %v15432_v30 = vsel %vm308_vm1, %v15401_v39, 0.0  ;;  %v15351_v32 = vrot.slane %v15350_v7, 4  ;;  %v15414_v46 = vadd.f32 %v15413_v15, %v15412_v57 }
 0x5d4   :  { %v15365_v9 = vadd.f32 %v15364_v52, %v20111_v1 }
 0x5d5   :  { %v15428_v17 = vadd.f32 %v15427_v24, %v15393_v35  ;;  %v15352_v3 = vadd.f32 %v15351_v32, %v15350_v7  ;;  %v15415_v44 = vrot.slane %v15414_v46, 4 }
 0x5d6   :  { %v15366_v53 = vadd.f32 %v15365_v9, %v20127_v50 }
 0x5d7   :  { %v15429_v62 = vadd.f32 %v15428_v17, %v15395_v28  ;;  %v15353_v35 = vrot.slane %v15352_v3, 2  ;;  %v15416_v13 = vadd.f32 %v15415_v44, %v15414_v46 }
 0x5d8   :  { %v15367_v26 = vadd.f32 %v15366_v53, %v20143_v56 }
 0x5d9   :  { %v15430_v19 = vadd.f32 %v15429_v62, %v15397_v5  ;;  %v15354_v9 = vadd.f32 %v15353_v35, %v15352_v3  ;;  %v15417_v28 = vrot.slane %v15416_v13, 2 }
 0x5da   :  { %v15369_v41 = vadd.f32 %v15368_v51, %v15367_v26 }
 0x5db   :  { %v15431_v63 = vadd.f32 %v15430_v19, %v15399_v42  ;;  %v15355_v53 = vrot.slane %v15354_v9, 1  ;;  %v15418_v5 = vadd.f32 %v15417_v28, %v15416_v13 }
 0x5dc   :  { %v15370_v14 = vrot.slane %v15369_v41, 4 }
 0x5dd   :  { %v15433_v43 = vadd.f32 %v15432_v30, %v15431_v63  ;;  %v15356_v12 = vadd.f32 %v15355_v53, %v15354_v9  ;;  %v15419_v19 = vrot.slane %v15418_v5, 1 }
 0x5de   :  { %v15371_v24 = vadd.f32 %v15370_v14, %v15369_v41 }
 0x5df   :  { %v15434_v52 = vrot.slane %v15433_v43, 4  ;;  %v15420_v57 = vadd.f32 %v15419_v19, %v15418_v5  ;;  %v20188_v7 = vmul.f32 0.010204081, %v15356_v12 }
 0x5e0   :  { %v15372_v6 = vrot.slane %v15371_v24, 2 }
 0x5e1   :  { %v15435_v38 = vadd.f32 %v15434_v52, %v15433_v43  ;;  %v15442_v32 = vmul.f32 0.010204081, %v15420_v57  ;;  %v15444_v46 = vmul.f32 %v20188_v7, %v20188_v7 }
 0x5e2   :  { %v15373_v40 = vadd.f32 %v15372_v6, %v15371_v24 }
 0x5e3   :  { %v15436_v58 = vrot.slane %v15435_v38, 2  ;;  %v15446_v24 = vsub.f32 %v15442_v32, %v15444_v46 }
 0x5e4   :  { %v15374_v55 = vrot.slane %v15373_v40, 1 }
 0x5e5   :  { %v15437_v25 = vadd.f32 %v15436_v58, %v15435_v38  ;;  %v15448_v38 = vadd.f32 1e-05, %v15446_v24 }
 0x5e6   :  { %v15375_v42 = vadd.f32 %v15374_v55, %v15373_v40 }
 0x5e7   :  { %v15438_v51 = vrot.slane %v15437_v25, 1  ;;  %16370 = vrsqrt.f32 %v15448_v38 }
 0x5e8   :  { %v20192_v41 = vmul.f32 0.010204081, %v15375_v42 }
 0x5e9   :  { %v15439_v63 = vadd.f32 %v15438_v51, %v15437_v25 }
 0x5ea   :  { %v15445_v3 = vmul.f32 %v20192_v41, %v20192_v41 }
 0x5eb   :  { %v15443_v43 = vmul.f32 0.010204081, %v15439_v63 }
 0x5ed   :  { %v15447_v35 = vsub.f32 %v15443_v43, %v15445_v3 }
 0x5ef   :  { %v15449_v53 = vadd.f32 1e-05, %v15447_v35 }
 0x5f1   :  { %16372 = vrsqrt.f32 %v15449_v53 }
 0x660   :  { %v20174_v17 = vpop.f32.mrf.mxu0 }
 0x661   :  { %v14971_v28 = vmul.f32 %v20174_v17, %v20174_v17 }
 0x662   :  { %v20176_v20 = vpop.f32.mrf.mxu0 }
 0x663   :  { %v14972_v25 = vmul.f32 %v20176_v20, %v20176_v20 }
 0x664   :  { %v20178_v62 = vpop.f32.mrf.mxu0 }
 0x665   :  { %v14973_v6 = vmul.f32 %v20178_v62, %v20178_v62  ;;  %v14933_v5 = vadd.f32 %v20178_v62, %v20174_v17 }
 0x666   :  { %v20180_v22 = vpop.f32.mrf.mxu0 }
 0x667   :  { %v14974_v40 = vmul.f32 %v20180_v22, %v20180_v22  ;;  %v14997_v12 = vadd.f32 %v14973_v6, %v14971_v28  ;;  %v14952_v51 = vadd.f32 %v20180_v22, %v20176_v20 }
 0x668   :  { %v20182_v11 = vpop.f32.mrf.mxu0 }
 0x669   :  { %v14975_v58 = vmul.f32 %v20182_v11, %v20182_v11  ;;  %v14934_v57 = vadd.f32 %v14933_v5, %v20182_v11  ;;  %v15016_v32 = vadd.f32 %v14974_v40, %v14972_v25 }
 0x66a   :  { %v20184_v26 = vpop.f32.mrf.mxu0 }
 0x66b   :  { %v14976_v19 = vmul.f32 %v20184_v26, %v20184_v26  ;;  %v14998_v46 = vadd.f32 %v14997_v12, %v14975_v58  ;;  %v14953_v24 = vadd.f32 %v14952_v51, %v20184_v26 }
 0x66c   :  { %v20186_v39 = vpop.f32.mrf.mxu0 }
 0x66d   :  { %20595 = vst [vmem:[#allocation25_spill] sm:$0xff] %v20186_v39  ;;  %v14977_v42 = vmul.f32 %v20186_v39, %v20186_v39  ;;  %v14935_v35 = vadd.f32 %v14934_v57, %v20186_v39  ;;  %v15017_v38 = vadd.f32 %v15016_v32, %v14976_v19 }
 0x66e   :  { %v20190_v15 = vpop.f32.mrf.mxu0 }
 0x66f   :  { %v14978_v43 = vmul.f32 %v20190_v15, %v20190_v15  ;;  %v14999_v28 = vadd.f32 %v14998_v46, %v14977_v42  ;;  %v14954_v58 = vadd.f32 %v14953_v24, %v20190_v15 }
 0x670   :  { %v20194_v30 = vpop.f32.mrf.mxu0 }
 0x671   :  { %20596 = vst [vmem:[#allocation41_spill] sm:$0xff] %v20194_v30  ;;  %v14979_v3 = vmul.f32 %v20194_v30, %v20194_v30  ;;  %v14936_v25 = vadd.f32 %v14935_v35, %v20194_v30  ;;  %v15018_v53 = vadd.f32 %v15017_v38, %v14978_v43 }
 0x672   :  { %v20198_v14 = vpop.f32.mrf.mxu0 }
 0x673   :  { %v14980_v5 = vmul.f32 %v20198_v14, %v20198_v14  ;;  %v15000_v51 = vadd.f32 %v14999_v28, %v14979_v3  ;;  %v14955_v42 = vadd.f32 %v14954_v58, %v20198_v14 }
 0x674   :  { %v20202_v44 = vpop.f32.mrf.mxu0 }
 0x675   :  { %20597 = vst [vmem:[#allocation42_spill] sm:$0xff] %v20202_v44  ;;  %v14981_v40 = vmul.f32 %v20202_v44, %v20202_v44  ;;  %v14937_v32 = vadd.f32 %v14936_v25, %v20202_v44  ;;  %v15019_v39 = vadd.f32 %v15018_v53, %v14980_v5 }
 0x676   :  { %v20204_v52 = vpop.f32.mrf.mxu0 }
 0x677   :  { %20598 = vst [vmem:[#allocation35_spill] sm:$0xff] %v20204_v52  ;;  %v14982_v57 = vmul.f32 %v20204_v52, %v20204_v52  ;;  %v15001_v24 = vadd.f32 %v15000_v51, %v14981_v40  ;;  %v14956_v3 = vadd.f32 %v14955_v42, %v20204_v52 }
 0x678   :  { %v20206_v13 = vpop.f32.mrf.mxu0 }
 0x679   :  { %20599 = vst [vmem:[#allocation34_spill] sm:$0xff] %v20206_v13  ;;  %v14983_v19 = vmul.f32 %v20206_v13, %v20206_v13  ;;  %v14938_v38 = vadd.f32 %v14937_v32, %v20206_v13  ;;  %v15020_v30 = vadd.f32 %v15019_v39, %v14982_v57  ;;  %v16371_v13 = vpop.eup %16370 }
 0x67a   :  { %v20210_v9 = vpop.f32.mrf.mxu0 }
 0x67b   :  { %20600 = vst [vmem:[#allocation37_spill] sm:$0xff] %v20210_v9  ;;  %v14984_v35 = vmul.f32 %v20210_v9, %v20210_v9  ;;  %v15002_v58 = vadd.f32 %v15001_v24, %v14983_v19  ;;  %v14957_v40 = vadd.f32 %v14956_v3, %v20210_v9 }
 0x67c   :  { %v20220_v55 = vpop.f32.mrf.mxu0 }
 0x67d   :  { %20601 = vst [vmem:[#allocation36_spill] sm:$0xff] %v20220_v55  ;;  %v14985_v43 = vmul.f32 %v20220_v55, %v20220_v55  ;;  %v14939_v53 = vadd.f32 %v14938_v38, %v20220_v55  ;;  %v15021_v44 = vadd.f32 %v15020_v30, %v14984_v35 }
 0x67e   :  { %v20231_v63 = vpop.f32.mrf.mxu0 }
 0x67f   :  { %20602 = vst [vmem:[#allocation26_spill] sm:$0xff] %v20231_v63  ;;  %v14986_v25 = vmul.f32 %v20231_v63, %v20231_v63  ;;  %v15003_v42 = vadd.f32 %v15002_v58, %v14985_v43  ;;  %v14958_v57 = vadd.f32 %v14957_v40, %v20231_v63  ;;  %v16373_v40 = vpop.eup %16372 }
 0x680   :  { %v20239_v6 = vpop.f32.mrf.mxu0 }
 0x681   :  { %20603 = vst [vmem:[#allocation27_spill] sm:$0xff] %v20239_v6  ;;  %v14987_v5 = vmul.f32 %v20239_v6, %v20239_v6  ;;  %v14940_v19 = vadd.f32 %v14939_v53, %v20239_v6  ;;  %v15022_v3 = vadd.f32 %v15021_v44, %v14986_v25 }
 0x682   :  { %v20247_v12 = vpop.f32.mrf.mxu0 }
 0x683   :  { %20604 = vst [vmem:[#allocation38_spill] sm:$0xff] %v20247_v12  ;;  %v14988_v32 = vmul.f32 %v20247_v12, %v20247_v12  ;;  %v15004_v9 = vadd.f32 %v15003_v42, %v14987_v5  ;;  %v14959_v30 = vadd.f32 %v14958_v57, %v20247_v12 }
 0x684   :  { %v20255_v46 = vpop.f32.mrf.mxu0 }
 0x685   :  { %20605 = vst [vmem:[#allocation43_spill] sm:$0xff] %v20255_v46  ;;  %v14989_v39 = vmul.f32 %v20255_v46, %v20255_v46  ;;  %v14941_v35 = vadd.f32 %v14940_v19, %v20255_v46  ;;  %v15023_v63 = vadd.f32 %v15022_v3, %v14988_v32 }
 0x686   :  { %v20263_v28 = vpop.f32.mrf.mxu0 }
 0x687   :  { %20606 = vst [vmem:[#allocation45_spill] sm:$0xff] %v20263_v28  ;;  %v14990_v38 = vmul.f32 %v20263_v28, %v20263_v28  ;;  %v15005_v53 = vadd.f32 %v15004_v9, %v14989_v39  ;;  %v14960_v6 = vadd.f32 %v14959_v30, %v20263_v28  ;;  %v15454_v39 = vcombine.low %v16371_v13, %v16373_v40 }
 0x688   :  { %v20271_v51 = vpop.f32.mrf.mxu0 }
 0x689   :  { %20607 = vst [vmem:[#allocation28_spill] sm:$0xff] %v20271_v51  ;;  %v14991_v43 = vmul.f32 %v20271_v51, %v20271_v51  ;;  %v14942_v44 = vadd.f32 %v14941_v35, %v20271_v51  ;;  %v15024_v57 = vadd.f32 %v15023_v63, %v14990_v38 }
 0x68a   :  { %v20279_v24 = vpop.f32.mrf.mxu0 }
 0x68b   :  { %20608 = vst [vmem:[#allocation29_spill] sm:$0xff] %v20279_v24  ;;  %v14992_v25 = vmul.f32 %v20279_v24, %v20279_v24  ;;  %v15006_v19 = vadd.f32 %v15005_v53, %v14991_v43  ;;  %v14961_v46 = vadd.f32 %v14960_v6, %v20279_v24 }
 0x68c   :  { %v20287_v58 = vpop.f32.mrf.mxu0 }
 0x68d   :  { %20609 = vst [vmem:[#allocation39_spill] sm:$0xff] %v20287_v58  ;;  %v14993_v5 = vmul.f32 %v20287_v58, %v20287_v58  ;;  %v14943_v12 = vadd.f32 %v14942_v44, %v20287_v58  ;;  %v15025_v35 = vadd.f32 %v15024_v57, %v14992_v25 }
 0x68e   :  { %v20295_v42 = vpop.f32.mrf.mxu0 }
 0x68f   :  { %20610 = vst [vmem:[#allocation44_spill] sm:$0xff] %v20295_v42  ;;  %v14994_v9 = vmul.f32 %v20295_v42, %v20295_v42  ;;  %v15007_v51 = vadd.f32 %v15006_v19, %v14993_v5  ;;  %v14962_v63 = vadd.f32 %v14961_v46, %v20295_v42 }
 0x690   :  { %v20301_v32 = vpop.f32.mrf.mxu0 }
 0x691   :  { %20611 = vst [vmem:[#allocation46_spill] sm:$0xff] %v20301_v32  ;;  %v14944_v3 = vsel %vm308_vm1, %v20301_v32, 0.0  ;;  %v14995_v30 = vmul.f32 %v20301_v32, %v20301_v32  ;;  %v15026_v40 = vadd.f32 %v15025_v35, %v14994_v9  ;;  %v20613_v32 = vld [vmem:[#allocation23_spill] sm:$0xff]  ;;  %v15336_v9 = vld [vmem:[%s20506_s11] sm:$0x3] }
 0x692   :  { %v14945_v38 = vadd.f32 %v14944_v3, %v14943_v12  ;;  %v20308_v6 = vpop.f32.mrf.mxu0  ;;  %v15461_v25 = vrot.slane %v15454_v39, %v20613_v32 }
 0x693   :  { %20612 = vst [vmem:[#allocation47_spill] sm:$0xff] %v20308_v6  ;;  %v15008_v43 = vsel %vm308_vm1, %v14995_v30, 0.0  ;;  %v14963_v53 = vsel %vm308_vm1, %v20308_v6, 0.0  ;;  %v14996_v13 = vmul.f32 %v20308_v6, %v20308_v6 }
 0x694   :  { %v14946_v44 = vrot.slane %v14945_v38, 4  ;;  %v15009_v58 = vadd.f32 %v15008_v43, %v15007_v51  ;;  %v14964_v24 = vadd.f32 %v14963_v53, %v14962_v63  ;;  %v15468_v55 = vrot.slane %v15461_v25, %v20613_v32 }
 0x695   :  { %v15027_v5 = vsel %vm308_vm1, %v14996_v13, 0.0 }
 0x696   :  { %v14947_v46 = vadd.f32 %v14946_v44, %v14945_v38  ;;  %v15010_v12 = vrot.slane %v15009_v58, 4  ;;  %v14965_v57 = vrot.slane %v14964_v24, 4  ;;  %v15028_v19 = vadd.f32 %v15027_v5, %v15026_v40  ;;  %v20614_v44 = vld [vmem:[#allocation22_spill] sm:$0xff] }
 0x697   :  { %v20322_v40 = vsub.s32 1, %v20614_v44 }
 0x698   :  { %v14948_v3 = vrot.slane %v14947_v46, 2  ;;  %v15011_v30 = vadd.f32 %v15010_v12, %v15009_v58  ;;  %v14966_v42 = vadd.f32 %v14965_v57, %v14964_v24  ;;  %v15029_v28 = vrot.slane %v15028_v19, 4 }
 0x699   :  { %v15470_v58 = vmul.f32 %v15468_v55, %v15336_v9 }
 0x69a   :  { %v14949_v51 = vadd.f32 %v14948_v3, %v14947_v46  ;;  %v15012_v35 = vrot.slane %v15011_v30, 2  ;;  %v14967_v63 = vrot.slane %v14966_v42, 2  ;;  %v15030_v39 = vadd.f32 %v15029_v28, %v15028_v19 }
 0x69b   :  { %v15475_v3 = vrot.slane %v15470_v58, %v20593_v61  ;;  %v15479_v28 = vrot.slane %v15470_v58, %v20322_v40  ;;  %v15337_v58 = vld [vmem:[%s20507_s12] sm:$0x3] }
 0x69c   :  { %v14950_v43 = vrot.slane %v14949_v51, 1  ;;  %v15013_v53 = vadd.f32 %v15012_v35, %v15011_v30  ;;  %v14968_v38 = vadd.f32 %v14967_v63, %v14966_v42  ;;  %v15031_v13 = vrot.slane %v15030_v39, 2 }
 0x69d   :  { %v15482_v63 = vmul.f32 %v15475_v3, %v20188_v7  ;;  %v15503_v7 = vmul.f32 %v15475_v3, %v20040_v36  ;;  %v15512_v36 = vmul.f32 %v15479_v28, %v20058_v0  ;;  %v15519_v0 = vmul.f32 %v15475_v3, %v20087_v29 }
 0x69e   :  { %v14951_v24 = vadd.f32 %v14950_v43, %v14949_v51  ;;  %v15014_v5 = vrot.slane %v15013_v53, 1  ;;  %v14969_v12 = vrot.slane %v14968_v38, 1  ;;  %v15032_v25 = vadd.f32 %v15031_v13, %v15030_v39 }
 0x69f   :  { %v15483_v39 = vmul.f32 %v15479_v28, %v20192_v41  ;;  %v15504_v41 = vmul.f32 %v15479_v28, %v20042_v34  ;;  %v15513_v34 = vmul.f32 %v15475_v3, %v20060_v27  ;;  %v15520_v27 = vmul.f32 %v15479_v28, %v20095_v45 }
 0x6a0   :  { %v15015_v57 = vadd.f32 %v15014_v5, %v15013_v53  ;;  %v20324_v6 = vmul.f32 0.010204081, %v14951_v24  ;;  %v14970_v52 = vadd.f32 %v14969_v12, %v14968_v38  ;;  %v15033_v46 = vrot.slane %v15032_v25, 1 }
 0x6a1   :  { %v15486_v13 = vcombine.low %v15482_v63, %v15483_v39  ;;  %v15523_v63 = vmul.f32 %v15475_v3, %v20119_v59  ;;  %v15526_v29 = vmul.f32 %v15479_v28, %v20143_v56  ;;  %v15527_v45 = vmul.f32 %v15475_v3, %v20151_v54 }
 0x6a2   :  { %v15037_v19 = vmul.f32 0.010204081, %v15015_v57  ;;  %v15039_v42 = vmul.f32 %v20324_v6, %v20324_v6  ;;  %v15034_v30 = vadd.f32 %v15033_v46, %v15032_v25  ;;  %v20330_v35 = vmul.f32 0.010204081, %v14970_v52 }
 0x6a3   :  { %v15493_v44 = vrot.slane %v15486_v13, %v20613_v32  ;;  %v15505_v25 = vmul.f32 %v15475_v3, %v20044_v16  ;;  %v15506_v57 = vmul.f32 %v15479_v28, %v20046_v31  ;;  %v15507_v46 = vmul.f32 %v15475_v3, %v20048_v47 }
 0x6a4   :  { %v15041_v55 = vsub.f32 %v15037_v19, %v15039_v42  ;;  %v15038_v9 = vmul.f32 0.010204081, %v15034_v30  ;;  %v15040_v51 = vmul.f32 %v20330_v35, %v20330_v35  ;;  %v15508_v19 = vmul.f32 %v15479_v28, %v20050_v10 }
 0x6a5   :  { %v15500_v52 = vrot.slane %v15493_v44, %v20613_v32  ;;  %v15509_v42 = vmul.f32 %v15475_v3, %v20052_v2  ;;  %v15510_v30 = vmul.f32 %v15479_v28, %v20054_v21  ;;  %v15515_v16 = vmul.f32 %v15475_v3, %v20064_v37 }
 0x6a6   :  { %v15043_v43 = vadd.f32 1e-05, %v15041_v55  ;;  %v15042_v53 = vsub.f32 %v15038_v9, %v15040_v51  ;;  %v15511_v55 = vmul.f32 %v15475_v3, %v20056_v33  ;;  %v15514_v51 = vmul.f32 %v15479_v28, %v20062_v4  ;;  %v14931_v4 = vld [vmem:[%s20503_s8] sm:$0x3] }
 0x6a7   :  { %v15502_v5 = vsub.f32 %v15337_v58, %v15500_v52  ;;  %v15516_v31 = vmul.f32 %v15479_v28, %v20066_v18  ;;  %v15517_v21 = vmul.f32 %v15475_v3, %v20068_v23  ;;  %v15518_v33 = vmul.f32 %v15479_v28, %v20076_v49 }
 0x6a8   :  { %v15044_v38 = vadd.f32 1e-05, %v15042_v53  ;;  %16374 = vrsqrt.f32 %v15043_v43  ;;  %v15521_v37 = vmul.f32 %v15475_v3, %v20103_v8  ;;  %v15522_v18 = vmul.f32 %v15479_v28, %v20111_v1 }
 0x6a9   :  { %v15533_v47 = vrot.slane %v15502_v5, %v20593_v61  ;;  %v15537_v10 = vrot.slane %v15502_v5, %v20322_v40  ;;  %v15524_v23 = vmul.f32 %v15479_v28, %v20127_v50  ;;  %v15525_v49 = vmul.f32 %v15475_v3, %v20135_v48 }
 0x6aa   :  { %16376 = vrsqrt.f32 %v15044_v38  ;;  %v15528_v43 = vmul.f32 %v15479_v28, %v20159_v60 }
 0x6ab   :  { %v20374_v53 = vadd.f32 %v15533_v47, %v15503_v7  ;;  %v20376_v38 = vadd.f32 %v15537_v10, %v15504_v41  ;;  %v20378_v1 = vadd.f32 %v15533_v47, %v15505_v25  ;;  %v20380_v59 = vadd.f32 %v15537_v10, %v15506_v57 }
 0x6ac   :  { %v20382_v13 = vadd.f32 %v15533_v47, %v15507_v46  ;;  %v20384_v50 = vadd.f32 %v15537_v10, %v15508_v19  ;;  %v20386_v48 = vadd.f32 %v15533_v47, %v15509_v42  ;;  %v20388_v56 = vadd.f32 %v15537_v10, %v15510_v30 }
 0x6ad   :  { %v20392_v3 = vadd.f32 %v15533_v47, %v15511_v55  ;;  %v20394_v28 = vadd.f32 %v15537_v10, %v15512_v36  ;;  %v20396_v44 = vadd.f32 %v15533_v47, %v15513_v34  ;;  %v20398_v52 = vadd.f32 %v15537_v10, %v15514_v51 }
 0x6ae   :  { %v20400_v58 = vadd.f32 %v15533_v47, %v15515_v16  ;;  %v20406_v41 = vadd.f32 %v15533_v47, %v15517_v21  ;;  %v20410_v25 = vadd.f32 %v15533_v47, %v15519_v0  ;;  %v20412_v57 = vadd.f32 %v15537_v10, %v15520_v27  ;;  %v20626_v0 = vld [vmem:[#allocation25_spill] sm:$0xff] }
 0x6af   :  { %v20414_v46 = vadd.f32 %v15533_v47, %v15521_v37  ;;  %v20416_v19 = vadd.f32 %v15537_v10, %v15522_v18  ;;  %v20418_v42 = vadd.f32 %v15533_v47, %v15523_v63  ;;  %v20420_v55 = vadd.f32 %v15537_v10, %v15524_v23  ;;  %v20628_v18 = vld [vmem:[#allocation42_spill] sm:$0xff] }
 0x6b0   :  { %20616 = vst [vmem:[#allocation31_spill] sm:$0xff] %v20410_v25  ;;  %20617 = vst [vmem:[#allocation48_spill] sm:$0xff] %v20412_v57  ;;  %v20428_v36 = vadd.f32 %v15537_v10, %v15528_v43  ;;  %v20630_v23 = vld [vmem:[#allocation34_spill] sm:$0xff] }
 0x6b1   :  { %20618 = vst [vmem:[#allocation49_spill] sm:$0xff] %v20414_v46  ;;  %20619 = vst [vmem:[#allocation32_spill] sm:$0xff] %v20416_v19 }
 0x6b2   :  { %20620 = vst [vmem:[#allocation33_spill] sm:$0xff] %v20418_v42  ;;  %20621 = vst [vmem:[#allocation50_spill] sm:$0xff] %v20420_v55 }
 0x6b3   :  { %20625 = vst [vmem:[#allocation23_spill] sm:$0xff] %v20428_v36 }
 0x6b5   :  { %v16375_v24 = vpop.eup %16374 }
 0x6b7   :  { %v16377_v12 = vpop.eup %16376 }
 0x6b8   :  { %v15049_v9 = vcombine.low %v16375_v24, %v16377_v12  ;;  %v20402_v24 = vadd.f32 %v15537_v10, %v15516_v31  ;;  %v20408_v12 = vadd.f32 %v15537_v10, %v15518_v33  ;;  %v14932_v31 = vld [vmem:[%s20504_s9] sm:$0x3]  ;;  %s16580_s9 = smov [#allocation16]  }
 0x6b9   :  { %s15649_s7 = sshll.u32 %s16580_s9, 4  ;;  %s15650_s7 = int_to_ptr.vmem [resolvable:$true] %s15649_s7 }
 0x6ba   :  { %v15056_v2 = vrot.slane %v15049_v9, %v20613_v32  ;;  %20615 = vst [vmem:[#allocation30_spill] sm:$0xff] %v20408_v12  ;;  %v20426_v9 = vadd.f32 %v15533_v47, %v15527_v45  ;;  %s16536_s17 = scalar_lea.vmem %s15650_s7, 3328  ;;  %p16541_p8 = scmp.lt.s32.totalorder %s15650_s7, %s15650_s7 }
 0x6bb   :  { %p16537_p7 = scmp.ne.s32.totalorder %s15650_s7, %s16536_s17  ;;  %p16542_p9 = scmp.lt.s32.totalorder %s16536_s17, %s16536_s17 }
 0x6bc   :  { %v15063_v39 = vrot.slane %v15056_v2, %v20613_v32  ;;  %20624 = vst [vmem:[#allocation40_spill] sm:$0xff] %v20426_v9  ;;  %v20642_v9 = vld [vmem:[#allocation46_spill] sm:$0xff] }
 0x6bd   :  { %p16543_p10 = por %p16542_p9, %p16541_p8 }
 0x6be   :  { %v15065_v8 = vmul.f32 %v15063_v39, %v14931_v4  ;;  %v20627_v4 = vld [vmem:[#allocation41_spill] sm:$0xff]  ;;  %v20629_v39 = vld [vmem:[#allocation35_spill] sm:$0xff] }
 0x6bf   :  { %p16544_p11 = pnand %p16543_p10, %p16537_p7 }
 0x6c0   :  { %v15070_v54 = vrot.slane %v15065_v8, %v20593_v61  ;;  %v15074_v60 = vrot.slane %v15065_v8, %v20322_v40  ;;  %v20634_v8 = vld [vmem:[#allocation27_spill] sm:$0xff] }
 0x6c2   :  { %v15077_v5 = vmul.f32 %v15070_v54, %v20324_v6  ;;  %v15078_v7 = vmul.f32 %v15074_v60, %v20330_v35  ;;  %v20422_v6 = vadd.f32 %v15533_v47, %v15525_v49  ;;  %v20424_v35 = vadd.f32 %v15537_v10, %v15526_v29 }
 0x6c3   :  { %v15098_v51 = vmul.f32 %v15070_v54, %v20174_v17  ;;  %v15099_v16 = vmul.f32 %v15074_v60, %v20176_v20  ;;  %v15100_v2 = vmul.f32 %v15070_v54, %v20178_v62  ;;  %v15101_v21 = vmul.f32 %v15074_v60, %v20180_v22 }
 0x6c4   :  { %v15081_v30 = vcombine.low %v15077_v5, %v15078_v7  ;;  %20622 = vst [vmem:[#allocation51_spill] sm:$0xff] %v20422_v6  ;;  %20623 = vst [vmem:[#allocation24_spill] sm:$0xff] %v20424_v35  ;;  %v15102_v33 = vmul.f32 %v15070_v54, %v20182_v11  ;;  %v15103_v47 = vmul.f32 %v15074_v60, %v20184_v26  ;;  %v20631_v11 = vld [vmem:[#allocation37_spill] sm:$0xff]  ;;  %v20632_v26 = vld [vmem:[#allocation36_spill] sm:$0xff] }
 0x6c5   :  { %v15104_v27 = vmul.f32 %v15070_v54, %v20626_v0  ;;  %v15105_v17 = vmul.f32 %v15074_v60, %v20190_v15  ;;  %v15106_v20 = vmul.f32 %v15070_v54, %v20627_v4  ;;  %v15107_v37 = vmul.f32 %v15074_v60, %v20198_v14  ;;  %v20635_v15 = vld [vmem:[#allocation38_spill] sm:$0xff]  ;;  %v20637_v14 = vld [vmem:[#allocation45_spill] sm:$0xff]  ;;  %v20638_v4 = vld [vmem:[#allocation28_spill] sm:$0xff] }
 0x6c6   :  { %v15088_v34 = vrot.slane %v15081_v30, %v20613_v32  ;;  %v15108_v63 = vmul.f32 %v15070_v54, %v20628_v18  ;;  %v15109_v62 = vmul.f32 %v15074_v60, %v20629_v39  ;;  %v15110_v22 = vmul.f32 %v15070_v54, %v20630_v23  ;;  %v20636_v30 = vld [vmem:[#allocation43_spill] sm:$0xff]  ;;  %v20639_v39 = vld [vmem:[#allocation29_spill] sm:$0xff] }
 0x6c7   :  { %v15111_v29 = vmul.f32 %v15074_v60, %v20631_v11  ;;  %v15112_v45 = vmul.f32 %v15070_v54, %v20632_v26  ;;  %v15114_v5 = vmul.f32 %v15070_v54, %v20634_v8  ;;  %v15115_v7 = vmul.f32 %v15074_v60, %v20635_v15  ;;  %v20640_v23 = vld [vmem:[#allocation39_spill] sm:$0xff]  ;;  %v20641_v26 = vld [vmem:[#allocation44_spill] sm:$0xff] }
 0x6c8   :  { %v15095_v10 = vrot.slane %v15088_v34, %v20613_v32  ;;  %v20633_v32 = vld [vmem:[#allocation26_spill] sm:$0xff]  ;;  %v15116_v34 = vmul.f32 %v15070_v54, %v20636_v30  ;;  %v15117_v0 = vmul.f32 %v15074_v60, %v20637_v14  ;;  %v15118_v18 = vmul.f32 %v15070_v54, %v20638_v4  ;;  %v20643_v35 = vld [vmem:[#allocation47_spill] sm:$0xff] }
 0x6c9   :  { %v15113_v43 = vmul.f32 %v15074_v60, %v20633_v32  ;;  %v15119_v36 = vmul.f32 %v15074_v60, %v20639_v39  ;;  %v15120_v11 = vmul.f32 %v15070_v54, %v20640_v23  ;;  %v15121_v32 = vmul.f32 %v15074_v60, %v20641_v26 }
 0x6ca   :  { %v15097_v49 = vsub.f32 %v14932_v31, %v15095_v10  ;;  %v15122_v8 = vmul.f32 %v15070_v54, %v20642_v9  ;;  %v15123_v15 = vmul.f32 %v15074_v60, %v20643_v35 }
 0x6cc   :  { %v15128_v31 = vrot.slane %v15097_v49, %v20593_v61  ;;  %v15132_v10 = vrot.slane %v15097_v49, %v20322_v40 }
 0x6ce   :  { %v15135_v6 = vadd.f32 %v15128_v31, %v15098_v51  ;;  %v15136_v30 = vadd.f32 %v15132_v10, %v15099_v16  ;;  %v15137_v55 = vadd.f32 %v15128_v31, %v15100_v2  ;;  %v15138_v14 = vadd.f32 %v15132_v10, %v15101_v21 }
 0x6cf   :  { %v15139_v42 = vadd.f32 %v15128_v31, %v15102_v33  ;;  %v15140_v4 = vadd.f32 %v15132_v10, %v15103_v47  ;;  %v15141_v19 = vadd.f32 %v15128_v31, %v15104_v27  ;;  %v15142_v39 = vadd.f32 %v15132_v10, %v15105_v17 }
 0x6d0   :  { %v15143_v46 = vadd.f32 %v15128_v31, %v15106_v20  ;;  %v15144_v61 = vadd.f32 %v15132_v10, %v15107_v37  ;;  %v15145_v57 = vadd.f32 %v15128_v31, %v15108_v63  ;;  %v15146_v40 = vadd.f32 %v15132_v10, %v15109_v62 }
 0x6d1   :  { %v15147_v49 = vadd.f32 %v15128_v31, %v15110_v22  ;;  %v15148_v23 = vadd.f32 %v15132_v10, %v15111_v29  ;;  %v15149_v25 = vadd.f32 %v15128_v31, %v15112_v45  ;;  %v15150_v26 = vadd.f32 %v15132_v10, %v15113_v43  ;;  %v20649_v45 = vld [vmem:[#allocation33_spill] sm:$0xff]  ;;  %v20651_v43 = vld [vmem:[#allocation51_spill] sm:$0xff] }
 0x6d2   :  { %v15151_v12 = vadd.f32 %v15128_v31, %v15114_v5  ;;  %v15152_v54 = vadd.f32 %v15132_v10, %v15115_v7  ;;  %v15153_v9 = vadd.f32 %v15128_v31, %v15116_v34  ;;  %v15154_v60 = vadd.f32 %v15132_v10, %v15117_v0  ;;  %v20652_v5 = vld [vmem:[#allocation24_spill] sm:$0xff] }
 0x6d3   :  { %v15155_v35 = vadd.f32 %v15128_v31, %v15118_v18  ;;  %v15156_v51 = vadd.f32 %v15132_v10, %v15119_v36  ;;  %v15157_v16 = vadd.f32 %v15128_v31, %v15120_v11  ;;  %v15158_v2 = vadd.f32 %v15132_v10, %v15121_v32  ;;  %v20653_v7 = vld [vmem:[#allocation40_spill] sm:$0xff] }
 0x6d4   :  { %v15159_v21 = vadd.f32 %v15128_v31, %v15122_v8  ;;  %v15160_v33 = vadd.f32 %v15132_v10, %v15123_v15  ;;  %v15566_v47 = vadd.f32 %v20374_v53, %v15135_v6  ;;  %v15567_v27 = vadd.f32 %v20376_v38, %v15136_v30  ;;  %v20647_v6 = vld [vmem:[#allocation49_spill] sm:$0xff] }
 0x6d5   :  { %v15568_v17 = vadd.f32 %v20378_v1, %v15137_v55  ;;  %v15569_v20 = vadd.f32 %v20380_v59, %v15138_v14  ;;  %v15570_v37 = vadd.f32 %v20382_v13, %v15139_v42  ;;  %v15571_v63 = vadd.f32 %v20384_v50, %v15140_v4  ;;  %v20644_v42 = vld [vmem:[#allocation30_spill] sm:$0xff]  ;;  %v20645_v55 = vld [vmem:[#allocation31_spill] sm:$0xff] }
 0x6d6   :  { %v15572_v62 = vadd.f32 %v20386_v48, %v15141_v19  ;;  %v15573_v36 = vadd.f32 %v20388_v56, %v15142_v39  ;;  %v15574_v22 = vadd.f32 %v20392_v3, %v15143_v46  ;;  %v15575_v29 = vadd.f32 %v20394_v28, %v15144_v61  ;;  %v20646_v19 = vld [vmem:[#allocation48_spill] sm:$0xff] }
 0x6d7   :  { %v15576_v53 = vadd.f32 %v20396_v44, %v15145_v57  ;;  %v15577_v38 = vadd.f32 %v20398_v52, %v15146_v40  ;;  %v15578_v1 = vadd.f32 %v20400_v58, %v15147_v49  ;;  %v15579_v59 = vadd.f32 %v20402_v24, %v15148_v23  ;;  %v20648_v46 = vld [vmem:[#allocation32_spill] sm:$0xff]  ;;  %v20650_v57 = vld [vmem:[#allocation50_spill] sm:$0xff] }
 0x6d8   :  { %v15580_v13 = vadd.f32 %v20406_v41, %v15149_v25  ;;  %v15581_v50 = vadd.f32 %v20644_v42, %v15150_v26  ;;  %v15582_v48 = vadd.f32 %v20645_v55, %v15151_v12  ;;  %v15583_v56 = vadd.f32 %v20646_v19, %v15152_v54  ;;  %v20654_v25 = vld [vmem:[#allocation23_spill] sm:$0xff] }
 0x6d9   :  { %v15584_v3 = vadd.f32 %v20647_v6, %v15153_v9  ;;  %v15585_v28 = vadd.f32 %v20648_v46, %v15154_v60  ;;  %v15586_v44 = vadd.f32 %v20649_v45, %v15155_v35  ;;  %v15587_v52 = vadd.f32 %v20650_v57, %v15156_v51 }
 0x6da   :  { %v15588_v58 = vadd.f32 %v20651_v43, %v15157_v16  ;;  %v15589_v24 = vadd.f32 %v20652_v5, %v15158_v2  ;;  %v15590_v41 = vadd.f32 %v20653_v7, %v15159_v21  ;;  %v15591_v34 = vadd.f32 %v20654_v25, %v15160_v33 }
 0x6db   :  { %v15592_v0 = vmax.f32 %v15566_v47, 0.0  ;;  %v15593_v12 = vmax.f32 %v15567_v27, 0.0  ;;  %v15594_v18 = vmax.f32 %v15568_v17, 0.0  ;;  %v15595_v31 = vmax.f32 %v15569_v20, 0.0 }
 0x6dc   :  { %v15596_v10 = vmax.f32 %v15570_v37, 0.0  ;;  %v15597_v11 = vmax.f32 %v15571_v63, 0.0  ;;  %v15598_v32 = vmax.f32 %v15572_v62, 0.0  ;;  %v15599_v8 = vmax.f32 %v15573_v36, 0.0 }
 0x6dd   :  { %v15600_v15 = vmax.f32 %v15574_v22, 0.0  ;;  %v15601_v30 = vmax.f32 %v15575_v29, 0.0  ;;  %v15602_v14 = vmax.f32 %v15576_v53, 0.0  ;;  %v15603_v4 = vmax.f32 %v15577_v38, 0.0  ;;  %15618 = vst [vmem:[#allocation16] sm:$0xff] %v15592_v0  ;;  %15619 = vst [vmem:[#allocation16 + $0x8] sm:$0xff] %v15593_v12 }
 0x6de   :  { %15620 = vst [vmem:[#allocation16 + $0x10] sm:$0xff] %v15594_v18  ;;  %15621 = vst [vmem:[#allocation16 + $0x18] sm:$0xff] %v15595_v31  ;;  %v15604_v39 = vmax.f32 %v15578_v1, 0.0  ;;  %v15605_v61 = vmax.f32 %v15579_v59, 0.0  ;;  %v15606_v40 = vmax.f32 %v15580_v13, 0.0  ;;  %v15607_v49 = vmax.f32 %v15581_v50, 0.0 }
 0x6df   :  { %15622 = vst [vmem:[#allocation16 + $0x20] sm:$0xff] %v15596_v10  ;;  %15623 = vst [vmem:[#allocation16 + $0x28] sm:$0xff] %v15597_v11  ;;  %v15608_v23 = vmax.f32 %v15582_v48, 0.0  ;;  %v15609_v26 = vmax.f32 %v15583_v56, 0.0  ;;  %v15610_v54 = vmax.f32 %v15584_v3, 0.0  ;;  %v15611_v9 = vmax.f32 %v15585_v28, 0.0 }
 0x6e0   :  { %15624 = vst [vmem:[#allocation16 + $0x30] sm:$0xff] %v15598_v32  ;;  %15625 = vst [vmem:[#allocation16 + $0x38] sm:$0xff] %v15599_v8  ;;  %v15612_v60 = vmax.f32 %v15586_v44, 0.0  ;;  %v15613_v35 = vmax.f32 %v15587_v52, 0.0  ;;  %v15614_v51 = vmax.f32 %v15588_v58, 0.0  ;;  %v15615_v16 = vmax.f32 %v15589_v24, 0.0 }
 0x6e1   :  { %15626 = vst [vmem:[#allocation16 + $0x40] sm:$0xff] %v15600_v15  ;;  %15627 = vst [vmem:[#allocation16 + $0x48] sm:$0xff] %v15601_v30  ;;  %v15616_v2 = vmax.f32 %v15590_v41, 0.0  ;;  %v15617_v21 = vmax.f32 %v15591_v34, 0.0 }
 0x6e2   :  { %15628 = vst [vmem:[#allocation16 + $0x50] sm:$0xff] %v15602_v14  ;;  %15629 = vst [vmem:[#allocation16 + $0x58] sm:$0xff] %v15603_v4 }
 0x6e3   :  { %15630 = vst [vmem:[#allocation16 + $0x60] sm:$0xff] %v15604_v39  ;;  %15631 = vst [vmem:[#allocation16 + $0x68] sm:$0xff] %v15605_v61 }
 0x6e4   :  { %15632 = vst [vmem:[#allocation16 + $0x70] sm:$0xff] %v15606_v40  ;;  %15633 = vst [vmem:[#allocation16 + $0x78] sm:$0xff] %v15607_v49 }
 0x6e5   :  { %15634 = vst [vmem:[#allocation16 + $0x80] sm:$0xff] %v15608_v23  ;;  %15635 = vst [vmem:[#allocation16 + $0x88] sm:$0xff] %v15609_v26 }
 0x6e6   :  { %15636 = vst [vmem:[#allocation16 + $0x90] sm:$0xff] %v15610_v54  ;;  %15637 = vst [vmem:[#allocation16 + $0x98] sm:$0xff] %v15611_v9 }
 0x6e7   :  { %15638 = vst [vmem:[#allocation16 + $0xa0] sm:$0xff] %v15612_v60  ;;  %15639 = vst [vmem:[#allocation16 + $0xa8] sm:$0xff] %v15613_v35 }
 0x6e8   :  { %15640 = vst [vmem:[#allocation16 + $0xb0] sm:$0xff] %v15614_v51  ;;  %15641 = vst [vmem:[#allocation16 + $0xb8] sm:$0xff] %v15615_v16 }
 0x6e9   :  { %15642 = vst [vmem:[#allocation16 + $0xc0] sm:$0x3] %v15616_v2  ;;  %15643 = vst [vmem:[#allocation16 + $0xc8] sm:$0x3] %v15617_v21 }
 0x6ea   :  { %16547 = shalt.err (!%p16544_p11)
}
 0x6eb   :  { %15655 = dma.vmem_to_hbm [thread:$0]  %s15650_s7, 3328, %s20508_s13, [#allocation6], %s16571_s1, %s16571_s1, %s16572_s23  }
 0x6ec   :  { %16564 = dma.done.wait [#allocation6], 3328  }
 0x6ed   :  { %16565 = vsyncadd [#allocation6], 4294963968 }
 0x6ee   :  { %15659 = vsyncpa [#allocation5], 1 }
 0x6ef   :  { %15660 = vsyncpa [#allocation8], 1 }
 0x6f0   :  { %15661 = vsyncpa [#allocation11], 1 }
 0x6f1   :  { %15662 = vsyncpa [#allocation14], 1 }
 0x6f2   :  { %15663 = vsyncpa [#allocation6], 1 }

</bundles_post_ra>
